<compile_context>
chip_gen: v7x
topology: tpu7x:2x2x1
jax: 0.10.0
libtpu: 0.0.40
codegen_flags: <defaults>
</compile_context>

<pallas_src>
import functools
import math

import numpy as np
import jax
import jax.numpy as jnp
from jax import lax
from jax.experimental import pallas as pl
from jax.experimental.pallas import tpu as pltpu


T_PAD = 64      # token axis padded 41 -> 64 (sublane-aligned, lane-aligned scores)
OUT_PAD = 128   # final output channels padded for lane-dense (unmasked) stores


# ---------------------------------------------------------------------------
# In-kernel helpers
# ---------------------------------------------------------------------------
def _gelu_tanh(x):
    # tanh-approx GELU (canonical DiT MLP activation)
    # TODO(synk): PyTorch nn.GELU defaults to the exact erf form; switch if the
    # reference block uses it.
    return 0.5 * x * (1.0 + jnp.tanh(0.7978845608028654 * (x + 0.044715 * x * x * x)))


def _ln_modulate(x, shift, scale):
    # LayerNorm (no affine, eps=1e-6) + adaLN modulation
    mu = jnp.mean(x, axis=-1, keepdims=True)
    var = jnp.mean((x - mu) ** 2, axis=-1, keepdims=True)
    xn = (x - mu) * lax.rsqrt(var + 1e-6)
    return xn * (1.0 + scale) + shift


def _mm(a, w_bf16):
    # MXU matmul: activation cast to bf16, weight pre-cast in wrapper,
    # f32 accumulation (safe on v5e/v6e/v7x).
    return jnp.dot(a.astype(jnp.bfloat16), w_bf16, preferred_element_type=jnp.float32)


# ---------------------------------------------------------------------------
# Single fused kernel: all DiT blocks + final layer for B_BLK batch elements
# ---------------------------------------------------------------------------
def _fused_forward_kernel(num_layers, num_heads,
                          x_ref, mask_ref, mod_ref, fmod_ref,
                          qkv_w_ref, qkv_b_ref, proj_w_ref, proj_b_ref,
                          mlp_w1_ref, mlp_b1_ref, mlp_w2_ref, mlp_b2_ref,
                          flin_w_ref, flin_b_ref, o_ref, attn_ref):
    x3 = x_ref[...]                       # (B_BLK, T_PAD, H) f32
    mask = mask_ref[...]                  # (T_PAD, T_PAD)
    mod_all = mod_ref[...]                # (B_BLK, L, 6, H)
    b_blk, t_pad, H = x3.shape
    Dh = H // num_heads
    BT = b_blk * t_pad

    # Static unroll: num_layers is tiny (L=2).  If L grows beyond a handful,
    # switch to lax.fori_loop with dynamic leading-index weight loads.
    for l in range(num_layers):
        mod = mod_all[:, l]                                # (B_BLK, 6, H)
        shift_msa, scale_msa, gate_msa = mod[:, 0:1], mod[:, 1:2], mod[:, 2:3]
        shift_mlp, scale_mlp, gate_mlp = mod[:, 3:4], mod[:, 4:5], mod[:, 5:6]

        # --- attention branch: adaLN -> fused qkv (whole batch slab) --------
        h3 = _ln_modulate(x3, shift_msa, scale_msa)        # (B_BLK, T_PAD, H)
        qkv = _mm(h3.reshape(BT, H), qkv_w_ref[l]) + qkv_b_ref[l]   # (BT, 3H) f32
        # Q columns were pre-scaled by 1/sqrt(Dh) in the wrapper.

        # --- attention core: per batch element / head (scores per-element) --
        for b in range(b_blk):
            r0 = b * t_pad
            r1 = r0 + t_pad
            for hh in range(num_heads):
                c0 = hh * Dh
                qh = qkv[r0:r1, c0:c0 + Dh]
                kh = qkv[r0:r1, H + c0:H + c0 + Dh]
                vh = qkv[r0:r1, 2 * H + c0:2 * H + c0 + Dh]
                # QK^T without materializing a transpose (contract on Dh axis).
                s = lax.dot_general(qh.astype(jnp.bfloat16), kh.astype(jnp.bfloat16),
                                    (((1,), (1,)), ((), ())),
                                    preferred_element_type=jnp.float32)
                s = s + mask                               # (T_PAD, T_PAD)
                s = s - jnp.max(s, axis=-1, keepdims=True)
                p = jnp.exp(s)
                denom = jnp.sum(p, axis=-1, keepdims=True)
                oh = _mm(p, vh.astype(jnp.bfloat16))       # (T_PAD, Dh)
                # EUP reciprocal; write head output straight into VMEM scratch.
                attn_ref[r0:r1, c0:c0 + Dh] = oh * pl.reciprocal(denom, approx=True)

        # fused proj + gate + residual
        y = _mm(attn_ref[...], proj_w_ref[l]) + proj_b_ref[l]        # (BT, H)
        x3 = x3 + gate_msa * y.reshape(b_blk, t_pad, H)

        # --- MLP branch: adaLN -> linear/GELU -> linear + gate + residual ---
        h3 = _ln_modulate(x3, shift_mlp, scale_mlp)
        m = _gelu_tanh(_mm(h3.reshape(BT, H), mlp_w1_ref[l]) + mlp_b1_ref[l])
        y = _mm(m, mlp_w2_ref[l]) + mlp_b2_ref[l]
        x3 = x3 + gate_mlp * y.reshape(b_blk, t_pad, H)

    # --- final adaLN + linear (output lane-padded to 128) --------------------
    fmod = fmod_ref[...]                                   # (B_BLK, 2, H)
    xf = _ln_modulate(x3, fmod[:, 0:1], fmod[:, 1:2])
    out = _mm(xf.reshape(BT, H), flin_w_ref[...]) + flin_b_ref[...]
    o_ref[...] = out.reshape(b_blk, t_pad, -1).astype(o_ref.dtype)


# ---------------------------------------------------------------------------
# Pure-JAX plumbing (tiny 2-row / 9-dim matmuls intentionally left to XLA)
# ---------------------------------------------------------------------------
def silu(x):
    return x * jax.nn.sigmoid(x)


def timestep_frequency_embedding(t, dim=256, max_period=10000.0):
    half = dim // 2
    freqs = jnp.exp(-math.log(max_period) *
                    jnp.arange(half, dtype=jnp.float32) / half)
    args = t.astype(jnp.float32)[:, None] * freqs[None, :]
    return jnp.concatenate([jnp.cos(args), jnp.sin(args)], axis=-1)


def sinusoidal_pos_table(length, dim):
    pos = np.arange(length, dtype=np.float32)[:, None]
    div = np.exp(np.arange(0, dim, 2, dtype=np.float32) *
                 (-math.log(10000.0) / dim))
    pe = np.zeros((length, dim), dtype=np.float32)
    pe[:, 0::2] = np.sin(pos * div)
    pe[:, 1::2] = np.cos(pos * div)
    return jnp.asarray(pe)


def multistep_pose_noise_forward(params, cfg, ref_link_poses, noisy_poses,
                                 target_pose, mask, t, *, b_blk=2):
    horizon = cfg["horizon"]
    max_dof = cfg["max_dof"]
    H = cfg["hidden_dim"]
    L = cfg["num_layers"]
    num_heads = cfg["num_heads"]
    B = t.shape[0]
    b_blk = max(1, min(b_blk, B))
    B_pad = ((B + b_blk - 1) // b_blk) * b_blk

    # ---- token embedding (tiny 9->H projections + pos-enc): plain XLA ------
    noisy_feat = noisy_poses @ params["noisy_w"] + params["noisy_b"]
    dof_pe = jnp.tile(params["dof_pos_enc"], (horizon, 1))
    noisy_feat = noisy_feat + dof_pe[None]
    hor_idx = jnp.repeat(jnp.arange(horizon), max_dof + 1)
    noisy_feat = noisy_feat + params["hor_embed"][hor_idx][None]

    ref_feat = ref_link_poses @ params["ref_w"] + params["ref_b"]
    tgt_feat = (target_pose @ params["ref_w"] + params["ref_b"])[:, None, :]
    cond = jnp.concatenate([ref_feat, tgt_feat], axis=1)
    cond = cond + params["cond_pos_enc"][:, :cond.shape[1]]

    x = jnp.concatenate([noisy_feat, cond], axis=1)        # (B, T, H)
    T = x.shape[1]
    assert T <= T_PAD
    x_pad = jnp.pad(x, ((0, B_pad - B), (0, T_PAD - T), (0, 0)))

    # ---- padded mask: real rows keep user mask; padded rows attend only self
    #      (keeps a finite entry per row so softmax never produces NaN) -------
    mask_pad = jnp.full((T_PAD, T_PAD), -jnp.inf, jnp.float32)
    mask_pad = mask_pad.at[:T, :T].set(mask)
    pad_ids = jnp.arange(T, T_PAD)
    mask_pad = mask_pad.at[pad_ids, pad_ids].set(0.0)

    # ---- scalar-conditioning path (2-row matmuls): plain XLA ----------------
    temb = timestep_frequency_embedding(t, dim=256)
    c = temb @ params["t_w1"] + params["t_b1"]
    c = silu(c)
    c = c @ params["t_w2"] + params["t_b2"]                # (B, H)
    c_act = silu(c)

    block_mod = jnp.stack(
        [(c_act @ blk["ada_w"] + blk["ada_b"]).reshape(B, 6, H)
         for blk in params["blocks"]], axis=1)             # (B, L, 6, H)
    final_mod = (c_act @ params["f_ada_w"] + params["f_ada_b"]).reshape(B, 2, H)
    block_mod = jnp.pad(block_mod, ((0, B_pad - B), (0, 0), (0, 0), (0, 0)))
    final_mod = jnp.pad(final_mod, ((0, B_pad - B), (0, 0), (0, 0)))

    # ---- stack per-block weights (trace-time), fold attn scale, cast bf16 ---
    inv_sqrt_d = 1.0 / math.sqrt(H // num_heads)
    q_scale = jnp.concatenate([jnp.full((H,), inv_sqrt_d, jnp.float32),
                               jnp.ones((2 * H,), jnp.float32)])
    qkv_w = jnp.stack([b["qkv_w"] for b in params["blocks"]]) * q_scale[None, None, :]
    qkv_b = jnp.stack([b["qkv_b"] for b in params["blocks"]]) * q_scale[None, :]
    qkv_w = qkv_w.astype(jnp.bfloat16)
    qkv_b = qkv_b[:, None, :]                              # (L, 1, 3H) f32
    proj_w = jnp.stack([b["proj_w"] for b in params["blocks"]]).astype(jnp.bfloat16)
    proj_b = jnp.stack([b["proj_b"] for b in params["blocks"]])[:, None, :]
    mlp_w1 = jnp.stack([b["mlp_w1"] for b in params["blocks"]]).astype(jnp.bfloat16)
    mlp_b1 = jnp.stack([b["mlp_b1"] for b in params["blocks"]])[:, None, :]
    mlp_w2 = jnp.stack([b["mlp_w2"] for b in params["blocks"]]).astype(jnp.bfloat16)
    mlp_b2 = jnp.stack([b["mlp_b2"] for b in params["blocks"]])[:, None, :]

    out_dim = params["f_lin_w"].shape[1]
    flin_w = jnp.pad(params["f_lin_w"],
                     ((0, 0), (0, OUT_PAD - out_dim))).astype(jnp.bfloat16)
    flin_b = jnp.pad(params["f_lin_b"], (0, OUT_PAD - out_dim))[None, :]

    kernel = functools.partial(_fused_forward_kernel, L, num_heads)

    def full_spec(shape):
        n = len(shape)
        return pl.BlockSpec(shape, lambda g, _n=n: (0,) * _n)

    out = pl.pallas_call(
        kernel,
        out_shape=jax.ShapeDtypeStruct((B_pad, T_PAD, OUT_PAD), jnp.float32),
        grid=(B_pad // b_blk,),
        in_specs=[
            pl.BlockSpec((b_blk, T_PAD, H), lambda g: (g, 0, 0)),      # x
            pl.BlockSpec((T_PAD, T_PAD), lambda g: (0, 0)),            # mask
            pl.BlockSpec((b_blk, L, 6, H), lambda g: (g, 0, 0, 0)),    # block adaLN
            pl.BlockSpec((b_blk, 2, H), lambda g: (g, 0, 0)),          # final adaLN
            full_spec((L, H, 3 * H)),       # qkv_w   (bf16, Q pre-scaled)
            full_spec((L, 1, 3 * H)),       # qkv_b
            full_spec((L, H, H)),           # proj_w  (bf16)
            full_spec((L, 1, H)),           # proj_b
            full_spec((L, H, 4 * H)),       # mlp_w1  (bf16)
            full_spec((L, 1, 4 * H)),       # mlp_b1
            full_spec((L, 4 * H, H)),       # mlp_w2  (bf16)
            full_spec((L, 1, H)),           # mlp_b2
            full_spec((H, OUT_PAD)),        # final linear w (bf16, lane-padded)
            full_spec((1, OUT_PAD)),        # final linear b
        ],
        out_specs=pl.BlockSpec((b_blk, T_PAD, OUT_PAD), lambda g: (g, 0, 0)),
        scratch_shapes=[pltpu.VMEM((b_blk * T_PAD, H), jnp.float32)],  # attn out
        compiler_params=pltpu.CompilerParams(
            dimension_semantics=("parallel",)),   # v7x: shard grid over both TCs
    )(x_pad, mask_pad, block_mod, final_mod,
      qkv_w, qkv_b, proj_w, proj_b, mlp_w1, mlp_b1, mlp_w2, mlp_b2,
      flin_w, flin_b)

    return out[:B, :T, :out_dim]


# ---------------------------------------------------------------------------
# Deterministic parameter construction (synthetic; not a checkpoint load)
# ---------------------------------------------------------------------------
def init_params(key, cfg, freq_dim=256):
    H = cfg["hidden_dim"]
    horizon = cfg["horizon"]
    max_dof = cfg["max_dof"]
    keys = iter(jax.random.split(key, 64))

    def lin(k, din, dout):
        w = jax.random.normal(k, (din, dout), jnp.float32) / np.sqrt(din)
        b = jnp.zeros((dout,), jnp.float32)
        return w, b

    p = {}
    p["ref_w"], p["ref_b"] = lin(next(keys), 9, H)
    p["noisy_w"], p["noisy_b"] = lin(next(keys), 9, H)
    p["hor_embed"] = 0.02 * jax.random.normal(next(keys), (horizon, H), jnp.float32)
    p["cond_pos_enc"] = 0.02 * jax.random.normal(
        next(keys), (1, max_dof + 2, H), jnp.float32)
    p["dof_pos_enc"] = sinusoidal_pos_table(max_dof + 1, H)
    p["t_w1"], p["t_b1"] = lin(next(keys), freq_dim, H)
    p["t_w2"], p["t_b2"] = lin(next(keys), H, H)

    blocks = []
    for _ in range(cfg["num_layers"]):
        blk = {}
        blk["qkv_w"], blk["qkv_b"] = lin(next(keys), H, 3 * H)
        blk["proj_w"], blk["proj_b"] = lin(next(keys), H, H)
        blk["mlp_w1"], blk["mlp_b1"] = lin(next(keys), H, 4 * H)
        blk["mlp_w2"], blk["mlp_b2"] = lin(next(keys), 4 * H, H)
        blk["ada_w"], blk["ada_b"] = lin(next(keys), H, 6 * H)
        blocks.append(blk)
    p["blocks"] = blocks

    p["f_ada_w"], p["f_ada_b"] = lin(next(keys), H, 2 * H)
    p["f_lin_w"], p["f_lin_b"] = lin(next(keys), H, 9)
    return p


def create_causal_mask(N, Hh):
    neg = -np.inf
    C = np.full((N, N), neg, np.float32)
    for i in range(N):
        C[i, :i + 1] = 0.0
    D = np.full((N, N), neg, np.float32)
    np.fill_diagonal(D, 0.0)
    Fm = np.full((N, N), neg, np.float32)
    M = np.full((Hh * N, Hh * N), neg, np.float32)
    for i in range(Hh):
        M[i * N:(i + 1) * N, i * N:(i + 1) * N] = C
        for j in range(i):
            M[i * N:(i + 1) * N, j * N:(j + 1) * N] = D
        for j in range(i + 1, Hh):
            M[i * N:(i + 1) * N, j * N:(j + 1) * N] = Fm
    return M


# ---------------------------------------------------------------------------
if __name__ == "__main__":
    cfg = dict(hidden_dim=32, num_heads=4, horizon=4, max_dof=7, num_layers=2)
    horizon, max_dof = cfg["horizon"], cfg["max_dof"]
    num_tokens = (max_dof + 1) * (horizon + 1) + 1   # 41
    B = 4          # folded 2-per-grid-step -> 2 grid steps (both v7x TCs busy)

    key = jax.random.PRNGKey(0)
    k_param, k_ref, k_noisy, k_tgt, k_t = jax.random.split(key, 5)
    params = init_params(k_param, cfg)

    ref_link_poses = jax.random.normal(k_ref, (B, max_dof + 1, 9), jnp.float32)
    noisy_poses = jax.random.normal(
        k_noisy, (B, horizon * (max_dof + 1), 9), jnp.float32)
    target_pose = jax.random.normal(k_tgt, (B, 9), jnp.float32)
    t = jax.random.randint(k_t, (B,), 0, 1000).astype(jnp.float32)

    mask_np = np.zeros((num_tokens, num_tokens), dtype=np.float32)
    lim = (max_dof + 1) * horizon
    mask_np[:lim, :lim] = create_causal_mask(max_dof + 1, horizon)
    mask = jnp.asarray(mask_np)

    fwd = jax.jit(lambda p, r, n, tp, m, tt:
                  multistep_pose_noise_forward(p, cfg, r, n, tp, m, tt, b_blk=2))
    out = fwd(params, ref_link_poses, noisy_poses, target_pose, mask, t)
    out = jax.block_until_ready(out)

    assert out.shape == (B, num_tokens, 9), out.shape
    assert bool(jnp.all(jnp.isfinite(out)))
    print("KERNEL_OK")
</pallas_src>

<mosaic_0001>
module attributes {stable_mosaic.version = 11 : i64} {
  func.func @_fused_forward_kernel(%arg0: i32, %arg1: memref<2x64x32xf32, #tpu.memory_space<vmem>>, %arg2: memref<64x64xf32, #tpu.memory_space<vmem>>, %arg3: memref<2x2x6x32xf32, #tpu.memory_space<vmem>>, %arg4: memref<2x2x32xf32, #tpu.memory_space<vmem>>, %arg5: memref<2x32x96xbf16, #tpu.memory_space<vmem>>, %arg6: memref<2x1x96xf32, #tpu.memory_space<vmem>>, %arg7: memref<2x32x32xbf16, #tpu.memory_space<vmem>>, %arg8: memref<2x1x32xf32, #tpu.memory_space<vmem>>, %arg9: memref<2x32x128xbf16, #tpu.memory_space<vmem>>, %arg10: memref<2x1x128xf32, #tpu.memory_space<vmem>>, %arg11: memref<2x128x32xbf16, #tpu.memory_space<vmem>>, %arg12: memref<2x1x32xf32, #tpu.memory_space<vmem>>, %arg13: memref<32x128xbf16, #tpu.memory_space<vmem>>, %arg14: memref<1x128xf32, #tpu.memory_space<vmem>>, %arg15: memref<2x64x128xf32, #tpu.memory_space<vmem>>, %arg16: memref<128x32xf32, #tpu.memory_space<vmem>>) attributes {dimension_semantics = [#tpu.dimension_semantics<parallel>], iteration_bounds = array<i64: 2>, scalar_prefetch = 0 : i64, scratch_operands = 1 : i64, tpu.core_type = #tpu.core_type<tc>, window_params = [{transform_indices = @transform_0, window_bounds = array<i64: 2, 64, 32>}, {pipeline_mode = #tpu.pipeline_mode<synchronous>, transform_indices = @transform_1, window_bounds = array<i64: 64, 64>}, {transform_indices = @transform_2, window_bounds = array<i64: 2, 2, 6, 32>}, {transform_indices = @transform_3, window_bounds = array<i64: 2, 2, 32>}, {pipeline_mode = #tpu.pipeline_mode<synchronous>, transform_indices = @transform_4, window_bounds = array<i64: 2, 32, 96>}, {pipeline_mode = #tpu.pipeline_mode<synchronous>, transform_indices = @transform_5, window_bounds = array<i64: 2, 1, 96>}, {pipeline_mode = #tpu.pipeline_mode<synchronous>, transform_indices = @transform_6, window_bounds = array<i64: 2, 32, 32>}, {pipeline_mode = #tpu.pipeline_mode<synchronous>, transform_indices = @transform_7, window_bounds = array<i64: 2, 1, 32>}, {pipeline_mode = #tpu.pipeline_mode<synchronous>, transform_indices = @transform_8, window_bounds = array<i64: 2, 32, 128>}, {pipeline_mode = #tpu.pipeline_mode<synchronous>, transform_indices = @transform_9, window_bounds = array<i64: 2, 1, 128>}, {pipeline_mode = #tpu.pipeline_mode<synchronous>, transform_indices = @transform_10, window_bounds = array<i64: 2, 128, 32>}, {pipeline_mode = #tpu.pipeline_mode<synchronous>, transform_indices = @transform_11, window_bounds = array<i64: 2, 1, 32>}, {pipeline_mode = #tpu.pipeline_mode<synchronous>, transform_indices = @transform_12, window_bounds = array<i64: 32, 128>}, {pipeline_mode = #tpu.pipeline_mode<synchronous>, transform_indices = @transform_13, window_bounds = array<i64: 1, 128>}, {transform_indices = @transform_14, window_bounds = array<i64: 2, 64, 128>}]} {
    %c0 = arith.constant 0 : index
    %c0_0 = arith.constant 0 : index
    %c0_1 = arith.constant 0 : index
    %0 = vector.load %arg1[%c0, %c0_0, %c0_1] : memref<2x64x32xf32, #tpu.memory_space<vmem>>, vector<2x64x32xf32>
    %c0_2 = arith.constant 0 : index
    %c0_3 = arith.constant 0 : index
    %1 = vector.load %arg2[%c0_2, %c0_3] : memref<64x64xf32, #tpu.memory_space<vmem>>, vector<64x64xf32>
    %c0_4 = arith.constant 0 : index
    %c0_5 = arith.constant 0 : index
    %c0_6 = arith.constant 0 : index
    %c0_7 = arith.constant 0 : index
    %2 = vector.load %arg3[%c0_4, %c0_5, %c0_6, %c0_7] : memref<2x2x6x32xf32, #tpu.memory_space<vmem>>, vector<2x2x6x32xf32>
    %3 = vector.extract_strided_slice %2 {offsets = [0, 0, 0, 0], sizes = [2, 1, 6, 32], strides = [1, 1, 1, 1]} : vector<2x2x6x32xf32> to vector<2x1x6x32xf32>
    %4 = vector.shape_cast %3 : vector<2x1x6x32xf32> to vector<2x6x32xf32>
    %5 = vector.extract_strided_slice %4 {offsets = [0, 0, 0], sizes = [2, 1, 32], strides = [1, 1, 1]} : vector<2x6x32xf32> to vector<2x1x32xf32>
    %6 = vector.extract_strided_slice %4 {offsets = [0, 1, 0], sizes = [2, 1, 32], strides = [1, 1, 1]} : vector<2x6x32xf32> to vector<2x1x32xf32>
    %7 = vector.extract_strided_slice %4 {offsets = [0, 2, 0], sizes = [2, 1, 32], strides = [1, 1, 1]} : vector<2x6x32xf32> to vector<2x1x32xf32>
    %8 = vector.extract_strided_slice %4 {offsets = [0, 3, 0], sizes = [2, 1, 32], strides = [1, 1, 1]} : vector<2x6x32xf32> to vector<2x1x32xf32>
    %9 = vector.extract_strided_slice %4 {offsets = [0, 4, 0], sizes = [2, 1, 32], strides = [1, 1, 1]} : vector<2x6x32xf32> to vector<2x1x32xf32>
    %10 = vector.extract_strided_slice %4 {offsets = [0, 5, 0], sizes = [2, 1, 32], strides = [1, 1, 1]} : vector<2x6x32xf32> to vector<2x1x32xf32>
    %cst = arith.constant dense<0.000000e+00> : vector<2x64xf32>
    %11 = vector.multi_reduction <add>, %0, %cst [2] : vector<2x64x32xf32> to vector<2x64xf32>
    %12 = vector.shape_cast %11 : vector<2x64xf32> to vector<2x64x1xf32>
    %cst_8 = arith.constant 3.200000e+01 : f32
    %13 = vector.broadcast %cst_8 : f32 to vector<2x64x1xf32>
    %14 = arith.divf %12, %13 : vector<2x64x1xf32>
    %15 = vector.broadcast %14 : vector<2x64x1xf32> to vector<2x64x32xf32>
    %16 = arith.subf %0, %15 : vector<2x64x32xf32>
    %17 = arith.mulf %16, %16 : vector<2x64x32xf32>
    %cst_9 = arith.constant dense<0.000000e+00> : vector<2x64xf32>
    %18 = vector.multi_reduction <add>, %17, %cst_9 [2] : vector<2x64x32xf32> to vector<2x64xf32>
    %19 = vector.shape_cast %18 : vector<2x64xf32> to vector<2x64x1xf32>
    %cst_10 = arith.constant 3.200000e+01 : f32
    %20 = vector.broadcast %cst_10 : f32 to vector<2x64x1xf32>
    %21 = arith.divf %19, %20 : vector<2x64x1xf32>
    %22 = vector.broadcast %14 : vector<2x64x1xf32> to vector<2x64x32xf32>
    %23 = arith.subf %0, %22 : vector<2x64x32xf32>
    %cst_11 = arith.constant 9.99999997E-7 : f32
    %24 = vector.broadcast %cst_11 : f32 to vector<2x64x1xf32>
    %25 = arith.addf %21, %24 : vector<2x64x1xf32>
    %26 = math.rsqrt %25 : vector<2x64x1xf32>
    %27 = vector.broadcast %26 : vector<2x64x1xf32> to vector<2x64x32xf32>
    %28 = arith.mulf %23, %27 : vector<2x64x32xf32>
    %cst_12 = arith.constant 1.000000e+00 : f32
    %29 = vector.broadcast %cst_12 : f32 to vector<2x1x32xf32>
    %30 = arith.addf %29, %6 : vector<2x1x32xf32>
    %31 = vector.broadcast %30 : vector<2x1x32xf32> to vector<2x64x32xf32>
    %32 = arith.mulf %28, %31 : vector<2x64x32xf32>
    %33 = vector.broadcast %5 : vector<2x1x32xf32> to vector<2x64x32xf32>
    %34 = arith.addf %32, %33 : vector<2x64x32xf32>
    %35 = vector.shape_cast %34 : vector<2x64x32xf32> to vector<128x32xf32>
    %c0_13 = arith.constant 0 : index
    %c0_14 = arith.constant 0 : index
    %c0_15 = arith.constant 0 : index
    %36 = vector.load %arg5[%c0_13, %c0_14, %c0_15] : memref<2x32x96xbf16, #tpu.memory_space<vmem>>, vector<1x32x96xbf16>
    %37 = vector.shape_cast %36 : vector<1x32x96xbf16> to vector<32x96xbf16>
    %38 = arith.truncf %35 : vector<128x32xf32> to vector<128x32xbf16>
    %cst_16 = arith.constant dense<0.000000e+00> : vector<128x96xf32>
    %39 = tpu.matmul %38, %37, %cst_16 {dimension_numbers = #tpu.dot_dimension_numbers<[1], [0], [0], [1], [0, 0, 1, 1], [], []>} : vector<128x32xbf16>, vector<32x96xbf16>, vector<128x96xf32> -> vector<128x96xf32>
    %c0_17 = arith.constant 0 : index
    %c0_18 = arith.constant 0 : index
    %c0_19 = arith.constant 0 : index
    %40 = vector.load %arg6[%c0_17, %c0_18, %c0_19] : memref<2x1x96xf32, #tpu.memory_space<vmem>>, vector<1x1x96xf32>
    %41 = vector.shape_cast %40 : vector<1x1x96xf32> to vector<1x96xf32>
    %42 = vector.broadcast %41 : vector<1x96xf32> to vector<128x96xf32>
    %43 = arith.addf %39, %42 : vector<128x96xf32>
    %44 = vector.extract_strided_slice %43 {offsets = [0, 0], sizes = [64, 8], strides = [1, 1]} : vector<128x96xf32> to vector<64x8xf32>
    %45 = vector.extract_strided_slice %43 {offsets = [0, 32], sizes = [64, 8], strides = [1, 1]} : vector<128x96xf32> to vector<64x8xf32>
    %46 = vector.extract_strided_slice %43 {offsets = [0, 64], sizes = [64, 8], strides = [1, 1]} : vector<128x96xf32> to vector<64x8xf32>
    %47 = arith.truncf %44 : vector<64x8xf32> to vector<64x8xbf16>
    %48 = arith.truncf %45 : vector<64x8xf32> to vector<64x8xbf16>
    %cst_20 = arith.constant dense<0.000000e+00> : vector<64x64xf32>
    %49 = tpu.matmul %47, %48, %cst_20 {dimension_numbers = #tpu.dot_dimension_numbers<[1], [1], [0], [0], [0, 0, 1, 0], [], []>} : vector<64x8xbf16>, vector<64x8xbf16>, vector<64x64xf32> -> vector<64x64xf32>
    %50 = arith.addf %49, %1 : vector<64x64xf32>
    %cst_21 = arith.constant dense<0xFF800000> : vector<64xf32>
    %51 = vector.multi_reduction <maximumf>, %50, %cst_21 [1] : vector<64x64xf32> to vector<64xf32>
    %52 = vector.shape_cast %51 : vector<64xf32> to vector<64x1xf32>
    %53 = vector.broadcast %52 : vector<64x1xf32> to vector<64x64xf32>
    %54 = arith.subf %50, %53 : vector<64x64xf32>
    %55 = math.exp %54 : vector<64x64xf32>
    %cst_22 = arith.constant dense<0.000000e+00> : vector<64xf32>
    %56 = vector.multi_reduction <add>, %55, %cst_22 [1] : vector<64x64xf32> to vector<64xf32>
    %57 = vector.shape_cast %56 : vector<64xf32> to vector<64x1xf32>
    %58 = arith.truncf %46 : vector<64x8xf32> to vector<64x8xbf16>
    %59 = arith.truncf %55 : vector<64x64xf32> to vector<64x64xbf16>
    %cst_23 = arith.constant dense<0.000000e+00> : vector<64x8xf32>
    %60 = tpu.matmul %59, %58, %cst_23 {dimension_numbers = #tpu.dot_dimension_numbers<[1], [0], [0], [1], [0, 0, 1, 1], [], []>} : vector<64x64xbf16>, vector<64x8xbf16>, vector<64x8xf32> -> vector<64x8xf32>
    %61 = tpu.reciprocal %57 {approx = true} : vector<64x1xf32> -> vector<64x1xf32>
    %62 = vector.broadcast %61 : vector<64x1xf32> to vector<64x8xf32>
    %63 = arith.mulf %60, %62 : vector<64x8xf32>
    %c0_24 = arith.constant 0 : index
    %c0_25 = arith.constant 0 : index
    %64 = vector.load %arg16[%c0_24, %c0_25] : memref<128x32xf32, #tpu.memory_space<vmem>>, vector<64x8xf32>
    tpu.vector_store %arg16[%c0_24, %c0_25], %63 {strides = array<i32>} : memref<128x32xf32, #tpu.memory_space<vmem>>, vector<64x8xf32>,
    %65 = vector.extract_strided_slice %43 {offsets = [0, 8], sizes = [64, 8], strides = [1, 1]} : vector<128x96xf32> to vector<64x8xf32>
    %66 = vector.extract_strided_slice %43 {offsets = [0, 40], sizes = [64, 8], strides = [1, 1]} : vector<128x96xf32> to vector<64x8xf32>
    %67 = vector.extract_strided_slice %43 {offsets = [0, 72], sizes = [64, 8], strides = [1, 1]} : vector<128x96xf32> to vector<64x8xf32>
    %68 = arith.truncf %65 : vector<64x8xf32> to vector<64x8xbf16>
    %69 = arith.truncf %66 : vector<64x8xf32> to vector<64x8xbf16>
    %cst_26 = arith.constant dense<0.000000e+00> : vector<64x64xf32>
    %70 = tpu.matmul %68, %69, %cst_26 {dimension_numbers = #tpu.dot_dimension_numbers<[1], [1], [0], [0], [0, 0, 1, 0], [], []>} : vector<64x8xbf16>, vector<64x8xbf16>, vector<64x64xf32> -> vector<64x64xf32>
    %71 = arith.addf %70, %1 : vector<64x64xf32>
    %cst_27 = arith.constant dense<0xFF800000> : vector<64xf32>
    %72 = vector.multi_reduction <maximumf>, %71, %cst_27 [1] : vector<64x64xf32> to vector<64xf32>
    %73 = vector.shape_cast %72 : vector<64xf32> to vector<64x1xf32>
    %74 = vector.broadcast %73 : vector<64x1xf32> to vector<64x64xf32>
    %75 = arith.subf %71, %74 : vector<64x64xf32>
    %76 = math.exp %75 : vector<64x64xf32>
    %cst_28 = arith.constant dense<0.000000e+00> : vector<64xf32>
    %77 = vector.multi_reduction <add>, %76, %cst_28 [1] : vector<64x64xf32> to vector<64xf32>
    %78 = vector.shape_cast %77 : vector<64xf32> to vector<64x1xf32>
    %79 = arith.truncf %67 : vector<64x8xf32> to vector<64x8xbf16>
    %80 = arith.truncf %76 : vector<64x64xf32> to vector<64x64xbf16>
    %cst_29 = arith.constant dense<0.000000e+00> : vector<64x8xf32>
    %81 = tpu.matmul %80, %79, %cst_29 {dimension_numbers = #tpu.dot_dimension_numbers<[1], [0], [0], [1], [0, 0, 1, 1], [], []>} : vector<64x64xbf16>, vector<64x8xbf16>, vector<64x8xf32> -> vector<64x8xf32>
    %82 = tpu.reciprocal %78 {approx = true} : vector<64x1xf32> -> vector<64x1xf32>
    %83 = vector.broadcast %82 : vector<64x1xf32> to vector<64x8xf32>
    %84 = arith.mulf %81, %83 : vector<64x8xf32>
    %c0_30 = arith.constant 0 : index
    %c8 = arith.constant 8 : index
    %85 = vector.load %arg16[%c0_30, %c8] : memref<128x32xf32, #tpu.memory_space<vmem>>, vector<64x8xf32>
    tpu.vector_store %arg16[%c0_30, %c8], %84 {strides = array<i32>} : memref<128x32xf32, #tpu.memory_space<vmem>>, vector<64x8xf32>,
    %86 = vector.extract_strided_slice %43 {offsets = [0, 16], sizes = [64, 8], strides = [1, 1]} : vector<128x96xf32> to vector<64x8xf32>
    %87 = vector.extract_strided_slice %43 {offsets = [0, 48], sizes = [64, 8], strides = [1, 1]} : vector<128x96xf32> to vector<64x8xf32>
    %88 = vector.extract_strided_slice %43 {offsets = [0, 80], sizes = [64, 8], strides = [1, 1]} : vector<128x96xf32> to vector<64x8xf32>
    %89 = arith.truncf %86 : vector<64x8xf32> to vector<64x8xbf16>
    %90 = arith.truncf %87 : vector<64x8xf32> to vector<64x8xbf16>
    %cst_31 = arith.constant dense<0.000000e+00> : vector<64x64xf32>
    %91 = tpu.matmul %89, %90, %cst_31 {dimension_numbers = #tpu.dot_dimension_numbers<[1], [1], [0], [0], [0, 0, 1, 0], [], []>} : vector<64x8xbf16>, vector<64x8xbf16>, vector<64x64xf32> -> vector<64x64xf32>
    %92 = arith.addf %91, %1 : vector<64x64xf32>
    %cst_32 = arith.constant dense<0xFF800000> : vector<64xf32>
    %93 = vector.multi_reduction <maximumf>, %92, %cst_32 [1] : vector<64x64xf32> to vector<64xf32>
    %94 = vector.shape_cast %93 : vector<64xf32> to vector<64x1xf32>
    %95 = vector.broadcast %94 : vector<64x1xf32> to vector<64x64xf32>
    %96 = arith.subf %92, %95 : vector<64x64xf32>
    %97 = math.exp %96 : vector<64x64xf32>
    %cst_33 = arith.constant dense<0.000000e+00> : vector<64xf32>
    %98 = vector.multi_reduction <add>, %97, %cst_33 [1] : vector<64x64xf32> to vector<64xf32>
    %99 = vector.shape_cast %98 : vector<64xf32> to vector<64x1xf32>
    %100 = arith.truncf %88 : vector<64x8xf32> to vector<64x8xbf16>
    %101 = arith.truncf %97 : vector<64x64xf32> to vector<64x64xbf16>
    %cst_34 = arith.constant dense<0.000000e+00> : vector<64x8xf32>
    %102 = tpu.matmul %101, %100, %cst_34 {dimension_numbers = #tpu.dot_dimension_numbers<[1], [0], [0], [1], [0, 0, 1, 1], [], []>} : vector<64x64xbf16>, vector<64x8xbf16>, vector<64x8xf32> -> vector<64x8xf32>
    %103 = tpu.reciprocal %99 {approx = true} : vector<64x1xf32> -> vector<64x1xf32>
    %104 = vector.broadcast %103 : vector<64x1xf32> to vector<64x8xf32>
    %105 = arith.mulf %102, %104 : vector<64x8xf32>
    %c0_35 = arith.constant 0 : index
    %c16 = arith.constant 16 : index
    %106 = vector.load %arg16[%c0_35, %c16] : memref<128x32xf32, #tpu.memory_space<vmem>>, vector<64x8xf32>
    tpu.vector_store %arg16[%c0_35, %c16], %105 {strides = array<i32>} : memref<128x32xf32, #tpu.memory_space<vmem>>, vector<64x8xf32>,
    %107 = vector.extract_strided_slice %43 {offsets = [0, 24], sizes = [64, 8], strides = [1, 1]} : vector<128x96xf32> to vector<64x8xf32>
    %108 = vector.extract_strided_slice %43 {offsets = [0, 56], sizes = [64, 8], strides = [1, 1]} : vector<128x96xf32> to vector<64x8xf32>
    %109 = vector.extract_strided_slice %43 {offsets = [0, 88], sizes = [64, 8], strides = [1, 1]} : vector<128x96xf32> to vector<64x8xf32>
    %110 = arith.truncf %107 : vector<64x8xf32> to vector<64x8xbf16>
    %111 = arith.truncf %108 : vector<64x8xf32> to vector<64x8xbf16>
    %cst_36 = arith.constant dense<0.000000e+00> : vector<64x64xf32>
    %112 = tpu.matmul %110, %111, %cst_36 {dimension_numbers = #tpu.dot_dimension_numbers<[1], [1], [0], [0], [0, 0, 1, 0], [], []>} : vector<64x8xbf16>, vector<64x8xbf16>, vector<64x64xf32> -> vector<64x64xf32>
    %113 = arith.addf %112, %1 : vector<64x64xf32>
    %cst_37 = arith.constant dense<0xFF800000> : vector<64xf32>
    %114 = vector.multi_reduction <maximumf>, %113, %cst_37 [1] : vector<64x64xf32> to vector<64xf32>
    %115 = vector.shape_cast %114 : vector<64xf32> to vector<64x1xf32>
    %116 = vector.broadcast %115 : vector<64x1xf32> to vector<64x64xf32>
    %117 = arith.subf %113, %116 : vector<64x64xf32>
    %118 = math.exp %117 : vector<64x64xf32>
    %cst_38 = arith.constant dense<0.000000e+00> : vector<64xf32>
    %119 = vector.multi_reduction <add>, %118, %cst_38 [1] : vector<64x64xf32> to vector<64xf32>
    %120 = vector.shape_cast %119 : vector<64xf32> to vector<64x1xf32>
    %121 = arith.truncf %109 : vector<64x8xf32> to vector<64x8xbf16>
    %122 = arith.truncf %118 : vector<64x64xf32> to vector<64x64xbf16>
    %cst_39 = arith.constant dense<0.000000e+00> : vector<64x8xf32>
    %123 = tpu.matmul %122, %121, %cst_39 {dimension_numbers = #tpu.dot_dimension_numbers<[1], [0], [0], [1], [0, 0, 1, 1], [], []>} : vector<64x64xbf16>, vector<64x8xbf16>, vector<64x8xf32> -> vector<64x8xf32>
    %124 = tpu.reciprocal %120 {approx = true} : vector<64x1xf32> -> vector<64x1xf32>
    %125 = vector.broadcast %124 : vector<64x1xf32> to vector<64x8xf32>
    %126 = arith.mulf %123, %125 : vector<64x8xf32>
    %c0_40 = arith.constant 0 : index
    %c24 = arith.constant 24 : index
    %127 = vector.load %arg16[%c0_40, %c24] : memref<128x32xf32, #tpu.memory_space<vmem>>, vector<64x8xf32>
    tpu.vector_store %arg16[%c0_40, %c24], %126 {strides = array<i32>} : memref<128x32xf32, #tpu.memory_space<vmem>>, vector<64x8xf32>,
    %128 = vector.extract_strided_slice %43 {offsets = [64, 0], sizes = [64, 8], strides = [1, 1]} : vector<128x96xf32> to vector<64x8xf32>
    %129 = vector.extract_strided_slice %43 {offsets = [64, 32], sizes = [64, 8], strides = [1, 1]} : vector<128x96xf32> to vector<64x8xf32>
    %130 = vector.extract_strided_slice %43 {offsets = [64, 64], sizes = [64, 8], strides = [1, 1]} : vector<128x96xf32> to vector<64x8xf32>
    %131 = arith.truncf %128 : vector<64x8xf32> to vector<64x8xbf16>
    %132 = arith.truncf %129 : vector<64x8xf32> to vector<64x8xbf16>
    %cst_41 = arith.constant dense<0.000000e+00> : vector<64x64xf32>
    %133 = tpu.matmul %131, %132, %cst_41 {dimension_numbers = #tpu.dot_dimension_numbers<[1], [1], [0], [0], [0, 0, 1, 0], [], []>} : vector<64x8xbf16>, vector<64x8xbf16>, vector<64x64xf32> -> vector<64x64xf32>
    %134 = arith.addf %133, %1 : vector<64x64xf32>
    %cst_42 = arith.constant dense<0xFF800000> : vector<64xf32>
    %135 = vector.multi_reduction <maximumf>, %134, %cst_42 [1] : vector<64x64xf32> to vector<64xf32>
    %136 = vector.shape_cast %135 : vector<64xf32> to vector<64x1xf32>
    %137 = vector.broadcast %136 : vector<64x1xf32> to vector<64x64xf32>
    %138 = arith.subf %134, %137 : vector<64x64xf32>
    %139 = math.exp %138 : vector<64x64xf32>
    %cst_43 = arith.constant dense<0.000000e+00> : vector<64xf32>
    %140 = vector.multi_reduction <add>, %139, %cst_43 [1] : vector<64x64xf32> to vector<64xf32>
    %141 = vector.shape_cast %140 : vector<64xf32> to vector<64x1xf32>
    %142 = arith.truncf %130 : vector<64x8xf32> to vector<64x8xbf16>
    %143 = arith.truncf %139 : vector<64x64xf32> to vector<64x64xbf16>
    %cst_44 = arith.constant dense<0.000000e+00> : vector<64x8xf32>
    %144 = tpu.matmul %143, %142, %cst_44 {dimension_numbers = #tpu.dot_dimension_numbers<[1], [0], [0], [1], [0, 0, 1, 1], [], []>} : vector<64x64xbf16>, vector<64x8xbf16>, vector<64x8xf32> -> vector<64x8xf32>
    %145 = tpu.reciprocal %141 {approx = true} : vector<64x1xf32> -> vector<64x1xf32>
    %146 = vector.broadcast %145 : vector<64x1xf32> to vector<64x8xf32>
    %147 = arith.mulf %144, %146 : vector<64x8xf32>
    %c64 = arith.constant 64 : index
    %c0_45 = arith.constant 0 : index
    %148 = vector.load %arg16[%c64, %c0_45] : memref<128x32xf32, #tpu.memory_space<vmem>>, vector<64x8xf32>
    tpu.vector_store %arg16[%c64, %c0_45], %147 {strides = array<i32>} : memref<128x32xf32, #tpu.memory_space<vmem>>, vector<64x8xf32>,
    %149 = vector.extract_strided_slice %43 {offsets = [64, 8], sizes = [64, 8], strides = [1, 1]} : vector<128x96xf32> to vector<64x8xf32>
    %150 = vector.extract_strided_slice %43 {offsets = [64, 40], sizes = [64, 8], strides = [1, 1]} : vector<128x96xf32> to vector<64x8xf32>
    %151 = vector.extract_strided_slice %43 {offsets = [64, 72], sizes = [64, 8], strides = [1, 1]} : vector<128x96xf32> to vector<64x8xf32>
    %152 = arith.truncf %149 : vector<64x8xf32> to vector<64x8xbf16>
    %153 = arith.truncf %150 : vector<64x8xf32> to vector<64x8xbf16>
    %cst_46 = arith.constant dense<0.000000e+00> : vector<64x64xf32>
    %154 = tpu.matmul %152, %153, %cst_46 {dimension_numbers = #tpu.dot_dimension_numbers<[1], [1], [0], [0], [0, 0, 1, 0], [], []>} : vector<64x8xbf16>, vector<64x8xbf16>, vector<64x64xf32> -> vector<64x64xf32>
    %155 = arith.addf %154, %1 : vector<64x64xf32>
    %cst_47 = arith.constant dense<0xFF800000> : vector<64xf32>
    %156 = vector.multi_reduction <maximumf>, %155, %cst_47 [1] : vector<64x64xf32> to vector<64xf32>
    %157 = vector.shape_cast %156 : vector<64xf32> to vector<64x1xf32>
    %158 = vector.broadcast %157 : vector<64x1xf32> to vector<64x64xf32>
    %159 = arith.subf %155, %158 : vector<64x64xf32>
    %160 = math.exp %159 : vector<64x64xf32>
    %cst_48 = arith.constant dense<0.000000e+00> : vector<64xf32>
    %161 = vector.multi_reduction <add>, %160, %cst_48 [1] : vector<64x64xf32> to vector<64xf32>
    %162 = vector.shape_cast %161 : vector<64xf32> to vector<64x1xf32>
    %163 = arith.truncf %151 : vector<64x8xf32> to vector<64x8xbf16>
    %164 = arith.truncf %160 : vector<64x64xf32> to vector<64x64xbf16>
    %cst_49 = arith.constant dense<0.000000e+00> : vector<64x8xf32>
    %165 = tpu.matmul %164, %163, %cst_49 {dimension_numbers = #tpu.dot_dimension_numbers<[1], [0], [0], [1], [0, 0, 1, 1], [], []>} : vector<64x64xbf16>, vector<64x8xbf16>, vector<64x8xf32> -> vector<64x8xf32>
    %166 = tpu.reciprocal %162 {approx = true} : vector<64x1xf32> -> vector<64x1xf32>
    %167 = vector.broadcast %166 : vector<64x1xf32> to vector<64x8xf32>
    %168 = arith.mulf %165, %167 : vector<64x8xf32>
    %c64_50 = arith.constant 64 : index
    %c8_51 = arith.constant 8 : index
    %169 = vector.load %arg16[%c64_50, %c8_51] : memref<128x32xf32, #tpu.memory_space<vmem>>, vector<64x8xf32>
    tpu.vector_store %arg16[%c64_50, %c8_51], %168 {strides = array<i32>} : memref<128x32xf32, #tpu.memory_space<vmem>>, vector<64x8xf32>,
    %170 = vector.extract_strided_slice %43 {offsets = [64, 16], sizes = [64, 8], strides = [1, 1]} : vector<128x96xf32> to vector<64x8xf32>
    %171 = vector.extract_strided_slice %43 {offsets = [64, 48], sizes = [64, 8], strides = [1, 1]} : vector<128x96xf32> to vector<64x8xf32>
    %172 = vector.extract_strided_slice %43 {offsets = [64, 80], sizes = [64, 8], strides = [1, 1]} : vector<128x96xf32> to vector<64x8xf32>
    %173 = arith.truncf %170 : vector<64x8xf32> to vector<64x8xbf16>
    %174 = arith.truncf %171 : vector<64x8xf32> to vector<64x8xbf16>
    %cst_52 = arith.constant dense<0.000000e+00> : vector<64x64xf32>
    %175 = tpu.matmul %173, %174, %cst_52 {dimension_numbers = #tpu.dot_dimension_numbers<[1], [1], [0], [0], [0, 0, 1, 0], [], []>} : vector<64x8xbf16>, vector<64x8xbf16>, vector<64x64xf32> -> vector<64x64xf32>
    %176 = arith.addf %175, %1 : vector<64x64xf32>
    %cst_53 = arith.constant dense<0xFF800000> : vector<64xf32>
    %177 = vector.multi_reduction <maximumf>, %176, %cst_53 [1] : vector<64x64xf32> to vector<64xf32>
    %178 = vector.shape_cast %177 : vector<64xf32> to vector<64x1xf32>
    %179 = vector.broadcast %178 : vector<64x1xf32> to vector<64x64xf32>
    %180 = arith.subf %176, %179 : vector<64x64xf32>
    %181 = math.exp %180 : vector<64x64xf32>
    %cst_54 = arith.constant dense<0.000000e+00> : vector<64xf32>
    %182 = vector.multi_reduction <add>, %181, %cst_54 [1] : vector<64x64xf32> to vector<64xf32>
    %183 = vector.shape_cast %182 : vector<64xf32> to vector<64x1xf32>
    %184 = arith.truncf %172 : vector<64x8xf32> to vector<64x8xbf16>
    %185 = arith.truncf %181 : vector<64x64xf32> to vector<64x64xbf16>
    %cst_55 = arith.constant dense<0.000000e+00> : vector<64x8xf32>
    %186 = tpu.matmul %185, %184, %cst_55 {dimension_numbers = #tpu.dot_dimension_numbers<[1], [0], [0], [1], [0, 0, 1, 1], [], []>} : vector<64x64xbf16>, vector<64x8xbf16>, vector<64x8xf32> -> vector<64x8xf32>
    %187 = tpu.reciprocal %183 {approx = true} : vector<64x1xf32> -> vector<64x1xf32>
    %188 = vector.broadcast %187 : vector<64x1xf32> to vector<64x8xf32>
    %189 = arith.mulf %186, %188 : vector<64x8xf32>
    %c64_56 = arith.constant 64 : index
    %c16_57 = arith.constant 16 : index
    %190 = vector.load %arg16[%c64_56, %c16_57] : memref<128x32xf32, #tpu.memory_space<vmem>>, vector<64x8xf32>
    tpu.vector_store %arg16[%c64_56, %c16_57], %189 {strides = array<i32>} : memref<128x32xf32, #tpu.memory_space<vmem>>, vector<64x8xf32>,
    %191 = vector.extract_strided_slice %43 {offsets = [64, 24], sizes = [64, 8], strides = [1, 1]} : vector<128x96xf32> to vector<64x8xf32>
    %192 = vector.extract_strided_slice %43 {offsets = [64, 56], sizes = [64, 8], strides = [1, 1]} : vector<128x96xf32> to vector<64x8xf32>
    %193 = vector.extract_strided_slice %43 {offsets = [64, 88], sizes = [64, 8], strides = [1, 1]} : vector<128x96xf32> to vector<64x8xf32>
    %194 = arith.truncf %191 : vector<64x8xf32> to vector<64x8xbf16>
    %195 = arith.truncf %192 : vector<64x8xf32> to vector<64x8xbf16>
    %cst_58 = arith.constant dense<0.000000e+00> : vector<64x64xf32>
    %196 = tpu.matmul %194, %195, %cst_58 {dimension_numbers = #tpu.dot_dimension_numbers<[1], [1], [0], [0], [0, 0, 1, 0], [], []>} : vector<64x8xbf16>, vector<64x8xbf16>, vector<64x64xf32> -> vector<64x64xf32>
    %197 = arith.addf %196, %1 : vector<64x64xf32>
    %cst_59 = arith.constant dense<0xFF800000> : vector<64xf32>
    %198 = vector.multi_reduction <maximumf>, %197, %cst_59 [1] : vector<64x64xf32> to vector<64xf32>
    %199 = vector.shape_cast %198 : vector<64xf32> to vector<64x1xf32>
    %200 = vector.broadcast %199 : vector<64x1xf32> to vector<64x64xf32>
    %201 = arith.subf %197, %200 : vector<64x64xf32>
    %202 = math.exp %201 : vector<64x64xf32>
    %cst_60 = arith.constant dense<0.000000e+00> : vector<64xf32>
    %203 = vector.multi_reduction <add>, %202, %cst_60 [1] : vector<64x64xf32> to vector<64xf32>
    %204 = vector.shape_cast %203 : vector<64xf32> to vector<64x1xf32>
    %205 = arith.truncf %193 : vector<64x8xf32> to vector<64x8xbf16>
    %206 = arith.truncf %202 : vector<64x64xf32> to vector<64x64xbf16>
    %cst_61 = arith.constant dense<0.000000e+00> : vector<64x8xf32>
    %207 = tpu.matmul %206, %205, %cst_61 {dimension_numbers = #tpu.dot_dimension_numbers<[1], [0], [0], [1], [0, 0, 1, 1], [], []>} : vector<64x64xbf16>, vector<64x8xbf16>, vector<64x8xf32> -> vector<64x8xf32>
    %208 = tpu.reciprocal %204 {approx = true} : vector<64x1xf32> -> vector<64x1xf32>
    %209 = vector.broadcast %208 : vector<64x1xf32> to vector<64x8xf32>
    %210 = arith.mulf %207, %209 : vector<64x8xf32>
    %c64_62 = arith.constant 64 : index
    %c24_63 = arith.constant 24 : index
    %211 = vector.load %arg16[%c64_62, %c24_63] : memref<128x32xf32, #tpu.memory_space<vmem>>, vector<64x8xf32>
    tpu.vector_store %arg16[%c64_62, %c24_63], %210 {strides = array<i32>} : memref<128x32xf32, #tpu.memory_space<vmem>>, vector<64x8xf32>,
    %c0_64 = arith.constant 0 : index
    %c0_65 = arith.constant 0 : index
    %212 = vector.load %arg16[%c0_64, %c0_65] : memref<128x32xf32, #tpu.memory_space<vmem>>, vector<128x32xf32>
    %c0_66 = arith.constant 0 : index
    %c0_67 = arith.constant 0 : index
    %c0_68 = arith.constant 0 : index
    %213 = vector.load %arg7[%c0_66, %c0_67, %c0_68] : memref<2x32x32xbf16, #tpu.memory_space<vmem>>, vector<1x32x32xbf16>
    %214 = vector.shape_cast %213 : vector<1x32x32xbf16> to vector<32x32xbf16>
    %215 = arith.truncf %212 : vector<128x32xf32> to vector<128x32xbf16>
    %cst_69 = arith.constant dense<0.000000e+00> : vector<128x32xf32>
    %216 = tpu.matmul %215, %214, %cst_69 {dimension_numbers = #tpu.dot_dimension_numbers<[1], [0], [0], [1], [0, 0, 1, 1], [], []>} : vector<128x32xbf16>, vector<32x32xbf16>, vector<128x32xf32> -> vector<128x32xf32>
    %c0_70 = arith.constant 0 : index
    %c0_71 = arith.constant 0 : index
    %c0_72 = arith.constant 0 : index
    %217 = vector.load %arg8[%c0_70, %c0_71, %c0_72] : memref<2x1x32xf32, #tpu.memory_space<vmem>>, vector<1x1x32xf32>
    %218 = vector.shape_cast %217 : vector<1x1x32xf32> to vector<1x32xf32>
    %219 = vector.broadcast %218 : vector<1x32xf32> to vector<128x32xf32>
    %220 = arith.addf %216, %219 : vector<128x32xf32>
    %221 = vector.shape_cast %220 : vector<128x32xf32> to vector<2x64x32xf32>
    %222 = vector.broadcast %7 : vector<2x1x32xf32> to vector<2x64x32xf32>
    %223 = arith.mulf %222, %221 : vector<2x64x32xf32>
    %224 = arith.addf %0, %223 : vector<2x64x32xf32>
    %cst_73 = arith.constant dense<0.000000e+00> : vector<2x64xf32>
    %225 = vector.multi_reduction <add>, %224, %cst_73 [2] : vector<2x64x32xf32> to vector<2x64xf32>
    %226 = vector.shape_cast %225 : vector<2x64xf32> to vector<2x64x1xf32>
    %cst_74 = arith.constant 3.200000e+01 : f32
    %227 = vector.broadcast %cst_74 : f32 to vector<2x64x1xf32>
    %228 = arith.divf %226, %227 : vector<2x64x1xf32>
    %229 = vector.broadcast %228 : vector<2x64x1xf32> to vector<2x64x32xf32>
    %230 = arith.subf %224, %229 : vector<2x64x32xf32>
    %231 = arith.mulf %230, %230 : vector<2x64x32xf32>
    %cst_75 = arith.constant dense<0.000000e+00> : vector<2x64xf32>
    %232 = vector.multi_reduction <add>, %231, %cst_75 [2] : vector<2x64x32xf32> to vector<2x64xf32>
    %233 = vector.shape_cast %232 : vector<2x64xf32> to vector<2x64x1xf32>
    %cst_76 = arith.constant 3.200000e+01 : f32
    %234 = vector.broadcast %cst_76 : f32 to vector<2x64x1xf32>
    %235 = arith.divf %233, %234 : vector<2x64x1xf32>
    %236 = vector.broadcast %228 : vector<2x64x1xf32> to vector<2x64x32xf32>
    %237 = arith.subf %224, %236 : vector<2x64x32xf32>
    %cst_77 = arith.constant 9.99999997E-7 : f32
    %238 = vector.broadcast %cst_77 : f32 to vector<2x64x1xf32>
    %239 = arith.addf %235, %238 : vector<2x64x1xf32>
    %240 = math.rsqrt %239 : vector<2x64x1xf32>
    %241 = vector.broadcast %240 : vector<2x64x1xf32> to vector<2x64x32xf32>
    %242 = arith.mulf %237, %241 : vector<2x64x32xf32>
    %cst_78 = arith.constant 1.000000e+00 : f32
    %243 = vector.broadcast %cst_78 : f32 to vector<2x1x32xf32>
    %244 = arith.addf %243, %9 : vector<2x1x32xf32>
    %245 = vector.broadcast %244 : vector<2x1x32xf32> to vector<2x64x32xf32>
    %246 = arith.mulf %242, %245 : vector<2x64x32xf32>
    %247 = vector.broadcast %8 : vector<2x1x32xf32> to vector<2x64x32xf32>
    %248 = arith.addf %246, %247 : vector<2x64x32xf32>
    %249 = vector.shape_cast %248 : vector<2x64x32xf32> to vector<128x32xf32>
    %c0_79 = arith.constant 0 : index
    %c0_80 = arith.constant 0 : index
    %c0_81 = arith.constant 0 : index
    %250 = vector.load %arg9[%c0_79, %c0_80, %c0_81] : memref<2x32x128xbf16, #tpu.memory_space<vmem>>, vector<1x32x128xbf16>
    %251 = vector.shape_cast %250 : vector<1x32x128xbf16> to vector<32x128xbf16>
    %252 = arith.truncf %249 : vector<128x32xf32> to vector<128x32xbf16>
    %cst_82 = arith.constant dense<0.000000e+00> : vector<128x128xf32>
    %253 = tpu.matmul %252, %251, %cst_82 {dimension_numbers = #tpu.dot_dimension_numbers<[1], [0], [0], [1], [0, 0, 1, 1], [], []>} : vector<128x32xbf16>, vector<32x128xbf16>, vector<128x128xf32> -> vector<128x128xf32>
    %c0_83 = arith.constant 0 : index
    %c0_84 = arith.constant 0 : index
    %c0_85 = arith.constant 0 : index
    %254 = vector.load %arg10[%c0_83, %c0_84, %c0_85] : memref<2x1x128xf32, #tpu.memory_space<vmem>>, vector<1x1x128xf32>
    %255 = vector.shape_cast %254 : vector<1x1x128xf32> to vector<1x128xf32>
    %256 = vector.broadcast %255 : vector<1x128xf32> to vector<128x128xf32>
    %257 = arith.addf %253, %256 : vector<128x128xf32>
    %cst_86 = arith.constant 5.000000e-01 : f32
    %258 = vector.broadcast %cst_86 : f32 to vector<128x128xf32>
    %259 = arith.mulf %258, %257 : vector<128x128xf32>
    %cst_87 = arith.constant 4.471500e-02 : f32
    %260 = vector.broadcast %cst_87 : f32 to vector<128x128xf32>
    %261 = arith.mulf %260, %257 : vector<128x128xf32>
    %262 = arith.mulf %261, %257 : vector<128x128xf32>
    %263 = arith.mulf %262, %257 : vector<128x128xf32>
    %264 = arith.addf %257, %263 : vector<128x128xf32>
    %cst_88 = arith.constant 0.797884583 : f32
    %265 = vector.broadcast %cst_88 : f32 to vector<128x128xf32>
    %266 = arith.mulf %265, %264 : vector<128x128xf32>
    %267 = math.tanh %266 : vector<128x128xf32>
    %cst_89 = arith.constant 1.000000e+00 : f32
    %268 = vector.broadcast %cst_89 : f32 to vector<128x128xf32>
    %269 = arith.addf %268, %267 : vector<128x128xf32>
    %270 = arith.mulf %259, %269 : vector<128x128xf32>
    %c0_90 = arith.constant 0 : index
    %c0_91 = arith.constant 0 : index
    %c0_92 = arith.constant 0 : index
    %271 = vector.load %arg11[%c0_90, %c0_91, %c0_92] : memref<2x128x32xbf16, #tpu.memory_space<vmem>>, vector<1x128x32xbf16>
    %272 = vector.shape_cast %271 : vector<1x128x32xbf16> to vector<128x32xbf16>
    %273 = arith.truncf %270 : vector<128x128xf32> to vector<128x128xbf16>
    %cst_93 = arith.constant dense<0.000000e+00> : vector<128x32xf32>
    %274 = tpu.matmul %273, %272, %cst_93 {dimension_numbers = #tpu.dot_dimension_numbers<[1], [0], [0], [1], [0, 0, 1, 1], [], []>} : vector<128x128xbf16>, vector<128x32xbf16>, vector<128x32xf32> -> vector<128x32xf32>
    %c0_94 = arith.constant 0 : index
    %c0_95 = arith.constant 0 : index
    %c0_96 = arith.constant 0 : index
    %275 = vector.load %arg12[%c0_94, %c0_95, %c0_96] : memref<2x1x32xf32, #tpu.memory_space<vmem>>, vector<1x1x32xf32>
    %276 = vector.shape_cast %275 : vector<1x1x32xf32> to vector<1x32xf32>
    %277 = vector.broadcast %276 : vector<1x32xf32> to vector<128x32xf32>
    %278 = arith.addf %274, %277 : vector<128x32xf32>
    %279 = vector.shape_cast %278 : vector<128x32xf32> to vector<2x64x32xf32>
    %280 = vector.broadcast %10 : vector<2x1x32xf32> to vector<2x64x32xf32>
    %281 = arith.mulf %280, %279 : vector<2x64x32xf32>
    %282 = arith.addf %224, %281 : vector<2x64x32xf32>
    %283 = vector.extract_strided_slice %2 {offsets = [0, 1, 0, 0], sizes = [2, 1, 6, 32], strides = [1, 1, 1, 1]} : vector<2x2x6x32xf32> to vector<2x1x6x32xf32>
    %284 = vector.shape_cast %283 : vector<2x1x6x32xf32> to vector<2x6x32xf32>
    %285 = vector.extract_strided_slice %284 {offsets = [0, 0, 0], sizes = [2, 1, 32], strides = [1, 1, 1]} : vector<2x6x32xf32> to vector<2x1x32xf32>
    %286 = vector.extract_strided_slice %284 {offsets = [0, 1, 0], sizes = [2, 1, 32], strides = [1, 1, 1]} : vector<2x6x32xf32> to vector<2x1x32xf32>
    %287 = vector.extract_strided_slice %284 {offsets = [0, 2, 0], sizes = [2, 1, 32], strides = [1, 1, 1]} : vector<2x6x32xf32> to vector<2x1x32xf32>
    %288 = vector.extract_strided_slice %284 {offsets = [0, 3, 0], sizes = [2, 1, 32], strides = [1, 1, 1]} : vector<2x6x32xf32> to vector<2x1x32xf32>
    %289 = vector.extract_strided_slice %284 {offsets = [0, 4, 0], sizes = [2, 1, 32], strides = [1, 1, 1]} : vector<2x6x32xf32> to vector<2x1x32xf32>
    %290 = vector.extract_strided_slice %284 {offsets = [0, 5, 0], sizes = [2, 1, 32], strides = [1, 1, 1]} : vector<2x6x32xf32> to vector<2x1x32xf32>
    %cst_97 = arith.constant dense<0.000000e+00> : vector<2x64xf32>
    %291 = vector.multi_reduction <add>, %282, %cst_97 [2] : vector<2x64x32xf32> to vector<2x64xf32>
    %292 = vector.shape_cast %291 : vector<2x64xf32> to vector<2x64x1xf32>
    %cst_98 = arith.constant 3.200000e+01 : f32
    %293 = vector.broadcast %cst_98 : f32 to vector<2x64x1xf32>
    %294 = arith.divf %292, %293 : vector<2x64x1xf32>
    %295 = vector.broadcast %294 : vector<2x64x1xf32> to vector<2x64x32xf32>
    %296 = arith.subf %282, %295 : vector<2x64x32xf32>
    %297 = arith.mulf %296, %296 : vector<2x64x32xf32>
    %cst_99 = arith.constant dense<0.000000e+00> : vector<2x64xf32>
    %298 = vector.multi_reduction <add>, %297, %cst_99 [2] : vector<2x64x32xf32> to vector<2x64xf32>
    %299 = vector.shape_cast %298 : vector<2x64xf32> to vector<2x64x1xf32>
    %cst_100 = arith.constant 3.200000e+01 : f32
    %300 = vector.broadcast %cst_100 : f32 to vector<2x64x1xf32>
    %301 = arith.divf %299, %300 : vector<2x64x1xf32>
    %302 = vector.broadcast %294 : vector<2x64x1xf32> to vector<2x64x32xf32>
    %303 = arith.subf %282, %302 : vector<2x64x32xf32>
    %cst_101 = arith.constant 9.99999997E-7 : f32
    %304 = vector.broadcast %cst_101 : f32 to vector<2x64x1xf32>
    %305 = arith.addf %301, %304 : vector<2x64x1xf32>
    %306 = math.rsqrt %305 : vector<2x64x1xf32>
    %307 = vector.broadcast %306 : vector<2x64x1xf32> to vector<2x64x32xf32>
    %308 = arith.mulf %303, %307 : vector<2x64x32xf32>
    %cst_102 = arith.constant 1.000000e+00 : f32
    %309 = vector.broadcast %cst_102 : f32 to vector<2x1x32xf32>
    %310 = arith.addf %309, %286 : vector<2x1x32xf32>
    %311 = vector.broadcast %310 : vector<2x1x32xf32> to vector<2x64x32xf32>
    %312 = arith.mulf %308, %311 : vector<2x64x32xf32>
    %313 = vector.broadcast %285 : vector<2x1x32xf32> to vector<2x64x32xf32>
    %314 = arith.addf %312, %313 : vector<2x64x32xf32>
    %315 = vector.shape_cast %314 : vector<2x64x32xf32> to vector<128x32xf32>
    %c1 = arith.constant 1 : index
    %c0_103 = arith.constant 0 : index
    %c0_104 = arith.constant 0 : index
    %316 = vector.load %arg5[%c1, %c0_103, %c0_104] : memref<2x32x96xbf16, #tpu.memory_space<vmem>>, vector<1x32x96xbf16>
    %317 = vector.shape_cast %316 : vector<1x32x96xbf16> to vector<32x96xbf16>
    %318 = arith.truncf %315 : vector<128x32xf32> to vector<128x32xbf16>
    %cst_105 = arith.constant dense<0.000000e+00> : vector<128x96xf32>
    %319 = tpu.matmul %318, %317, %cst_105 {dimension_numbers = #tpu.dot_dimension_numbers<[1], [0], [0], [1], [0, 0, 1, 1], [], []>} : vector<128x32xbf16>, vector<32x96xbf16>, vector<128x96xf32> -> vector<128x96xf32>
    %c1_106 = arith.constant 1 : index
    %c0_107 = arith.constant 0 : index
    %c0_108 = arith.constant 0 : index
    %320 = vector.load %arg6[%c1_106, %c0_107, %c0_108] : memref<2x1x96xf32, #tpu.memory_space<vmem>>, vector<1x1x96xf32>
    %321 = vector.shape_cast %320 : vector<1x1x96xf32> to vector<1x96xf32>
    %322 = vector.broadcast %321 : vector<1x96xf32> to vector<128x96xf32>
    %323 = arith.addf %319, %322 : vector<128x96xf32>
    %324 = vector.extract_strided_slice %323 {offsets = [0, 0], sizes = [64, 8], strides = [1, 1]} : vector<128x96xf32> to vector<64x8xf32>
    %325 = vector.extract_strided_slice %323 {offsets = [0, 32], sizes = [64, 8], strides = [1, 1]} : vector<128x96xf32> to vector<64x8xf32>
    %326 = vector.extract_strided_slice %323 {offsets = [0, 64], sizes = [64, 8], strides = [1, 1]} : vector<128x96xf32> to vector<64x8xf32>
    %327 = arith.truncf %324 : vector<64x8xf32> to vector<64x8xbf16>
    %328 = arith.truncf %325 : vector<64x8xf32> to vector<64x8xbf16>
    %cst_109 = arith.constant dense<0.000000e+00> : vector<64x64xf32>
    %329 = tpu.matmul %327, %328, %cst_109 {dimension_numbers = #tpu.dot_dimension_numbers<[1], [1], [0], [0], [0, 0, 1, 0], [], []>} : vector<64x8xbf16>, vector<64x8xbf16>, vector<64x64xf32> -> vector<64x64xf32>
    %330 = arith.addf %329, %1 : vector<64x64xf32>
    %cst_110 = arith.constant dense<0xFF800000> : vector<64xf32>
    %331 = vector.multi_reduction <maximumf>, %330, %cst_110 [1] : vector<64x64xf32> to vector<64xf32>
    %332 = vector.shape_cast %331 : vector<64xf32> to vector<64x1xf32>
    %333 = vector.broadcast %332 : vector<64x1xf32> to vector<64x64xf32>
    %334 = arith.subf %330, %333 : vector<64x64xf32>
    %335 = math.exp %334 : vector<64x64xf32>
    %cst_111 = arith.constant dense<0.000000e+00> : vector<64xf32>
    %336 = vector.multi_reduction <add>, %335, %cst_111 [1] : vector<64x64xf32> to vector<64xf32>
    %337 = vector.shape_cast %336 : vector<64xf32> to vector<64x1xf32>
    %338 = arith.truncf %326 : vector<64x8xf32> to vector<64x8xbf16>
    %339 = arith.truncf %335 : vector<64x64xf32> to vector<64x64xbf16>
    %cst_112 = arith.constant dense<0.000000e+00> : vector<64x8xf32>
    %340 = tpu.matmul %339, %338, %cst_112 {dimension_numbers = #tpu.dot_dimension_numbers<[1], [0], [0], [1], [0, 0, 1, 1], [], []>} : vector<64x64xbf16>, vector<64x8xbf16>, vector<64x8xf32> -> vector<64x8xf32>
    %341 = tpu.reciprocal %337 {approx = true} : vector<64x1xf32> -> vector<64x1xf32>
    %342 = vector.broadcast %341 : vector<64x1xf32> to vector<64x8xf32>
    %343 = arith.mulf %340, %342 : vector<64x8xf32>
    %c0_113 = arith.constant 0 : index
    %c0_114 = arith.constant 0 : index
    %344 = vector.load %arg16[%c0_113, %c0_114] : memref<128x32xf32, #tpu.memory_space<vmem>>, vector<64x8xf32>
    tpu.vector_store %arg16[%c0_113, %c0_114], %343 {strides = array<i32>} : memref<128x32xf32, #tpu.memory_space<vmem>>, vector<64x8xf32>,
    %345 = vector.extract_strided_slice %323 {offsets = [0, 8], sizes = [64, 8], strides = [1, 1]} : vector<128x96xf32> to vector<64x8xf32>
    %346 = vector.extract_strided_slice %323 {offsets = [0, 40], sizes = [64, 8], strides = [1, 1]} : vector<128x96xf32> to vector<64x8xf32>
    %347 = vector.extract_strided_slice %323 {offsets = [0, 72], sizes = [64, 8], strides = [1, 1]} : vector<128x96xf32> to vector<64x8xf32>
    %348 = arith.truncf %345 : vector<64x8xf32> to vector<64x8xbf16>
    %349 = arith.truncf %346 : vector<64x8xf32> to vector<64x8xbf16>
    %cst_115 = arith.constant dense<0.000000e+00> : vector<64x64xf32>
    %350 = tpu.matmul %348, %349, %cst_115 {dimension_numbers = #tpu.dot_dimension_numbers<[1], [1], [0], [0], [0, 0, 1, 0], [], []>} : vector<64x8xbf16>, vector<64x8xbf16>, vector<64x64xf32> -> vector<64x64xf32>
    %351 = arith.addf %350, %1 : vector<64x64xf32>
    %cst_116 = arith.constant dense<0xFF800000> : vector<64xf32>
    %352 = vector.multi_reduction <maximumf>, %351, %cst_116 [1] : vector<64x64xf32> to vector<64xf32>
    %353 = vector.shape_cast %352 : vector<64xf32> to vector<64x1xf32>
    %354 = vector.broadcast %353 : vector<64x1xf32> to vector<64x64xf32>
    %355 = arith.subf %351, %354 : vector<64x64xf32>
    %356 = math.exp %355 : vector<64x64xf32>
    %cst_117 = arith.constant dense<0.000000e+00> : vector<64xf32>
    %357 = vector.multi_reduction <add>, %356, %cst_117 [1] : vector<64x64xf32> to vector<64xf32>
    %358 = vector.shape_cast %357 : vector<64xf32> to vector<64x1xf32>
    %359 = arith.truncf %347 : vector<64x8xf32> to vector<64x8xbf16>
    %360 = arith.truncf %356 : vector<64x64xf32> to vector<64x64xbf16>
    %cst_118 = arith.constant dense<0.000000e+00> : vector<64x8xf32>
    %361 = tpu.matmul %360, %359, %cst_118 {dimension_numbers = #tpu.dot_dimension_numbers<[1], [0], [0], [1], [0, 0, 1, 1], [], []>} : vector<64x64xbf16>, vector<64x8xbf16>, vector<64x8xf32> -> vector<64x8xf32>
    %362 = tpu.reciprocal %358 {approx = true} : vector<64x1xf32> -> vector<64x1xf32>
    %363 = vector.broadcast %362 : vector<64x1xf32> to vector<64x8xf32>
    %364 = arith.mulf %361, %363 : vector<64x8xf32>
    %c0_119 = arith.constant 0 : index
    %c8_120 = arith.constant 8 : index
    %365 = vector.load %arg16[%c0_119, %c8_120] : memref<128x32xf32, #tpu.memory_space<vmem>>, vector<64x8xf32>
    tpu.vector_store %arg16[%c0_119, %c8_120], %364 {strides = array<i32>} : memref<128x32xf32, #tpu.memory_space<vmem>>, vector<64x8xf32>,
    %366 = vector.extract_strided_slice %323 {offsets = [0, 16], sizes = [64, 8], strides = [1, 1]} : vector<128x96xf32> to vector<64x8xf32>
    %367 = vector.extract_strided_slice %323 {offsets = [0, 48], sizes = [64, 8], strides = [1, 1]} : vector<128x96xf32> to vector<64x8xf32>
    %368 = vector.extract_strided_slice %323 {offsets = [0, 80], sizes = [64, 8], strides = [1, 1]} : vector<128x96xf32> to vector<64x8xf32>
    %369 = arith.truncf %366 : vector<64x8xf32> to vector<64x8xbf16>
    %370 = arith.truncf %367 : vector<64x8xf32> to vector<64x8xbf16>
    %cst_121 = arith.constant dense<0.000000e+00> : vector<64x64xf32>
    %371 = tpu.matmul %369, %370, %cst_121 {dimension_numbers = #tpu.dot_dimension_numbers<[1], [1], [0], [0], [0, 0, 1, 0], [], []>} : vector<64x8xbf16>, vector<64x8xbf16>, vector<64x64xf32> -> vector<64x64xf32>
    %372 = arith.addf %371, %1 : vector<64x64xf32>
    %cst_122 = arith.constant dense<0xFF800000> : vector<64xf32>
    %373 = vector.multi_reduction <maximumf>, %372, %cst_122 [1] : vector<64x64xf32> to vector<64xf32>
    %374 = vector.shape_cast %373 : vector<64xf32> to vector<64x1xf32>
    %375 = vector.broadcast %374 : vector<64x1xf32> to vector<64x64xf32>
    %376 = arith.subf %372, %375 : vector<64x64xf32>
    %377 = math.exp %376 : vector<64x64xf32>
    %cst_123 = arith.constant dense<0.000000e+00> : vector<64xf32>
    %378 = vector.multi_reduction <add>, %377, %cst_123 [1] : vector<64x64xf32> to vector<64xf32>
    %379 = vector.shape_cast %378 : vector<64xf32> to vector<64x1xf32>
    %380 = arith.truncf %368 : vector<64x8xf32> to vector<64x8xbf16>
    %381 = arith.truncf %377 : vector<64x64xf32> to vector<64x64xbf16>
    %cst_124 = arith.constant dense<0.000000e+00> : vector<64x8xf32>
    %382 = tpu.matmul %381, %380, %cst_124 {dimension_numbers = #tpu.dot_dimension_numbers<[1], [0], [0], [1], [0, 0, 1, 1], [], []>} : vector<64x64xbf16>, vector<64x8xbf16>, vector<64x8xf32> -> vector<64x8xf32>
    %383 = tpu.reciprocal %379 {approx = true} : vector<64x1xf32> -> vector<64x1xf32>
    %384 = vector.broadcast %383 : vector<64x1xf32> to vector<64x8xf32>
    %385 = arith.mulf %382, %384 : vector<64x8xf32>
    %c0_125 = arith.constant 0 : index
    %c16_126 = arith.constant 16 : index
    %386 = vector.load %arg16[%c0_125, %c16_126] : memref<128x32xf32, #tpu.memory_space<vmem>>, vector<64x8xf32>
    tpu.vector_store %arg16[%c0_125, %c16_126], %385 {strides = array<i32>} : memref<128x32xf32, #tpu.memory_space<vmem>>, vector<64x8xf32>,
    %387 = vector.extract_strided_slice %323 {offsets = [0, 24], sizes = [64, 8], strides = [1, 1]} : vector<128x96xf32> to vector<64x8xf32>
    %388 = vector.extract_strided_slice %323 {offsets = [0, 56], sizes = [64, 8], strides = [1, 1]} : vector<128x96xf32> to vector<64x8xf32>
    %389 = vector.extract_strided_slice %323 {offsets = [0, 88], sizes = [64, 8], strides = [1, 1]} : vector<128x96xf32> to vector<64x8xf32>
    %390 = arith.truncf %387 : vector<64x8xf32> to vector<64x8xbf16>
    %391 = arith.truncf %388 : vector<64x8xf32> to vector<64x8xbf16>
    %cst_127 = arith.constant dense<0.000000e+00> : vector<64x64xf32>
    %392 = tpu.matmul %390, %391, %cst_127 {dimension_numbers = #tpu.dot_dimension_numbers<[1], [1], [0], [0], [0, 0, 1, 0], [], []>} : vector<64x8xbf16>, vector<64x8xbf16>, vector<64x64xf32> -> vector<64x64xf32>
    %393 = arith.addf %392, %1 : vector<64x64xf32>
    %cst_128 = arith.constant dense<0xFF800000> : vector<64xf32>
    %394 = vector.multi_reduction <maximumf>, %393, %cst_128 [1] : vector<64x64xf32> to vector<64xf32>
    %395 = vector.shape_cast %394 : vector<64xf32> to vector<64x1xf32>
    %396 = vector.broadcast %395 : vector<64x1xf32> to vector<64x64xf32>
    %397 = arith.subf %393, %396 : vector<64x64xf32>
    %398 = math.exp %397 : vector<64x64xf32>
    %cst_129 = arith.constant dense<0.000000e+00> : vector<64xf32>
    %399 = vector.multi_reduction <add>, %398, %cst_129 [1] : vector<64x64xf32> to vector<64xf32>
    %400 = vector.shape_cast %399 : vector<64xf32> to vector<64x1xf32>
    %401 = arith.truncf %389 : vector<64x8xf32> to vector<64x8xbf16>
    %402 = arith.truncf %398 : vector<64x64xf32> to vector<64x64xbf16>
    %cst_130 = arith.constant dense<0.000000e+00> : vector<64x8xf32>
    %403 = tpu.matmul %402, %401, %cst_130 {dimension_numbers = #tpu.dot_dimension_numbers<[1], [0], [0], [1], [0, 0, 1, 1], [], []>} : vector<64x64xbf16>, vector<64x8xbf16>, vector<64x8xf32> -> vector<64x8xf32>
    %404 = tpu.reciprocal %400 {approx = true} : vector<64x1xf32> -> vector<64x1xf32>
    %405 = vector.broadcast %404 : vector<64x1xf32> to vector<64x8xf32>
    %406 = arith.mulf %403, %405 : vector<64x8xf32>
    %c0_131 = arith.constant 0 : index
    %c24_132 = arith.constant 24 : index
    %407 = vector.load %arg16[%c0_131, %c24_132] : memref<128x32xf32, #tpu.memory_space<vmem>>, vector<64x8xf32>
    tpu.vector_store %arg16[%c0_131, %c24_132], %406 {strides = array<i32>} : memref<128x32xf32, #tpu.memory_space<vmem>>, vector<64x8xf32>,
    %408 = vector.extract_strided_slice %323 {offsets = [64, 0], sizes = [64, 8], strides = [1, 1]} : vector<128x96xf32> to vector<64x8xf32>
    %409 = vector.extract_strided_slice %323 {offsets = [64, 32], sizes = [64, 8], strides = [1, 1]} : vector<128x96xf32> to vector<64x8xf32>
    %410 = vector.extract_strided_slice %323 {offsets = [64, 64], sizes = [64, 8], strides = [1, 1]} : vector<128x96xf32> to vector<64x8xf32>
    %411 = arith.truncf %408 : vector<64x8xf32> to vector<64x8xbf16>
    %412 = arith.truncf %409 : vector<64x8xf32> to vector<64x8xbf16>
    %cst_133 = arith.constant dense<0.000000e+00> : vector<64x64xf32>
    %413 = tpu.matmul %411, %412, %cst_133 {dimension_numbers = #tpu.dot_dimension_numbers<[1], [1], [0], [0], [0, 0, 1, 0], [], []>} : vector<64x8xbf16>, vector<64x8xbf16>, vector<64x64xf32> -> vector<64x64xf32>
    %414 = arith.addf %413, %1 : vector<64x64xf32>
    %cst_134 = arith.constant dense<0xFF800000> : vector<64xf32>
    %415 = vector.multi_reduction <maximumf>, %414, %cst_134 [1] : vector<64x64xf32> to vector<64xf32>
    %416 = vector.shape_cast %415 : vector<64xf32> to vector<64x1xf32>
    %417 = vector.broadcast %416 : vector<64x1xf32> to vector<64x64xf32>
    %418 = arith.subf %414, %417 : vector<64x64xf32>
    %419 = math.exp %418 : vector<64x64xf32>
    %cst_135 = arith.constant dense<0.000000e+00> : vector<64xf32>
    %420 = vector.multi_reduction <add>, %419, %cst_135 [1] : vector<64x64xf32> to vector<64xf32>
    %421 = vector.shape_cast %420 : vector<64xf32> to vector<64x1xf32>
    %422 = arith.truncf %410 : vector<64x8xf32> to vector<64x8xbf16>
    %423 = arith.truncf %419 : vector<64x64xf32> to vector<64x64xbf16>
    %cst_136 = arith.constant dense<0.000000e+00> : vector<64x8xf32>
    %424 = tpu.matmul %423, %422, %cst_136 {dimension_numbers = #tpu.dot_dimension_numbers<[1], [0], [0], [1], [0, 0, 1, 1], [], []>} : vector<64x64xbf16>, vector<64x8xbf16>, vector<64x8xf32> -> vector<64x8xf32>
    %425 = tpu.reciprocal %421 {approx = true} : vector<64x1xf32> -> vector<64x1xf32>
    %426 = vector.broadcast %425 : vector<64x1xf32> to vector<64x8xf32>
    %427 = arith.mulf %424, %426 : vector<64x8xf32>
    %c64_137 = arith.constant 64 : index
    %c0_138 = arith.constant 0 : index
    %428 = vector.load %arg16[%c64_137, %c0_138] : memref<128x32xf32, #tpu.memory_space<vmem>>, vector<64x8xf32>
    tpu.vector_store %arg16[%c64_137, %c0_138], %427 {strides = array<i32>} : memref<128x32xf32, #tpu.memory_space<vmem>>, vector<64x8xf32>,
    %429 = vector.extract_strided_slice %323 {offsets = [64, 8], sizes = [64, 8], strides = [1, 1]} : vector<128x96xf32> to vector<64x8xf32>
    %430 = vector.extract_strided_slice %323 {offsets = [64, 40], sizes = [64, 8], strides = [1, 1]} : vector<128x96xf32> to vector<64x8xf32>
    %431 = vector.extract_strided_slice %323 {offsets = [64, 72], sizes = [64, 8], strides = [1, 1]} : vector<128x96xf32> to vector<64x8xf32>
    %432 = arith.truncf %429 : vector<64x8xf32> to vector<64x8xbf16>
    %433 = arith.truncf %430 : vector<64x8xf32> to vector<64x8xbf16>
    %cst_139 = arith.constant dense<0.000000e+00> : vector<64x64xf32>
    %434 = tpu.matmul %432, %433, %cst_139 {dimension_numbers = #tpu.dot_dimension_numbers<[1], [1], [0], [0], [0, 0, 1, 0], [], []>} : vector<64x8xbf16>, vector<64x8xbf16>, vector<64x64xf32> -> vector<64x64xf32>
    %435 = arith.addf %434, %1 : vector<64x64xf32>
    %cst_140 = arith.constant dense<0xFF800000> : vector<64xf32>
    %436 = vector.multi_reduction <maximumf>, %435, %cst_140 [1] : vector<64x64xf32> to vector<64xf32>
    %437 = vector.shape_cast %436 : vector<64xf32> to vector<64x1xf32>
    %438 = vector.broadcast %437 : vector<64x1xf32> to vector<64x64xf32>
    %439 = arith.subf %435, %438 : vector<64x64xf32>
    %440 = math.exp %439 : vector<64x64xf32>
    %cst_141 = arith.constant dense<0.000000e+00> : vector<64xf32>
    %441 = vector.multi_reduction <add>, %440, %cst_141 [1] : vector<64x64xf32> to vector<64xf32>
    %442 = vector.shape_cast %441 : vector<64xf32> to vector<64x1xf32>
    %443 = arith.truncf %431 : vector<64x8xf32> to vector<64x8xbf16>
    %444 = arith.truncf %440 : vector<64x64xf32> to vector<64x64xbf16>
    %cst_142 = arith.constant dense<0.000000e+00> : vector<64x8xf32>
    %445 = tpu.matmul %444, %443, %cst_142 {dimension_numbers = #tpu.dot_dimension_numbers<[1], [0], [0], [1], [0, 0, 1, 1], [], []>} : vector<64x64xbf16>, vector<64x8xbf16>, vector<64x8xf32> -> vector<64x8xf32>
    %446 = tpu.reciprocal %442 {approx = true} : vector<64x1xf32> -> vector<64x1xf32>
    %447 = vector.broadcast %446 : vector<64x1xf32> to vector<64x8xf32>
    %448 = arith.mulf %445, %447 : vector<64x8xf32>
    %c64_143 = arith.constant 64 : index
    %c8_144 = arith.constant 8 : index
    %449 = vector.load %arg16[%c64_143, %c8_144] : memref<128x32xf32, #tpu.memory_space<vmem>>, vector<64x8xf32>
    tpu.vector_store %arg16[%c64_143, %c8_144], %448 {strides = array<i32>} : memref<128x32xf32, #tpu.memory_space<vmem>>, vector<64x8xf32>,
    %450 = vector.extract_strided_slice %323 {offsets = [64, 16], sizes = [64, 8], strides = [1, 1]} : vector<128x96xf32> to vector<64x8xf32>
    %451 = vector.extract_strided_slice %323 {offsets = [64, 48], sizes = [64, 8], strides = [1, 1]} : vector<128x96xf32> to vector<64x8xf32>
    %452 = vector.extract_strided_slice %323 {offsets = [64, 80], sizes = [64, 8], strides = [1, 1]} : vector<128x96xf32> to vector<64x8xf32>
    %453 = arith.truncf %450 : vector<64x8xf32> to vector<64x8xbf16>
    %454 = arith.truncf %451 : vector<64x8xf32> to vector<64x8xbf16>
    %cst_145 = arith.constant dense<0.000000e+00> : vector<64x64xf32>
    %455 = tpu.matmul %453, %454, %cst_145 {dimension_numbers = #tpu.dot_dimension_numbers<[1], [1], [0], [0], [0, 0, 1, 0], [], []>} : vector<64x8xbf16>, vector<64x8xbf16>, vector<64x64xf32> -> vector<64x64xf32>
    %456 = arith.addf %455, %1 : vector<64x64xf32>
    %cst_146 = arith.constant dense<0xFF800000> : vector<64xf32>
    %457 = vector.multi_reduction <maximumf>, %456, %cst_146 [1] : vector<64x64xf32> to vector<64xf32>
    %458 = vector.shape_cast %457 : vector<64xf32> to vector<64x1xf32>
    %459 = vector.broadcast %458 : vector<64x1xf32> to vector<64x64xf32>
    %460 = arith.subf %456, %459 : vector<64x64xf32>
    %461 = math.exp %460 : vector<64x64xf32>
    %cst_147 = arith.constant dense<0.000000e+00> : vector<64xf32>
    %462 = vector.multi_reduction <add>, %461, %cst_147 [1] : vector<64x64xf32> to vector<64xf32>
    %463 = vector.shape_cast %462 : vector<64xf32> to vector<64x1xf32>
    %464 = arith.truncf %452 : vector<64x8xf32> to vector<64x8xbf16>
    %465 = arith.truncf %461 : vector<64x64xf32> to vector<64x64xbf16>
    %cst_148 = arith.constant dense<0.000000e+00> : vector<64x8xf32>
    %466 = tpu.matmul %465, %464, %cst_148 {dimension_numbers = #tpu.dot_dimension_numbers<[1], [0], [0], [1], [0, 0, 1, 1], [], []>} : vector<64x64xbf16>, vector<64x8xbf16>, vector<64x8xf32> -> vector<64x8xf32>
    %467 = tpu.reciprocal %463 {approx = true} : vector<64x1xf32> -> vector<64x1xf32>
    %468 = vector.broadcast %467 : vector<64x1xf32> to vector<64x8xf32>
    %469 = arith.mulf %466, %468 : vector<64x8xf32>
    %c64_149 = arith.constant 64 : index
    %c16_150 = arith.constant 16 : index
    %470 = vector.load %arg16[%c64_149, %c16_150] : memref<128x32xf32, #tpu.memory_space<vmem>>, vector<64x8xf32>
    tpu.vector_store %arg16[%c64_149, %c16_150], %469 {strides = array<i32>} : memref<128x32xf32, #tpu.memory_space<vmem>>, vector<64x8xf32>,
    %471 = vector.extract_strided_slice %323 {offsets = [64, 24], sizes = [64, 8], strides = [1, 1]} : vector<128x96xf32> to vector<64x8xf32>
    %472 = vector.extract_strided_slice %323 {offsets = [64, 56], sizes = [64, 8], strides = [1, 1]} : vector<128x96xf32> to vector<64x8xf32>
    %473 = vector.extract_strided_slice %323 {offsets = [64, 88], sizes = [64, 8], strides = [1, 1]} : vector<128x96xf32> to vector<64x8xf32>
    %474 = arith.truncf %471 : vector<64x8xf32> to vector<64x8xbf16>
    %475 = arith.truncf %472 : vector<64x8xf32> to vector<64x8xbf16>
    %cst_151 = arith.constant dense<0.000000e+00> : vector<64x64xf32>
    %476 = tpu.matmul %474, %475, %cst_151 {dimension_numbers = #tpu.dot_dimension_numbers<[1], [1], [0], [0], [0, 0, 1, 0], [], []>} : vector<64x8xbf16>, vector<64x8xbf16>, vector<64x64xf32> -> vector<64x64xf32>
    %477 = arith.addf %476, %1 : vector<64x64xf32>
    %cst_152 = arith.constant dense<0xFF800000> : vector<64xf32>
    %478 = vector.multi_reduction <maximumf>, %477, %cst_152 [1] : vector<64x64xf32> to vector<64xf32>
    %479 = vector.shape_cast %478 : vector<64xf32> to vector<64x1xf32>
    %480 = vector.broadcast %479 : vector<64x1xf32> to vector<64x64xf32>
    %481 = arith.subf %477, %480 : vector<64x64xf32>
    %482 = math.exp %481 : vector<64x64xf32>
    %cst_153 = arith.constant dense<0.000000e+00> : vector<64xf32>
    %483 = vector.multi_reduction <add>, %482, %cst_153 [1] : vector<64x64xf32> to vector<64xf32>
    %484 = vector.shape_cast %483 : vector<64xf32> to vector<64x1xf32>
    %485 = arith.truncf %473 : vector<64x8xf32> to vector<64x8xbf16>
    %486 = arith.truncf %482 : vector<64x64xf32> to vector<64x64xbf16>
    %cst_154 = arith.constant dense<0.000000e+00> : vector<64x8xf32>
    %487 = tpu.matmul %486, %485, %cst_154 {dimension_numbers = #tpu.dot_dimension_numbers<[1], [0], [0], [1], [0, 0, 1, 1], [], []>} : vector<64x64xbf16>, vector<64x8xbf16>, vector<64x8xf32> -> vector<64x8xf32>
    %488 = tpu.reciprocal %484 {approx = true} : vector<64x1xf32> -> vector<64x1xf32>
    %489 = vector.broadcast %488 : vector<64x1xf32> to vector<64x8xf32>
    %490 = arith.mulf %487, %489 : vector<64x8xf32>
    %c64_155 = arith.constant 64 : index
    %c24_156 = arith.constant 24 : index
    %491 = vector.load %arg16[%c64_155, %c24_156] : memref<128x32xf32, #tpu.memory_space<vmem>>, vector<64x8xf32>
    tpu.vector_store %arg16[%c64_155, %c24_156], %490 {strides = array<i32>} : memref<128x32xf32, #tpu.memory_space<vmem>>, vector<64x8xf32>,
    %c0_157 = arith.constant 0 : index
    %c0_158 = arith.constant 0 : index
    %492 = vector.load %arg16[%c0_157, %c0_158] : memref<128x32xf32, #tpu.memory_space<vmem>>, vector<128x32xf32>
    %c1_159 = arith.constant 1 : index
    %c0_160 = arith.constant 0 : index
    %c0_161 = arith.constant 0 : index
    %493 = vector.load %arg7[%c1_159, %c0_160, %c0_161] : memref<2x32x32xbf16, #tpu.memory_space<vmem>>, vector<1x32x32xbf16>
    %494 = vector.shape_cast %493 : vector<1x32x32xbf16> to vector<32x32xbf16>
    %495 = arith.truncf %492 : vector<128x32xf32> to vector<128x32xbf16>
    %cst_162 = arith.constant dense<0.000000e+00> : vector<128x32xf32>
    %496 = tpu.matmul %495, %494, %cst_162 {dimension_numbers = #tpu.dot_dimension_numbers<[1], [0], [0], [1], [0, 0, 1, 1], [], []>} : vector<128x32xbf16>, vector<32x32xbf16>, vector<128x32xf32> -> vector<128x32xf32>
    %c1_163 = arith.constant 1 : index
    %c0_164 = arith.constant 0 : index
    %c0_165 = arith.constant 0 : index
    %497 = vector.load %arg8[%c1_163, %c0_164, %c0_165] : memref<2x1x32xf32, #tpu.memory_space<vmem>>, vector<1x1x32xf32>
    %498 = vector.shape_cast %497 : vector<1x1x32xf32> to vector<1x32xf32>
    %499 = vector.broadcast %498 : vector<1x32xf32> to vector<128x32xf32>
    %500 = arith.addf %496, %499 : vector<128x32xf32>
    %501 = vector.shape_cast %500 : vector<128x32xf32> to vector<2x64x32xf32>
    %502 = vector.broadcast %287 : vector<2x1x32xf32> to vector<2x64x32xf32>
    %503 = arith.mulf %502, %501 : vector<2x64x32xf32>
    %504 = arith.addf %282, %503 : vector<2x64x32xf32>
    %cst_166 = arith.constant dense<0.000000e+00> : vector<2x64xf32>
    %505 = vector.multi_reduction <add>, %504, %cst_166 [2] : vector<2x64x32xf32> to vector<2x64xf32>
    %506 = vector.shape_cast %505 : vector<2x64xf32> to vector<2x64x1xf32>
    %cst_167 = arith.constant 3.200000e+01 : f32
    %507 = vector.broadcast %cst_167 : f32 to vector<2x64x1xf32>
    %508 = arith.divf %506, %507 : vector<2x64x1xf32>
    %509 = vector.broadcast %508 : vector<2x64x1xf32> to vector<2x64x32xf32>
    %510 = arith.subf %504, %509 : vector<2x64x32xf32>
    %511 = arith.mulf %510, %510 : vector<2x64x32xf32>
    %cst_168 = arith.constant dense<0.000000e+00> : vector<2x64xf32>
    %512 = vector.multi_reduction <add>, %511, %cst_168 [2] : vector<2x64x32xf32> to vector<2x64xf32>
    %513 = vector.shape_cast %512 : vector<2x64xf32> to vector<2x64x1xf32>
    %cst_169 = arith.constant 3.200000e+01 : f32
    %514 = vector.broadcast %cst_169 : f32 to vector<2x64x1xf32>
    %515 = arith.divf %513, %514 : vector<2x64x1xf32>
    %516 = vector.broadcast %508 : vector<2x64x1xf32> to vector<2x64x32xf32>
    %517 = arith.subf %504, %516 : vector<2x64x32xf32>
    %cst_170 = arith.constant 9.99999997E-7 : f32
    %518 = vector.broadcast %cst_170 : f32 to vector<2x64x1xf32>
    %519 = arith.addf %515, %518 : vector<2x64x1xf32>
    %520 = math.rsqrt %519 : vector<2x64x1xf32>
    %521 = vector.broadcast %520 : vector<2x64x1xf32> to vector<2x64x32xf32>
    %522 = arith.mulf %517, %521 : vector<2x64x32xf32>
    %cst_171 = arith.constant 1.000000e+00 : f32
    %523 = vector.broadcast %cst_171 : f32 to vector<2x1x32xf32>
    %524 = arith.addf %523, %289 : vector<2x1x32xf32>
    %525 = vector.broadcast %524 : vector<2x1x32xf32> to vector<2x64x32xf32>
    %526 = arith.mulf %522, %525 : vector<2x64x32xf32>
    %527 = vector.broadcast %288 : vector<2x1x32xf32> to vector<2x64x32xf32>
    %528 = arith.addf %526, %527 : vector<2x64x32xf32>
    %529 = vector.shape_cast %528 : vector<2x64x32xf32> to vector<128x32xf32>
    %c1_172 = arith.constant 1 : index
    %c0_173 = arith.constant 0 : index
    %c0_174 = arith.constant 0 : index
    %530 = vector.load %arg9[%c1_172, %c0_173, %c0_174] : memref<2x32x128xbf16, #tpu.memory_space<vmem>>, vector<1x32x128xbf16>
    %531 = vector.shape_cast %530 : vector<1x32x128xbf16> to vector<32x128xbf16>
    %532 = arith.truncf %529 : vector<128x32xf32> to vector<128x32xbf16>
    %cst_175 = arith.constant dense<0.000000e+00> : vector<128x128xf32>
    %533 = tpu.matmul %532, %531, %cst_175 {dimension_numbers = #tpu.dot_dimension_numbers<[1], [0], [0], [1], [0, 0, 1, 1], [], []>} : vector<128x32xbf16>, vector<32x128xbf16>, vector<128x128xf32> -> vector<128x128xf32>
    %c1_176 = arith.constant 1 : index
    %c0_177 = arith.constant 0 : index
    %c0_178 = arith.constant 0 : index
    %534 = vector.load %arg10[%c1_176, %c0_177, %c0_178] : memref<2x1x128xf32, #tpu.memory_space<vmem>>, vector<1x1x128xf32>
    %535 = vector.shape_cast %534 : vector<1x1x128xf32> to vector<1x128xf32>
    %536 = vector.broadcast %535 : vector<1x128xf32> to vector<128x128xf32>
    %537 = arith.addf %533, %536 : vector<128x128xf32>
    %cst_179 = arith.constant 5.000000e-01 : f32
    %538 = vector.broadcast %cst_179 : f32 to vector<128x128xf32>
    %539 = arith.mulf %538, %537 : vector<128x128xf32>
    %cst_180 = arith.constant 4.471500e-02 : f32
    %540 = vector.broadcast %cst_180 : f32 to vector<128x128xf32>
    %541 = arith.mulf %540, %537 : vector<128x128xf32>
    %542 = arith.mulf %541, %537 : vector<128x128xf32>
    %543 = arith.mulf %542, %537 : vector<128x128xf32>
    %544 = arith.addf %537, %543 : vector<128x128xf32>
    %cst_181 = arith.constant 0.797884583 : f32
    %545 = vector.broadcast %cst_181 : f32 to vector<128x128xf32>
    %546 = arith.mulf %545, %544 : vector<128x128xf32>
    %547 = math.tanh %546 : vector<128x128xf32>
    %cst_182 = arith.constant 1.000000e+00 : f32
    %548 = vector.broadcast %cst_182 : f32 to vector<128x128xf32>
    %549 = arith.addf %548, %547 : vector<128x128xf32>
    %550 = arith.mulf %539, %549 : vector<128x128xf32>
    %c1_183 = arith.constant 1 : index
    %c0_184 = arith.constant 0 : index
    %c0_185 = arith.constant 0 : index
    %551 = vector.load %arg11[%c1_183, %c0_184, %c0_185] : memref<2x128x32xbf16, #tpu.memory_space<vmem>>, vector<1x128x32xbf16>
    %552 = vector.shape_cast %551 : vector<1x128x32xbf16> to vector<128x32xbf16>
    %553 = arith.truncf %550 : vector<128x128xf32> to vector<128x128xbf16>
    %cst_186 = arith.constant dense<0.000000e+00> : vector<128x32xf32>
    %554 = tpu.matmul %553, %552, %cst_186 {dimension_numbers = #tpu.dot_dimension_numbers<[1], [0], [0], [1], [0, 0, 1, 1], [], []>} : vector<128x128xbf16>, vector<128x32xbf16>, vector<128x32xf32> -> vector<128x32xf32>
    %c1_187 = arith.constant 1 : index
    %c0_188 = arith.constant 0 : index
    %c0_189 = arith.constant 0 : index
    %555 = vector.load %arg12[%c1_187, %c0_188, %c0_189] : memref<2x1x32xf32, #tpu.memory_space<vmem>>, vector<1x1x32xf32>
    %556 = vector.shape_cast %555 : vector<1x1x32xf32> to vector<1x32xf32>
    %557 = vector.broadcast %556 : vector<1x32xf32> to vector<128x32xf32>
    %558 = arith.addf %554, %557 : vector<128x32xf32>
    %559 = vector.shape_cast %558 : vector<128x32xf32> to vector<2x64x32xf32>
    %560 = vector.broadcast %290 : vector<2x1x32xf32> to vector<2x64x32xf32>
    %561 = arith.mulf %560, %559 : vector<2x64x32xf32>
    %562 = arith.addf %504, %561 : vector<2x64x32xf32>
    %c0_190 = arith.constant 0 : index
    %c0_191 = arith.constant 0 : index
    %c0_192 = arith.constant 0 : index
    %563 = vector.load %arg4[%c0_190, %c0_191, %c0_192] : memref<2x2x32xf32, #tpu.memory_space<vmem>>, vector<2x2x32xf32>
    %564 = vector.extract_strided_slice %563 {offsets = [0, 0, 0], sizes = [2, 1, 32], strides = [1, 1, 1]} : vector<2x2x32xf32> to vector<2x1x32xf32>
    %565 = vector.extract_strided_slice %563 {offsets = [0, 1, 0], sizes = [2, 1, 32], strides = [1, 1, 1]} : vector<2x2x32xf32> to vector<2x1x32xf32>
    %cst_193 = arith.constant dense<0.000000e+00> : vector<2x64xf32>
    %566 = vector.multi_reduction <add>, %562, %cst_193 [2] : vector<2x64x32xf32> to vector<2x64xf32>
    %567 = vector.shape_cast %566 : vector<2x64xf32> to vector<2x64x1xf32>
    %cst_194 = arith.constant 3.200000e+01 : f32
    %568 = vector.broadcast %cst_194 : f32 to vector<2x64x1xf32>
    %569 = arith.divf %567, %568 : vector<2x64x1xf32>
    %570 = vector.broadcast %569 : vector<2x64x1xf32> to vector<2x64x32xf32>
    %571 = arith.subf %562, %570 : vector<2x64x32xf32>
    %572 = arith.mulf %571, %571 : vector<2x64x32xf32>
    %cst_195 = arith.constant dense<0.000000e+00> : vector<2x64xf32>
    %573 = vector.multi_reduction <add>, %572, %cst_195 [2] : vector<2x64x32xf32> to vector<2x64xf32>
    %574 = vector.shape_cast %573 : vector<2x64xf32> to vector<2x64x1xf32>
    %cst_196 = arith.constant 3.200000e+01 : f32
    %575 = vector.broadcast %cst_196 : f32 to vector<2x64x1xf32>
    %576 = arith.divf %574, %575 : vector<2x64x1xf32>
    %577 = vector.broadcast %569 : vector<2x64x1xf32> to vector<2x64x32xf32>
    %578 = arith.subf %562, %577 : vector<2x64x32xf32>
    %cst_197 = arith.constant 9.99999997E-7 : f32
    %579 = vector.broadcast %cst_197 : f32 to vector<2x64x1xf32>
    %580 = arith.addf %576, %579 : vector<2x64x1xf32>
    %581 = math.rsqrt %580 : vector<2x64x1xf32>
    %582 = vector.broadcast %581 : vector<2x64x1xf32> to vector<2x64x32xf32>
    %583 = arith.mulf %578, %582 : vector<2x64x32xf32>
    %cst_198 = arith.constant 1.000000e+00 : f32
    %584 = vector.broadcast %cst_198 : f32 to vector<2x1x32xf32>
    %585 = arith.addf %584, %565 : vector<2x1x32xf32>
    %586 = vector.broadcast %585 : vector<2x1x32xf32> to vector<2x64x32xf32>
    %587 = arith.mulf %583, %586 : vector<2x64x32xf32>
    %588 = vector.broadcast %564 : vector<2x1x32xf32> to vector<2x64x32xf32>
    %589 = arith.addf %587, %588 : vector<2x64x32xf32>
    %590 = vector.shape_cast %589 : vector<2x64x32xf32> to vector<128x32xf32>
    %c0_199 = arith.constant 0 : index
    %c0_200 = arith.constant 0 : index
    %591 = vector.load %arg13[%c0_199, %c0_200] : memref<32x128xbf16, #tpu.memory_space<vmem>>, vector<32x128xbf16>
    %592 = arith.truncf %590 : vector<128x32xf32> to vector<128x32xbf16>
    %cst_201 = arith.constant dense<0.000000e+00> : vector<128x128xf32>
    %593 = tpu.matmul %592, %591, %cst_201 {dimension_numbers = #tpu.dot_dimension_numbers<[1], [0], [0], [1], [0, 0, 1, 1], [], []>} : vector<128x32xbf16>, vector<32x128xbf16>, vector<128x128xf32> -> vector<128x128xf32>
    %c0_202 = arith.constant 0 : index
    %c0_203 = arith.constant 0 : index
    %594 = vector.load %arg14[%c0_202, %c0_203] : memref<1x128xf32, #tpu.memory_space<vmem>>, vector<1x128xf32>
    %595 = vector.broadcast %594 : vector<1x128xf32> to vector<128x128xf32>
    %596 = arith.addf %593, %595 : vector<128x128xf32>
    %597 = vector.shape_cast %596 : vector<128x128xf32> to vector<2x64x128xf32>
    %c0_204 = arith.constant 0 : index
    %c0_205 = arith.constant 0 : index
    %c0_206 = arith.constant 0 : index
    %598 = vector.load %arg15[%c0_204, %c0_205, %c0_206] : memref<2x64x128xf32, #tpu.memory_space<vmem>>, vector<2x64x128xf32>
    tpu.vector_store %arg15[%c0_204, %c0_205, %c0_206], %597 {strides = array<i32>} : memref<2x64x128xf32, #tpu.memory_space<vmem>>, vector<2x64x128xf32>,
    return
  }
  func.func @transform_0(%arg0: i32) -> (i32, i32, i32) {
    %c0_i32 = arith.constant 0 : i32
    %c0_i32_0 = arith.constant 0 : i32
    %c0_i32_1 = arith.constant 0 : i32
    return %arg0, %c0_i32, %c0_i32_0 : i32, i32, i32
  }
  func.func @transform_1(%arg0: i32) -> (i32, i32) {
    %c0_i32 = arith.constant 0 : i32
    %c0_i32_0 = arith.constant 0 : i32
    %c0_i32_1 = arith.constant 0 : i32
    return %c0_i32, %c0_i32_0 : i32, i32
  }
  func.func @transform_2(%arg0: i32) -> (i32, i32, i32, i32) {
    %c0_i32 = arith.constant 0 : i32
    %c0_i32_0 = arith.constant 0 : i32
    %c0_i32_1 = arith.constant 0 : i32
    %c0_i32_2 = arith.constant 0 : i32
    return %arg0, %c0_i32, %c0_i32_0, %c0_i32_1 : i32, i32, i32, i32
  }
  func.func @transform_3(%arg0: i32) -> (i32, i32, i32) {
    %c0_i32 = arith.constant 0 : i32
    %c0_i32_0 = arith.constant 0 : i32
    %c0_i32_1 = arith.constant 0 : i32
    return %arg0, %c0_i32, %c0_i32_0 : i32, i32, i32
  }
  func.func @transform_4(%arg0: i32) -> (i32, i32, i32) {
    %c0_i32 = arith.constant 0 : i32
    %c0_i32_0 = arith.constant 0 : i32
    %c0_i32_1 = arith.constant 0 : i32
    %c0_i32_2 = arith.constant 0 : i32
    return %c0_i32, %c0_i32_0, %c0_i32_1 : i32, i32, i32
  }
  func.func @transform_5(%arg0: i32) -> (i32, i32, i32) {
    %c0_i32 = arith.constant 0 : i32
    %c0_i32_0 = arith.constant 0 : i32
    %c0_i32_1 = arith.constant 0 : i32
    %c0_i32_2 = arith.constant 0 : i32
    return %c0_i32, %c0_i32_0, %c0_i32_1 : i32, i32, i32
  }
  func.func @transform_6(%arg0: i32) -> (i32, i32, i32) {
    %c0_i32 = arith.constant 0 : i32
    %c0_i32_0 = arith.constant 0 : i32
    %c0_i32_1 = arith.constant 0 : i32
    %c0_i32_2 = arith.constant 0 : i32
    return %c0_i32, %c0_i32_0, %c0_i32_1 : i32, i32, i32
  }
  func.func @transform_7(%arg0: i32) -> (i32, i32, i32) {
    %c0_i32 = arith.constant 0 : i32
    %c0_i32_0 = arith.constant 0 : i32
    %c0_i32_1 = arith.constant 0 : i32
    %c0_i32_2 = arith.constant 0 : i32
    return %c0_i32, %c0_i32_0, %c0_i32_1 : i32, i32, i32
  }
  func.func @transform_8(%arg0: i32) -> (i32, i32, i32) {
    %c0_i32 = arith.constant 0 : i32
    %c0_i32_0 = arith.constant 0 : i32
    %c0_i32_1 = arith.constant 0 : i32
    %c0_i32_2 = arith.constant 0 : i32
    return %c0_i32, %c0_i32_0, %c0_i32_1 : i32, i32, i32
  }
  func.func @transform_9(%arg0: i32) -> (i32, i32, i32) {
    %c0_i32 = arith.constant 0 : i32
    %c0_i32_0 = arith.constant 0 : i32
    %c0_i32_1 = arith.constant 0 : i32
    %c0_i32_2 = arith.constant 0 : i32
    return %c0_i32, %c0_i32_0, %c0_i32_1 : i32, i32, i32
  }
  func.func @transform_10(%arg0: i32) -> (i32, i32, i32) {
    %c0_i32 = arith.constant 0 : i32
    %c0_i32_0 = arith.constant 0 : i32
    %c0_i32_1 = arith.constant 0 : i32
    %c0_i32_2 = arith.constant 0 : i32
    return %c0_i32, %c0_i32_0, %c0_i32_1 : i32, i32, i32
  }
  func.func @transform_11(%arg0: i32) -> (i32, i32, i32) {
    %c0_i32 = arith.constant 0 : i32
    %c0_i32_0 = arith.constant 0 : i32
    %c0_i32_1 = arith.constant 0 : i32
    %c0_i32_2 = arith.constant 0 : i32
    return %c0_i32, %c0_i32_0, %c0_i32_1 : i32, i32, i32
  }
  func.func @transform_12(%arg0: i32) -> (i32, i32) {
    %c0_i32 = arith.constant 0 : i32
    %c0_i32_0 = arith.constant 0 : i32
    %c0_i32_1 = arith.constant 0 : i32
    return %c0_i32, %c0_i32_0 : i32, i32
  }
  func.func @transform_13(%arg0: i32) -> (i32, i32) {
    %c0_i32 = arith.constant 0 : i32
    %c0_i32_0 = arith.constant 0 : i32
    %c0_i32_1 = arith.constant 0 : i32
    return %c0_i32, %c0_i32_0 : i32, i32
  }
  func.func @transform_14(%arg0: i32) -> (i32, i32, i32) {
    %c0_i32 = arith.constant 0 : i32
    %c0_i32_0 = arith.constant 0 : i32
    %c0_i32_1 = arith.constant 0 : i32
    return %arg0, %c0_i32, %c0_i32_0 : i32, i32, i32
  }
}

</mosaic_0001>

<bundles_post_ra>
// kernel: _lambda_.1
= control target key start
LH: loop header
LB: loop body
LE: loop exit
PB: predicated region body
PF: predicated region fallthrough
CT: control target
= control target key end

     0   :  { %s11292_s29 = smov 0   ;;  %s15542_s0 = inlined_call_operand.vmem [shape: f32[4,64,32], index: 0, kind: input, shape index: {}]   ;;  %s15543_s1 = inlined_call_operand.vmem [shape: f32[64,64], index: 1, kind: input, shape index: {}]   ;;  %s15544_s2 = inlined_call_operand.vmem [shape: f32[4,2,6,32], index: 2, kind: input, shape index: {}]   ;;  %s15545_s3 = inlined_call_operand.vmem [shape: f32[4,2,32], index: 3, kind: input, shape index: {}]   ;;  %s15546_s4 = inlined_call_operand.vmem [shape: bf16[2,32,96], index: 4, kind: input, shape index: {}]   ;;  %s15547_s5 = inlined_call_operand.vmem [shape: f32[2,1,96], index: 5, kind: input, shape index: {}]   ;;  %s15548_s6 = inlined_call_operand.vmem [shape: bf16[2,32,32], index: 6, kind: input, shape index: {}]   ;;  %s15549_s7 = inlined_call_operand.vmem [shape: f32[2,1,32], index: 7, kind: input, shape index: {}]   ;;  %s15550_s8 = inlined_call_operand.vmem [shape: bf16[2,32,128], index: 8, kind: input, shape index: {}]   ;;  %s15551_s9 = inlined_call_operand.vmem [shape: f32[2,1,128], index: 9, kind: input, shape index: {}]   ;;  %s15552_s10 = inlined_call_operand.vmem [shape: bf16[2,128,32], index: 10, kind: input, shape index: {}]   ;;  %s15553_s11 = inlined_call_operand.vmem [shape: f32[2,1,32], index: 11, kind: input, shape index: {}]   ;;  %s15554_s12 = inlined_call_operand.vmem [shape: bf16[32,128], index: 12, kind: input, shape index: {}]   ;;  %s15555_s13 = inlined_call_operand.vmem [shape: f32[1,128], index: 13, kind: input, shape index: {}]   ;;  %s15556_s14 = inlined_call_operand.vmem [shape: f32[4,64,128], index: 14, kind: output, shape index: {}]  }
   0x1   :  { %15659 = sst [smem:[#allocation98_spill]] %s15542_s0 }
   0x2   :  { %15660 = sst [smem:[#allocation99_spill]] %s15544_s2 }
   0x3 LB: > { %s8937_s30 = sadd.s32 4294967295, %s11201_s29   ;;  %p8941_p0 = scmp.ge.s32.totalorder %s11201_s29, 1  ;;  %s11201_s29 = sphi %s11292_s29, %s24_s29  }
   0x4   : > { %p437_p1 = scmp.lt.s32.totalorder %s11201_s29, 3 }
   0x6   : > { %p438_p2 = pnand %p8941_p0, %p437_p1 }
   0x8   : > { %441 = sbr.rel (%p438_p2) target bundleno = 10657 (0x29a1), region = 76 }
   0xf   : > { %s8942_s15 = sshll.u32 %s8937_s30, 1  ;;  %vm552_vm0 = vcmask 261120   ;;  %s15661_s0 = sld [smem:[#allocation98_spill]]  ;;  %v10373_v56 = vld [vmem:[%s15546_s4] sm:$0xff]   ;;  %v10374_v57 = vld [vmem:[%s15546_s4 + $0x8] sm:$0xff]   ;;  %v764_v63 = vlaneseq  ;;  %vm980_vm1 = vcmask 64512  }
  0x10   : > { %p497_p3 = scmp.lt.s32.totalorder %s8942_s15, 3  ;;  %9571 = vmatprep.subr.bf16.mxu0 %v10373_v56  ;;  %s15662_s2 = sld [smem:[#allocation99_spill]]  ;;  %vm1070_vm2 = vcmask 523264   ;;  %vm1578_vm3 = vcmask 130112   ;;  %vm1905_vm4 = vcmask 195712   ;;  %vm2232_vm5 = vcmask 261312  }
  0x11   : > { %9572 = vmatpush3.bf16.msra.mxu0 %v10373_v56  ;;  %s15568_s17 = smov 96   ;;  %s15600_s18 = smov 88  }
  0x12   : > { %s16006_s15 = smov (!%p497_p3, %s8942_s15), 3  ;;  %9573 = vmatprep.subr.bf16.mxu0 %v10374_v57  ;;  %s15598_s20 = smov 120  }
  0x13   : > { %s15565_s16 = sshll.u32 %s16006_s15, 6  ;;  %s9211_s24 = sshll.u32 %s16006_s15, 4 }
  0x14   : > { %s15566_s21 = smov 64   ;;  %s15596_s22 = smov 56  }
  0x15   : > { %s11308_s19 = scalar_lea.vmem %s15661_s0, %s15565_s16  ;;  %9574 = vmatpush3.bf16.msra.mxu0 %v10374_v57  ;;  %s15594_s28 = smov 80  }
  0x16   : > { %v524_v0 = vld [vmem:[%s11308_s19] sm:$0xff]  ;;  %v526_v1 = vld [vmem:[%s11308_s19 + $0x10] sm:$0xff]  ;;  %v525_v2 = vld [vmem:[%s11308_s19 + $0x8] sm:$0xff]  ;;  %s11376_s27 = scalar_lea.vmem %s15662_s2, %s9211_s24  ;;  %s15592_s30 = smov 112  }
  0x17   : > { %v553_v3 = vsel %vm552_vm0, %v524_v0, 0.0  ;;  %v559_v4 = vsel %vm552_vm0, %v526_v1, 0.0  ;;  %v527_v5 = vld [vmem:[%s11308_s19 + $0x18] sm:$0xff]  ;;  %v528_v6 = vld [vmem:[%s11308_s19 + $0x20] sm:$0xff]  ;;  %v529_v7 = vld [vmem:[%s11308_s19 + $0x28] sm:$0xff]  ;;  %v556_v8 = vsel %vm552_vm0, %v525_v2, 0.0 }
  0x18   : > { %554 = vadd.xlane.f32.xlu0 %v553_v3  ;;  %560 = vadd.xlane.f32.xlu1 %v559_v4  ;;  %v562_v9 = vsel %vm552_vm0, %v527_v5, 0.0  ;;  %v565_v10 = vsel %vm552_vm0, %v528_v6, 0.0  ;;  %v568_v11 = vsel %vm552_vm0, %v529_v7, 0.0  ;;  %v530_v12 = vld [vmem:[%s11308_s19 + $0x30] sm:$0xff]  ;;  %v531_v13 = vld [vmem:[%s11308_s19 + $0x38] sm:$0xff]  ;;  %s15590_s23 = smov 48  }
  0x19   : > { %v571_v14 = vsel %vm552_vm0, %v530_v12, 0.0  ;;  %v574_v15 = vsel %vm552_vm0, %v531_v13, 0.0  ;;  %s15574_s24 = smov 72   ;;  %s15572_s25 = smov 104  }
  0x1a   : > { %s15570_s26 = smov 40   ;;  %s15725_s16 = smov 40  }
  0x1c   : > { %557 = vadd.xlane.f32.xlu0 %v556_v8  ;;  %563 = vadd.xlane.f32.xlu1 %v562_v9  ;;  %v548_v9 = vld [vmem:[%s11376_s27] sm:$0x3f] }
  0x20   : > { %566 = vadd.xlane.f32.xlu0 %v565_v10  ;;  %569 = vadd.xlane.f32.xlu1 %v568_v11 }
  0x24   : > { %572 = vadd.xlane.f32.xlu0 %v571_v14  ;;  %575 = vadd.xlane.f32.xlu1 %v574_v15  ;;  %v11381_v14 = vadd.f32 1.0, %v548_v9 }
  0x26   : > { %15664 = vst [vmem:[#allocation4_spill] sm:$0xff] %v11381_v14 }
  0xa5   : > { %v555_v16 = vpop.xlane.xlu0 %554  ;;  %v561_v17 = vpop.xlane.xlu1 %560 }
  0xa6   : > { %v602_v18 = vmul.f32 0.03125, %v555_v16  ;;  %v604_v19 = vmul.f32 0.03125, %v561_v17 }
  0xa8   : > { %v11326_v20 = vsub.f32 %v524_v0, %v602_v18  ;;  %v11328_v21 = vsub.f32 %v526_v1, %v604_v19 }
  0xa9   : > { %v558_v22 = vpop.xlane.xlu0 %557  ;;  %v564_v23 = vpop.xlane.xlu1 %563 }
  0xaa   : > { %v603_v24 = vmul.f32 0.03125, %v558_v22  ;;  %v605_v25 = vmul.f32 0.03125, %v564_v23  ;;  %v634_v26 = vmul.f32 %v11326_v20, %v11326_v20  ;;  %v636_v27 = vmul.f32 %v11328_v21, %v11328_v21 }
  0xac   : > { %v11334_v28 = vsub.f32 %v525_v2, %v603_v24  ;;  %v11336_v29 = vsub.f32 %v527_v5, %v605_v25  ;;  %v650_v30 = vsel %vm552_vm0, %v634_v26, 0.0  ;;  %v656_v33 = vsel %vm552_vm0, %v636_v27, 0.0 }
  0xad   : > { %651 = vadd.xlane.f32.xlu0 %v650_v30  ;;  %v567_v31 = vpop.xlane.xlu0 %566  ;;  %v570_v32 = vpop.xlane.xlu1 %569 }
  0xae   : > { %v606_v34 = vmul.f32 0.03125, %v567_v31  ;;  %v607_v35 = vmul.f32 0.03125, %v570_v32  ;;  %v635_v36 = vmul.f32 %v11334_v28, %v11334_v28  ;;  %v637_v37 = vmul.f32 %v11336_v29, %v11336_v29 }
  0xb0   : > { %v11344_v38 = vsub.f32 %v528_v6, %v606_v34  ;;  %v11346_v39 = vsub.f32 %v529_v7, %v607_v35  ;;  %v653_v40 = vsel %vm552_vm0, %v635_v36, 0.0  ;;  %v659_v43 = vsel %vm552_vm0, %v637_v37, 0.0 }
  0xb1   : > { %657 = vadd.xlane.f32.xlu0 %v656_v33  ;;  %654 = vadd.xlane.f32.xlu1 %v653_v40  ;;  %v573_v41 = vpop.xlane.xlu0 %572  ;;  %v576_v42 = vpop.xlane.xlu1 %575  ;;  %v11378_v6 = vshrl.u32 %v764_v63, 7 }
  0xb2   : > { %v608_v44 = vmul.f32 0.03125, %v573_v41  ;;  %v609_v45 = vmul.f32 0.03125, %v576_v42  ;;  %v638_v46 = vmul.f32 %v11344_v38, %v11344_v38  ;;  %v639_v47 = vmul.f32 %v11346_v39, %v11346_v39 }
  0xb3   : > { %15663 = vst [vmem:[#allocation3_spill] sm:$0xff] %v11378_v6  ;;  %v11384_v15 = vsub.s32 1, %v11378_v6  ;;  %v11390_v26 = vsub.s32 0, %v11378_v6 }
  0xb4   : > { %v11354_v48 = vsub.f32 %v530_v12, %v608_v44  ;;  %v11356_v49 = vsub.f32 %v531_v13, %v609_v45  ;;  %v662_v50 = vsel %vm552_vm0, %v638_v46, 0.0  ;;  %v665_v51 = vsel %vm552_vm0, %v639_v47, 0.0 }
  0xb5   : > { %660 = vadd.xlane.f32.xlu1 %v659_v43  ;;  %663 = vadd.xlane.f32.xlu0 %v662_v50  ;;  %15665 = vst [vmem:[#allocation5_spill] sm:$0xff] %v11384_v15  ;;  %v767_v25 = vrot.slane %v11381_v14, %v11384_v15  ;;  %15666 = vst [vmem:[#allocation6_spill] sm:$0xff] %v11390_v26  ;;  %v791_v35 = vrot.slane %v548_v9, %v11390_v26 }
  0xb6   : > { %v640_v52 = vmul.f32 %v11354_v48, %v11354_v48  ;;  %v641_v53 = vmul.f32 %v11356_v49, %v11356_v49 }
  0xb8   : > { %v668_v54 = vsel %vm552_vm0, %v640_v52, 0.0  ;;  %v671_v55 = vsel %vm552_vm0, %v641_v53, 0.0 }
  0xb9   : > { %666 = vadd.xlane.f32.xlu1 %v665_v51  ;;  %669 = vadd.xlane.f32.xlu0 %v668_v54 }
  0xbd   : > { %672 = vadd.xlane.f32.xlu1 %v671_v55 }
 0x13a   : > { %v652_v58 = vpop.xlane.xlu0 %651 }
 0x13b   : > { %v698_v59 = vmul.f32 0.03125, %v652_v58 }
 0x13d   : > { %v714_v60 = vadd.f32 1e-06, %v698_v59 }
 0x13e   : > { %v655_v61 = vpop.xlane.xlu1 %654  ;;  %v658_v62 = vpop.xlane.xlu0 %657 }
 0x13f   : > { %10403 = vrsqrt.f32 %v714_v60  ;;  %v699_v0 = vmul.f32 0.03125, %v655_v61  ;;  %v700_v1 = vmul.f32 0.03125, %v658_v62 }
 0x141   : > { %v715_v2 = vadd.f32 1e-06, %v699_v0  ;;  %v716_v3 = vadd.f32 1e-06, %v700_v1  ;;  %v11407_v0 = vld [vmem:[%s15547_s5] ss:$0 sm:$0xff] }
 0x142   : > { %v661_v4 = vpop.xlane.xlu1 %660  ;;  %v664_v5 = vpop.xlane.xlu0 %663 }
 0x143   : > { %10405 = vrsqrt.f32 %v715_v2  ;;  %v701_v7 = vmul.f32 0.03125, %v661_v4  ;;  %v702_v8 = vmul.f32 0.03125, %v664_v5 }
 0x144   : > { %10407 = vrsqrt.f32 %v716_v3 }
 0x145   : > { %v717_v10 = vadd.f32 1e-06, %v701_v7  ;;  %v718_v11 = vadd.f32 1e-06, %v702_v8 }
 0x146   : > { %v667_v12 = vpop.xlane.xlu1 %666  ;;  %v670_v13 = vpop.xlane.xlu0 %669 }
 0x147   : > { %10409 = vrsqrt.f32 %v717_v10  ;;  %v703_v16 = vmul.f32 0.03125, %v667_v12  ;;  %v704_v17 = vmul.f32 0.03125, %v670_v13 }
 0x148   : > { %10411 = vrsqrt.f32 %v718_v11 }
 0x149   : > { %v10404_v18 = vpop.eup %10403  ;;  %v719_v19 = vadd.f32 1e-06, %v703_v16  ;;  %v720_v22 = vadd.f32 1e-06, %v704_v17 }
 0x14a   : > { %v673_v23 = vpop.xlane.xlu1 %672  ;;  %v746_v24 = vmul.f32 %v10404_v18, %v11326_v20 }
 0x14b   : > { %10413 = vrsqrt.f32 %v719_v19  ;;  %v705_v27 = vmul.f32 0.03125, %v673_v23 }
 0x14c   : > { %10415 = vrsqrt.f32 %v720_v22  ;;  %v772_v34 = vmul.f32 %v767_v25, %v746_v24  ;;  %v11452_v24 = vld [vmem:[%s11308_s19 + $0x40] sm:$0xff] }
 0x14d   : > { %v10406_v30 = vpop.eup %10405  ;;  %v721_v31 = vadd.f32 1e-06, %v705_v27  ;;  %v11457_v27 = vld [vmem:[%s11308_s19 + $0x50] sm:$0xff] }
 0x14e   : > { %v10408_v32 = vpop.eup %10407  ;;  %v747_v33 = vmul.f32 %v10406_v30, %v11334_v28  ;;  %v796_v41 = vadd.f32 %v791_v35, %v772_v34  ;;  %v583_v30 = vsel %vm552_vm0, %v11457_v27, 0.0 }
 0x14f   : > { %10417 = vrsqrt.f32 %v721_v31  ;;  %v748_v20 = vmul.f32 %v10408_v32, %v11328_v21  ;;  %v11462_v31 = vld [vmem:[%s11308_s19 + $0x58] sm:$0xff] }
 0x150   : > { %v773_v36 = vmul.f32 %v767_v25, %v747_v33  ;;  %v586_v32 = vsel %vm552_vm0, %v11462_v31, 0.0  ;;  %v11467_v33 = vld [vmem:[%s11308_s19 + $0x60] sm:$0xff] }
 0x151   : > { %v10410_v37 = vpop.eup %10409  ;;  %v774_v44 = vmul.f32 %v767_v25, %v748_v20  ;;  %v589_v34 = vsel %vm552_vm0, %v11467_v33, 0.0  ;;  %v11475_v20 = vld [vmem:[%s11308_s19 + $0x48] sm:$0xff] }
 0x152   : > { %v10412_v40 = vpop.eup %10411  ;;  %v797_v42 = vadd.f32 %v791_v35, %v773_v36  ;;  %v749_v43 = vmul.f32 %v10410_v37, %v11336_v29  ;;  %v580_v37 = vsel %vm552_vm0, %v11475_v20, 0.0 }
 0x153   : > { %v750_v45 = vmul.f32 %v10412_v40, %v11344_v38  ;;  %v798_v51 = vadd.f32 %v791_v35, %v774_v44  ;;  %v11482_v40 = vld [vmem:[%s11308_s19 + $0x68] sm:$0xff] }
 0x154   : > { %v816_v46 = vpack.c.bf16 %v797_v42, %v796_v41  ;;  %v775_v47 = vmul.f32 %v767_v25, %v749_v43  ;;  %v592_v41 = vsel %vm552_vm0, %v11482_v40, 0.0  ;;  %v11487_v42 = vld [vmem:[%s11308_s19 + $0x78] sm:$0xff] }
 0x155   : > { %v10414_v50 = vpop.eup %10413  ;;  %v776_v53 = vmul.f32 %v767_v25, %v750_v45  ;;  %v598_v43 = vsel %vm552_vm0, %v11487_v42, 0.0 }
 0x156   : > { %v10416_v28 = vpop.eup %10415  ;;  %9575 = vmatprep.mubr.msk.bf16.mxu0 %vm552_vm0, %v816_v46  ;;  %v799_v52 = vadd.f32 %v791_v35, %v775_v47  ;;  %v751_v21 = vmul.f32 %v10414_v50, %v11346_v39 }
 0x157   : > { %v752_v54 = vmul.f32 %v10416_v28, %v11354_v48  ;;  %v800_v29 = vadd.f32 %v791_v35, %v776_v53 }
 0x158   : > { %v817_v55 = vpack.c.bf16 %v799_v52, %v798_v51  ;;  %v777_v56 = vmul.f32 %v767_v25, %v751_v21 }
 0x159   : > { %v10418_v57 = vpop.eup %10417  ;;  %v778_v59 = vmul.f32 %v767_v25, %v752_v54 }
 0x15a   : > { %9576 = vmatmul.mubr.msk.bf16.vlgmr.msra.gmra.mrb[0].mxu0 %vm552_vm0, %v817_v55  ;;  %v801_v38 = vadd.f32 %v791_v35, %v777_v56  ;;  %v753_v58 = vmul.f32 %v10418_v57, %v11356_v49 }
 0x15b   : > { %v802_v62 = vadd.f32 %v791_v35, %v778_v59 }
 0x15c   : > { %v818_v60 = vpack.c.bf16 %v801_v38, %v800_v29  ;;  %v779_v61 = vmul.f32 %v767_v25, %v753_v58  ;;  %v577_v25 = vsel %vm552_vm0, %v11452_v24, 0.0 }
 0x15e   : > { %9579 = vmatprep.mubr.msk.bf16.mxu0 %vm552_vm0, %v818_v60  ;;  %v803_v63 = vadd.f32 %v791_v35, %v779_v61  ;;  %v11472_v35 = vld [vmem:[%s11308_s19 + $0x70] sm:$0xff] }
 0x15f   : > { %v595_v36 = vsel %vm552_vm0, %v11472_v35, 0.0 }
 0x160   : > { %v819_v39 = vpack.c.bf16 %v803_v63, %v802_v62 }
 0x162   : > { %9580 = vmatmul.mubr.msk.bf16.gmra.mrb[4].mxu0 %vm552_vm0, %v819_v39 }
 0x22d   : > { %v9577_v48 = vpop.f32.mrb[0].mxu0 }
 0x22e   : > { %v901_v1 = vpop.f32.mrb[1].mxu0  ;;  %v910_v49 = vadd.f32 %v9577_v48, %v11407_v0 }
 0x22f   : > { %v9578_v2 = vpop.f32.mrb[2].mxu0  ;;  %v902_v5 = vadd.f32 %v11407_v0, %v901_v1 }
 0x230   : > { %v913_v3 = vadd.f32 %v9578_v2, %v11407_v0  ;;  %v904_v4 = vpop.f32.mrb[3].mxu0 }
 0x231   : > { %v905_v7 = vadd.f32 %v11407_v0, %v904_v4 }
 0x232   : > { %v11413_v8 = vpack.c.bf16 %v913_v3, %v910_v49 }
 0x233   : > { %v11415_v9 = vpack.c.bf16 %v905_v7, %v902_v5 }
 0x234   : > { %974 = vrot.lane.b32.xlu1 %v11413_v8, %s15568_s17 }
 0x235   : > { %972 = vrot.lane.b32.xlu0 %v11415_v9, %s15568_s17  ;;  %v9581_v10 = vpop.f32.mrb[4].mxu0  ;;  %9599 = vmatprep.mubr.msk.bf16.mxu1 %vm980_vm1, %v11415_v9 }
 0x236   : > { %v917_v11 = vpop.f32.mrb[5].mxu0  ;;  %v926_v13 = vadd.f32 %v9581_v10, %v11407_v0 }
 0x237   : > { %v9582_v12 = vpop.f32.mrb[6].mxu0  ;;  %v918_v18 = vadd.f32 %v11407_v0, %v917_v11 }
 0x238   : > { %v929_v16 = vadd.f32 %v9582_v12, %v11407_v0  ;;  %v920_v17 = vpop.f32.mrb[7].mxu0 }
 0x239   : > { %v921_v19 = vadd.f32 %v11407_v0, %v920_v17  ;;  %1268 = vrot.lane.b32.xlu0 %v11415_v9, %s15600_s18 }
 0x23a   : > { %v11429_v22 = vpack.c.bf16 %v929_v16, %v926_v13 }
 0x23b   : > { %v11431_v23 = vpack.c.bf16 %v921_v19, %v918_v18 }
 0x23d   : > { %1272 = vrot.lane.b32.xlu0 %v11431_v23, %s15600_s18  ;;  %976 = vrot.lane.b32.xlu1 %v11431_v23, %s15568_s17 }
 0x241   : > { %1260 = vrot.lane.b32.xlu0 %v11415_v9, %s15598_s20  ;;  %978 = vrot.lane.b32.xlu1 %v11429_v22, %s15568_s17 }
 0x245   : > { %1264 = vrot.lane.b32.xlu0 %v11431_v23, %s15598_s20  ;;  %1270 = vrot.lane.b32.xlu1 %v11413_v8, %s15600_s18 }
 0x249   : > { %1274 = vrot.lane.b32.xlu1 %v11429_v22, %s15600_s18 }
 0x24d   : > { %1262 = vrot.lane.b32.xlu1 %v11413_v8, %s15598_s20 }
 0x251   : > { %1266 = vrot.lane.b32.xlu1 %v11429_v22, %s15598_s20 }
 0x264   : > { %578 = vadd.xlane.f32.xlu0 %v577_v25 }
 0x268   : > { %584 = vadd.xlane.f32.xlu0 %v583_v30 }
 0x26c   : > { %587 = vadd.xlane.f32.xlu0 %v586_v32 }
 0x270   : > { %590 = vadd.xlane.f32.xlu0 %v589_v34 }
 0x274   : > { %596 = vadd.xlane.f32.xlu0 %v595_v36 }
 0x275   : > { %581 = vadd.xlane.f32.xlu1 %v580_v37 }
 0x279   : > { %593 = vadd.xlane.f32.xlu1 %v592_v41 }
 0x27d   : > { %599 = vadd.xlane.f32.xlu1 %v598_v43 }
 0x2a6   : > { %v975_v46 = vpop.permute.xlu1 %974 }
 0x2a7   : > { %v973_v44 = vpop.permute.xlu0 %972  ;;  %v997_v47 = vsel %vm980_vm1, %v975_v46, 0 }
 0x2a8   : > { %10287 = vmatprep.subr.msk.bf16.mxu1 %vm980_vm1, %v973_v44  ;;  %v994_v45 = vsel %vm980_vm1, %v973_v44, 0 }
 0x2a9   : > { %9592 = vmatpush3.bf16.xpose.msra.mxu1 %v994_v45 }
 0x2aa   : > { %10288 = vmatprep.subr.msk.bf16.mxu1 %vm980_vm1, %v975_v46 }
 0x2ab   : > { %v1269_v21 = vpop.permute.xlu0 %1268 }
 0x2ac   : > { %v1289_v53 = vsel %vm980_vm1, %v1269_v21, 0 }
 0x2af   : > { %v977_v50 = vpop.permute.xlu1 %976  ;;  %v1273_v55 = vpop.permute.xlu0 %1272 }
 0x2b0   : > { %v1000_v28 = vsel %vm980_vm1, %v977_v50, 0  ;;  %v1295_v29 = vsel %vm980_vm1, %v1273_v55, 0 }
 0x2b1   : > { %9594 = vmatpush3.bf16.xpose.msra.mxu1 %v997_v47 }
 0x2b2   : > { %10289 = vmatprep.subr.msk.bf16.mxu1 %vm980_vm1, %v977_v50 }
 0x2b3   : > { %v979_v51 = vpop.permute.xlu1 %978  ;;  %v1261_v56 = vpop.permute.xlu0 %1260 }
 0x2b4   : > { %v1003_v52 = vsel %vm980_vm1, %v979_v51, 0 }
 0x2b7   : > { %v1271_v54 = vpop.permute.xlu1 %1270  ;;  %v1265_v60 = vpop.permute.xlu0 %1264 }
 0x2b8   : > { %v1292_v57 = vsel %vm980_vm1, %v1271_v54, 0 }
 0x2b9   : > { %9596 = vmatpush3.bf16.xpose.msra.mxu1 %v1000_v28 }
 0x2ba   : > { %10290 = vmatprep.subr.msk.bf16.mxu1 %vm980_vm1, %v979_v51 }
 0x2bb   : > { %v1275_v38 = vpop.permute.xlu1 %1274 }
 0x2bc   : > { %v1298_v58 = vsel %vm980_vm1, %v1275_v38, 0 }
 0x2bf   : > { %v1263_v59 = vpop.permute.xlu1 %1262 }
 0x2c1   : > { %9598 = vmatpush3.bf16.xpose.msra.mxu1 %v1003_v52 }
 0x2c2   : > { %10291 = vmatprep.subr.msk.bf16.mxu1 %vm980_vm1, %v1269_v21 }
 0x2c3   : > { %v1267_v61 = vpop.permute.xlu1 %1266 }
 0x2c8   : > { %9600 = vmatmul.mubr.msk.bf16.vlgmr.msra.gmra.mrb[0].mxu1 %vm980_vm1, %v11413_v8 }
 0x2c9   : > { %9603 = vmatprep.mubr.msk.bf16.mxu1 %vm980_vm1, %v11431_v23  ;;  %9624 = vmatpush3.bf16.xpose.msra.mxu1 %v1289_v53 }
 0x2ca   : > { %10292 = vmatprep.subr.msk.bf16.mxu1 %vm980_vm1, %v1271_v54 }
 0x2d0   : > { %9604 = vmatmul.mubr.msk.bf16.gmra.mrb[4].mxu1 %vm980_vm1, %v11429_v22 }
 0x2d1   : > { %9626 = vmatpush3.bf16.xpose.msra.mxu1 %v1292_v57  ;;  %9631 = vmatprep.mubr.msk.bf16.mxu1 %vm980_vm1, %v1261_v56 }
 0x2d2   : > { %10293 = vmatprep.subr.msk.bf16.mxu1 %vm980_vm1, %v1273_v55 }
 0x2d9   : > { %9628 = vmatpush3.bf16.xpose.msra.mxu1 %v1295_v29 }
 0x2da   : > { %10294 = vmatprep.subr.msk.bf16.mxu1 %vm980_vm1, %v1275_v38 }
 0x2e1   : > { %9630 = vmatpush3.bf16.xpose.msra.mxu1 %v1298_v58 }
 0x2e8   : > { %9632 = vmatmul.mubr.msk.bf16.vlgmr.msra.gmra.mrb[8].mxu1 %vm980_vm1, %v1263_v59 }
 0x2e9   : > { %9635 = vmatprep.mubr.msk.bf16.mxu1 %vm980_vm1, %v1265_v60  ;;  %v11584_v60 = vld [vmem:[%s15543_s1 + $0x10] sm:$0xff] }
 0x2f0   : > { %9636 = vmatmul.mubr.msk.bf16.gmra.mrb[12].mxu1 %vm980_vm1, %v1267_v61 }
 0x2f1   : > { %v579_v62 = vpop.xlane.xlu0 %578 }
 0x2f2   : > { %v610_v63 = vmul.f32 0.03125, %v579_v62 }
 0x2f4   : > { %v11518_v39 = vsub.f32 %v11452_v24, %v610_v63 }
 0x2f5   : > { %v585_v48 = vpop.xlane.xlu0 %584 }
 0x2f6   : > { %v612_v1 = vmul.f32 0.03125, %v585_v48  ;;  %v642_v2 = vmul.f32 %v11518_v39, %v11518_v39 }
 0x2f8   : > { %v11523_v49 = vsub.f32 %v11457_v27, %v612_v1  ;;  %v674_v3 = vsel %vm552_vm0, %v642_v2, 0.0  ;;  %v11589_v1 = vld [vmem:[%s15543_s1] sm:$0xff]  ;;  %v11594_v2 = vld [vmem:[%s15543_s1 + $0x18] sm:$0xff] }
 0x2f9   : > { %675 = vadd.xlane.f32.xlu0 %v674_v3  ;;  %v588_v4 = vpop.xlane.xlu0 %587 }
 0x2fa   : > { %v644_v5 = vmul.f32 %v11523_v49, %v11523_v49  ;;  %v613_v12 = vmul.f32 0.03125, %v588_v4 }
 0x2fc   : > { %v680_v7 = vsel %vm552_vm0, %v644_v5, 0.0  ;;  %v11535_v24 = vsub.f32 %v11462_v31, %v613_v12  ;;  %v11603_v12 = vld [vmem:[%s15543_s1 + $0x8] sm:$0xff] }
 0x2fd   : > { %681 = vadd.xlane.f32.xlu0 %v680_v7  ;;  %v591_v10 = vpop.xlane.xlu0 %590  ;;  %v550_v7 = vld [vmem:[%s11376_s27 + $0x10] sm:$0x3f] }
 0x2fe   : > { %v614_v11 = vmul.f32 0.03125, %v591_v10  ;;  %v645_v31 = vmul.f32 %v11535_v24, %v11535_v24 }
 0x300   : > { %v11530_v13 = vsub.f32 %v11467_v33, %v614_v11  ;;  %v683_v45 = vsel %vm552_vm0, %v645_v31, 0.0 }
 0x301   : > { %v597_v16 = vpop.xlane.xlu0 %596 }
 0x302   : > { %v616_v17 = vmul.f32 0.03125, %v597_v16  ;;  %v582_v18 = vpop.xlane.xlu1 %581  ;;  %v646_v19 = vmul.f32 %v11530_v13, %v11530_v13 }
 0x303   : > { %v611_v25 = vmul.f32 0.03125, %v582_v18 }
 0x304   : > { %v11538_v27 = vsub.f32 %v11472_v35, %v616_v17  ;;  %v686_v30 = vsel %vm552_vm0, %v646_v19, 0.0 }
 0x305   : > { %v11542_v32 = vsub.f32 %v11475_v20, %v611_v25  ;;  %687 = vadd.xlane.f32.xlu0 %v686_v30 }
 0x306   : > { %v648_v33 = vmul.f32 %v11538_v27, %v11538_v27  ;;  %v594_v34 = vpop.xlane.xlu1 %593 }
 0x307   : > { %v643_v36 = vmul.f32 %v11542_v32, %v11542_v32  ;;  %v615_v37 = vmul.f32 0.03125, %v594_v34 }
 0x308   : > { %v692_v35 = vsel %vm552_vm0, %v648_v33, 0.0  ;;  %v11613_v33 = vadd.f32 1.0, %v550_v7 }
 0x309   : > { %693 = vadd.xlane.f32.xlu0 %v692_v35  ;;  %v677_v41 = vsel %vm552_vm0, %v643_v36, 0.0  ;;  %v11553_v20 = vsub.f32 %v11482_v40, %v615_v37  ;;  %v11623_v35 = vld [vmem:[%s15543_s1 + $0x30] sm:$0xff] }
 0x30a   : > { %678 = vadd.xlane.f32.xlu1 %v677_v41  ;;  %v600_v43 = vpop.xlane.xlu1 %599  ;;  %15667 = vst [vmem:[#allocation7_spill] sm:$0xff] %v11613_v33 }
 0x30b   : > { %v617_v44 = vmul.f32 0.03125, %v600_v43  ;;  %v647_v46 = vmul.f32 %v11553_v20, %v11553_v20 }
 0x30d   : > { %v11559_v47 = vsub.f32 %v11487_v42, %v617_v44  ;;  %v689_v50 = vsel %vm552_vm0, %v647_v46, 0.0 }
 0x30e   : > { %684 = vadd.xlane.f32.xlu1 %v683_v45 }
 0x30f   : > { %v649_v28 = vmul.f32 %v11559_v47, %v11559_v47 }
 0x311   : > { %v695_v40 = vsel %vm552_vm0, %v649_v28, 0.0  ;;  %v11635_v28 = vld [vmem:[%s15543_s1 + $0x38] sm:$0xff] }
 0x312   : > { %690 = vadd.xlane.f32.xlu1 %v689_v50  ;;  %v11630_v50 = vld [vmem:[%s15543_s1 + $0x20] sm:$0xff] }
 0x316   : > { %696 = vadd.xlane.f32.xlu1 %v695_v40 }
 0x31f   : > { %1147 = vrot.lane.b32.xlu0 %v11415_v9, %s15566_s21 }
 0x323   : > { %1151 = vrot.lane.b32.xlu0 %v11431_v23, %s15566_s21 }
 0x327   : > { %1149 = vrot.lane.b32.xlu1 %v11413_v8, %s15566_s21  ;;  %1445 = vrot.lane.b32.xlu0 %v11431_v23, %s15596_s22 }
 0x32b   : > { %1153 = vrot.lane.b32.xlu1 %v11429_v22, %s15566_s21 }
 0x32f   : > { %1441 = vrot.lane.b32.xlu1 %v11415_v9, %s15596_s22 }
 0x333   : > { %1443 = vrot.lane.b32.xlu1 %v11413_v8, %s15596_s22 }
 0x337   : > { %1447 = vrot.lane.b32.xlu1 %v11429_v22, %s15596_s22 }
 0x386   : > { %v676_v42 = vpop.xlane.xlu0 %675 }
 0x387   : > { %v706_v52 = vmul.f32 0.03125, %v676_v42  ;;  %v11640_v42 = vrot.slane %v11613_v33, %v11384_v15 }
 0x389   : > { %v722_v53 = vadd.f32 1e-06, %v706_v52 }
 0x38a   : > { %v682_v51 = vpop.xlane.xlu0 %681 }
 0x38b   : > { %v708_v21 = vmul.f32 0.03125, %v682_v51  ;;  %10419 = vrsqrt.f32 %v722_v53 }
 0x38d   : > { %v724_v55 = vadd.f32 1e-06, %v708_v21 }
 0x38f   : > { %10421 = vrsqrt.f32 %v724_v55  ;;  %v11650_v55 = vld [vmem:[%s15543_s1 + $0x28] sm:$0xff] }
 0x392   : > { %v688_v54 = vpop.xlane.xlu0 %687 }
 0x393   : > { %v710_v56 = vmul.f32 0.03125, %v688_v54 }
 0x395   : > { %v726_v58 = vadd.f32 1e-06, %v710_v56  ;;  %v10420_v34 = vpop.eup %10419 }
 0x396   : > { %v694_v57 = vpop.xlane.xlu0 %693  ;;  %v754_v40 = vmul.f32 %v10420_v34, %v11518_v39 }
 0x397   : > { %v679_v29 = vpop.xlane.xlu1 %678  ;;  %v712_v59 = vmul.f32 0.03125, %v694_v57 }
 0x398   : > { %v707_v38 = vmul.f32 0.03125, %v679_v29 }
 0x399   : > { %v728_v10 = vadd.f32 1e-06, %v712_v59  ;;  %v10422_v41 = vpop.eup %10421 }
 0x39a   : > { %v723_v61 = vadd.f32 1e-06, %v707_v38  ;;  %v1148_v62 = vpop.permute.xlu0 %1147  ;;  %v756_v39 = vmul.f32 %v10422_v41, %v11523_v49  ;;  %v795_v49 = vrot.slane %v550_v7, %v11390_v26 }
 0x39b   : > { %v9601_v63 = vpop.f32.mrb[0].mxu1  ;;  %v685_v48 = vpop.xlane.xlu1 %684  ;;  %9607 = vmatprep.subr.bf16.mxu0 %v1148_v62 }
 0x39c   : > { %10423 = vrsqrt.f32 %v723_v61  ;;  %v11597_v3 = vadd.f32 %v9601_v63, %v11584_v60  ;;  %v709_v4 = vmul.f32 0.03125, %v685_v48  ;;  %v1039_v5 = vpop.f32.mrb[1].mxu1  ;;  %9608 = vmatpush3.bf16.msra.mxu0 %v1148_v62  ;;  %v780_v48 = vmul.f32 %v11640_v42, %v754_v40 }
 0x39d   : > { %10425 = vrsqrt.f32 %v726_v58  ;;  %v9602_v11 = vpop.f32.mrb[2].mxu1  ;;  %v11606_v17 = vadd.f32 %v1039_v5, %v11589_v1  ;;  %v782_v7 = vmul.f32 %v11640_v42, %v756_v39 }
 0x39e   : > { %v725_v16 = vadd.f32 1e-06, %v709_v4  ;;  %v11609_v18 = vadd.f32 %v9602_v11, %v11594_v2  ;;  %v1042_v19 = vpop.f32.mrb[3].mxu1  ;;  %v1077_v25 = vsel %vm1070_vm2, %v11597_v3, -inf }
 0x39f   : > { %v691_v30 = vpop.xlane.xlu1 %690  ;;  %1078 = vmax.xlane.f32.xlu0 %v1077_v25  ;;  %v11616_v36 = vadd.f32 %v1042_v19, %v11603_v12  ;;  %v1071_v44 = vsel %vm1070_vm2, %v11606_v17, -inf  ;;  %v804_v25 = vadd.f32 %v795_v49, %v780_v48 }
 0x3a0   : > { %10427 = vrsqrt.f32 %v725_v16  ;;  %v711_v37 = vmul.f32 0.03125, %v691_v30  ;;  %v1080_v31 = vsel %vm1070_vm2, %v11609_v18, -inf }
 0x3a1   : > { %1081 = vmax.xlane.f32.xlu1 %v1080_v31  ;;  %10429 = vrsqrt.f32 %v728_v10  ;;  %v1074_v53 = vsel %vm1070_vm2, %v11616_v36, -inf  ;;  %v1152_v10 = vpop.permute.xlu0 %1151 }
 0x3a2   : > { %v727_v43 = vadd.f32 1e-06, %v711_v37 }
 0x3a3   : > { %v9605_v45 = vpop.f32.mrb[4].mxu1  ;;  %v697_v46 = vpop.xlane.xlu1 %696  ;;  %1072 = vmax.xlane.f32.xlu0 %v1071_v44 }
 0x3a4   : > { %10431 = vrsqrt.f32 %v727_v43  ;;  %v11643_v51 = vadd.f32 %v9605_v45, %v11623_v35  ;;  %v713_v52 = vmul.f32 0.03125, %v697_v46  ;;  %v1055_v21 = vpop.f32.mrb[5].mxu1  ;;  %v806_v46 = vadd.f32 %v795_v49, %v782_v7 }
 0x3a5   : > { %v9606_v54 = vpop.f32.mrb[6].mxu1  ;;  %1075 = vmax.xlane.f32.xlu1 %v1074_v53  ;;  %v11654_v29 = vadd.f32 %v1055_v21, %v11630_v50 }
 0x3a6   : > { %v10424_v56 = vpop.eup %10423  ;;  %v729_v57 = vadd.f32 1e-06, %v713_v52  ;;  %v11657_v38 = vadd.f32 %v9606_v54, %v11635_v28  ;;  %v1058_v58 = vpop.f32.mrb[7].mxu1  ;;  %v1089_v59 = vsel %vm1070_vm2, %v11643_v51, -inf }
 0x3a7   : > { %v10426_v61 = vpop.eup %10425  ;;  %v1150_v62 = vpop.permute.xlu1 %1149  ;;  %1090 = vmax.xlane.f32.xlu0 %v1089_v59  ;;  %v755_v63 = vmul.f32 %v10424_v56, %v11542_v32  ;;  %v11665_v4 = vadd.f32 %v1058_v58, %v11650_v55  ;;  %v1083_v32 = vsel %vm1070_vm2, %v11654_v29, -inf }
 0x3a8   : > { %10433 = vrsqrt.f32 %v729_v57  ;;  %9609 = vmatprep.subr.bf16.mxu0 %v1150_v62  ;;  %v1092_v5 = vsel %vm1070_vm2, %v11657_v38, -inf  ;;  %v758_v37 = vmul.f32 %v10426_v61, %v11530_v13 }
 0x3a9   : > { %1093 = vmax.xlane.f32.xlu1 %v1092_v5  ;;  %9610 = vmatpush3.bf16.msra.mxu0 %v1150_v62  ;;  %v781_v11 = vmul.f32 %v11640_v42, %v755_v63  ;;  %v1086_v41 = vsel %vm1070_vm2, %v11665_v4, -inf }
 0x3aa   : > { %v10428_v16 = vpop.eup %10427  ;;  %9611 = vmatprep.subr.bf16.mxu0 %v1152_v10 }
 0x3ab   : > { %v1154_v19 = vpop.permute.xlu1 %1153  ;;  %1084 = vmax.xlane.f32.xlu0 %v1083_v32  ;;  %v805_v30 = vadd.f32 %v795_v49, %v781_v11  ;;  %v757_v34 = vmul.f32 %v10428_v16, %v11535_v24  ;;  %v10430_v31 = vpop.eup %10429  ;;  %v784_v24 = vmul.f32 %v11640_v42, %v758_v37 }
 0x3ac   : > { %v760_v13 = vmul.f32 %v10430_v31, %v11538_v27 }
 0x3ad   : > { %1087 = vmax.xlane.f32.xlu1 %v1086_v41  ;;  %9612 = vmatpush3.bf16.msra.mxu0 %v1152_v10  ;;  %v820_v43 = vpack.c.bf16 %v805_v30, %v804_v25  ;;  %v783_v44 = vmul.f32 %v11640_v42, %v757_v34  ;;  %v808_v56 = vadd.f32 %v795_v49, %v784_v24 }
 0x3ae   : > { %v10432_v45 = vpop.eup %10431  ;;  %9613 = vmatprep.subr.bf16.mxu0 %v1154_v19 }
 0x3af   : > { %9583 = vmatprep.mubr.msk.bf16.mxu0 %vm552_vm0, %v820_v43  ;;  %v807_v40 = vadd.f32 %v795_v49, %v783_v44  ;;  %v759_v52 = vmul.f32 %v10432_v45, %v11553_v20  ;;  %v11682_v21 = vpop.permute.xlu1 %1441  ;;  %v786_v20 = vmul.f32 %v11640_v42, %v760_v13 }
 0x3b1   : > { %9614 = vmatpush3.bf16.msra.mxu0 %v1154_v19  ;;  %v821_v53 = vpack.c.bf16 %v807_v40, %v806_v46  ;;  %v785_v54 = vmul.f32 %v11640_v42, %v759_v52  ;;  %v810_v61 = vadd.f32 %v795_v49, %v786_v20 }
 0x3b2   : > { %v10434_v39 = vpop.eup %10433  ;;  %9639 = vmatprep.subr.bf16.mxu0 %v11682_v21 }
 0x3b3   : > { %9584 = vmatmul.mubr.msk.bf16.gmra.mrb[8].mxu0 %vm552_vm0, %v821_v53  ;;  %v809_v57 = vadd.f32 %v795_v49, %v785_v54  ;;  %v761_v58 = vmul.f32 %v10434_v39, %v11559_v47  ;;  %v1444_v13 = vpop.permute.xlu1 %1443  ;;  %v1446_v53 = vpop.permute.xlu0 %1445 }
 0x3b5   : > { %v822_v59 = vpack.c.bf16 %v809_v57, %v808_v56  ;;  %v787_v27 = vmul.f32 %v11640_v42, %v761_v58 }
 0x3b7   : > { %9587 = vmatprep.mubr.msk.bf16.mxu0 %vm552_vm0, %v822_v59  ;;  %v811_v62 = vadd.f32 %v795_v49, %v787_v27  ;;  %v11756_v54 = vpop.permute.xlu1 %1447 }
 0x3b9   : > { %v823_v63 = vpack.c.bf16 %v811_v62, %v810_v61 }
 0x3bb   : > { %9588 = vmatmul.mubr.msk.bf16.gmra.mrb[12].mxu0 %vm552_vm0, %v823_v63  ;;  %v9633_v48 = vpop.f32.mrb[8].mxu1 }
 0x3bc   : > { %v11693_v5 = vadd.f32 %v9633_v48, %v11584_v60  ;;  %v1334_v10 = vpop.f32.mrb[9].mxu1 }
 0x3bd   : > { %v11696_v11 = vadd.f32 %v1334_v10, %v11589_v1  ;;  %v9634_v47 = vpop.f32.mrb[10].mxu1 }
 0x3be   : > { %v1337_v16 = vpop.f32.mrb[11].mxu1  ;;  %v1371_v42 = vsel %vm1070_vm2, %v11693_v5, -inf  ;;  %v11701_v32 = vadd.f32 %v9634_v47, %v11594_v2 }
 0x3bf   : > { %v11704_v49 = vadd.f32 %v1337_v16, %v11603_v12  ;;  %1372 = vmax.xlane.f32.xlu0 %v1371_v42  ;;  %v1365_v7 = vsel %vm1070_vm2, %v11696_v11, -inf }
 0x3c0   : > { %1366 = vmax.xlane.f32.xlu1 %v1365_v7  ;;  %v1374_v30 = vsel %vm1070_vm2, %v11701_v32, -inf }
 0x3c1   : > { %v1368_v19 = vsel %vm1070_vm2, %v11704_v49, -inf }
 0x3c3   : > { %v9637_v25 = vpop.f32.mrb[12].mxu1  ;;  %1369 = vmax.xlane.f32.xlu0 %v1368_v19 }
 0x3c4   : > { %v11713_v34 = vadd.f32 %v9637_v25, %v11623_v35  ;;  %v1350_v37 = vpop.f32.mrb[13].mxu1  ;;  %1375 = vmax.xlane.f32.xlu1 %v1374_v30 }
 0x3c5   : > { %v9638_v31 = vpop.f32.mrb[14].mxu1  ;;  %v11716_v41 = vadd.f32 %v1350_v37, %v11630_v50 }
 0x3c6   : > { %v1353_v43 = vpop.f32.mrb[15].mxu1  ;;  %v1383_v44 = vsel %vm1070_vm2, %v11713_v34, -inf  ;;  %v11721_v45 = vadd.f32 %v9638_v31, %v11635_v28 }
 0x3c7   : > { %1384 = vmax.xlane.f32.xlu0 %v1383_v44  ;;  %v1377_v46 = vsel %vm1070_vm2, %v11716_v41, -inf  ;;  %v11740_v52 = vadd.f32 %v1353_v43, %v11650_v55 }
 0x3c8   : > { %v1386_v40 = vsel %vm1070_vm2, %v11721_v45, -inf }
 0x3c9   : > { %v1380_v24 = vsel %vm1070_vm2, %v11740_v52, -inf }
 0x3cb   : > { %1378 = vmax.xlane.f32.xlu0 %v1377_v46 }
 0x3cf   : > { %1387 = vmax.xlane.f32.xlu0 %v1386_v40 }
 0x3d5   : > { %1597 = vrot.lane.b32.xlu1 %v11413_v8, %s15594_s28 }
 0x3d9   : > { %1599 = vrot.lane.b32.xlu1 %v11431_v23, %s15594_s28 }
 0x3e5   : > { %1595 = vrot.lane.b32.xlu0 %v11415_v9, %s15594_s28 }
 0x3e9   : > { %1587 = vrot.lane.b32.xlu0 %v11415_v9, %s15592_s30 }
 0x3ed   : > { %1591 = vrot.lane.b32.xlu0 %v11431_v23, %s15592_s30 }
 0x3f1   : > { %1768 = vrot.lane.b32.xlu0 %v11415_v9, %s15590_s23 }
 0x3fd   : > { %1381 = vmax.xlane.f32.xlu1 %v1380_v24 }
 0x40e   : > { %1601 = vrot.lane.b32.xlu1 %v11429_v22, %s15594_s28 }
 0x412   : > { %1589 = vrot.lane.b32.xlu1 %v11413_v8, %s15592_s30 }
 0x416   : > { %1593 = vrot.lane.b32.xlu1 %v11429_v22, %s15592_s30 }
 0x41a   : > { %1770 = vrot.lane.b32.xlu1 %v11413_v8, %s15590_s23 }
 0x41e   : > { %1772 = vrot.lane.b32.xlu1 %v11431_v23, %s15590_s23 }
 0x422   : > { %1774 = vrot.lane.b32.xlu1 %v11429_v22, %s15590_s23 }
 0x42c   : > { %v1079_v39 = vpop.xlane.xlu0 %1078 }
 0x42d   : > { %v1097_v58 = vsub.f32 %v11597_v3, %v1079_v39 }
 0x42e   : > { %v1082_v56 = vpop.xlane.xlu1 %1081 }
 0x42f   : > { %v1098_v57 = vsub.f32 %v11609_v18, %v1082_v56  ;;  %v1107_v48 = vmul.f32 1.442695, %v1097_v58 }
 0x430   : > { %v1073_v20 = vpop.xlane.xlu0 %1072 }
 0x431   : > { %v1109_v59 = vmul.f32 1.442695, %v1098_v57  ;;  %v1095_v27 = vsub.f32 %v11606_v17, %v1073_v20 }
 0x432   : > { %v1076_v61 = vpop.xlane.xlu1 %1075 }
 0x433   : > { %v1103_v62 = vmul.f32 1.442695, %v1095_v27  ;;  %v1096_v63 = vsub.f32 %v11616_v36, %v1076_v61  ;;  %10435 = vpow2.f32 %v1109_v59 }
 0x434   : > { %v1091_v10 = vpop.xlane.xlu0 %1090 }
 0x435   : > { %v1105_v47 = vmul.f32 1.442695, %v1096_v63  ;;  %10437 = vpow2.f32 %v1103_v62  ;;  %v1101_v3 = vsub.f32 %v11643_v51, %v1091_v10 }
 0x436   : > { %v1094_v16 = vpop.xlane.xlu1 %1093 }
 0x437   : > { %10439 = vpow2.f32 %v1105_v47  ;;  %v1102_v42 = vsub.f32 %v11657_v38, %v1094_v16  ;;  %v1115_v30 = vmul.f32 1.442695, %v1101_v3 }
 0x438   : > { %10441 = vpow2.f32 %v1107_v48  ;;  %v1085_v18 = vpop.xlane.xlu0 %1084 }
 0x439   : > { %v1117_v7 = vmul.f32 1.442695, %v1102_v42  ;;  %v1099_v17 = vsub.f32 %v11654_v29, %v1085_v18 }
 0x43a   : > { %v1088_v19 = vpop.xlane.xlu1 %1087 }
 0x43b   : > { %v1111_v25 = vmul.f32 1.442695, %v1099_v17  ;;  %v1100_v36 = vsub.f32 %v11665_v4, %v1088_v19  ;;  %10443 = vpow2.f32 %v1117_v7 }
 0x43d   : > { %v1113_v37 = vmul.f32 1.442695, %v1100_v36  ;;  %10445 = vpow2.f32 %v1111_v25  ;;  %v11766_v31 = vpop.eup %10435 }
 0x43f   : > { %10447 = vpow2.f32 %v1113_v37  ;;  %v11768_v43 = vpop.eup %10437 }
 0x440   : > { %10449 = vpow2.f32 %v1115_v30 }
 0x441   : > { %v11770_v38 = vpop.eup %10439 }
 0x442   : > { %v11772_v51 = vpop.eup %10441  ;;  %v1143_v29 = vpack.c.bf16 %v11770_v38, %v11768_v43 }
 0x443   : > { %v1144_v4 = vpack.c.bf16 %v11766_v31, %v11772_v51 }
 0x444   : > { %9615 = vmatprep.mubr.msk.bf16.mxu0 %vm1070_vm2, %v1143_v29 }
 0x445   : > { %9616 = vmatmul.mubr.msk.bf16.vlgmr.msra.gmra.mrb[16].mxu0 %vm1070_vm2, %v1144_v4  ;;  %v11781_v44 = vpop.eup %10443 }
 0x446   : > { %9640 = vmatpush3.bf16.msra.mxu0 %v11682_v21  ;;  %15668 = vst [vmem:[#allocation8_spill] sm:$0xff] %v11781_v44 }
 0x447   : > { %9641 = vmatprep.subr.bf16.mxu0 %v1444_v13  ;;  %v11783_v46 = vpop.eup %10445 }
 0x448   : > { %15669 = vst [vmem:[#allocation9_spill] sm:$0xff] %v11783_v46 }
 0x449   : > { %v11785_v40 = vpop.eup %10447 }
 0x44a   : > { %15670 = vst [vmem:[#allocation10_spill] sm:$0xff] %v11785_v40  ;;  %v11787_v24 = vpop.eup %10449  ;;  %9642 = vmatpush3.bf16.msra.mxu0 %v1444_v13  ;;  %v1145_v39 = vpack.c.bf16 %v11785_v40, %v11783_v46 }
 0x44b   : > { %15671 = vst [vmem:[#allocation11_spill] sm:$0xff] %v11787_v24  ;;  %9643 = vmatprep.subr.bf16.mxu0 %v1446_v53  ;;  %v1146_v56 = vpack.c.bf16 %v11781_v44, %v11787_v24 }
 0x44c   : > { %9619 = vmatprep.mubr.msk.bf16.mxu0 %vm1070_vm2, %v1145_v39  ;;  %v1373_v21 = vpop.xlane.xlu0 %1372 }
 0x44d   : > { %v1391_v57 = vsub.f32 %v11693_v5, %v1373_v21  ;;  %v1367_v58 = vpop.xlane.xlu1 %1366  ;;  %9620 = vmatmul.mubr.msk.bf16.gmra.mrb[20].mxu0 %vm1070_vm2, %v1146_v56 }
 0x44e   : > { %v1389_v20 = vsub.f32 %v11696_v11, %v1367_v58  ;;  %9644 = vmatpush3.bf16.msra.mxu0 %v1446_v53 }
 0x44f   : > { %v1401_v59 = vmul.f32 1.442695, %v1391_v57  ;;  %9645 = vmatprep.subr.bf16.mxu0 %v11756_v54 }
 0x450   : > { %v1397_v13 = vmul.f32 1.442695, %v1389_v20  ;;  %v1370_v27 = vpop.xlane.xlu0 %1369 }
 0x451   : > { %v1390_v61 = vsub.f32 %v11704_v49, %v1370_v27  ;;  %v1376_v62 = vpop.xlane.xlu1 %1375  ;;  %10451 = vpow2.f32 %v1401_v59 }
 0x452   : > { %v1392_v63 = vsub.f32 %v11701_v32, %v1376_v62  ;;  %9646 = vmatpush3.bf16.msra.mxu0 %v11756_v54  ;;  %10453 = vpow2.f32 %v1397_v13 }
 0x453   : > { %v1399_v5 = vmul.f32 1.442695, %v1390_v61 }
 0x454   : > { %v1403_v48 = vmul.f32 1.442695, %v1392_v63  ;;  %v1385_v10 = vpop.xlane.xlu0 %1384 }
 0x455   : > { %10455 = vpow2.f32 %v1399_v5  ;;  %v1598_v7 = vpop.permute.xlu1 %1597  ;;  %v1395_v21 = vsub.f32 %v11713_v34, %v1385_v10 }
 0x456   : > { %10457 = vpow2.f32 %v1403_v48  ;;  %v1619_v25 = vsel %vm980_vm1, %v1598_v7, 0 }
 0x457   : > { %v1409_v5 = vmul.f32 1.442695, %v1395_v21 }
 0x458   : > { %v1379_v11 = vpop.xlane.xlu0 %1378 }
 0x459   : > { %v1600_v36 = vpop.permute.xlu1 %1599  ;;  %v1393_v29 = vsub.f32 %v11716_v41, %v1379_v11 }
 0x45a   : > { %v1622_v37 = vsel %vm980_vm1, %v1600_v36, 0 }
 0x45b   : > { %v11801_v47 = vpop.eup %10451  ;;  %v1405_v58 = vmul.f32 1.442695, %v1393_v29 }
 0x45c   : > { %v1388_v53 = vpop.xlane.xlu0 %1387  ;;  %v11803_v16 = vpop.eup %10453 }
 0x45d   : > { %v1396_v4 = vsub.f32 %v11721_v45, %v1388_v53  ;;  %10459 = vpow2.f32 %v1405_v58 }
 0x45f   : > { %v11805_v42 = vpop.eup %10455  ;;  %v1411_v27 = vmul.f32 1.442695, %v1396_v4 }
 0x460   : > { %v11807_v49 = vpop.eup %10457  ;;  %v1596_v32 = vpop.permute.xlu0 %1595  ;;  %v1437_v54 = vpack.c.bf16 %v11805_v42, %v11803_v16 }
 0x461   : > { %v1438_v3 = vpack.c.bf16 %v11807_v49, %v11801_v47  ;;  %10295 = vmatprep.subr.msk.bf16.mxu0 %vm980_vm1, %v1596_v32  ;;  %v1616_v18 = vsel %vm980_vm1, %v1596_v32, 0  ;;  %10461 = vpow2.f32 %v1411_v27 }
 0x462   : > { %9647 = vmatprep.mubr.msk.bf16.mxu0 %vm1070_vm2, %v1437_v54 }
 0x463   : > { %9648 = vmatmul.mubr.msk.bf16.vlgmr.msra.gmra.mrb[24].mxu0 %vm1070_vm2, %v1438_v3 }
 0x464   : > { %9656 = vmatpush3.bf16.xpose.msra.mxu0 %v1616_v18  ;;  %v11817_v17 = vpop.permute.xlu0 %1587 }
 0x465   : > { %10296 = vmatprep.subr.msk.bf16.mxu0 %vm980_vm1, %v1598_v7 }
 0x467   : > { %v11847_v4 = vpop.eup %10459 }
 0x468   : > { %v11820_v19 = vpop.permute.xlu0 %1591 }
 0x46c   : > { %9658 = vmatpush3.bf16.xpose.msra.mxu0 %v1619_v25  ;;  %v1769_v30 = vpop.permute.xlu0 %1768 }
 0x46d   : > { %10297 = vmatprep.subr.msk.bf16.mxu0 %vm980_vm1, %v1600_v36  ;;  %9671 = vmatprep.subr.bf16.mxu1 %v1769_v30 }
 0x46e   : > { %9672 = vmatpush3.bf16.msra.mxu1 %v1769_v30 }
 0x474   : > { %9660 = vmatpush3.bf16.xpose.msra.mxu0 %v1622_v37 }
 0x486   : > { %v9585_v39 = vpop.f32.mrb[8].mxu0 }
 0x487   : > { %v933_v56 = vpop.f32.mrb[9].mxu0  ;;  %v942_v20 = vadd.f32 %v9585_v39, %v11407_v0  ;;  %v11849_v39 = vpop.eup %10461 }
 0x488   : > { %v9586_v57 = vpop.f32.mrb[10].mxu0  ;;  %v934_v61 = vadd.f32 %v11407_v0, %v933_v56 }
 0x489   : > { %v945_v59 = vadd.f32 %v9586_v57, %v11407_v0  ;;  %v936_v13 = vpop.f32.mrb[11].mxu0 }
 0x48a   : > { %v937_v62 = vadd.f32 %v11407_v0, %v936_v13  ;;  %v1382_v63 = vpop.xlane.xlu1 %1381 }
 0x48b   : > { %v11832_v41 = vpack.c.bf16 %v945_v59, %v942_v20  ;;  %v1394_v45 = vsub.f32 %v11740_v52, %v1382_v63 }
 0x48c   : > { %v11835_v48 = vpack.c.bf16 %v937_v62, %v934_v61 }
 0x48d   : > { %v1407_v34 = vmul.f32 1.442695, %v1394_v45 }
 0x48e   : > { %v1602_v10 = vpop.permute.xlu1 %1601  ;;  %v9589_v11 = vpop.f32.mrb[12].mxu0 }
 0x48f   : > { %10463 = vpow2.f32 %v1407_v34  ;;  %v949_v53 = vpop.f32.mrb[13].mxu0  ;;  %10298 = vmatprep.subr.msk.bf16.mxu0 %vm980_vm1, %v1602_v10  ;;  %v1625_v32 = vsel %vm980_vm1, %v1602_v10, 0  ;;  %v958_v3 = vadd.f32 %v9589_v11, %v11407_v0 }
 0x490   : > { %10465 = vpow2.f32 %v1409_v5  ;;  %v9590_v54 = vpop.f32.mrb[14].mxu0  ;;  %9662 = vmatpush3.bf16.xpose.msra.mxu0 %v1625_v32  ;;  %v950_v7 = vadd.f32 %v11407_v0, %v949_v53 }
 0x491   : > { %v961_v52 = vadd.f32 %v9590_v54, %v11407_v0  ;;  %v952_v18 = vpop.f32.mrb[15].mxu0 }
 0x492   : > { %v953_v25 = vadd.f32 %v11407_v0, %v952_v18  ;;  %v1590_v36 = vpop.permute.xlu1 %1589 }
 0x493   : > { %v11843_v30 = vpack.c.bf16 %v961_v52, %v958_v3 }
 0x494   : > { %v11845_v37 = vpack.c.bf16 %v953_v25, %v950_v7 }
 0x496   : > { %v1594_v29 = vpop.permute.xlu1 %1593 }
 0x499   : > { %v11851_v56 = vpop.eup %10463 }
 0x49a   : > { %v11853_v21 = vpop.eup %10465  ;;  %v1771_v57 = vpop.permute.xlu1 %1770  ;;  %v1439_v58 = vpack.c.bf16 %v11851_v56, %v11847_v4 }
 0x49b   : > { %9673 = vmatprep.subr.bf16.mxu1 %v1771_v57  ;;  %v1440_v0 = vpack.c.bf16 %v11849_v39, %v11853_v21 }
 0x49c   : > { %9651 = vmatprep.mubr.msk.bf16.mxu0 %vm1070_vm2, %v1439_v58  ;;  %9674 = vmatpush3.bf16.msra.mxu1 %v1771_v57 }
 0x49d   : > { %9652 = vmatmul.mubr.msk.bf16.gmra.mrb[28].mxu0 %vm1070_vm2, %v1440_v0 }
 0x49e   : > { %v1773_v20 = vpop.permute.xlu1 %1772  ;;  %9663 = vmatprep.mubr.msk.bf16.mxu0 %vm980_vm1, %v11817_v17 }
 0x49f   : > { %9675 = vmatprep.subr.bf16.mxu1 %v1773_v20 }
 0x4a0   : > { %9676 = vmatpush3.bf16.msra.mxu1 %v1773_v20 }
 0x4a2   : > { %v1775_v59 = vpop.permute.xlu1 %1774 }
 0x4a3   : > { %9677 = vmatprep.subr.bf16.mxu1 %v1775_v59 }
 0x4a4   : > { %9678 = vmatpush3.bf16.msra.mxu1 %v1775_v59 }
 0x4a5   : > { %9664 = vmatmul.mubr.msk.bf16.vlgmr.msra.gmra.mrb[32].mxu0 %vm980_vm1, %v1590_v36 }
 0x4a6   : > { %9667 = vmatprep.mubr.msk.bf16.mxu0 %vm980_vm1, %v11820_v19 }
 0x4ad   : > { %9668 = vmatmul.mubr.msk.bf16.gmra.mrb[36].mxu0 %vm980_vm1, %v1594_v29 }
 0x518   : > { %v11867_v13 = vpop.f32.mrb[16].mxu0 }
 0x519   : > { %15672 = vst [vmem:[#allocation12_spill] sm:$0xff] %v11867_v13  ;;  %v11869_v27 = vpop.f32.mrb[17].mxu0 }
 0x51a   : > { %15673 = vst [vmem:[#allocation13_spill] sm:$0xff] %v11869_v27  ;;  %v11871_v61 = vpop.f32.mrb[18].mxu0 }
 0x51b   : > { %15674 = vst [vmem:[#allocation14_spill] sm:$0xff] %v11871_v61  ;;  %v11873_v62 = vpop.f32.mrb[19].mxu0 }
 0x51c   : > { %15675 = vst [vmem:[#allocation15_spill] sm:$0xff] %v11873_v62 }
 0x520   : > { %v11875_v17 = vpop.f32.mrb[20].mxu0 }
 0x521   : > { %15676 = vst [vmem:[#allocation16_spill] sm:$0xff] %v11875_v17  ;;  %v11877_v63 = vpop.f32.mrb[21].mxu0 }
 0x522   : > { %15677 = vst [vmem:[#allocation17_spill] sm:$0xff] %v11877_v63  ;;  %v11879_v45 = vpop.f32.mrb[22].mxu0 }
 0x523   : > { %15678 = vst [vmem:[#allocation18_spill] sm:$0xff] %v11879_v45  ;;  %v11881_v5 = vpop.f32.mrb[23].mxu0 }
 0x524   : > { %15679 = vst [vmem:[#allocation19_spill] sm:$0xff] %v11881_v5 }
 0x536   : > { %v11883_v34 = vpop.f32.mrb[24].mxu0 }
 0x537   : > { %15680 = vst [vmem:[#allocation20_spill] sm:$0xff] %v11883_v34  ;;  %v11885_v19 = vpop.f32.mrb[25].mxu0 }
 0x538   : > { %15681 = vst [vmem:[#allocation21_spill] sm:$0xff] %v11885_v19  ;;  %v11887_v10 = vpop.f32.mrb[26].mxu0 }
 0x539   : > { %15682 = vst [vmem:[#allocation22_spill] sm:$0xff] %v11887_v10  ;;  %v11889_v11 = vpop.f32.mrb[27].mxu0 }
 0x53a   : > { %15683 = vst [vmem:[#allocation23_spill] sm:$0xff] %v11889_v11 }
 0x570   : > { %v11891_v53 = vpop.f32.mrb[28].mxu0 }
 0x571   : > { %15684 = vst [vmem:[#allocation24_spill] sm:$0xff] %v11891_v53  ;;  %v11893_v32 = vpop.f32.mrb[29].mxu0 }
 0x572   : > { %15685 = vst [vmem:[#allocation25_spill] sm:$0xff] %v11893_v32  ;;  %v11895_v54 = vpop.f32.mrb[30].mxu0 }
 0x573   : > { %15686 = vst [vmem:[#allocation26_spill] sm:$0xff] %v11895_v54  ;;  %v11897_v3 = vpop.f32.mrb[31].mxu0 }
 0x574   : > { %15687 = vst [vmem:[#allocation27_spill] sm:$0xff] %v11897_v3 }
 0x578   : > { %v9665_v52 = vpop.f32.mrb[32].mxu0 }
 0x579   : > { %v1670_v18 = vadd.f32 %v9665_v52, %v11584_v60  ;;  %v1661_v7 = vpop.f32.mrb[33].mxu0 }
 0x57a   : > { %v9666_v25 = vpop.f32.mrb[34].mxu0  ;;  %v1662_v36 = vadd.f32 %v1661_v7, %v11589_v1 }
 0x57b   : > { %v1664_v29 = vpop.f32.mrb[35].mxu0  ;;  %v1698_v57 = vsel %vm1070_vm2, %v1670_v18, -inf  ;;  %v1673_v20 = vadd.f32 %v9666_v25, %v11594_v2 }
 0x57c   : > { %v1665_v58 = vadd.f32 %v1664_v29, %v11603_v12  ;;  %1699 = vmax.xlane.f32.xlu0 %v1698_v57  ;;  %v1692_v59 = vsel %vm1070_vm2, %v1662_v36, -inf }
 0x57d   : > { %v1701_v14 = vsel %vm1070_vm2, %v1673_v20, -inf }
 0x57e   : > { %v1695_v0 = vsel %vm1070_vm2, %v1665_v58, -inf }
 0x57f   : > { %1696 = vmax.xlane.f32.xlu1 %v1695_v0 }
 0x580   : > { %1693 = vmax.xlane.f32.xlu0 %v1692_v59  ;;  %v9669_v26 = vpop.f32.mrb[36].mxu0 }
 0x581   : > { %v1677_v52 = vpop.f32.mrb[37].mxu0  ;;  %v11907_v33 = vadd.f32 %v9669_v26, %v11623_v35 }
 0x582   : > { %v9670_v15 = vpop.f32.mrb[38].mxu0  ;;  %v11911_v29 = vadd.f32 %v1677_v52, %v11630_v50 }
 0x583   : > { %v1680_v7 = vpop.f32.mrb[39].mxu0  ;;  %v1710_v25 = vsel %vm1070_vm2, %v11907_v33, -inf  ;;  %v11916_v57 = vadd.f32 %v9670_v15, %v11635_v28 }
 0x584   : > { %1702 = vmax.xlane.f32.xlu0 %v1701_v14  ;;  %v1704_v0 = vsel %vm1070_vm2, %v11911_v29, -inf  ;;  %v1681_v14 = vadd.f32 %v1680_v7, %v11650_v55 }
 0x585   : > { %v1713_v26 = vsel %vm1070_vm2, %v11916_v57, -inf }
 0x586   : > { %v1707_v15 = vsel %vm1070_vm2, %v1681_v14, -inf }
 0x588   : > { %1711 = vmax.xlane.f32.xlu0 %v1710_v25 }
 0x58c   : > { %1705 = vmax.xlane.f32.xlu0 %v1704_v0 }
 0x590   : > { %1924 = vrot.lane.b32.xlu1 %v11413_v8, %s15574_s24  ;;  %1714 = vmax.xlane.f32.xlu0 %v1713_v26 }
 0x594   : > { %1926 = vrot.lane.b32.xlu1 %v11431_v23, %s15574_s24 }
 0x5a6   : > { %1922 = vrot.lane.b32.xlu0 %v11415_v9, %s15574_s24 }
 0x5aa   : > { %1914 = vrot.lane.b32.xlu0 %v11415_v9, %s15572_s25 }
 0x5ae   : > { %1918 = vrot.lane.b32.xlu0 %v11431_v23, %s15572_s25 }
 0x5b2   : > { %2095 = vrot.lane.b32.xlu0 %v11415_v9, %s15570_s26 }
 0x5b8   : > { %1708 = vmax.xlane.f32.xlu1 %v1707_v15 }
 0x5c9   : > { %1928 = vrot.lane.b32.xlu1 %v11429_v22, %s15574_s24  ;;  %s15607_s24 = smov 24  }
 0x5cd   : > { %1916 = vrot.lane.b32.xlu1 %v11413_v8, %s15572_s25 }
 0x5d1   : > { %1920 = vrot.lane.b32.xlu1 %v11429_v22, %s15572_s25  ;;  %s15723_s25 = smov 72  }
 0x5d5   : > { %2097 = vrot.lane.b32.xlu1 %v11413_v8, %s15570_s26 }
 0x5d9   : > { %2099 = vrot.lane.b32.xlu1 %v11431_v23, %s15570_s26 }
 0x5dd   : > { %2101 = vrot.lane.b32.xlu1 %v11429_v22, %s15570_s26  ;;  %s15724_s26 = smov 104  }
 0x609   : > { %v1700_v9 = vpop.xlane.xlu0 %1699 }
 0x60a   : > { %v1718_v52 = vsub.f32 %v1670_v18, %v1700_v9 }
 0x60c   : > { %v1697_v59 = vpop.xlane.xlu1 %1696  ;;  %v1728_v6 = vmul.f32 1.442695, %v1718_v52 }
 0x60d   : > { %v1717_v7 = vsub.f32 %v1665_v58, %v1697_v59  ;;  %v1694_v25 = vpop.xlane.xlu0 %1693 }
 0x60e   : > { %v1716_v0 = vsub.f32 %v1662_v36, %v1694_v25 }
 0x60f   : > { %v1726_v26 = vmul.f32 1.442695, %v1717_v7 }
 0x610   : > { %v1724_v15 = vmul.f32 1.442695, %v1716_v0 }
 0x611   : > { %10467 = vpow2.f32 %v1726_v26  ;;  %v1703_v53 = vpop.xlane.xlu0 %1702 }
 0x612   : > { %10469 = vpow2.f32 %v1724_v15  ;;  %v1719_v54 = vsub.f32 %v1673_v20, %v1703_v53  ;;  %v1925_v20 = vpop.permute.xlu1 %1924 }
 0x613   : > { %10471 = vpow2.f32 %v1728_v6  ;;  %v1946_v7 = vsel %vm980_vm1, %v1925_v20, 0 }
 0x614   : > { %v1730_v8 = vmul.f32 1.442695, %v1719_v54 }
 0x615   : > { %v1712_v45 = vpop.xlane.xlu0 %1711 }
 0x616   : > { %10473 = vpow2.f32 %v1730_v8  ;;  %v1927_v25 = vpop.permute.xlu1 %1926 }
 0x617   : > { %v1949_v26 = vsel %vm980_vm1, %v1927_v25, 0 }
 0x619   : > { %v1706_v23 = vpop.xlane.xlu0 %1705 }
 0x61a   : > { %v1720_v15 = vsub.f32 %v11911_v29, %v1706_v23 }
 0x61b   : > { %v11948_v63 = vpop.eup %10467 }
 0x61c   : > { %v11950_v22 = vpop.eup %10469 }
 0x61d   : > { %v1715_v18 = vpop.xlane.xlu0 %1714  ;;  %v1764_v36 = vpack.c.bf16 %v11948_v63, %v11950_v22  ;;  %v11954_v58 = vpop.eup %10471 }
 0x61e   : > { %v1723_v8 = vsub.f32 %v11916_v57, %v1715_v18 }
 0x61f   : > { %9679 = vmatprep.mubr.msk.bf16.mxu1 %vm1070_vm2, %v1764_v36  ;;  %v1722_v36 = vsub.f32 %v11907_v33, %v1712_v45 }
 0x620   : > { %v11957_v9 = vpop.eup %10473 }
 0x621   : > { %v1765_v6 = vpack.c.bf16 %v11957_v9, %v11954_v58  ;;  %v1923_v53 = vpop.permute.xlu0 %1922  ;;  %v1736_v17 = vmul.f32 1.442695, %v1722_v36 }
 0x622   : > { %10299 = vmatprep.subr.msk.bf16.mxu1 %vm980_vm1, %v1923_v53  ;;  %v1943_v54 = vsel %vm980_vm1, %v1923_v53, 0  ;;  %v1738_v53 = vmul.f32 1.442695, %v1723_v8 }
 0x623   : > { %9680 = vmatmul.mubr.msk.bf16.vlgmr.msra.gmra.mrb[16].mxu1 %vm1070_vm2, %v1765_v6  ;;  %v1732_v6 = vmul.f32 1.442695, %v1720_v15 }
 0x624   : > { %9688 = vmatpush3.bf16.xpose.msra.mxu1 %v1943_v54 }
 0x625   : > { %10300 = vmatprep.subr.msk.bf16.mxu1 %vm980_vm1, %v1925_v20  ;;  %v1915_v59 = vpop.permute.xlu0 %1914  ;;  %10475 = vpow2.f32 %v1732_v6 }
 0x626   : > { %10477 = vpow2.f32 %v1738_v53 }
 0x629   : > { %v1919_v52 = vpop.permute.xlu0 %1918 }
 0x62c   : > { %9690 = vmatpush3.bf16.xpose.msra.mxu1 %v1946_v7 }
 0x62d   : > { %10301 = vmatprep.subr.msk.bf16.mxu1 %vm980_vm1, %v1927_v25  ;;  %v2096_v0 = vpop.permute.xlu0 %2095 }
 0x62e   : > { %9703 = vmatprep.subr.bf16.mxu0 %v2096_v0 }
 0x62f   : > { %9704 = vmatpush3.bf16.msra.mxu0 %v2096_v0  ;;  %v11973_v23 = vpop.eup %10475 }
 0x630   : > { %v11975_v33 = vpop.eup %10477 }
 0x634   : > { %9692 = vmatpush3.bf16.xpose.msra.mxu1 %v1949_v26 }
 0x645   : > { %v1709_v54 = vpop.xlane.xlu1 %1708 }
 0x646   : > { %v1721_v20 = vsub.f32 %v1681_v14, %v1709_v54 }
 0x648   : > { %v1734_v7 = vmul.f32 1.442695, %v1721_v20 }
 0x649   : > { %v1929_v5 = vpop.permute.xlu1 %1928 }
 0x64a   : > { %10479 = vpow2.f32 %v1734_v7  ;;  %10302 = vmatprep.subr.msk.bf16.mxu1 %vm980_vm1, %v1929_v5  ;;  %v1952_v25 = vsel %vm980_vm1, %v1929_v5, 0 }
 0x64b   : > { %10481 = vpow2.f32 %v1736_v17  ;;  %9694 = vmatpush3.bf16.xpose.msra.mxu1 %v1952_v25 }
 0x64d   : > { %v1917_v29 = vpop.permute.xlu1 %1916 }
 0x651   : > { %v1921_v57 = vpop.permute.xlu1 %1920 }
 0x654   : > { %v11977_v45 = vpop.eup %10479 }
 0x655   : > { %v11979_v14 = vpop.eup %10481  ;;  %v2098_v18 = vpop.permute.xlu1 %2097  ;;  %v1766_v0 = vpack.c.bf16 %v11977_v45, %v11973_v23 }
 0x656   : > { %9705 = vmatprep.subr.bf16.mxu0 %v2098_v18  ;;  %v1767_v5 = vpack.c.bf16 %v11975_v33, %v11979_v14 }
 0x657   : > { %9683 = vmatprep.mubr.msk.bf16.mxu1 %vm1070_vm2, %v1766_v0  ;;  %9706 = vmatpush3.bf16.msra.mxu0 %v2098_v18 }
 0x658   : > { %9684 = vmatmul.mubr.msk.bf16.gmra.mrb[20].mxu1 %vm1070_vm2, %v1767_v5 }
 0x659   : > { %v2100_v17 = vpop.permute.xlu1 %2099  ;;  %9695 = vmatprep.mubr.msk.bf16.mxu1 %vm980_vm1, %v1915_v59 }
 0x65a   : > { %9707 = vmatprep.subr.bf16.mxu0 %v2100_v17 }
 0x65b   : > { %9708 = vmatpush3.bf16.msra.mxu0 %v2100_v17 }
 0x65d   : > { %v2102_v26 = vpop.permute.xlu1 %2101 }
 0x65e   : > { %9709 = vmatprep.subr.bf16.mxu0 %v2102_v26 }
 0x65f   : > { %9710 = vmatpush3.bf16.msra.mxu0 %v2102_v26 }
 0x660   : > { %9696 = vmatmul.mubr.msk.bf16.vlgmr.msra.gmra.mrb[24].mxu1 %vm980_vm1, %v1917_v29 }
 0x661   : > { %9699 = vmatprep.mubr.msk.bf16.mxu1 %vm980_vm1, %v1919_v52 }
 0x668   : > { %9700 = vmatmul.mubr.msk.bf16.gmra.mrb[28].mxu1 %vm980_vm1, %v1921_v57 }
 0x6f6   : > { %v11991_v15 = vpop.f32.mrb[16].mxu1 }
 0x6f7   : > { %15688 = vst [vmem:[#allocation28_spill] sm:$0xff] %v11991_v15  ;;  %v11993_v8 = vpop.f32.mrb[17].mxu1 }
 0x6f8   : > { %15689 = vst [vmem:[#allocation29_spill] sm:$0xff] %v11993_v8  ;;  %v11995_v36 = vpop.f32.mrb[18].mxu1 }
 0x6f9   : > { %15690 = vst [vmem:[#allocation30_spill] sm:$0xff] %v11995_v36  ;;  %v11997_v6 = vpop.f32.mrb[19].mxu1 }
 0x6fa   : > { %15691 = vst [vmem:[#allocation31_spill] sm:$0xff] %v11997_v6 }
 0x72b   : > { %v11999_v59 = vpop.f32.mrb[20].mxu1 }
 0x72c   : > { %15692 = vst [vmem:[#allocation32_spill] sm:$0xff] %v11999_v59  ;;  %v12001_v53 = vpop.f32.mrb[21].mxu1 }
 0x72d   : > { %15693 = vst [vmem:[#allocation33_spill] sm:$0xff] %v12001_v53  ;;  %v12003_v54 = vpop.f32.mrb[22].mxu1 }
 0x72e   : > { %15694 = vst [vmem:[#allocation34_spill] sm:$0xff] %v12003_v54  ;;  %v12005_v20 = vpop.f32.mrb[23].mxu1 }
 0x72f   : > { %15695 = vst [vmem:[#allocation35_spill] sm:$0xff] %v12005_v20 }
 0x733   : > { %v9697_v7 = vpop.f32.mrb[24].mxu1 }
 0x734   : > { %v1997_v52 = vadd.f32 %v9697_v7, %v11584_v60  ;;  %v1988_v25 = vpop.f32.mrb[25].mxu1 }
 0x735   : > { %v9698_v29 = vpop.f32.mrb[26].mxu1  ;;  %v1989_v57 = vadd.f32 %v1988_v25, %v11589_v1 }
 0x736   : > { %v1991_v18 = vpop.f32.mrb[27].mxu1  ;;  %v2025_v0 = vsel %vm1070_vm2, %v1997_v52, -inf  ;;  %v2000_v26 = vadd.f32 %v9698_v29, %v11594_v2 }
 0x737   : > { %v1992_v5 = vadd.f32 %v1991_v18, %v11603_v12  ;;  %2026 = vmax.xlane.f32.xlu0 %v2025_v0  ;;  %v2019_v54 = vsel %vm1070_vm2, %v1989_v57, -inf }
 0x738   : > { %v2028_v25 = vsel %vm1070_vm2, %v2000_v26, -inf }
 0x739   : > { %v2022_v17 = vsel %vm1070_vm2, %v1992_v5, -inf }
 0x73a   : > { %2023 = vmax.xlane.f32.xlu1 %v2022_v17 }
 0x73b   : > { %2020 = vmax.xlane.f32.xlu0 %v2019_v54  ;;  %v9701_v20 = vpop.f32.mrb[28].mxu1 }
 0x73c   : > { %v2004_v60 = vpop.f32.mrb[29].mxu1  ;;  %v12015_v59 = vadd.f32 %v9701_v20, %v11623_v35 }
 0x73d   : > { %v9702_v7 = vpop.f32.mrb[30].mxu1  ;;  %v12019_v12 = vadd.f32 %v2004_v60, %v11630_v50 }
 0x73e   : > { %v2007_v1 = vpop.f32.mrb[31].mxu1  ;;  %v2037_v2 = vsel %vm1070_vm2, %v12015_v59, -inf  ;;  %v2016_v29 = vadd.f32 %v9702_v7, %v11635_v28 }
 0x73f   : > { %2029 = vmax.xlane.f32.xlu0 %v2028_v25  ;;  %v2031_v54 = vsel %vm1070_vm2, %v12019_v12, -inf  ;;  %v2008_v50 = vadd.f32 %v2007_v1, %v11650_v55 }
 0x740   : > { %v2040_v35 = vsel %vm1070_vm2, %v2016_v29, -inf }
 0x741   : > { %v2034_v28 = vsel %vm1070_vm2, %v2008_v50, -inf }
 0x743   : > { %2038 = vmax.xlane.f32.xlu0 %v2037_v2 }
 0x747   : > { %2032 = vmax.xlane.f32.xlu0 %v2031_v54 }
 0x74b   : > { %2251 = vrot.lane.b32.xlu1 %v11832_v41, %s15568_s17  ;;  %2041 = vmax.xlane.f32.xlu0 %v2040_v35 }
 0x74f   : > { %2253 = vrot.lane.b32.xlu1 %v11845_v37, %s15568_s17 }
 0x761   : > { %2249 = vrot.lane.b32.xlu0 %v11835_v48, %s15568_s17 }
 0x765   : > { %2422 = vrot.lane.b32.xlu0 %v11835_v48, %s15566_s21 }
 0x773   : > { %2035 = vmax.xlane.f32.xlu1 %v2034_v28 }
 0x784   : > { %2255 = vrot.lane.b32.xlu1 %v11843_v30, %s15568_s17  ;;  %s15609_s17 = smov 16  }
 0x788   : > { %2424 = vrot.lane.b32.xlu1 %v11832_v41, %s15566_s21 }
 0x78c   : > { %2426 = vrot.lane.b32.xlu1 %v11845_v37, %s15566_s21 }
 0x790   : > { %2428 = vrot.lane.b32.xlu1 %v11843_v30, %s15566_s21  ;;  %s15611_s21 = smov 8  }
 0x7c4   : > { %v2027_v20 = vpop.xlane.xlu0 %2026 }
 0x7c5   : > { %v2045_v0 = vsub.f32 %v1997_v52, %v2027_v20 }
 0x7c7   : > { %v2024_v18 = vpop.xlane.xlu1 %2023  ;;  %v2055_v25 = vmul.f32 1.442695, %v2045_v0 }
 0x7c8   : > { %v2044_v17 = vsub.f32 %v1992_v5, %v2024_v18  ;;  %v2021_v55 = vpop.xlane.xlu0 %2020 }
 0x7c9   : > { %v2043_v60 = vsub.f32 %v1989_v57, %v2021_v55 }
 0x7ca   : > { %v2053_v7 = vmul.f32 1.442695, %v2044_v17 }
 0x7cb   : > { %v2051_v1 = vmul.f32 1.442695, %v2043_v60  ;;  %v2252_v17 = vpop.permute.xlu1 %2251 }
 0x7cc   : > { %10483 = vpow2.f32 %v2053_v7  ;;  %v2030_v2 = vpop.xlane.xlu0 %2029  ;;  %v2273_v60 = vsel %vm980_vm1, %v2252_v17, 0 }
 0x7cd   : > { %10485 = vpow2.f32 %v2051_v1  ;;  %v2046_v54 = vsub.f32 %v2000_v26, %v2030_v2 }
 0x7ce   : > { %10487 = vpow2.f32 %v2055_v25 }
 0x7cf   : > { %v2057_v35 = vmul.f32 1.442695, %v2046_v54  ;;  %v2254_v7 = vpop.permute.xlu1 %2253 }
 0x7d0   : > { %v2039_v28 = vpop.xlane.xlu0 %2038  ;;  %v2276_v1 = vsel %vm980_vm1, %v2254_v7, 0 }
 0x7d1   : > { %10489 = vpow2.f32 %v2057_v35  ;;  %v2049_v54 = vsub.f32 %v12015_v59, %v2039_v28 }
 0x7d4   : > { %v2033_v53 = vpop.xlane.xlu0 %2032 }
 0x7d5   : > { %v2047_v25 = vsub.f32 %v12019_v12, %v2033_v53 }
 0x7d6   : > { %v12045_v61 = vpop.eup %10483 }
 0x7d7   : > { %v12047_v62 = vpop.eup %10485  ;;  %v2059_v35 = vmul.f32 1.442695, %v2047_v25 }
 0x7d8   : > { %v2042_v52 = vpop.xlane.xlu0 %2041  ;;  %v2091_v57 = vpack.c.bf16 %v12045_v61, %v12047_v62  ;;  %v12051_v5 = vpop.eup %10487 }
 0x7d9   : > { %v2050_v2 = vsub.f32 %v2016_v29, %v2042_v52  ;;  %10491 = vpow2.f32 %v2059_v35 }
 0x7da   : > { %9711 = vmatprep.mubr.msk.bf16.mxu0 %vm1070_vm2, %v2091_v57 }
 0x7db   : > { %v12054_v20 = vpop.eup %10489  ;;  %v2065_v57 = vmul.f32 1.442695, %v2050_v2 }
 0x7dc   : > { %v2092_v26 = vpack.c.bf16 %v12054_v20, %v12051_v5  ;;  %v2250_v18 = vpop.permute.xlu0 %2249 }
 0x7dd   : > { %10303 = vmatprep.subr.msk.bf16.mxu0 %vm980_vm1, %v2250_v18  ;;  %v2270_v0 = vsel %vm980_vm1, %v2250_v18, 0  ;;  %10493 = vpow2.f32 %v2065_v57 }
 0x7de   : > { %9712 = vmatmul.mubr.msk.bf16.vlgmr.msra.gmra.mrb[40].mxu0 %vm1070_vm2, %v2092_v26 }
 0x7df   : > { %9720 = vmatpush3.bf16.xpose.msra.mxu0 %v2270_v0  ;;  %v2063_v0 = vmul.f32 1.442695, %v2049_v54 }
 0x7e0   : > { %10304 = vmatprep.subr.msk.bf16.mxu0 %vm980_vm1, %v2252_v17  ;;  %v2423_v55 = vpop.permute.xlu0 %2422 }
 0x7e1   : > { %9735 = vmatprep.subr.bf16.mxu1 %v2423_v55 }
 0x7e2   : > { %9736 = vmatpush3.bf16.msra.mxu1 %v2423_v55 }
 0x7e3   : > { %v12069_v12 = vpop.eup %10491 }
 0x7e7   : > { %9722 = vmatpush3.bf16.xpose.msra.mxu0 %v2273_v60  ;;  %v12071_v29 = vpop.eup %10493 }
 0x7e8   : > { %10305 = vmatprep.subr.msk.bf16.mxu0 %vm980_vm1, %v2254_v7 }
 0x7ef   : > { %9724 = vmatpush3.bf16.xpose.msra.mxu0 %v2276_v1 }
 0x800   : > { %v2036_v26 = vpop.xlane.xlu1 %2035 }
 0x801   : > { %v2048_v18 = vsub.f32 %v2008_v50, %v2036_v26 }
 0x803   : > { %v2061_v55 = vmul.f32 1.442695, %v2048_v18 }
 0x804   : > { %v2256_v17 = vpop.permute.xlu1 %2255 }
 0x805   : > { %10495 = vpow2.f32 %v2061_v55  ;;  %10306 = vmatprep.subr.msk.bf16.mxu0 %vm980_vm1, %v2256_v17  ;;  %v2279_v60 = vsel %vm980_vm1, %v2256_v17, 0  ;;  %v12110_v17 = vld [vmem:[%s15543_s1 + $0x10] sm:$0xff] }
 0x806   : > { %10497 = vpow2.f32 %v2063_v0  ;;  %9726 = vmatpush3.bf16.xpose.msra.mxu0 %v2279_v60 }
 0x808   : > { %v2425_v53 = vpop.permute.xlu1 %2424 }
 0x809   : > { %9737 = vmatprep.subr.bf16.mxu1 %v2425_v53 }
 0x80a   : > { %9738 = vmatpush3.bf16.msra.mxu1 %v2425_v53 }
 0x80c   : > { %v2427_v59 = vpop.permute.xlu1 %2426 }
 0x80d   : > { %9739 = vmatprep.subr.bf16.mxu1 %v2427_v59 }
 0x80e   : > { %9740 = vmatpush3.bf16.msra.mxu1 %v2427_v59 }
 0x80f   : > { %v12073_v50 = vpop.eup %10495 }
 0x810   : > { %v12075_v28 = vpop.eup %10497  ;;  %v2429_v52 = vpop.permute.xlu1 %2428  ;;  %v2093_v7 = vpack.c.bf16 %v12073_v50, %v12069_v12 }
 0x811   : > { %9741 = vmatprep.subr.bf16.mxu1 %v2429_v52  ;;  %v2094_v1 = vpack.c.bf16 %v12071_v29, %v12075_v28 }
 0x812   : > { %9715 = vmatprep.mubr.msk.bf16.mxu0 %vm1070_vm2, %v2093_v7  ;;  %9742 = vmatpush3.bf16.msra.mxu1 %v2429_v52  ;;  %v12116_v52 = vld [vmem:[%s15543_s1] sm:$0xff] }
 0x813   : > { %9716 = vmatmul.mubr.msk.bf16.gmra.mrb[44].mxu0 %vm1070_vm2, %v2094_v1 }
 0x814   : > { %9727 = vmatprep.mubr.msk.bf16.mxu0 %vm980_vm1, %v11835_v48 }
 0x81b   : > { %9728 = vmatmul.mubr.msk.bf16.vlgmr.msra.gmra.mrb[48].mxu0 %vm980_vm1, %v11832_v41 }
 0x81c   : > { %9731 = vmatprep.mubr.msk.bf16.mxu0 %vm980_vm1, %v11845_v37 }
 0x823   : > { %9732 = vmatmul.mubr.msk.bf16.gmra.mrb[52].mxu0 %vm980_vm1, %v11843_v30 }
 0x8b1   : > { %v12091_v25 = vpop.f32.mrb[40].mxu0 }
 0x8b2   : > { %15696 = vst [vmem:[#allocation36_spill] sm:$0xff] %v12091_v25  ;;  %v12093_v2 = vpop.f32.mrb[41].mxu0 }
 0x8b3   : > { %15697 = vst [vmem:[#allocation37_spill] sm:$0xff] %v12093_v2  ;;  %v12095_v54 = vpop.f32.mrb[42].mxu0 }
 0x8b4   : > { %15698 = vst [vmem:[#allocation38_spill] sm:$0xff] %v12095_v54  ;;  %v12097_v35 = vpop.f32.mrb[43].mxu0 }
 0x8b5   : > { %15699 = vst [vmem:[#allocation39_spill] sm:$0xff] %v12097_v35 }
 0x8e6   : > { %v12099_v57 = vpop.f32.mrb[44].mxu0 }
 0x8e7   : > { %15700 = vst [vmem:[#allocation40_spill] sm:$0xff] %v12099_v57  ;;  %v12101_v26 = vpop.f32.mrb[45].mxu0 }
 0x8e8   : > { %15701 = vst [vmem:[#allocation41_spill] sm:$0xff] %v12101_v26  ;;  %v12103_v18 = vpop.f32.mrb[46].mxu0  ;;  %v12130_v26 = vld [vmem:[%s15543_s1 + $0x18] sm:$0xff] }
 0x8e9   : > { %15702 = vst [vmem:[#allocation42_spill] sm:$0xff] %v12103_v18  ;;  %v12105_v0 = vpop.f32.mrb[47].mxu0 }
 0x8ea   : > { %15703 = vst [vmem:[#allocation43_spill] sm:$0xff] %v12105_v0  ;;  %v12123_v0 = vld [vmem:[%s15543_s1 + $0x8] sm:$0xff] }
 0x8ee   : > { %v9729_v55 = vpop.f32.mrb[48].mxu0 }
 0x8ef   : > { %v2324_v60 = vadd.f32 %v12110_v17, %v9729_v55  ;;  %v2315_v53 = vpop.f32.mrb[49].mxu0 }
 0x8f0   : > { %v9730_v59 = vpop.f32.mrb[50].mxu0  ;;  %v2316_v7 = vadd.f32 %v12116_v52, %v2315_v53 }
 0x8f1   : > { %v2318_v1 = vpop.f32.mrb[51].mxu0  ;;  %v2352_v18 = vsel %vm1070_vm2, %v2324_v60, -inf  ;;  %v2327_v53 = vadd.f32 %v12130_v26, %v9730_v59  ;;  %v12146_v59 = vld [vmem:[%s15543_s1 + $0x20] sm:$0xff] }
 0x8f2   : > { %v2319_v57 = vadd.f32 %v12123_v0, %v2318_v1  ;;  %2353 = vmax.xlane.f32.xlu0 %v2352_v18  ;;  %v2346_v3 = vsel %vm1070_vm2, %v2316_v7, -inf  ;;  %v12137_v18 = vld [vmem:[%s15543_s1 + $0x30] sm:$0xff] }
 0x8f3   : > { %v2355_v36 = vsel %vm1070_vm2, %v2327_v53, -inf }
 0x8f4   : > { %v2349_v55 = vsel %vm1070_vm2, %v2319_v57, -inf }
 0x8f5   : > { %2350 = vmax.xlane.f32.xlu1 %v2349_v55 }
 0x8f6   : > { %v9733_v54 = vpop.f32.mrb[52].mxu0  ;;  %2347 = vmax.xlane.f32.xlu0 %v2346_v3 }
 0x8f7   : > { %v2331_v13 = vpop.f32.mrb[53].mxu0  ;;  %v12140_v1 = vadd.f32 %v12137_v18, %v9733_v54  ;;  %v12156_v54 = vld [vmem:[%s15543_s1 + $0x38] sm:$0xff] }
 0x8f8   : > { %v9734_v35 = vpop.f32.mrb[54].mxu0  ;;  %v12149_v3 = vadd.f32 %v12146_v59, %v2331_v13 }
 0x8f9   : > { %v2334_v27 = vpop.f32.mrb[55].mxu0  ;;  %v2364_v55 = vsel %vm1070_vm2, %v12140_v1, -inf  ;;  %v12159_v6 = vadd.f32 %v12156_v54, %v9734_v35  ;;  %v12180_v35 = vld [vmem:[%s15543_s1 + $0x28] sm:$0xff] }
 0x8fa   : > { %2356 = vmax.xlane.f32.xlu0 %v2355_v36  ;;  %v2358_v36 = vsel %vm1070_vm2, %v12149_v3, -inf }
 0x8fb   : > { %v2367_v13 = vsel %vm1070_vm2, %v12159_v6, -inf }
 0x8fe   : > { %2365 = vmax.xlane.f32.xlu0 %v2364_v55  ;;  %v2335_v55 = vadd.f32 %v12180_v35, %v2334_v27 }
 0x902   : > { %2359 = vmax.xlane.f32.xlu0 %v2358_v36  ;;  %v2361_v36 = vsel %vm1070_vm2, %v2335_v55, -inf }
 0x906   : > { %2545 = vrot.lane.b32.xlu1 %v11832_v41, %s15600_s18  ;;  %2368 = vmax.xlane.f32.xlu0 %v2367_v13 }
 0x90a   : > { %2547 = vrot.lane.b32.xlu1 %v11845_v37, %s15600_s18 }
 0x91c   : > { %2543 = vrot.lane.b32.xlu0 %v11835_v48, %s15600_s18 }
 0x920   : > { %2535 = vrot.lane.b32.xlu0 %v11835_v48, %s15598_s20 }
 0x924   : > { %2539 = vrot.lane.b32.xlu0 %v11845_v37, %s15598_s20 }
 0x928   : > { %2716 = vrot.lane.b32.xlu0 %v11835_v48, %s15596_s22 }
 0x92e   : > { %2362 = vmax.xlane.f32.xlu1 %v2361_v36 }
 0x93f   : > { %2549 = vrot.lane.b32.xlu1 %v11843_v30, %s15600_s18 }
 0x943   : > { %2537 = vrot.lane.b32.xlu1 %v11832_v41, %s15598_s20 }
 0x947   : > { %2541 = vrot.lane.b32.xlu1 %v11843_v30, %s15598_s20  ;;  %s15831_s20 = smov 80  }
 0x94b   : > { %2718 = vrot.lane.b32.xlu1 %v11832_v41, %s15596_s22 }
 0x94f   : > { %2720 = vrot.lane.b32.xlu1 %v11845_v37, %s15596_s22 }
 0x953   : > { %2722 = vrot.lane.b32.xlu1 %v11843_v30, %s15596_s22  ;;  %s15834_s22 = smov 48  }
 0x97f   : > { %v2354_v27 = vpop.xlane.xlu0 %2353 }
 0x980   : > { %v2372_v36 = vsub.f32 %v2324_v60, %v2354_v27 }
 0x982   : > { %v2351_v13 = vpop.xlane.xlu1 %2350  ;;  %v2382_v15 = vmul.f32 1.442695, %v2372_v36 }
 0x983   : > { %v2371_v10 = vsub.f32 %v2319_v57, %v2351_v13  ;;  %v2348_v11 = vpop.xlane.xlu0 %2347 }
 0x984   : > { %v2370_v32 = vsub.f32 %v2316_v7, %v2348_v11 }
 0x985   : > { %v2380_v25 = vmul.f32 1.442695, %v2371_v10 }
 0x986   : > { %v2378_v2 = vmul.f32 1.442695, %v2370_v32 }
 0x987   : > { %10499 = vpow2.f32 %v2380_v25  ;;  %v2357_v8 = vpop.xlane.xlu0 %2356 }
 0x988   : > { %10501 = vpow2.f32 %v2378_v2  ;;  %v2373_v19 = vsub.f32 %v2327_v53, %v2357_v8  ;;  %v2546_v8 = vpop.permute.xlu1 %2545 }
 0x989   : > { %10503 = vpow2.f32 %v2382_v15  ;;  %v2567_v57 = vsel %vm980_vm1, %v2546_v8, 0 }
 0x98a   : > { %v2384_v34 = vmul.f32 1.442695, %v2373_v19 }
 0x98b   : > { %v2366_v44 = vpop.xlane.xlu0 %2365 }
 0x98c   : > { %10505 = vpow2.f32 %v2384_v34  ;;  %v2548_v7 = vpop.permute.xlu1 %2547 }
 0x98d   : > { %v2570_v27 = vsel %vm980_vm1, %v2548_v7, 0 }
 0x98f   : > { %v2360_v46 = vpop.xlane.xlu0 %2359 }
 0x990   : > { %v2374_v13 = vsub.f32 %v12149_v3, %v2360_v46 }
 0x991   : > { %v12196_v24 = vpop.eup %10499 }
 0x992   : > { %15704 = vst [vmem:[#allocation44_spill] sm:$0xff] %v12196_v24  ;;  %v12198_v40 = vpop.eup %10501 }
 0x993   : > { %15705 = vst [vmem:[#allocation45_spill] sm:$0xff] %v12198_v40  ;;  %v2369_v60 = vpop.xlane.xlu0 %2368  ;;  %v2418_v11 = vpack.c.bf16 %v12196_v24, %v12198_v40  ;;  %v12202_v10 = vpop.eup %10503 }
 0x994   : > { %15706 = vst [vmem:[#allocation46_spill] sm:$0xff] %v12202_v10  ;;  %v2377_v36 = vsub.f32 %v12159_v6, %v2369_v60 }
 0x995   : > { %9743 = vmatprep.mubr.msk.bf16.mxu1 %vm1070_vm2, %v2418_v11  ;;  %v2376_v11 = vsub.f32 %v12140_v1, %v2366_v44 }
 0x996   : > { %v12205_v32 = vpop.eup %10505 }
 0x997   : > { %15707 = vst [vmem:[#allocation47_spill] sm:$0xff] %v12205_v32  ;;  %v2419_v19 = vpack.c.bf16 %v12205_v32, %v12202_v10  ;;  %v2544_v15 = vpop.permute.xlu0 %2543  ;;  %v2390_v10 = vmul.f32 1.442695, %v2376_v11 }
 0x998   : > { %10307 = vmatprep.subr.msk.bf16.mxu1 %vm980_vm1, %v2544_v15  ;;  %v2564_v34 = vsel %vm980_vm1, %v2544_v15, 0  ;;  %v2392_v15 = vmul.f32 1.442695, %v2377_v36 }
 0x999   : > { %9744 = vmatmul.mubr.msk.bf16.vlgmr.msra.gmra.mrb[32].mxu1 %vm1070_vm2, %v2419_v19  ;;  %v2386_v19 = vmul.f32 1.442695, %v2374_v13 }
 0x99a   : > { %9752 = vmatpush3.bf16.xpose.msra.mxu1 %v2564_v34 }
 0x99b   : > { %10308 = vmatprep.subr.msk.bf16.mxu1 %vm980_vm1, %v2546_v8  ;;  %v2536_v25 = vpop.permute.xlu0 %2535  ;;  %10507 = vpow2.f32 %v2386_v19 }
 0x99c   : > { %10509 = vpow2.f32 %v2392_v15 }
 0x99f   : > { %v2540_v2 = vpop.permute.xlu0 %2539 }
 0x9a2   : > { %9754 = vmatpush3.bf16.xpose.msra.mxu1 %v2567_v57 }
 0x9a3   : > { %10309 = vmatprep.subr.msk.bf16.mxu1 %vm980_vm1, %v2548_v7  ;;  %v2717_v53 = vpop.permute.xlu0 %2716 }
 0x9a4   : > { %9767 = vmatprep.subr.bf16.mxu0 %v2717_v53 }
 0x9a5   : > { %9768 = vmatpush3.bf16.msra.mxu0 %v2717_v53  ;;  %v12221_v3 = vpop.eup %10507 }
 0x9a6   : > { %15708 = vst [vmem:[#allocation48_spill] sm:$0xff] %v12221_v3  ;;  %v12223_v44 = vpop.eup %10509 }
 0x9a7   : > { %15709 = vst [vmem:[#allocation49_spill] sm:$0xff] %v12223_v44 }
 0x9aa   : > { %9756 = vmatpush3.bf16.xpose.msra.mxu1 %v2570_v27 }
 0x9bb   : > { %v2363_v34 = vpop.xlane.xlu1 %2362 }
 0x9bc   : > { %v2375_v8 = vsub.f32 %v2335_v55, %v2363_v34 }
 0x9be   : > { %v2388_v57 = vmul.f32 1.442695, %v2375_v8 }
 0x9bf   : > { %v2550_v32 = vpop.permute.xlu1 %2549 }
 0x9c0   : > { %10511 = vpow2.f32 %v2388_v57  ;;  %10310 = vmatprep.subr.msk.bf16.mxu1 %vm980_vm1, %v2550_v32  ;;  %v2573_v7 = vsel %vm980_vm1, %v2550_v32, 0 }
 0x9c1   : > { %10513 = vpow2.f32 %v2390_v10  ;;  %9758 = vmatpush3.bf16.xpose.msra.mxu1 %v2573_v7 }
 0x9c3   : > { %v2538_v46 = vpop.permute.xlu1 %2537 }
 0x9c7   : > { %v2542_v6 = vpop.permute.xlu1 %2541 }
 0x9ca   : > { %v12225_v1 = vpop.eup %10511 }
 0x9cb   : > { %15710 = vst [vmem:[#allocation50_spill] sm:$0xff] %v12225_v1  ;;  %v12227_v55 = vpop.eup %10513  ;;  %v2719_v60 = vpop.permute.xlu1 %2718  ;;  %v2420_v53 = vpack.c.bf16 %v12225_v1, %v12221_v3 }
 0x9cc   : > { %15711 = vst [vmem:[#allocation51_spill] sm:$0xff] %v12227_v55  ;;  %9769 = vmatprep.subr.bf16.mxu0 %v2719_v60  ;;  %v2421_v32 = vpack.c.bf16 %v12223_v44, %v12227_v55 }
 0x9cd   : > { %9747 = vmatprep.mubr.msk.bf16.mxu1 %vm1070_vm2, %v2420_v53  ;;  %9770 = vmatpush3.bf16.msra.mxu0 %v2719_v60 }
 0x9ce   : > { %9748 = vmatmul.mubr.msk.bf16.gmra.mrb[36].mxu1 %vm1070_vm2, %v2421_v32 }
 0x9cf   : > { %v2721_v10 = vpop.permute.xlu1 %2720  ;;  %9759 = vmatprep.mubr.msk.bf16.mxu1 %vm980_vm1, %v2536_v25 }
 0x9d0   : > { %9771 = vmatprep.subr.bf16.mxu0 %v2721_v10 }
 0x9d1   : > { %9772 = vmatpush3.bf16.msra.mxu0 %v2721_v10 }
 0x9d3   : > { %v2723_v27 = vpop.permute.xlu1 %2722 }
 0x9d4   : > { %9773 = vmatprep.subr.bf16.mxu0 %v2723_v27 }
 0x9d5   : > { %9774 = vmatpush3.bf16.msra.mxu0 %v2723_v27 }
 0x9d6   : > { %9760 = vmatmul.mubr.msk.bf16.vlgmr.msra.gmra.mrb[40].mxu1 %vm980_vm1, %v2538_v46 }
 0x9d7   : > { %9763 = vmatprep.mubr.msk.bf16.mxu1 %vm980_vm1, %v2540_v2 }
 0x9de   : > { %9764 = vmatmul.mubr.msk.bf16.gmra.mrb[44].mxu1 %vm980_vm1, %v2542_v6 }
 0xa6c   : > { %v12239_v13 = vpop.f32.mrb[32].mxu1 }
 0xa6d   : > { %15712 = vst [vmem:[#allocation52_spill] sm:$0xff] %v12239_v13  ;;  %v12241_v36 = vpop.f32.mrb[33].mxu1 }
 0xa6e   : > { %15713 = vst [vmem:[#allocation53_spill] sm:$0xff] %v12241_v36  ;;  %v12243_v11 = vpop.f32.mrb[34].mxu1 }
 0xa6f   : > { %15714 = vst [vmem:[#allocation54_spill] sm:$0xff] %v12243_v11  ;;  %v12245_v19 = vpop.f32.mrb[35].mxu1 }
 0xa70   : > { %15715 = vst [vmem:[#allocation55_spill] sm:$0xff] %v12245_v19 }
 0xaa1   : > { %v12247_v25 = vpop.f32.mrb[36].mxu1 }
 0xaa2   : > { %15716 = vst [vmem:[#allocation56_spill] sm:$0xff] %v12247_v25  ;;  %v12249_v15 = vpop.f32.mrb[37].mxu1 }
 0xaa3   : > { %15717 = vst [vmem:[#allocation57_spill] sm:$0xff] %v12249_v15  ;;  %v12251_v34 = vpop.f32.mrb[38].mxu1 }
 0xaa4   : > { %15718 = vst [vmem:[#allocation58_spill] sm:$0xff] %v12251_v34  ;;  %v12253_v8 = vpop.f32.mrb[39].mxu1 }
 0xaa5   : > { %15719 = vst [vmem:[#allocation59_spill] sm:$0xff] %v12253_v8 }
 0xaa9   : > { %v9761_v57 = vpop.f32.mrb[40].mxu1 }
 0xaaa   : > { %v2618_v2 = vadd.f32 %v12110_v17, %v9761_v57  ;;  %v2609_v7 = vpop.f32.mrb[41].mxu1 }
 0xaab   : > { %v9762_v46 = vpop.f32.mrb[42].mxu1  ;;  %v2610_v6 = vadd.f32 %v12116_v52, %v2609_v7 }
 0xaac   : > { %v2612_v60 = vpop.f32.mrb[43].mxu1  ;;  %v2646_v53 = vsel %vm1070_vm2, %v2618_v2, -inf  ;;  %v2621_v27 = vadd.f32 %v12130_v26, %v9762_v46 }
 0xaad   : > { %v2613_v32 = vadd.f32 %v12123_v0, %v2612_v60  ;;  %2647 = vmax.xlane.f32.xlu0 %v2646_v53  ;;  %v2640_v25 = vsel %vm1070_vm2, %v2610_v6, -inf }
 0xaae   : > { %v2649_v13 = vsel %vm1070_vm2, %v2621_v27, -inf }
 0xaaf   : > { %v2643_v10 = vsel %vm1070_vm2, %v2613_v32, -inf }
 0xab0   : > { %2644 = vmax.xlane.f32.xlu1 %v2643_v10 }
 0xab1   : > { %2641 = vmax.xlane.f32.xlu0 %v2640_v25  ;;  %v9765_v34 = vpop.f32.mrb[44].mxu1 }
 0xab2   : > { %v2625_v57 = vpop.f32.mrb[45].mxu1  ;;  %v12263_v8 = vadd.f32 %v12137_v18, %v9765_v34 }
 0xab3   : > { %v9766_v15 = vpop.f32.mrb[46].mxu1  ;;  %v12267_v60 = vadd.f32 %v12146_v59, %v2625_v57 }
 0xab4   : > { %v2628_v7 = vpop.f32.mrb[47].mxu1  ;;  %v2658_v46 = vsel %vm1070_vm2, %v12263_v8, -inf  ;;  %v12272_v53 = vadd.f32 %v12156_v54, %v9766_v15 }
 0xab5   : > { %2650 = vmax.xlane.f32.xlu0 %v2649_v13  ;;  %v2652_v25 = vsel %vm1070_vm2, %v12267_v60, -inf  ;;  %v2629_v13 = vadd.f32 %v12180_v35, %v2628_v7 }
 0xab6   : > { %v2661_v34 = vsel %vm1070_vm2, %v12272_v53, -inf }
 0xab7   : > { %v2655_v15 = vsel %vm1070_vm2, %v2629_v13, -inf }
 0xab9   : > { %2659 = vmax.xlane.f32.xlu0 %v2658_v46 }
 0xabd   : > { %2653 = vmax.xlane.f32.xlu0 %v2652_v25 }
 0xac1   : > { %2871 = vrot.lane.b32.xlu1 %v11832_v41, %s15594_s28  ;;  %2662 = vmax.xlane.f32.xlu0 %v2661_v34 }
 0xac5   : > { %2873 = vrot.lane.b32.xlu1 %v11845_v37, %s15594_s28 }
 0xad7   : > { %2869 = vrot.lane.b32.xlu0 %v11835_v48, %s15594_s28 }
 0xadb   : > { %2861 = vrot.lane.b32.xlu0 %v11835_v48, %s15592_s30 }
 0xadf   : > { %2865 = vrot.lane.b32.xlu0 %v11845_v37, %s15592_s30 }
 0xae3   : > { %3042 = vrot.lane.b32.xlu0 %v11835_v48, %s15590_s23 }
 0xae9   : > { %2656 = vmax.xlane.f32.xlu1 %v2655_v15 }
 0xafa   : > { %2875 = vrot.lane.b32.xlu1 %v11843_v30, %s15594_s28  ;;  %s15818_s28 = smov 96  }
 0xafe   : > { %2863 = vrot.lane.b32.xlu1 %v11832_v41, %s15592_s30 }
 0xb02   : > { %2867 = vrot.lane.b32.xlu1 %v11843_v30, %s15592_s30  ;;  %s15819_s30 = smov 88  }
 0xb06   : > { %3044 = vrot.lane.b32.xlu1 %v11832_v41, %s15590_s23 }
 0xb0a   : > { %3046 = vrot.lane.b32.xlu1 %v11845_v37, %s15590_s23 }
 0xb0e   : > { %3048 = vrot.lane.b32.xlu1 %v11843_v30, %s15590_s23  ;;  %s15820_s23 = smov 120  }
 0xb3a   : > { %v2648_v10 = vpop.xlane.xlu0 %2647 }
 0xb3b   : > { %v2666_v7 = vsub.f32 %v2618_v2, %v2648_v10 }
 0xb3d   : > { %v2645_v57 = vpop.xlane.xlu1 %2644  ;;  %v2676_v36 = vmul.f32 1.442695, %v2666_v7 }
 0xb3e   : > { %v2665_v46 = vsub.f32 %v2613_v32, %v2645_v57  ;;  %v2642_v25 = vpop.xlane.xlu0 %2641 }
 0xb3f   : > { %v2664_v34 = vsub.f32 %v2610_v6, %v2642_v25 }
 0xb40   : > { %v2674_v15 = vmul.f32 1.442695, %v2665_v46 }
 0xb41   : > { %v2672_v11 = vmul.f32 1.442695, %v2664_v34 }
 0xb42   : > { %10515 = vpow2.f32 %v2674_v15  ;;  %v2651_v19 = vpop.xlane.xlu0 %2650 }
 0xb43   : > { %10517 = vpow2.f32 %v2672_v11  ;;  %v2667_v55 = vsub.f32 %v2621_v27, %v2651_v19  ;;  %v2872_v11 = vpop.permute.xlu1 %2871 }
 0xb44   : > { %10519 = vpow2.f32 %v2676_v36  ;;  %v2893_v57 = vsel %vm980_vm1, %v2872_v11, 0 }
 0xb45   : > { %v2678_v44 = vmul.f32 1.442695, %v2667_v55 }
 0xb46   : > { %v2660_v3 = vpop.xlane.xlu0 %2659 }
 0xb47   : > { %10521 = vpow2.f32 %v2678_v44  ;;  %v2874_v7 = vpop.permute.xlu1 %2873 }
 0xb48   : > { %v2896_v25 = vsel %vm980_vm1, %v2874_v7, 0 }
 0xb4a   : > { %v2654_v1 = vpop.xlane.xlu0 %2653 }
 0xb4b   : > { %v2668_v34 = vsub.f32 %v12267_v60, %v2654_v1 }
 0xb4c   : > { %v12304_v40 = vpop.eup %10515 }
 0xb4d   : > { %v12306_v24 = vpop.eup %10517 }
 0xb4e   : > { %v2663_v2 = vpop.xlane.xlu0 %2662  ;;  %v2712_v6 = vpack.c.bf16 %v12304_v40, %v12306_v24  ;;  %v12310_v32 = vpop.eup %10519 }
 0xb4f   : > { %15720 = vst [vmem:[#allocation60_spill] sm:$0xff] %v12310_v32  ;;  %v2671_v15 = vsub.f32 %v12272_v53, %v2663_v2 }
 0xb50   : > { %9775 = vmatprep.mubr.msk.bf16.mxu0 %vm1070_vm2, %v2712_v6  ;;  %v2670_v6 = vsub.f32 %v12263_v8, %v2660_v3 }
 0xb51   : > { %v12313_v10 = vpop.eup %10521 }
 0xb52   : > { %15721 = vst [vmem:[#allocation61_spill] sm:$0xff] %v12313_v10  ;;  %v2713_v55 = vpack.c.bf16 %v12313_v10, %v12310_v32  ;;  %v2870_v36 = vpop.permute.xlu0 %2869  ;;  %v2684_v32 = vmul.f32 1.442695, %v2670_v6 }
 0xb53   : > { %10311 = vmatprep.subr.msk.bf16.mxu0 %vm980_vm1, %v2870_v36  ;;  %v2890_v44 = vsel %vm980_vm1, %v2870_v36, 0  ;;  %v2686_v36 = vmul.f32 1.442695, %v2671_v15 }
 0xb54   : > { %9776 = vmatmul.mubr.msk.bf16.vlgmr.msra.gmra.mrb[56].mxu0 %vm1070_vm2, %v2713_v55  ;;  %v2680_v55 = vmul.f32 1.442695, %v2668_v34 }
 0xb55   : > { %9784 = vmatpush3.bf16.xpose.msra.mxu0 %v2890_v44 }
 0xb56   : > { %10312 = vmatprep.subr.msk.bf16.mxu0 %vm980_vm1, %v2872_v11  ;;  %v2862_v19 = vpop.permute.xlu0 %2861  ;;  %10523 = vpow2.f32 %v2680_v55 }
 0xb57   : > { %10525 = vpow2.f32 %v2686_v36 }
 0xb5a   : > { %v2866_v27 = vpop.permute.xlu0 %2865 }
 0xb5d   : > { %9786 = vmatpush3.bf16.xpose.msra.mxu0 %v2893_v57 }
 0xb5e   : > { %10313 = vmatprep.subr.msk.bf16.mxu0 %vm980_vm1, %v2874_v7  ;;  %v3043_v46 = vpop.permute.xlu0 %3042 }
 0xb5f   : > { %9799 = vmatprep.subr.bf16.mxu1 %v3043_v46 }
 0xb60   : > { %9800 = vmatpush3.bf16.msra.mxu1 %v3043_v46  ;;  %v12329_v53 = vpop.eup %10523 }
 0xb61   : > { %v12331_v3 = vpop.eup %10525 }
 0xb65   : > { %9788 = vmatpush3.bf16.xpose.msra.mxu0 %v2896_v25 }
 0xb76   : > { %v2657_v44 = vpop.xlane.xlu1 %2656 }
 0xb77   : > { %v2669_v11 = vsub.f32 %v2629_v13, %v2657_v44 }
 0xb79   : > { %v2682_v57 = vmul.f32 1.442695, %v2669_v11 }
 0xb7a   : > { %v2876_v10 = vpop.permute.xlu1 %2875 }
 0xb7b   : > { %10527 = vpow2.f32 %v2682_v57  ;;  %10314 = vmatprep.subr.msk.bf16.mxu0 %vm980_vm1, %v2876_v10  ;;  %v2899_v7 = vsel %vm980_vm1, %v2876_v10, 0 }
 0xb7c   : > { %10529 = vpow2.f32 %v2684_v32  ;;  %9790 = vmatpush3.bf16.xpose.msra.mxu0 %v2899_v7 }
 0xb7e   : > { %v2864_v1 = vpop.permute.xlu1 %2863 }
 0xb82   : > { %v2868_v60 = vpop.permute.xlu1 %2867 }
 0xb85   : > { %v12333_v8 = vpop.eup %10527 }
 0xb86   : > { %v12335_v13 = vpop.eup %10529  ;;  %v3045_v2 = vpop.permute.xlu1 %3044  ;;  %v2714_v46 = vpack.c.bf16 %v12333_v8, %v12329_v53 }
 0xb87   : > { %9801 = vmatprep.subr.bf16.mxu1 %v3045_v2  ;;  %v2715_v10 = vpack.c.bf16 %v12331_v3, %v12335_v13 }
 0xb88   : > { %9779 = vmatprep.mubr.msk.bf16.mxu0 %vm1070_vm2, %v2714_v46  ;;  %9802 = vmatpush3.bf16.msra.mxu1 %v3045_v2 }
 0xb89   : > { %9780 = vmatmul.mubr.msk.bf16.gmra.mrb[60].mxu0 %vm1070_vm2, %v2715_v10 }
 0xb8a   : > { %v3047_v32 = vpop.permute.xlu1 %3046  ;;  %9791 = vmatprep.mubr.msk.bf16.mxu0 %vm980_vm1, %v2862_v19 }
 0xb8b   : > { %9803 = vmatprep.subr.bf16.mxu1 %v3047_v32 }
 0xb8c   : > { %9804 = vmatpush3.bf16.msra.mxu1 %v3047_v32 }
 0xb8e   : > { %v3049_v25 = vpop.permute.xlu1 %3048 }
 0xb8f   : > { %9805 = vmatprep.subr.bf16.mxu1 %v3049_v25 }
 0xb90   : > { %9806 = vmatpush3.bf16.msra.mxu1 %v3049_v25 }
 0xb91   : > { %9792 = vmatmul.mubr.msk.bf16.vlgmr.msra.gmra.mrb[64].mxu0 %vm980_vm1, %v2864_v1 }
 0xb92   : > { %9795 = vmatprep.mubr.msk.bf16.mxu0 %vm980_vm1, %v2866_v27 }
 0xb99   : > { %9796 = vmatmul.mubr.msk.bf16.gmra.mrb[68].mxu0 %vm980_vm1, %v2868_v60 }
 0xc27   : > { %v12347_v34 = vpop.f32.mrb[56].mxu0 }
 0xc28   : > { %v12349_v15 = vpop.f32.mrb[57].mxu0 }
 0xc29   : > { %v12351_v6 = vpop.f32.mrb[58].mxu0 }
 0xc2a   : > { %v12353_v55 = vpop.f32.mrb[59].mxu0 }
 0xc5c   : > { %v12355_v19 = vpop.f32.mrb[60].mxu0 }
 0xc5d   : > { %v12357_v36 = vpop.f32.mrb[61].mxu0 }
 0xc5e   : > { %v12359_v44 = vpop.f32.mrb[62].mxu0 }
 0xc5f   : > { %15722 = vst [vmem:[#allocation62_spill] sm:$0xff] %v12359_v44  ;;  %v12361_v11 = vpop.f32.mrb[63].mxu0 }
 0xc64   : > { %v9793_v57 = vpop.f32.mrb[64].mxu0 }
 0xc65   : > { %v12364_v27 = vadd.f32 %v12110_v17, %v9793_v57  ;;  %v2935_v7 = vpop.f32.mrb[65].mxu0 }
 0xc66   : > { %v9794_v1 = vpop.f32.mrb[66].mxu0  ;;  %v12367_v60 = vadd.f32 %v12116_v52, %v2935_v7 }
 0xc67   : > { %v2938_v2 = vpop.f32.mrb[67].mxu0  ;;  %v2972_v46 = vsel %vm1070_vm2, %v12364_v27, -inf  ;;  %v12377_v25 = vadd.f32 %v12130_v26, %v9794_v1 }
 0xc68   : > { %v12372_v10 = vadd.f32 %v12123_v0, %v2938_v2  ;;  %2973 = vmax.xlane.f32.xlu0 %v2972_v46  ;;  %v2966_v17 = vsel %vm1070_vm2, %v12367_v60, -inf }
 0xc69   : > { %v2975_v2 = vsel %vm1070_vm2, %v12377_v25, -inf }
 0xc6a   : > { %v2969_v32 = vsel %vm1070_vm2, %v12372_v10, -inf }
 0xc6b   : > { %2970 = vmax.xlane.f32.xlu1 %v2969_v32 }
 0xc6c   : > { %2967 = vmax.xlane.f32.xlu0 %v2966_v17  ;;  %v9797_v52 = vpop.f32.mrb[68].mxu0  ;;  %v1413_v17 = vsel %vm1070_vm2, %v11803_v16, 0.0  ;;  %v1746_v16 = vsel %vm1070_vm2, %v11954_v58, 0.0  ;;  %v1752_v58 = vsel %vm1070_vm2, %v11973_v23, 0.0  ;;  %v2085_v23 = vsel %vm1070_vm2, %v12075_v28, 0.0 }
 0xc6d   : > { %v2951_v57 = vpop.f32.mrb[69].mxu0  ;;  %v12382_v44 = vadd.f32 %v12137_v18, %v9797_v52  ;;  %v1419_v52 = vsel %vm1070_vm2, %v11801_v47, 0.0  ;;  %v2073_v47 = vsel %vm1070_vm2, %v12051_v5, 0.0  ;;  %v2079_v5 = vsel %vm1070_vm2, %v12069_v12, 0.0 }
 0xc6e   : > { %v9798_v7 = vpop.f32.mrb[70].mxu0  ;;  %v12387_v46 = vadd.f32 %v12146_v59, %v2951_v57  ;;  %v1740_v57 = vsel %vm1070_vm2, %v11950_v22, 0.0  ;;  %v1431_v22 = vsel %vm1070_vm2, %v11853_v21, 0.0  ;;  %v1749_v21 = vsel %vm1070_vm2, %v11957_v9, 0.0 }
 0xc6f   : > { %v2954_v0 = vpop.f32.mrb[71].mxu0  ;;  %v2984_v26 = vsel %vm1070_vm2, %v12382_v44, -inf  ;;  %v12392_v1 = vadd.f32 %v12156_v54, %v9798_v7  ;;  %v2067_v7 = vsel %vm1070_vm2, %v12047_v62, 0.0  ;;  %v1416_v62 = vsel %vm1070_vm2, %v11805_v42, 0.0 }
 0xc70   : > { %2976 = vmax.xlane.f32.xlu0 %v2975_v2  ;;  %v2978_v32 = vsel %vm1070_vm2, %v12387_v46, -inf  ;;  %v12409_v59 = vadd.f32 %v12180_v35, %v2954_v0  ;;  %v1422_v35 = vsel %vm1070_vm2, %v11807_v49, 0.0  ;;  %v1425_v49 = vsel %vm1070_vm2, %v11847_v4, 0.0 }
 0xc71   : > { %v2987_v18 = vsel %vm1070_vm2, %v12392_v1, -inf  ;;  %v1758_v0 = vsel %vm1070_vm2, %v11979_v14, 0.0  ;;  %v1743_v4 = vsel %vm1070_vm2, %v11948_v63, 0.0  ;;  %v2070_v42 = vsel %vm1070_vm2, %v12045_v61, 0.0 }
 0xc72   : > { %v2981_v54 = vsel %vm1070_vm2, %v12409_v59, -inf  ;;  %v1119_v14 = vsel %vm1070_vm2, %v11768_v43, 0.0  ;;  %v2076_v63 = vsel %vm1070_vm2, %v12054_v20, 0.0  ;;  %v1125_v12 = vsel %vm1070_vm2, %v11772_v51, 0.0 }
 0xc73   : > { %v1428_v9 = vsel %vm1070_vm2, %v11851_v56, 0.0  ;;  %v1434_v61 = vsel %vm1070_vm2, %v11849_v39, 0.0 }
 0xc74   : > { %2985 = vmax.xlane.f32.xlu0 %v2984_v26 }
 0xc78   : > { %2979 = vmax.xlane.f32.xlu0 %v2978_v32 }
 0xc7c   : > { %3197 = vrot.lane.b32.xlu1 %v11832_v41, %s15723_s25  ;;  %2988 = vmax.xlane.f32.xlu0 %v2987_v18 }
 0xc80   : > { %3199 = vrot.lane.b32.xlu1 %v11845_v37, %s15723_s25 }
 0xc92   : > { %3195 = vrot.lane.b32.xlu0 %v11835_v48, %s15723_s25 }
 0xc96   : > { %3187 = vrot.lane.b32.xlu0 %v11835_v48, %s15724_s26 }
 0xc9a   : > { %3191 = vrot.lane.b32.xlu0 %v11845_v37, %s15724_s26 }
 0xca4   : > { %2982 = vmax.xlane.f32.xlu1 %v2981_v54  ;;  %v1755_v54 = vsel %vm1070_vm2, %v11977_v45, 0.0 }
 0xcb5   : > { %3201 = vrot.lane.b32.xlu1 %v11843_v30, %s15723_s25 }
 0xcb9   : > { %3189 = vrot.lane.b32.xlu1 %v11832_v41, %s15724_s26  ;;  %1414 = vadd.xlane.f32.xlu0 %v1413_v17 }
 0xcbd   : > { %3193 = vrot.lane.b32.xlu1 %v11843_v30, %s15724_s26  ;;  %1420 = vadd.xlane.f32.xlu0 %v1419_v52 }
 0xcc1   : > { %1423 = vadd.xlane.f32.xlu0 %v1422_v35 }
 0xcc5   : > { %1741 = vadd.xlane.f32.xlu0 %v1740_v57 }
 0xcc9   : > { %1747 = vadd.xlane.f32.xlu0 %v1746_v16 }
 0xccd   : > { %2068 = vadd.xlane.f32.xlu0 %v2067_v7 }
 0xcd1   : > { %2074 = vadd.xlane.f32.xlu0 %v2073_v47  ;;  %v1122_v47 = vsel %vm1070_vm2, %v11770_v38, 0.0 }
 0xcd5   : > { %1426 = vadd.xlane.f32.xlu0 %v1425_v49 }
 0xcd9   : > { %1432 = vadd.xlane.f32.xlu0 %v1431_v22 }
 0xcdd   : > { %1753 = vadd.xlane.f32.xlu0 %v1752_v58  ;;  %v1128_v58 = vsel %vm1070_vm2, %v11766_v31, 0.0  ;;  %v15727_v31 = vld [vmem:[#allocation11_spill] sm:$0xff] }
 0xce1   : > { %1417 = vadd.xlane.f32.xlu1 %v1416_v62  ;;  %1759 = vadd.xlane.f32.xlu0 %v1758_v0 }
 0xce5   : > { %1744 = vadd.xlane.f32.xlu1 %v1743_v4  ;;  %2080 = vadd.xlane.f32.xlu0 %v2079_v5  ;;  %v15726_v4 = vld [vmem:[#allocation10_spill] sm:$0xff] }
 0xce6   : > { %v1134_v5 = vsel %vm1070_vm2, %v15726_v4, 0.0 }
 0xce9   : > { %1750 = vadd.xlane.f32.xlu1 %v1749_v21  ;;  %2086 = vadd.xlane.f32.xlu0 %v2085_v23  ;;  %v1137_v21 = vsel %vm1070_vm2, %v15727_v31, 0.0 }
 0xced   : > { %2071 = vadd.xlane.f32.xlu1 %v2070_v42  ;;  %1120 = vadd.xlane.f32.xlu0 %v1119_v14 }
 0xcf1   : > { %2077 = vadd.xlane.f32.xlu1 %v2076_v63  ;;  %1126 = vadd.xlane.f32.xlu0 %v1125_v12 }
 0xcf5   : > { %1429 = vadd.xlane.f32.xlu1 %v1428_v9  ;;  %v2974_v28 = vpop.xlane.xlu0 %2973 }
 0xcf6   : > { %v2992_v43 = vsub.f32 %v12364_v27, %v2974_v28  ;;  %v1761_v27 = vsel %vm1070_vm2, %v11975_v33, 0.0 }
 0xcf8   : > { %v2971_v2 = vpop.xlane.xlu1 %2970  ;;  %v3002_v56 = vmul.f32 1.442695, %v2992_v43 }
 0xcf9   : > { %v2991_v26 = vsub.f32 %v12372_v10, %v2971_v2  ;;  %1435 = vadd.xlane.f32.xlu1 %v1434_v61  ;;  %v2968_v20 = vpop.xlane.xlu0 %2967 }
 0xcfa   : > { %v2990_v32 = vsub.f32 %v12367_v60, %v2968_v20  ;;  %v2082_v60 = vsel %vm1070_vm2, %v12073_v50, 0.0 }
 0xcfb   : > { %v3000_v51 = vmul.f32 1.442695, %v2991_v26 }
 0xcfc   : > { %v2998_v18 = vmul.f32 1.442695, %v2990_v32  ;;  %v3198_v22 = vpop.permute.xlu1 %3197 }
 0xcfd   : > { %10531 = vpow2.f32 %v3000_v51  ;;  %1756 = vadd.xlane.f32.xlu1 %v1755_v54  ;;  %v2977_v17 = vpop.xlane.xlu0 %2976  ;;  %v3219_v38 = vsel %vm980_vm1, %v3198_v22, 0 }
 0xcfe   : > { %10533 = vpow2.f32 %v2998_v18  ;;  %v2993_v39 = vsub.f32 %v12377_v25, %v2977_v17  ;;  %v2088_v25 = vsel %vm1070_vm2, %v12071_v29, 0.0  ;;  %v15728_v18 = vld [vmem:[#allocation9_spill] sm:$0xff] }
 0xcff   : > { %10535 = vpow2.f32 %v3002_v56  ;;  %v1131_v54 = vsel %vm1070_vm2, %v15728_v18, 0.0  ;;  %v15729_v56 = vld [vmem:[#allocation8_spill] sm:$0xff] }
 0xd00   : > { %v3004_v52 = vmul.f32 1.442695, %v2993_v39  ;;  %v3200_v62 = vpop.permute.xlu1 %3199  ;;  %v1140_v17 = vsel %vm1070_vm2, %v15729_v56, 0.0  ;;  %v15737_v56 = vld [vmem:[#allocation23_spill] sm:$0xff] }
 0xd01   : > { %1762 = vadd.xlane.f32.xlu1 %v1761_v27  ;;  %v2986_v10 = vpop.xlane.xlu0 %2985  ;;  %v3222_v0 = vsel %vm980_vm1, %v3200_v62, 0 }
 0xd02   : > { %10537 = vpow2.f32 %v3004_v52  ;;  %v2996_v14 = vsub.f32 %v12382_v44, %v2986_v10 }
 0xd05   : > { %2083 = vadd.xlane.f32.xlu1 %v2082_v60  ;;  %v2980_v45 = vpop.xlane.xlu0 %2979 }
 0xd06   : > { %v2994_v23 = vsub.f32 %v12387_v46, %v2980_v45 }
 0xd07   : > { %v12473_v35 = vpop.eup %10531  ;;  %3368 = vrot.lane.b32.xlu0 %v11835_v48, %s15725_s16 }
 0xd08   : > { %v12477_v57 = vpop.eup %10533  ;;  %v3006_v63 = vmul.f32 1.442695, %v2994_v23  ;;  %v15734_v23 = vld [vmem:[#allocation37_spill] sm:$0xff] }
 0xd09   : > { %2089 = vadd.xlane.f32.xlu1 %v2088_v25  ;;  %v2989_v33 = vpop.xlane.xlu0 %2988  ;;  %v3038_v16 = vpack.c.bf16 %v12473_v35, %v12477_v57  ;;  %v12483_v7 = vpop.eup %10535 }
 0xd0a   : > { %v2997_v42 = vsub.f32 %v12392_v1, %v2989_v33  ;;  %10539 = vpow2.f32 %v3006_v63  ;;  %v15730_v33 = vld [vmem:[#allocation20_spill] sm:$0xff] }
 0xd0b   : > { %9807 = vmatprep.mubr.msk.bf16.mxu1 %vm1070_vm2, %v3038_v16 }
 0xd0c   : > { %v12486_v50 = vpop.eup %10537  ;;  %v3012_v12 = vmul.f32 1.442695, %v2997_v42 }
 0xd0d   : > { %v3039_v48 = vpack.c.bf16 %v12486_v50, %v12483_v7  ;;  %1123 = vadd.xlane.f32.xlu1 %v1122_v47  ;;  %v3196_v49 = vpop.permute.xlu0 %3195 }
 0xd0e   : > { %10315 = vmatprep.subr.msk.bf16.mxu1 %vm980_vm1, %v3196_v49  ;;  %v3216_v29 = vsel %vm980_vm1, %v3196_v49, 0  ;;  %10541 = vpow2.f32 %v3012_v12  ;;  %v15735_v12 = vld [vmem:[#allocation36_spill] sm:$0xff] }
 0xd0f   : > { %9808 = vmatmul.mubr.msk.bf16.vlgmr.msra.gmra.mrb[48].mxu1 %vm1070_vm2, %v3039_v48 }
 0xd10   : > { %9816 = vmatpush3.bf16.xpose.msra.mxu1 %v3216_v29  ;;  %v15731_v29 = vld [vmem:[#allocation21_spill] sm:$0xff] }
 0xd11   : > { %10316 = vmatprep.subr.msk.bf16.mxu1 %vm980_vm1, %v3198_v22  ;;  %1129 = vadd.xlane.f32.xlu1 %v1128_v58  ;;  %v3188_v46 = vpop.permute.xlu0 %3187 }
 0xd14   : > { %v12513_v1 = vpop.eup %10539 }
 0xd15   : > { %v3192_v32 = vpop.permute.xlu0 %3191 }
 0xd18   : > { %9818 = vmatpush3.bf16.xpose.msra.mxu1 %v3219_v38  ;;  %v12515_v44 = vpop.eup %10541  ;;  %v15732_v38 = vld [vmem:[#allocation29_spill] sm:$0xff] }
 0xd19   : > { %10317 = vmatprep.subr.msk.bf16.mxu1 %vm980_vm1, %v3200_v62 }
 0xd20   : > { %9820 = vmatpush3.bf16.xpose.msra.mxu1 %v3222_v0 }
 0xd22   : > { %3370 = vrot.lane.b32.xlu1 %v11832_v41, %s15725_s16  ;;  %v3010_v41 = vmul.f32 1.442695, %v2996_v14 }
 0xd26   : > { %1135 = vadd.xlane.f32.xlu0 %v1134_v5  ;;  %v15733_v5 = vld [vmem:[#allocation28_spill] sm:$0xff] }
 0xd2a   : > { %1138 = vadd.xlane.f32.xlu0 %v1137_v21 }
 0xd31   : > { %v2983_v9 = vpop.xlane.xlu1 %2982 }
 0xd32   : > { %v2995_v28 = vsub.f32 %v12409_v59, %v2983_v9 }
 0xd34   : > { %v3008_v2 = vmul.f32 1.442695, %v2995_v28 }
 0xd35   : > { %v3202_v61 = vpop.permute.xlu1 %3201 }
 0xd36   : > { %10543 = vpow2.f32 %v3008_v2  ;;  %10318 = vmatprep.subr.msk.bf16.mxu1 %vm980_vm1, %v3202_v61  ;;  %v3225_v43 = vsel %vm980_vm1, %v3202_v61, 0  ;;  %v15736_v61 = vld [vmem:[#allocation25_spill] sm:$0xff] }
 0xd37   : > { %10545 = vpow2.f32 %v3010_v41  ;;  %9822 = vmatpush3.bf16.xpose.msra.mxu1 %v3225_v43 }
 0xd39   : > { %v3190_v52 = vpop.permute.xlu1 %3189 }
 0xd3d   : > { %v3194_v60 = vpop.permute.xlu1 %3193 }
 0xd40   : > { %v12517_v26 = vpop.eup %10543  ;;  %3372 = vrot.lane.b32.xlu0 %v11845_v37, %s15725_s16 }
 0xd41   : > { %v12521_v59 = vpop.eup %10545  ;;  %v3040_v20 = vpack.c.bf16 %v12517_v26, %v12513_v1 }
 0xd42   : > { %v3041_v51 = vpack.c.bf16 %v12515_v44, %v12521_v59 }
 0xd43   : > { %9811 = vmatprep.mubr.msk.bf16.mxu1 %vm1070_vm2, %v3040_v20 }
 0xd44   : > { %9812 = vmatmul.mubr.msk.bf16.gmra.mrb[52].mxu1 %vm1070_vm2, %v3041_v51 }
 0xd45   : > { %9823 = vmatprep.mubr.msk.bf16.mxu1 %vm980_vm1, %v3188_v46 }
 0xd46   : > { %1132 = vadd.xlane.f32.xlu1 %v1131_v54  ;;  %v1415_v37 = vpop.xlane.xlu0 %1414 }
 0xd4a   : > { %1141 = vadd.xlane.f32.xlu1 %v1140_v17  ;;  %v1421_v39 = vpop.xlane.xlu0 %1420 }
 0xd4b   : > { %10547 = vrcp.f32 %v1421_v39 }
 0xd4c   : > { %9824 = vmatmul.mubr.msk.bf16.vlgmr.msra.gmra.mrb[56].mxu1 %vm980_vm1, %v3190_v52  ;;  %10549 = vrcp.f32 %v1415_v37 }
 0xd4d   : > { %9827 = vmatprep.mubr.msk.bf16.mxu1 %vm980_vm1, %v3192_v32 }
 0xd4e   : > { %v1424_v27 = vpop.xlane.xlu0 %1423 }
 0xd52   : > { %v1742_v10 = vpop.xlane.xlu0 %1741 }
 0xd53   : > { %10551 = vrcp.f32 %v1742_v10  ;;  %v15738_v10 = vld [vmem:[#allocation22_spill] sm:$0xff] }
 0xd54   : > { %9828 = vmatmul.mubr.msk.bf16.gmra.mrb[60].mxu1 %vm980_vm1, %v3194_v60 }
 0xd55   : > { %v10548_v45 = vpop.eup %10547 }
 0xd56   : > { %v1748_v25 = vpop.xlane.xlu0 %1747  ;;  %v1540_v16 = vmul.f32 %v10548_v45, %v15730_v33  ;;  %v10550_v47 = vpop.eup %10549 }
 0xd57   : > { %10553 = vrcp.f32 %v1748_v25  ;;  %v1538_v22 = vmul.f32 %v10550_v47, %v15731_v29 }
 0xd58   : > { %1558 = vrot.lane.b32.xlu0 %v1540_v16, %s15611_s21  ;;  %v15739_v16 = vld [vmem:[#allocation31_spill] sm:$0xff] }
 0xd5a   : > { %v2069_v48 = vpop.xlane.xlu0 %2068 }
 0xd5b   : > { %10555 = vrcp.f32 %v2069_v48  ;;  %3374 = vrot.lane.b32.xlu1 %v11843_v30, %s15725_s16 }
 0xd5d   : > { %v10552_v49 = vpop.eup %10551 }
 0xd5e   : > { %v2075_v58 = vpop.xlane.xlu0 %2074  ;;  %v1865_v62 = vmul.f32 %v10552_v49, %v15732_v38 }
 0xd5f   : > { %10557 = vrcp.f32 %v2075_v58  ;;  %1554 = vrot.lane.b32.xlu1 %v1538_v22, %s15611_s21  ;;  %v15740_v22 = vld [vmem:[#allocation30_spill] sm:$0xff] }
 0xd60   : > { %1881 = vrot.lane.b32.xlu0 %v1865_v62, %s15609_s17  ;;  %v15741_v62 = vld [vmem:[#allocation13_spill] sm:$0xff] }
 0xd61   : > { %v10554_v0 = vpop.eup %10553 }
 0xd62   : > { %v1427_v4 = vpop.xlane.xlu0 %1426  ;;  %v1867_v31 = vmul.f32 %v10554_v0, %v15733_v5 }
 0xd63   : > { %10559 = vrcp.f32 %v1427_v4 }
 0xd64   : > { %1885 = vrot.lane.b32.xlu0 %v1867_v31, %s15609_s17  ;;  %v15742_v31 = vld [vmem:[#allocation39_spill] sm:$0xff] }
 0xd65   : > { %v10556_v30 = vpop.eup %10555 }
 0xd66   : > { %v12547_v21 = vpop.xlane.xlu0 %1432  ;;  %v2192_v42 = vmul.f32 %v10556_v30, %v15734_v23 }
 0xd68   : > { %2208 = vrot.lane.b32.xlu0 %v2192_v42, %s15607_s24  ;;  %v15743_v42 = vld [vmem:[#allocation12_spill] sm:$0xff] }
 0xd69   : > { %v10558_v14 = vpop.eup %10557 }
 0xd6a   : > { %v12551_v63 = vpop.xlane.xlu0 %1753  ;;  %v2194_v9 = vmul.f32 %v10558_v14, %v15735_v12 }
 0xd6c   : > { %2212 = vrot.lane.b32.xlu0 %v2194_v9, %s15607_s24  ;;  %v15744_v9 = vld [vmem:[#allocation38_spill] sm:$0xff] }
 0xd6d   : > { %v10560_v28 = vpop.eup %10559 }
 0xd6e   : > { %v1418_v41 = vpop.xlane.xlu1 %1417  ;;  %v12555_v2 = vpop.xlane.xlu0 %1759  ;;  %v1542_v43 = vmul.f32 %v10560_v28, %v15736_v61 }
 0xd6f   : > { %10561 = vrcp.f32 %v1418_v41 }
 0xd70   : > { %1562 = vrot.lane.b32.xlu0 %v1542_v43, %s15611_s21  ;;  %10563 = vrcp.f32 %v1424_v27  ;;  %v15745_v43 = vld [vmem:[#allocation27_spill] sm:$0xff] }
 0xd72   : > { %v1745_v46 = vpop.xlane.xlu1 %1744  ;;  %v12559_v20 = vpop.xlane.xlu0 %2080 }
 0xd73   : > { %10565 = vrcp.f32 %v1745_v46 }
 0xd76   : > { %v1751_v32 = vpop.xlane.xlu1 %1750  ;;  %v12561_v51 = vpop.xlane.xlu0 %2086 }
 0xd77   : > { %10567 = vrcp.f32 %v1751_v32 }
 0xd79   : > { %v10562_v18 = vpop.eup %10561 }
 0xd7a   : > { %v2072_v54 = vpop.xlane.xlu1 %2071  ;;  %v1121_v37 = vpop.xlane.xlu0 %1120  ;;  %v1539_v17 = vmul.f32 %v10562_v18, %v15737_v56 }
 0xd7b   : > { %v10564_v39 = vpop.eup %10563  ;;  %10569 = vrcp.f32 %v1121_v37 }
 0xd7c   : > { %1556 = vrot.lane.b32.xlu1 %v1539_v17, %s15611_s21  ;;  %10571 = vrcp.f32 %v2072_v54  ;;  %v1541_v60 = vmul.f32 %v10564_v39, %v15738_v10  ;;  %v15746_v17 = vld [vmem:[#allocation15_spill] sm:$0xff] }
 0xd7d   : > { %v10566_v45 = vpop.eup %10565 }
 0xd7e   : > { %v2078_v52 = vpop.xlane.xlu1 %2077  ;;  %v1127_v27 = vpop.xlane.xlu0 %1126  ;;  %v1866_v47 = vmul.f32 %v10566_v45, %v15739_v16  ;;  %v15748_v16 = vld [vmem:[#allocation19_spill] sm:$0xff] }
 0xd7f   : > { %10573 = vrcp.f32 %v1127_v27  ;;  %v15747_v27 = vld [vmem:[#allocation14_spill] sm:$0xff] }
 0xd80   : > { %1560 = vrot.lane.b32.xlu1 %v1541_v60, %s15611_s21  ;;  %10575 = vrcp.f32 %v2078_v52 }
 0xd81   : > { %v10568_v48 = vpop.eup %10567 }
 0xd82   : > { %v1430_v25 = vpop.xlane.xlu1 %1429  ;;  %v3369_v33 = vpop.permute.xlu0 %3368  ;;  %v1868_v58 = vmul.f32 %v10568_v48, %v15740_v22 }
 0xd83   : > { %9831 = vmatprep.subr.bf16.mxu0 %v3369_v33  ;;  %10577 = vrcp.f32 %v1430_v25 }
 0xd84   : > { %1883 = vrot.lane.b32.xlu1 %v1866_v47, %s15609_s17  ;;  %9832 = vmatpush3.bf16.msra.mxu0 %v3369_v33 }
 0xd85   : > { %v10570_v49 = vpop.eup %10569 }
 0xd86   : > { %v12569_v29 = vpop.xlane.xlu1 %1435  ;;  %v10572_v38 = vpop.eup %10571  ;;  %v1244_v0 = vmul.f32 %v10570_v49, %v15741_v62  ;;  %v15749_v49 = vld [vmem:[#allocation16_spill] sm:$0xff] }
 0xd87   : > { %v2193_v30 = vmul.f32 %v10572_v38, %v15742_v31 }
 0xd88   : > { %1887 = vrot.lane.b32.xlu1 %v1868_v58, %s15609_s17  ;;  %1252 = vst.msk [vmem:[#allocation2] sm:$0xff] %vm980_vm1, %v1244_v0 }
 0xd89   : > { %v10574_v4 = vpop.eup %10573 }
 0xd8a   : > { %v12575_v5 = vpop.xlane.xlu1 %1756  ;;  %v10576_v23 = vpop.eup %10575  ;;  %v1246_v14 = vmul.f32 %v10574_v4, %v15743_v42 }
 0xd8b   : > { %v2195_v28 = vmul.f32 %v10576_v23, %v15744_v9  ;;  %v15750_v9 = vld [vmem:[#allocation17_spill] sm:$0xff] }
 0xd8c   : > { %2210 = vrot.lane.b32.xlu1 %v2193_v30, %s15607_s24  ;;  %1254 = vst.msk [vmem:[#allocation2 + $0x10] sm:$0xff] %vm980_vm1, %v1246_v14 }
 0xd8d   : > { %v10578_v41 = vpop.eup %10577 }
 0xd8e   : > { %v12581_v12 = vpop.xlane.xlu1 %1762  ;;  %v1543_v46 = vmul.f32 %v10578_v41, %v15745_v43 }
 0xd90   : > { %2214 = vrot.lane.b32.xlu1 %v2195_v28, %s15607_s24 }
 0xd92   : > { %v12585_v61 = vpop.xlane.xlu1 %2083 }
 0xd94   : > { %1564 = vrot.lane.b32.xlu1 %v1543_v46, %s15611_s21 }
 0xd96   : > { %v12589_v32 = vpop.xlane.xlu1 %2089 }
 0xd9a   : > { %v1124_v18 = vpop.xlane.xlu1 %1123 }
 0xd9b   : > { %10579 = vrcp.f32 %v1124_v18 }
 0xd9e   : > { %v1130_v54 = vpop.xlane.xlu1 %1129 }
 0xd9f   : > { %10581 = vrcp.f32 %v1130_v54  ;;  %v15751_v54 = vld [vmem:[#allocation18_spill] sm:$0xff] }
 0xda2   : > { %v3371_v37 = vpop.permute.xlu1 %3370 }
 0xda3   : > { %9833 = vmatprep.subr.bf16.mxu0 %v3371_v37 }
 0xda4   : > { %9834 = vmatpush3.bf16.msra.mxu0 %v3371_v37 }
 0xda5   : > { %v10580_v56 = vpop.eup %10579 }
 0xda6   : > { %v1245_v39 = vmul.f32 %v10580_v56, %v15746_v17 }
 0xda8   : > { %1253 = vst.msk [vmem:[#allocation2 + $0x8] sm:$0xff] %vm980_vm1, %v1245_v39 }
 0xda9   : > { %v10582_v52 = vpop.eup %10581 }
 0xdaa   : > { %v1247_v10 = vmul.f32 %v10582_v52, %v15747_v27 }
 0xdac   : > { %1255 = vst.msk [vmem:[#allocation2 + $0x18] sm:$0xff] %vm980_vm1, %v1247_v10 }
 0xdb3   : > { %v1136_v60 = vpop.xlane.xlu0 %1135 }
 0xdb4   : > { %10583 = vrcp.f32 %v1136_v60 }
 0xdb7   : > { %v1139_v45 = vpop.xlane.xlu0 %1138 }
 0xdb8   : > { %10585 = vrcp.f32 %v1139_v45 }
 0xdbb   : > { %v3373_v25 = vpop.permute.xlu0 %3372 }
 0xdbc   : > { %9835 = vmatprep.subr.bf16.mxu0 %v3373_v25 }
 0xdbd   : > { %9836 = vmatpush3.bf16.msra.mxu0 %v3373_v25 }
 0xdbe   : > { %v10584_v33 = vpop.eup %10583 }
 0xdbf   : > { %v1249_v47 = vmul.f32 %v10584_v33, %v15748_v16 }
 0xdc1   : > { %1257 = vst.msk [vmem:[#allocation2 + $0x28] sm:$0xff] %vm980_vm1, %v1249_v47 }
 0xdc2   : > { %v10586_v48 = vpop.eup %10585 }
 0xdc3   : > { %v1250_v22 = vmul.f32 %v10586_v48, %v15749_v49 }
 0xdc5   : > { %1258 = vst.msk [vmem:[#allocation2 + $0x30] sm:$0xff] %vm980_vm1, %v1250_v22  ;;  %v11147_v22 = vld [vmem:[%s15543_s1 + $0x10] sm:$0xff] }
 0xdca   : > { %v1559_v58 = vpop.permute.xlu0 %1558 }
 0xdcb   : > { %1581 = vst.msk [vmem:[#allocation2 + $0x10] sm:$0xff] %vm1578_vm3, %v1559_v58 }
 0xdd2   : > { %v1882_v38 = vpop.permute.xlu0 %1881 }
 0xdd3   : > { %v1133_v62 = vpop.xlane.xlu1 %1132 }
 0xdd4   : > { %10587 = vrcp.f32 %v1133_v62 }
 0xdd6   : > { %v1886_v0 = vpop.permute.xlu0 %1885 }
 0xdd7   : > { %1908 = vst.msk [vmem:[#allocation2 + $0x10] sm:$0xff] %vm1905_vm4, %v1886_v0  ;;  %v1142_v4 = vpop.xlane.xlu1 %1141  ;;  %v11148_v0 = vld [vmem:[%s15543_s1] sm:$0xff] }
 0xdd8   : > { %10589 = vrcp.f32 %v1142_v4 }
 0xdd9   : > { %10591 = vrcp.f32 %v12569_v29  ;;  %v15755_v29 = vld [vmem:[#allocation24_spill] sm:$0xff] }
 0xdda   : > { %v2209_v31 = vpop.permute.xlu0 %2208  ;;  %10593 = vrcp.f32 %v12547_v21 }
 0xddb   : > { %v3375_v30 = vpop.permute.xlu1 %3374  ;;  %10595 = vrcp.f32 %v12551_v63  ;;  %v15757_v63 = vld [vmem:[#allocation32_spill] sm:$0xff] }
 0xddc   : > { %9837 = vmatprep.subr.bf16.mxu0 %v3375_v30  ;;  %10597 = vrcp.f32 %v12555_v2  ;;  %v15758_v2 = vld [vmem:[#allocation41_spill] sm:$0xff] }
 0xddd   : > { %9838 = vmatpush3.bf16.msra.mxu0 %v3375_v30  ;;  %10599 = vrcp.f32 %v12559_v20 }
 0xdde   : > { %v10588_v23 = vpop.eup %10587  ;;  %v2213_v42 = vpop.permute.xlu0 %2212  ;;  %10601 = vrcp.f32 %v12561_v51  ;;  %v11153_v51 = vld [vmem:[%s15543_s1 + $0x38] sm:$0xff] }
 0xddf   : > { %2235 = vst.msk [vmem:[#allocation2 + $0x10] sm:$0xff] %vm2232_vm5, %v2213_v42  ;;  %v1555_v14 = vpop.permute.xlu1 %1554  ;;  %v1248_v28 = vmul.f32 %v10588_v23, %v15750_v9  ;;  %10603 = vrcp.f32 %v12575_v5  ;;  %v10375_v5 = vld [vmem:[%s15548_s6] sm:$0xff]  }
 0xde0   : > { %1579 = vst.msk [vmem:[#allocation2] sm:$0xff] %vm1578_vm3, %v1555_v14  ;;  %v11150_v14 = vld [vmem:[%s15543_s1 + $0x8] sm:$0xff]  ;;  %10605 = vrcp.f32 %v12581_v12  ;;  %v15762_v12 = vld [vmem:[#allocation43_spill] sm:$0xff]  ;;  %9847 = vmatprep.subr.bf16.mxu0 %v10375_v5 }
 0xde1   : > { %1906 = vst.msk [vmem:[#allocation2] sm:$0xff] %vm1905_vm4, %v1882_v38  ;;  %10607 = vrcp.f32 %v12585_v61 }
 0xde2   : > { %1256 = vst.msk [vmem:[#allocation2 + $0x20] sm:$0xff] %vm980_vm1, %v1248_v28  ;;  %v10590_v41 = vpop.eup %10589  ;;  %v12607_v43 = vpop.f32.mrb[48].mxu1  ;;  %10609 = vrcp.f32 %v12589_v32  ;;  %v15763_v32 = vld [vmem:[#allocation42_spill] sm:$0xff] }
 0xde3   : > { %2233 = vst.msk [vmem:[#allocation2] sm:$0xff] %vm2232_vm5, %v2209_v31  ;;  %v1563_v46 = vpop.permute.xlu0 %1562  ;;  %v12610_v18 = vpop.f32.mrb[49].mxu1  ;;  %v1251_v37 = vmul.f32 %v10590_v41, %v15751_v54  ;;  %v11149_v31 = vld [vmem:[%s15543_s1 + $0x18] sm:$0xff]  ;;  %v11151_v54 = vld [vmem:[%s15543_s1 + $0x30] sm:$0xff] }
 0xde4   : > { %1583 = vst.msk [vmem:[#allocation2 + $0x20] sm:$0xff] %vm1578_vm3, %v1563_v46  ;;  %v12613_v56 = vpop.f32.mrb[50].mxu1 }
 0xde5   : > { %v12615_v17 = vpop.f32.mrb[51].mxu1  ;;  %1259 = vst.msk [vmem:[#allocation2 + $0x38] sm:$0xff] %vm980_vm1, %v1251_v37 }
 0xdee   : > { %v1557_v39 = vpop.permute.xlu1 %1556 }
 0xdef   : > { %1580 = vst.msk [vmem:[#allocation2 + $0x8] sm:$0xff] %vm1578_vm3, %v1557_v39 }
 0xdf2   : > { %v1561_v52 = vpop.permute.xlu1 %1560 }
 0xdf3   : > { %1582 = vst.msk [vmem:[#allocation2 + $0x18] sm:$0xff] %vm1578_vm3, %v1561_v52 }
 0xdf6   : > { %v1884_v27 = vpop.permute.xlu1 %1883 }
 0xdf7   : > { %1907 = vst.msk [vmem:[#allocation2 + $0x8] sm:$0xff] %vm1905_vm4, %v1884_v27 }
 0xdfa   : > { %v1888_v10 = vpop.permute.xlu1 %1887 }
 0xdfb   : > { %1909 = vst.msk [vmem:[#allocation2 + $0x18] sm:$0xff] %vm1905_vm4, %v1888_v10  ;;  %v11152_v10 = vld [vmem:[%s15543_s1 + $0x20] sm:$0xff] }
 0xdfe   : > { %v2211_v60 = vpop.permute.xlu1 %2210 }
 0xdff   : > { %2234 = vst.msk [vmem:[#allocation2 + $0x8] sm:$0xff] %vm2232_vm5, %v2211_v60 }
 0xe02   : > { %v2215_v45 = vpop.permute.xlu1 %2214 }
 0xe03   : > { %2236 = vst.msk [vmem:[#allocation2 + $0x18] sm:$0xff] %vm2232_vm5, %v2215_v45 }
 0xe06   : > { %v1565_v25 = vpop.permute.xlu1 %1564 }
 0xe07   : > { %1584 = vst.msk [vmem:[#allocation2 + $0x28] sm:$0xff] %vm1578_vm3, %v1565_v25 }
 0xe17   : > { %v12625_v33 = vpop.f32.mrb[52].mxu1 }
 0xe18   : > { %v12627_v16 = vpop.f32.mrb[53].mxu1 }
 0xe19   : > { %v12629_v47 = vpop.f32.mrb[54].mxu1 }
 0xe1a   : > { %15752 = vst [vmem:[#allocation10_spill] sm:$0xff] %v12629_v47  ;;  %v12631_v48 = vpop.f32.mrb[55].mxu1 }
 0xe1b   : > { %15753 = vst [vmem:[#allocation11_spill] sm:$0xff] %v12631_v48 }
 0xe1f   : > { %v9825_v49 = vpop.f32.mrb[56].mxu1 }
 0xe20   : > { %v12636_v58 = vadd.f32 %v11147_v22, %v9825_v49  ;;  %v3261_v38 = vpop.f32.mrb[57].mxu1  ;;  %v10592_v22 = vpop.eup %10591 }
 0xe21   : > { %v9826_v62 = vpop.f32.mrb[58].mxu1  ;;  %v12641_v4 = vadd.f32 %v11148_v0, %v3261_v38  ;;  %v15754_v38 = vld [vmem:[#allocation26_spill] sm:$0xff]  ;;  %v10594_v0 = vpop.eup %10593 }
 0xe22   : > { %v12646_v30 = vadd.f32 %v11149_v31, %v9826_v62  ;;  %v3264_v23 = vpop.f32.mrb[59].mxu1  ;;  %v3298_v42 = vsel %vm1070_vm2, %v12636_v58, -inf  ;;  %v1545_v62 = vmul.f32 %v10592_v22, %v15754_v38  ;;  %v1544_v31 = vmul.f32 %v10594_v0, %v15755_v29  ;;  %v15760_v38 = vld [vmem:[#allocation35_spill] sm:$0xff]  ;;  %v15761_v0 = vld [vmem:[#allocation34_spill] sm:$0xff] }
 0xe23   : > { %3299 = vmax.xlane.f32.xlu0 %v3298_v42  ;;  %v12653_v9 = vadd.f32 %v11150_v14, %v3264_v23  ;;  %v3292_v41 = vsel %vm1070_vm2, %v12641_v4, -inf  ;;  %v10596_v23 = vpop.eup %10595  ;;  %v15756_v42 = vld [vmem:[#allocation33_spill] sm:$0xff] }
 0xe24   : > { %v3301_v28 = vsel %vm1070_vm2, %v12646_v30, -inf  ;;  %v1869_v21 = vmul.f32 %v10596_v23, %v15756_v42  ;;  %v10598_v14 = vpop.eup %10597 }
 0xe25   : > { %3302 = vmax.xlane.f32.xlu1 %v3301_v28  ;;  %v3295_v52 = vsel %vm1070_vm2, %v12653_v9, -inf  ;;  %v1871_v28 = vmul.f32 %v10598_v14, %v15757_v63 }
 0xe27   : > { %v9829_v46 = vpop.f32.mrb[60].mxu1  ;;  %3293 = vmax.xlane.f32.xlu0 %v3292_v41  ;;  %v10600_v41 = vpop.eup %10599 }
 0xe28   : > { %v12662_v37 = vadd.f32 %v11151_v54, %v9829_v46  ;;  %v3277_v39 = vpop.f32.mrb[61].mxu1  ;;  %v2196_v46 = vmul.f32 %v10600_v41, %v15758_v2  ;;  %v10602_v20 = vpop.eup %10601  ;;  %v15759_v54 = vld [vmem:[#allocation40_spill] sm:$0xff] }
 0xe29   : > { %v9830_v27 = vpop.f32.mrb[62].mxu1  ;;  %3296 = vmax.xlane.f32.xlu1 %v3295_v52  ;;  %v12669_v60 = vadd.f32 %v11152_v10, %v3277_v39  ;;  %v2198_v39 = vmul.f32 %v10602_v20, %v15759_v54  ;;  %v11154_v10 = vld [vmem:[%s15543_s1 + $0x28] sm:$0xff] }
 0xe2a   : > { %v3280_v45 = vpop.f32.mrb[63].mxu1  ;;  %v3310_v25 = vsel %vm1070_vm2, %v12662_v37, -inf  ;;  %v12696_v52 = vadd.f32 %v11153_v51, %v9830_v27  ;;  %v10604_v27 = vpop.eup %10603 }
 0xe2b   : > { %3311 = vmax.xlane.f32.xlu0 %v3310_v25  ;;  %v3304_v49 = vsel %vm1070_vm2, %v12669_v60, -inf  ;;  %v12701_v25 = vadd.f32 %v11154_v10, %v3280_v45  ;;  %v1870_v45 = vmul.f32 %v10604_v27, %v15760_v38 }
 0xe2d   : > { %v3307_v22 = vsel %vm1070_vm2, %v12701_v25, -inf }
 0xe2f   : > { %3305 = vmax.xlane.f32.xlu0 %v3304_v49  ;;  %v3313_v49 = vsel %vm1070_vm2, %v12696_v52, -inf }
 0xe3a   : > { %1568 = vrot.lane.b32.xlu1 %v1545_v62, %s15611_s21  ;;  %v10606_v62 = vpop.eup %10605 }
 0xe3b   : > { %v1872_v29 = vmul.f32 %v10606_v62, %v15761_v0 }
 0xe45   : > { %1566 = vrot.lane.b32.xlu0 %v1544_v31, %s15611_s21  ;;  %v10608_v31 = vpop.eup %10607 }
 0xe46   : > { %v2197_v23 = vmul.f32 %v10608_v31, %v15762_v12  ;;  %v10610_v61 = vpop.eup %10609 }
 0xe47   : > { %v2199_v42 = vmul.f32 %v10610_v61, %v15763_v32 }
 0xe49   : > { %1889 = vrot.lane.b32.xlu0 %v1869_v21, %s15609_s17 }
 0xe4d   : > { %1893 = vrot.lane.b32.xlu0 %v1871_v28, %s15609_s17 }
 0xe51   : > { %2216 = vrot.lane.b32.xlu0 %v2196_v46, %s15607_s24 }
 0xe55   : > { %2220 = vrot.lane.b32.xlu0 %v2198_v39, %s15607_s24 }
 0xe5e   : > { %3314 = vmax.xlane.f32.xlu1 %v3313_v49 }
 0xe62   : > { %3308 = vmax.xlane.f32.xlu1 %v3307_v22 }
 0xe73   : > { %1891 = vrot.lane.b32.xlu1 %v1870_v45, %s15609_s17 }
 0xe77   : > { %1895 = vrot.lane.b32.xlu1 %v1872_v29, %s15609_s17  ;;  %v10376_v29 = vld [vmem:[%s15548_s6 + $0x8] sm:$0xff]  }
 0xe7b   : > { %2218 = vrot.lane.b32.xlu1 %v2197_v23, %s15607_s24 }
 0xe7f   : > { %2222 = vrot.lane.b32.xlu1 %v2199_v42, %s15607_s24 }
 0xeb0   : > { %v3300_v21 = vpop.xlane.xlu0 %3299 }
 0xeb1   : > { %v3318_v28 = vsub.f32 %v12636_v58, %v3300_v21 }
 0xeb2   : > { %v3303_v14 = vpop.xlane.xlu1 %3302 }
 0xeb3   : > { %v3319_v63 = vsub.f32 %v12646_v30, %v3303_v14  ;;  %v3328_v51 = vmul.f32 1.442695, %v3318_v28 }
 0xeb4   : > { %v3294_v41 = vpop.xlane.xlu0 %3293 }
 0xeb5   : > { %v3330_v2 = vmul.f32 1.442695, %v3319_v63  ;;  %v3316_v46 = vsub.f32 %v12641_v4, %v3294_v41 }
 0xeb6   : > { %v3297_v20 = vpop.xlane.xlu1 %3296 }
 0xeb7   : > { %v3324_v54 = vmul.f32 1.442695, %v3316_v46  ;;  %v3317_v39 = vsub.f32 %v12653_v9, %v3297_v20  ;;  %10611 = vpow2.f32 %v3330_v2 }
 0xeb8   : > { %v3312_v10 = vpop.xlane.xlu0 %3311 }
 0xeb9   : > { %v3326_v49 = vmul.f32 1.442695, %v3317_v39  ;;  %10613 = vpow2.f32 %v3324_v54  ;;  %v3322_v21 = vsub.f32 %v12662_v37, %v3312_v10  ;;  %v3514_v54 = vld [vmem:[#allocation2 + $0x8] sm:$0xff] }
 0xeba   : > { %v1569_v22 = vpop.permute.xlu1 %1568 }
 0xebb   : > { %10615 = vpow2.f32 %v3326_v49  ;;  %1586 = vst.msk [vmem:[#allocation2 + $0x38] sm:$0xff] %vm1578_vm3, %v1569_v22  ;;  %v3336_v41 = vmul.f32 1.442695, %v3322_v21  ;;  %v3513_v22 = vld [vmem:[#allocation2] sm:$0xff] }
 0xebc   : > { %10617 = vpow2.f32 %v3328_v51  ;;  %v3306_v30 = vpop.xlane.xlu0 %3305 }
 0xebd   : > { %v3320_v61 = vsub.f32 %v12669_v60, %v3306_v30  ;;  %v3533_v30 = vpack.c.bf16 %v3514_v54, %v3513_v22  ;;  %v12798_v54 = vld [vmem:[%s11376_s27] sm:$0x3f] }
 0xebf   : > { %v3332_v14 = vmul.f32 1.442695, %v3320_v61 }
 0xec0   : > { %v1567_v58 = vpop.permute.xlu0 %1566 }
 0xec1   : > { %1585 = vst.msk [vmem:[#allocation2 + $0x30] sm:$0xff] %vm1578_vm3, %v1567_v58  ;;  %v12728_v27 = vpop.eup %10611  ;;  %10619 = vpow2.f32 %v3332_v14  ;;  %v3516_v58 = vld [vmem:[#allocation2 + $0x18] sm:$0xff] }
 0xec3   : > { %v12730_v4 = vpop.eup %10613 }
 0xec4   : > { %v1890_v38 = vpop.permute.xlu0 %1889 }
 0xec5   : > { %v12732_v9 = vpop.eup %10615  ;;  %1910 = vst.msk [vmem:[#allocation2 + $0x20] sm:$0xff] %vm1905_vm4, %v1890_v38 }
 0xec6   : > { %v12735_v45 = vpop.eup %10617  ;;  %v3364_v62 = vpack.c.bf16 %v12732_v9, %v12730_v4 }
 0xec7   : > { %v3365_v0 = vpack.c.bf16 %v12728_v27, %v12735_v45 }
 0xec8   : > { %9839 = vmatprep.mubr.msk.bf16.mxu0 %vm1070_vm2, %v3364_v62  ;;  %v1894_v31 = vpop.permute.xlu0 %1893  ;;  %v3515_v62 = vld [vmem:[#allocation2 + $0x10] sm:$0xff] }
 0xec9   : > { %1912 = vst.msk [vmem:[#allocation2 + $0x30] sm:$0xff] %vm1905_vm4, %v1894_v31  ;;  %9840 = vmatmul.mubr.msk.bf16.vlgmr.msra.gmra.mrb[72].mxu0 %vm1070_vm2, %v3365_v0  ;;  %v3534_v0 = vpack.c.bf16 %v3516_v58, %v3515_v62 }
 0xeca   : > { %9848 = vmatpush3.bf16.msra.mxu0 %v10375_v5 }
 0xecb   : > { %9849 = vmatprep.subr.bf16.mxu0 %v10376_v29  ;;  %v12755_v20 = vpop.eup %10619 }
 0xecc   : > { %v2217_v12 = vpop.permute.xlu0 %2216 }
 0xecd   : > { %2237 = vst.msk [vmem:[#allocation2 + $0x20] sm:$0xff] %vm2232_vm5, %v2217_v12 }
 0xece   : > { %9850 = vmatpush3.bf16.msra.mxu0 %v10376_v29 }
 0xed0   : > { %v2221_v23 = vpop.permute.xlu0 %2220 }
 0xed1   : > { %2239 = vst.msk [vmem:[#allocation2 + $0x30] sm:$0xff] %vm2232_vm5, %v2221_v23 }
 0xed4   : > { %v3517_v29 = vld [vmem:[#allocation2 + $0x20] sm:$0xff] }
 0xed8   : > { %v3519_v23 = vld [vmem:[#allocation2 + $0x30] sm:$0xff] }
 0xeeb   : > { %v3315_v32 = vpop.xlane.xlu1 %3314 }
 0xeec   : > { %v3323_v42 = vsub.f32 %v12696_v52, %v3315_v32 }
 0xeee   : > { %v3338_v63 = vmul.f32 1.442695, %v3323_v42 }
 0xeef   : > { %v3309_v28 = vpop.xlane.xlu1 %3308 }
 0xef0   : > { %v3321_v5 = vsub.f32 %v12701_v25, %v3309_v28  ;;  %10621 = vpow2.f32 %v3338_v63 }
 0xef2   : > { %v3334_v2 = vmul.f32 1.442695, %v3321_v5 }
 0xef3   : > { %v1892_v46 = vpop.permute.xlu1 %1891 }
 0xef4   : > { %10623 = vpow2.f32 %v3334_v2  ;;  %1911 = vst.msk [vmem:[#allocation2 + $0x28] sm:$0xff] %vm1905_vm4, %v1892_v46  ;;  %v15768_v2 = vld [vmem:[#allocation3_spill] sm:$0xff] }
 0xef5   : > { %10625 = vpow2.f32 %v3336_v41  ;;  %v12792_v46 = vsub.s32 2, %v15768_v2 }
 0xef7   : > { %v1896_v60 = vpop.permute.xlu1 %1895  ;;  %15769 = vst [vmem:[#allocation29_spill] sm:$0xff] %v12792_v46 }
 0xef8   : > { %1913 = vst.msk [vmem:[#allocation2 + $0x38] sm:$0xff] %vm1905_vm4, %v1896_v60  ;;  %v9028_v60 = vld [vmem:[%s15549_s7] ss:$0 sm:$0xff] }
 0xefa   : > { %v12758_v37 = vpop.eup %10621 }
 0xefb   : > { %v2219_v52 = vpop.permute.xlu1 %2218 }
 0xefc   : > { %2238 = vst.msk [vmem:[#allocation2 + $0x28] sm:$0xff] %vm2232_vm5, %v2219_v52 }
 0xefe   : > { %v12760_v25 = vpop.eup %10623 }
 0xeff   : > { %v12762_v39 = vpop.eup %10625  ;;  %v2223_v51 = vpop.permute.xlu1 %2222  ;;  %v3366_v10 = vpack.c.bf16 %v12760_v25, %v12755_v20 }
 0xf00   : > { %2240 = vst.msk [vmem:[#allocation2 + $0x38] sm:$0xff] %vm2232_vm5, %v2223_v51  ;;  %v3367_v49 = vpack.c.bf16 %v12758_v37, %v12762_v39  ;;  %v3684_v51 = vrot.slane %v12798_v54, %v12792_v46  ;;  %v11158_v46 = vld [vmem:[%s11308_s19 + $0x8] sm:$0xff] }
 0xf01   : > { %9843 = vmatprep.mubr.msk.bf16.mxu0 %vm1070_vm2, %v3366_v10 }
 0xf02   : > { %9844 = vmatmul.mubr.msk.bf16.gmra.mrb[76].mxu0 %vm1070_vm2, %v3367_v49 }
 0xf03   : > { %9851 = vmatprep.mubr.msk.bf16.mxu0 %vm552_vm0, %v3533_v30  ;;  %v3518_v38 = vld [vmem:[#allocation2 + $0x28] sm:$0xff] }
 0xf04   : > { %v3535_v31 = vpack.c.bf16 %v3518_v38, %v3517_v29 }
 0xf07   : > { %v3520_v12 = vld [vmem:[#allocation2 + $0x38] sm:$0xff] }
 0xf08   : > { %v3536_v61 = vpack.c.bf16 %v3520_v12, %v3519_v23 }
 0xf0a   : > { %9852 = vmatmul.mubr.msk.bf16.vlgmr.msra.gmra.mrb[80].mxu0 %vm552_vm0, %v3534_v0 }
 0xf0b   : > { %9855 = vmatprep.mubr.msk.bf16.mxu0 %vm552_vm0, %v3535_v31  ;;  %v11156_v31 = vld [vmem:[%s11308_s19] sm:$0xff] }
 0xf12   : > { %9856 = vmatmul.mubr.msk.bf16.gmra.mrb[84].mxu0 %vm552_vm0, %v3536_v61 }
 0xf9c   : > { %v12775_v32 = vpop.f32.mrb[72].mxu0 }
 0xf9d   : > { %v12777_v42 = vpop.f32.mrb[73].mxu0 }
 0xf9e   : > { %v12779_v21 = vpop.f32.mrb[74].mxu0 }
 0xf9f   : > { %v12781_v14 = vpop.f32.mrb[75].mxu0 }
 0xfd5   : > { %v12783_v63 = vpop.f32.mrb[76].mxu0 }
 0xfd6   : > { %15764 = vst [vmem:[#allocation9_spill] sm:$0xff] %v12783_v63  ;;  %v12785_v28 = vpop.f32.mrb[77].mxu0 }
 0xfd7   : > { %15765 = vst [vmem:[#allocation8_spill] sm:$0xff] %v12785_v28  ;;  %v12787_v5 = vpop.f32.mrb[78].mxu0  ;;  %v11160_v28 = vld [vmem:[%s11308_s19 + $0x20] sm:$0xff] }
 0xfd8   : > { %15766 = vst [vmem:[#allocation20_spill] sm:$0xff] %v12787_v5  ;;  %v12789_v41 = vpop.f32.mrb[79].mxu0  ;;  %v11157_v5 = vld [vmem:[%s11308_s19 + $0x10] sm:$0xff] }
 0xfd9   : > { %15767 = vst [vmem:[#allocation21_spill] sm:$0xff] %v12789_v41 }
 0xfdd   : > { %v9853_v52 = vpop.f32.mrb[80].mxu0 }
 0xfde   : > { %v3627_v10 = vadd.f32 %v9853_v52, %v9028_v60  ;;  %v3618_v49 = vpop.f32.mrb[81].mxu0 }
 0xfdf   : > { %v3619_v22 = vadd.f32 %v9028_v60, %v3618_v49  ;;  %v9854_v30 = vpop.f32.mrb[82].mxu0 }
 0xfe0   : > { %v3630_v58 = vadd.f32 %v9854_v30, %v9028_v60  ;;  %v3621_v38 = vpop.f32.mrb[83].mxu0  ;;  %v3691_v62 = vmul.f32 %v3684_v51, %v3627_v10 }
 0xfe1   : > { %v3689_v0 = vmul.f32 %v3684_v51, %v3619_v22  ;;  %v3622_v29 = vadd.f32 %v9028_v60, %v3621_v38 }
 0xfe2   : > { %v3692_v61 = vmul.f32 %v3684_v51, %v3630_v58  ;;  %v12806_v41 = vadd.f32 %v11157_v5, %v3691_v62  ;;  %v11159_v58 = vld [vmem:[%s11308_s19 + $0x18] sm:$0xff] }
 0xfe3   : > { %v12803_v12 = vadd.f32 %v11156_v31, %v3689_v0  ;;  %v3690_v23 = vmul.f32 %v3684_v51, %v3622_v29 }
 0xfe4   : > { %v12816_v0 = vadd.f32 %v11159_v58, %v3692_v61  ;;  %v11161_v61 = vld [vmem:[%s11308_s19 + $0x28] sm:$0xff] }
 0xfe5   : > { %v12809_v63 = vadd.f32 %v11158_v46, %v3690_v23  ;;  %v9857_v52 = vpop.f32.mrb[84].mxu0  ;;  %v3721_v49 = vsel %vm552_vm0, %v12803_v12, 0.0  ;;  %v3727_v23 = vsel %vm552_vm0, %v12806_v41, 0.0 }
 0xfe6   : > { %3722 = vadd.xlane.f32.xlu0 %v3721_v49  ;;  %v3634_v10 = vpop.f32.mrb[85].mxu0  ;;  %v3643_v62 = vadd.f32 %v9857_v52, %v9028_v60  ;;  %v11162_v52 = vld [vmem:[%s11308_s19 + $0x38] sm:$0xff] }
 0xfe7   : > { %15770 = vst [vmem:[#allocation28_spill] sm:$0xff] %v12809_v63  ;;  %v3635_v22 = vadd.f32 %v9028_v60, %v3634_v10  ;;  %v9858_v30 = vpop.f32.mrb[86].mxu0  ;;  %v3724_v38 = vsel %vm552_vm0, %v12809_v63, 0.0 }
 0xfe8   : > { %v3646_v5 = vadd.f32 %v9858_v30, %v9028_v60  ;;  %3725 = vadd.xlane.f32.xlu1 %v3724_v38  ;;  %v3637_v46 = vpop.f32.mrb[87].mxu0  ;;  %v3695_v47 = vmul.f32 %v3684_v51, %v3643_v62  ;;  %v3730_v30 = vsel %vm552_vm0, %v12816_v0, 0.0  ;;  %v11163_v38 = vld [vmem:[%s11308_s19 + $0x30] sm:$0xff] }
 0xfe9   : > { %v3693_v29 = vmul.f32 %v3684_v51, %v3635_v22  ;;  %v3638_v31 = vadd.f32 %v9028_v60, %v3637_v46 }
 0xfea   : > { %3728 = vadd.xlane.f32.xlu0 %v3727_v23  ;;  %v3696_v49 = vmul.f32 %v3684_v51, %v3646_v5  ;;  %v12834_v5 = vadd.f32 %v11163_v38, %v3695_v47 }
 0xfeb   : > { %v3694_v10 = vmul.f32 %v3684_v51, %v3638_v31  ;;  %v12821_v48 = vadd.f32 %v11160_v28, %v3693_v29 }
 0xfec   : > { %v12829_v60 = vadd.f32 %v11162_v52, %v3696_v49  ;;  %v3739_v46 = vsel %vm552_vm0, %v12834_v5, 0.0 }
 0xfed   : > { %v12824_v58 = vadd.f32 %v11161_v61, %v3694_v10  ;;  %v3733_v28 = vsel %vm552_vm0, %v12821_v48, 0.0 }
 0xfee   : > { %3731 = vadd.xlane.f32.xlu0 %v3730_v30  ;;  %15772 = vst [vmem:[#allocation36_spill] sm:$0xff] %v12829_v60  ;;  %v3742_v51 = vsel %vm552_vm0, %v12829_v60, 0.0 }
 0xfef   : > { %15771 = vst [vmem:[#allocation37_spill] sm:$0xff] %v12824_v58  ;;  %v3736_v22 = vsel %vm552_vm0, %v12824_v58, 0.0 }
 0xff0   : > { %3737 = vadd.xlane.f32.xlu1 %v3736_v22 }
 0xff2   : > { %3734 = vadd.xlane.f32.xlu0 %v3733_v28 }
 0xff4   : > { %3743 = vadd.xlane.f32.xlu1 %v3742_v51 }
 0xff6   : > { %3740 = vadd.xlane.f32.xlu0 %v3739_v46 }
0x1073   : > { %v3723_v62 = vpop.xlane.xlu0 %3722 }
0x1074   : > { %v3769_v29 = vmul.f32 0.03125, %v3723_v62 }
0x1075   : > { %v3726_v31 = vpop.xlane.xlu1 %3725 }
0x1076   : > { %v12843_v23 = vsub.f32 %v12803_v12, %v3769_v29  ;;  %v3770_v47 = vmul.f32 0.03125, %v3726_v31 }
0x1077   : > { %v3729_v49 = vpop.xlane.xlu0 %3728 }
0x1078   : > { %v12846_v10 = vsub.f32 %v12809_v63, %v3770_v47  ;;  %v3771_v61 = vmul.f32 0.03125, %v3729_v49  ;;  %v3801_v30 = vmul.f32 %v12843_v23, %v12843_v23 }
0x107a   : > { %v12851_v52 = vsub.f32 %v12806_v41, %v3771_v61  ;;  %v3817_v22 = vsel %vm552_vm0, %v3801_v30, 0.0  ;;  %v3802_v38 = vmul.f32 %v12846_v10, %v12846_v10 }
0x107b   : > { %3818 = vadd.xlane.f32.xlu0 %v3817_v22  ;;  %v3732_v28 = vpop.xlane.xlu0 %3731 }
0x107c   : > { %v3772_v51 = vmul.f32 0.03125, %v3732_v28  ;;  %v3820_v46 = vsel %vm552_vm0, %v3802_v38, 0.0  ;;  %v3803_v62 = vmul.f32 %v12851_v52, %v12851_v52 }
0x107d   : > { %3821 = vadd.xlane.f32.xlu1 %v3820_v46  ;;  %v3738_v29 = vpop.xlane.xlu1 %3737 }
0x107e   : > { %v12860_v31 = vsub.f32 %v12816_v0, %v3772_v51  ;;  %v3774_v47 = vmul.f32 0.03125, %v3738_v29  ;;  %v3823_v49 = vsel %vm552_vm0, %v3803_v62, 0.0 }
0x107f   : > { %3824 = vadd.xlane.f32.xlu0 %v3823_v49  ;;  %v3735_v61 = vpop.xlane.xlu0 %3734 }
0x1080   : > { %v12864_v30 = vsub.f32 %v12824_v58, %v3774_v47  ;;  %v3773_v22 = vmul.f32 0.03125, %v3735_v61  ;;  %v3804_v38 = vmul.f32 %v12860_v31, %v12860_v31 }
0x1081   : > { %v3744_v28 = vpop.xlane.xlu1 %3743 }
0x1082   : > { %v12869_v63 = vsub.f32 %v12821_v48, %v3773_v22  ;;  %v3776_v46 = vmul.f32 0.03125, %v3744_v28  ;;  %v3826_v51 = vsel %vm552_vm0, %v3804_v38, 0.0  ;;  %v3806_v29 = vmul.f32 %v12864_v30, %v12864_v30 }
0x1083   : > { %3827 = vadd.xlane.f32.xlu1 %v3826_v51  ;;  %v3741_v62 = vpop.xlane.xlu0 %3740 }
0x1084   : > { %v12875_v49 = vsub.f32 %v12829_v60, %v3776_v46  ;;  %v3775_v47 = vmul.f32 0.03125, %v3741_v62  ;;  %v3805_v61 = vmul.f32 %v12869_v63, %v12869_v63  ;;  %v3832_v22 = vsel %vm552_vm0, %v3806_v29, 0.0 }
0x1085   : > { %v2688_v29 = vsel %vm1070_vm2, %v12306_v24, 0.0  ;;  %v3020_v24 = vsel %vm1070_vm2, %v12483_v7, 0.0  ;;  %v3346_v7 = vsel %vm1070_vm2, %v12735_v45, 0.0  ;;  %v2706_v45 = vsel %vm1070_vm2, %v12335_v13, 0.0 }
0x1086   : > { %v12880_v58 = vsub.f32 %v12834_v5, %v3775_v47  ;;  %v3829_v28 = vsel %vm552_vm0, %v3805_v61, 0.0  ;;  %v3808_v38 = vmul.f32 %v12875_v49, %v12875_v49  ;;  %v2691_v47 = vsel %vm1070_vm2, %v12304_v40, 0.0  ;;  %v15773_v61 = vld [vmem:[#allocation61_spill] sm:$0xff] }
0x1087   : > { %3833 = vadd.xlane.f32.xlu1 %v3832_v22  ;;  %3830 = vadd.xlane.f32.xlu0 %v3829_v28  ;;  %v2697_v22 = vsel %vm1070_vm2, %v15773_v61, 0.0  ;;  %v15774_v28 = vld [vmem:[#allocation60_spill] sm:$0xff]  ;;  %v3023_v40 = vsel %vm1070_vm2, %v12486_v50, 0.0  ;;  %v3352_v13 = vsel %vm1070_vm2, %v12755_v20, 0.0 }
0x1088   : > { %v3807_v46 = vmul.f32 %v12880_v58, %v12880_v58  ;;  %v3838_v51 = vsel %vm552_vm0, %v3808_v38, 0.0  ;;  %v2694_v60 = vsel %vm1070_vm2, %v15774_v28, 0.0  ;;  %v3017_v38 = vsel %vm1070_vm2, %v12473_v35, 0.0  ;;  %v10377_v35 = vld [vmem:[%s15550_s8] sm:$0xff]   ;;  %v10378_v50 = vld [vmem:[%s15550_s8 + $0x8] sm:$0xff]  }
0x1089   : > { %9867 = vmatprep.subr.bf16.mxu1 %v10377_v35 }
0x108a   : > { %v3835_v62 = vsel %vm552_vm0, %v3807_v46, 0.0  ;;  %v3014_v46 = vsel %vm1070_vm2, %v12477_v57, 0.0  ;;  %v3349_v57 = vsel %vm1070_vm2, %v12728_v27, 0.0  ;;  %9868 = vmatpush3.bf16.msra.mxu1 %v10377_v35  ;;  %v2709_v27 = vsel %vm1070_vm2, %v12331_v3, 0.0 }
0x108b   : > { %3839 = vadd.xlane.f32.xlu1 %v3838_v51  ;;  %3836 = vadd.xlane.f32.xlu0 %v3835_v62  ;;  %v3343_v51 = vsel %vm1070_vm2, %v12732_v9, 0.0  ;;  %v2700_v9 = vsel %vm1070_vm2, %v12329_v53, 0.0  ;;  %v3029_v62 = vsel %vm1070_vm2, %v12517_v26, 0.0  ;;  %v3035_v53 = vsel %vm1070_vm2, %v12515_v44, 0.0  ;;  %v15775_v44 = vld [vmem:[#allocation44_spill] sm:$0xff] }
0x108c   : > { %9869 = vmatprep.subr.bf16.mxu1 %v10378_v50  ;;  %v3355_v3 = vsel %vm1070_vm2, %v12760_v25, 0.0  ;;  %v3358_v26 = vsel %vm1070_vm2, %v12762_v39, 0.0  ;;  %v15777_v25 = vld [vmem:[#allocation47_spill] sm:$0xff] }
0x108d   : > { %v2403_v20 = vsel %vm1070_vm2, %v15777_v25, 0.0 }
0x108e   : > { %9870 = vmatpush3.bf16.msra.mxu1 %v10378_v50 }
0x108f   : > { %2692 = vadd.xlane.f32.xlu1 %v2691_v47  ;;  %2689 = vadd.xlane.f32.xlu0 %v2688_v29  ;;  %v3032_v47 = vsel %vm1070_vm2, %v12521_v59, 0.0  ;;  %v2397_v59 = vsel %vm1070_vm2, %v15775_v44, 0.0  ;;  %v15776_v29 = vld [vmem:[#allocation45_spill] sm:$0xff] }
0x1090   : > { %v2394_v61 = vsel %vm1070_vm2, %v15776_v29, 0.0 }
0x1093   : > { %2698 = vadd.xlane.f32.xlu1 %v2697_v22  ;;  %2695 = vadd.xlane.f32.xlu0 %v2694_v60  ;;  %v3340_v60 = vsel %vm1070_vm2, %v12730_v4, 0.0  ;;  %v2703_v4 = vsel %vm1070_vm2, %v12333_v8, 0.0  ;;  %v3026_v8 = vsel %vm1070_vm2, %v12513_v1, 0.0  ;;  %v3361_v1 = vsel %vm1070_vm2, %v12758_v37, 0.0  ;;  %v15778_v22 = vld [vmem:[#allocation46_spill] sm:$0xff] }
0x1094   : > { %v2400_v28 = vsel %vm1070_vm2, %v15778_v22, 0.0  ;;  %v15779_v37 = vld [vmem:[#allocation50_spill] sm:$0xff] }
0x1095   : > { %v2409_v39 = vsel %vm1070_vm2, %v15779_v37, 0.0 }
0x1097   : > { %3018 = vadd.xlane.f32.xlu1 %v3017_v38  ;;  %3015 = vadd.xlane.f32.xlu0 %v3014_v46  ;;  %v15780_v38 = vld [vmem:[#allocation48_spill] sm:$0xff] }
0x1098   : > { %v2406_v46 = vsel %vm1070_vm2, %v15780_v38, 0.0 }
0x109b   : > { %3024 = vadd.xlane.f32.xlu1 %v3023_v40  ;;  %3021 = vadd.xlane.f32.xlu0 %v3020_v24  ;;  %v15781_v40 = vld [vmem:[#allocation49_spill] sm:$0xff] }
0x109c   : > { %v2415_v24 = vsel %vm1070_vm2, %v15781_v40, 0.0 }
0x109f   : > { %3344 = vadd.xlane.f32.xlu1 %v3343_v51  ;;  %3341 = vadd.xlane.f32.xlu0 %v3340_v60  ;;  %v15782_v51 = vld [vmem:[#allocation51_spill] sm:$0xff] }
0x10a0   : > { %v2412_v60 = vsel %vm1070_vm2, %v15782_v51, 0.0 }
0x10a3   : > { %3350 = vadd.xlane.f32.xlu1 %v3349_v57  ;;  %3347 = vadd.xlane.f32.xlu0 %v3346_v7 }
0x10a7   : > { %2704 = vadd.xlane.f32.xlu1 %v2703_v4  ;;  %2701 = vadd.xlane.f32.xlu0 %v2700_v9 }
0x10ab   : > { %2710 = vadd.xlane.f32.xlu1 %v2709_v27  ;;  %2707 = vadd.xlane.f32.xlu0 %v2706_v45 }
0x10af   : > { %3030 = vadd.xlane.f32.xlu1 %v3029_v62  ;;  %3027 = vadd.xlane.f32.xlu0 %v3026_v8 }
0x10b3   : > { %3036 = vadd.xlane.f32.xlu1 %v3035_v53  ;;  %3033 = vadd.xlane.f32.xlu0 %v3032_v47  ;;  %v12961_v47 = vsub.s32 4, %v15768_v2 }
0x10b5   : > { %15783 = vst [vmem:[#allocation25_spill] sm:$0xff] %v12961_v47 }
0x10b7   : > { %3356 = vadd.xlane.f32.xlu1 %v3355_v3  ;;  %3353 = vadd.xlane.f32.xlu0 %v3352_v13 }
0x10bb   : > { %3362 = vadd.xlane.f32.xlu1 %v3361_v1  ;;  %3359 = vadd.xlane.f32.xlu0 %v3358_v26 }
0x10bf   : > { %2398 = vadd.xlane.f32.xlu1 %v2397_v59  ;;  %2395 = vadd.xlane.f32.xlu0 %v2394_v61  ;;  %v15784_v59 = vld [vmem:[#allocation4_spill] sm:$0xff]  ;;  %v12968_v61 = vsub.s32 3, %v15768_v2 }
0x10c0   : > { %v12965_v29 = vrot.slane %v15784_v59, %v12961_v47 }
0x10c1   : > { %15785 = vst [vmem:[#allocation23_spill] sm:$0xff] %v12968_v61 }
0x10c3   : > { %2404 = vadd.xlane.f32.xlu1 %v2403_v20  ;;  %2401 = vadd.xlane.f32.xlu0 %v2400_v28 }
0x10c7   : > { %2410 = vadd.xlane.f32.xlu1 %v2409_v39  ;;  %2407 = vadd.xlane.f32.xlu0 %v2406_v46 }
0x10cb   : > { %2416 = vadd.xlane.f32.xlu1 %v2415_v24  ;;  %2413 = vadd.xlane.f32.xlu0 %v2412_v60  ;;  %v12973_v24 = vrot.slane %v12798_v54, %v12968_v61 }
0x1108   : > { %v3819_v35 = vpop.xlane.xlu0 %3818 }
0x1109   : > { %v3865_v57 = vmul.f32 0.03125, %v3819_v35 }
0x110a   : > { %v3822_v7 = vpop.xlane.xlu1 %3821 }
0x110b   : > { %v3881_v50 = vadd.f32 1e-06, %v3865_v57  ;;  %v3866_v4 = vmul.f32 0.03125, %v3822_v7 }
0x110c   : > { %v3825_v9 = vpop.xlane.xlu0 %3824 }
0x110d   : > { %10627 = vrsqrt.f32 %v3881_v50  ;;  %v3882_v27 = vadd.f32 1e-06, %v3866_v4  ;;  %v3867_v45 = vmul.f32 0.03125, %v3825_v9 }
0x110f   : > { %10629 = vrsqrt.f32 %v3882_v27  ;;  %v3883_v62 = vadd.f32 1e-06, %v3867_v45 }
0x1110   : > { %v3828_v8 = vpop.xlane.xlu1 %3827 }
0x1111   : > { %10631 = vrsqrt.f32 %v3883_v62  ;;  %v3868_v53 = vmul.f32 0.03125, %v3828_v8 }
0x1113   : > { %v3884_v3 = vadd.f32 1e-06, %v3868_v53 }
0x1114   : > { %v3834_v13 = vpop.xlane.xlu1 %3833  ;;  %v3831_v1 = vpop.xlane.xlu0 %3830 }
0x1115   : > { %10633 = vrsqrt.f32 %v3884_v3  ;;  %v3870_v26 = vmul.f32 0.03125, %v3834_v13  ;;  %v3869_v44 = vmul.f32 0.03125, %v3831_v1 }
0x1117   : > { %v10628_v25 = vpop.eup %10627  ;;  %v3886_v20 = vadd.f32 1e-06, %v3870_v26  ;;  %v3885_v22 = vadd.f32 1e-06, %v3869_v44 }
0x1118   : > { %v3840_v28 = vpop.xlane.xlu1 %3839  ;;  %v3837_v37 = vpop.xlane.xlu0 %3836  ;;  %v3913_v39 = vmul.f32 %v10628_v25, %v12843_v23 }
0x1119   : > { %v10630_v38 = vpop.eup %10629  ;;  %10635 = vrsqrt.f32 %v3886_v20  ;;  %v3872_v46 = vmul.f32 0.03125, %v3840_v28  ;;  %v3871_v40 = vmul.f32 0.03125, %v3837_v37 }
0x111a   : > { %10637 = vrsqrt.f32 %v3885_v22  ;;  %v3914_v51 = vmul.f32 %v10630_v38, %v12846_v10  ;;  %v3937_v60 = vmul.f32 %v12965_v29, %v3913_v39 }
0x111b   : > { %v10632_v35 = vpop.eup %10631  ;;  %v3888_v57 = vadd.f32 1e-06, %v3872_v46  ;;  %v3887_v7 = vadd.f32 1e-06, %v3871_v40 }
0x111c   : > { %v3915_v50 = vmul.f32 %v10632_v35, %v12851_v52  ;;  %v2693_v4 = vpop.xlane.xlu1 %2692  ;;  %v2690_v23 = vpop.xlane.xlu0 %2689  ;;  %v3938_v9 = vmul.f32 %v12965_v29, %v3914_v51  ;;  %v3961_v27 = vadd.f32 %v12973_v24, %v3937_v60 }
0x111d   : > { %10639 = vrsqrt.f32 %v3888_v57 }
0x111e   : > { %10641 = vrsqrt.f32 %v3887_v7  ;;  %v3962_v54 = vadd.f32 %v12973_v24, %v3938_v9  ;;  %v3939_v10 = vmul.f32 %v12965_v29, %v3915_v50 }
0x111f   : > { %v10634_v45 = vpop.eup %10633  ;;  %10643 = vrcp.f32 %v2693_v4 }
0x1120   : > { %v3916_v62 = vmul.f32 %v10634_v45, %v12860_v31  ;;  %10645 = vrcp.f32 %v2690_v23  ;;  %v2699_v8 = vpop.xlane.xlu1 %2698  ;;  %v2696_v53 = vpop.xlane.xlu0 %2695  ;;  %v3981_v52 = vpack.c.bf16 %v3962_v54, %v3961_v27  ;;  %v3963_v26 = vadd.f32 %v12973_v24, %v3939_v10 }
0x1121   : > { %10647 = vrcp.f32 %v2696_v53 }
0x1122   : > { %v3940_v3 = vmul.f32 %v12965_v29, %v3916_v62  ;;  %9871 = vmatprep.mubr.msk.bf16.mxu1 %vm552_vm0, %v3981_v52  ;;  %10649 = vrcp.f32 %v2699_v8 }
0x1123   : > { %v10636_v13 = vpop.eup %10635 }
0x1124   : > { %v10638_v1 = vpop.eup %10637  ;;  %v3964_v44 = vadd.f32 %v12973_v24, %v3940_v3  ;;  %v3019_v59 = vpop.xlane.xlu1 %3018  ;;  %v3918_v20 = vmul.f32 %v10636_v13, %v12864_v30 }
0x1125   : > { %v3016_v25 = vpop.xlane.xlu0 %3015  ;;  %v3917_v31 = vmul.f32 %v10638_v1, %v12869_v63 }
0x1126   : > { %10651 = vrcp.f32 %v3016_v25  ;;  %v3982_v22 = vpack.c.bf16 %v3964_v44, %v3963_v26  ;;  %v3942_v28 = vmul.f32 %v12965_v29, %v3918_v20 }
0x1127   : > { %v10640_v37 = vpop.eup %10639  ;;  %v3941_v39 = vmul.f32 %v12965_v29, %v3917_v31  ;;  %10653 = vrcp.f32 %v3019_v59 }
0x1128   : > { %v10642_v38 = vpop.eup %10641  ;;  %v3025_v46 = vpop.xlane.xlu1 %3024  ;;  %9872 = vmatmul.mubr.msk.bf16.vlgmr.msra.gmra.mrb[64].mxu1 %vm552_vm0, %v3982_v22  ;;  %v3966_v51 = vadd.f32 %v12973_v24, %v3942_v28  ;;  %v3920_v60 = vmul.f32 %v10640_v37, %v12875_v49 }
0x1129   : > { %v3022_v40 = vpop.xlane.xlu0 %3021  ;;  %v10644_v30 = vpop.eup %10643  ;;  %v3965_v63 = vadd.f32 %v12973_v24, %v3941_v39  ;;  %v3919_v35 = vmul.f32 %v10642_v38, %v12880_v58 }
0x112a   : > { %v10646_v57 = vpop.eup %10645  ;;  %10655 = vrcp.f32 %v3022_v40  ;;  %v2814_v7 = vmul.f32 %v10644_v30, %v12353_v55  ;;  %v3944_v50 = vmul.f32 %v12965_v29, %v3920_v60 }
0x112b   : > { %v2813_v4 = vmul.f32 %v10646_v57, %v12349_v15  ;;  %v3983_v23 = vpack.c.bf16 %v3966_v51, %v3965_v63  ;;  %v3943_v9 = vmul.f32 %v12965_v29, %v3919_v35  ;;  %v10648_v27 = vpop.eup %10647  ;;  %10657 = vrcp.f32 %v3025_v46 }
0x112c   : > { %2831 = vrot.lane.b32.xlu1 %v2814_v7, %s15611_s21  ;;  %v3345_v49 = vpop.xlane.xlu1 %3344  ;;  %v3968_v45 = vadd.f32 %v12973_v24, %v3944_v50  ;;  %v2815_v55 = vmul.f32 %v10648_v27, %v12347_v34  ;;  %v10650_v15 = vpop.eup %10649  ;;  %v15786_v50 = vld [vmem:[#allocation62_spill] sm:$0xff] }
0x112d   : > { %v3342_v54 = vpop.xlane.xlu0 %3341  ;;  %2829 = vrot.lane.b32.xlu0 %v2813_v4, %s15611_s21  ;;  %9875 = vmatprep.mubr.msk.bf16.mxu1 %vm552_vm0, %v3983_v23  ;;  %v3967_v58 = vadd.f32 %v12973_v24, %v3943_v9  ;;  %v2816_v52 = vmul.f32 %v10650_v15, %v12351_v6  ;;  %v15788_v15 = vld [vmem:[#allocation8_spill] sm:$0xff] }
0x112e   : > { %10659 = vrcp.f32 %v3342_v54 }
0x112f   : > { %v3984_v10 = vpack.c.bf16 %v3968_v45, %v3967_v58  ;;  %10661 = vrcp.f32 %v3345_v49  ;;  %v15787_v49 = vld [vmem:[#allocation11_spill] sm:$0xff] }
0x1130   : > { %v10652_v29 = vpop.eup %10651  ;;  %2833 = vrot.lane.b32.xlu1 %v2815_v55, %s15611_s21  ;;  %v3351_v62 = vpop.xlane.xlu1 %3350 }
0x1131   : > { %v3348_v8 = vpop.xlane.xlu0 %3347  ;;  %9876 = vmatmul.mubr.msk.bf16.gmra.mrb[68].mxu1 %vm552_vm0, %v3984_v10  ;;  %v3139_v53 = vmul.f32 %v10652_v29, %v12610_v18  ;;  %v10654_v3 = vpop.eup %10653  ;;  %v15789_v29 = vld [vmem:[#allocation10_spill] sm:$0xff] }
0x1132   : > { %10663 = vrcp.f32 %v3348_v8  ;;  %v3140_v26 = vmul.f32 %v10654_v3, %v12615_v17  ;;  %v15790_v3 = vld [vmem:[#allocation9_spill] sm:$0xff] }
0x1133   : > { %3155 = vrot.lane.b32.xlu0 %v3139_v53, %s15609_s17  ;;  %10665 = vrcp.f32 %v3351_v62 }
0x1134   : > { %v10656_v34 = vpop.eup %10655  ;;  %2835 = vrot.lane.b32.xlu1 %v2816_v52, %s15611_s21  ;;  %v2705_v24 = vpop.xlane.xlu1 %2704 }
0x1135   : > { %v2702_v13 = vpop.xlane.xlu0 %2701  ;;  %v3141_v1 = vmul.f32 %v10656_v34, %v12607_v43  ;;  %v10658_v44 = vpop.eup %10657 }
0x1136   : > { %10667 = vrcp.f32 %v2702_v13  ;;  %v3142_v20 = vmul.f32 %v10658_v44, %v12613_v56  ;;  %v15791_v13 = vld [vmem:[#allocation21_spill] sm:$0xff] }
0x1137   : > { %3159 = vrot.lane.b32.xlu0 %v3141_v1, %s15609_s17  ;;  %10669 = vrcp.f32 %v2705_v24 }
0x1138   : > { %v10660_v18 = vpop.eup %10659  ;;  %3157 = vrot.lane.b32.xlu1 %v3140_v26, %s15609_s17  ;;  %v2711_v6 = vpop.xlane.xlu1 %2710 }
0x1139   : > { %v2708_v59 = vpop.xlane.xlu0 %2707  ;;  %v3465_v25 = vmul.f32 %v10660_v18, %v12777_v42  ;;  %v10662_v31 = vpop.eup %10661 }
0x113a   : > { %10671 = vrcp.f32 %v2708_v59  ;;  %v3466_v37 = vmul.f32 %v10662_v31, %v12781_v14  ;;  %v15792_v59 = vld [vmem:[#allocation55_spill] sm:$0xff] }
0x113b   : > { %3481 = vrot.lane.b32.xlu0 %v3465_v25, %s15607_s24  ;;  %10673 = vrcp.f32 %v2711_v6 }
0x113c   : > { %v10664_v43 = vpop.eup %10663  ;;  %3161 = vrot.lane.b32.xlu1 %v3142_v20, %s15609_s17  ;;  %v3031_v17 = vpop.xlane.xlu1 %3030  ;;  %v15793_v20 = vld [vmem:[#allocation53_spill] sm:$0xff] }
0x113d   : > { %v3028_v22 = vpop.xlane.xlu0 %3027  ;;  %v3467_v28 = vmul.f32 %v10664_v43, %v12775_v32  ;;  %v10666_v39 = vpop.eup %10665  ;;  %v15794_v43 = vld [vmem:[#allocation20_spill] sm:$0xff] }
0x113e   : > { %10675 = vrcp.f32 %v3028_v22  ;;  %v3468_v40 = vmul.f32 %v10666_v39, %v12779_v21 }
0x113f   : > { %3485 = vrot.lane.b32.xlu0 %v3467_v28, %s15607_s24  ;;  %10677 = vrcp.f32 %v3031_v17 }
0x1140   : > { %v10668_v42 = vpop.eup %10667  ;;  %3483 = vrot.lane.b32.xlu1 %v3466_v37, %s15607_s24  ;;  %v3037_v56 = vpop.xlane.xlu1 %3036  ;;  %v15795_v37 = vld [vmem:[#allocation54_spill] sm:$0xff] }
0x1141   : > { %v3034_v38 = vpop.xlane.xlu0 %3033  ;;  %v2817_v46 = vmul.f32 %v10668_v42, %v12357_v36  ;;  %v10670_v51 = vpop.eup %10669  ;;  %v15796_v42 = vld [vmem:[#allocation52_spill] sm:$0xff] }
0x1142   : > { %10679 = vrcp.f32 %v3034_v38  ;;  %v2818_v63 = vmul.f32 %v10670_v51, %v12361_v11 }
0x1143   : > { %2837 = vrot.lane.b32.xlu0 %v2817_v46, %s15611_s21  ;;  %10681 = vrcp.f32 %v3037_v56 }
0x1144   : > { %v10672_v32 = vpop.eup %10671  ;;  %3487 = vrot.lane.b32.xlu1 %v3468_v40, %s15607_s24  ;;  %v3357_v14 = vpop.xlane.xlu1 %3356  ;;  %v15797_v40 = vld [vmem:[#allocation59_spill] sm:$0xff] }
0x1145   : > { %v3354_v60 = vpop.xlane.xlu0 %3353  ;;  %v2819_v30 = vmul.f32 %v10672_v32, %v12355_v19  ;;  %v10674_v35 = vpop.eup %10673  ;;  %v15798_v32 = vld [vmem:[#allocation57_spill] sm:$0xff] }
0x1146   : > { %10683 = vrcp.f32 %v3354_v60  ;;  %v2820_v4 = vmul.f32 %v10674_v35, %v15786_v50  ;;  %v10381_v50 = vld [vmem:[%s15552_s10 + $0x10] sm:$0xff]  }
0x1147   : > { %2841 = vrot.lane.b32.xlu0 %v2819_v30, %s15611_s21  ;;  %10685 = vrcp.f32 %v3357_v14 }
0x1148   : > { %v10676_v36 = vpop.eup %10675  ;;  %2839 = vrot.lane.b32.xlu1 %v2818_v63, %s15611_s21  ;;  %v3363_v21 = vpop.xlane.xlu1 %3362  ;;  %v15799_v63 = vld [vmem:[#allocation58_spill] sm:$0xff] }
0x1149   : > { %v3360_v57 = vpop.xlane.xlu0 %3359  ;;  %v3143_v7 = vmul.f32 %v10676_v36, %v12627_v16  ;;  %v10678_v23 = vpop.eup %10677  ;;  %v15800_v36 = vld [vmem:[#allocation56_spill] sm:$0xff] }
0x114a   : > { %10687 = vrcp.f32 %v3360_v57  ;;  %v3144_v54 = vmul.f32 %v10678_v23, %v15787_v49  ;;  %v10379_v57 = vld [vmem:[%s15552_s10] sm:$0xff]  }
0x114b   : > { %3163 = vrot.lane.b32.xlu0 %v3143_v7, %s15609_s17  ;;  %10689 = vrcp.f32 %v3363_v21  ;;  %9887 = vmatprep.subr.bf16.mxu0 %v10379_v57  ;;  %v10380_v7 = vld [vmem:[%s15552_s10 + $0x8] sm:$0xff]   ;;  %v10383_v23 = vld [vmem:[%s15552_s10 + $0x20] sm:$0xff]  }
0x114c   : > { %v10680_v19 = vpop.eup %10679  ;;  %2843 = vrot.lane.b32.xlu1 %v2820_v4, %s15611_s21  ;;  %v2399_v11 = vpop.xlane.xlu1 %2398  ;;  %9888 = vmatpush3.bf16.msra.mxu0 %v10379_v57  ;;  %v10382_v4 = vld [vmem:[%s15552_s10 + $0x18] sm:$0xff]   ;;  %s15832_s21 = smov 112  }
0x114d   : > { %v2396_v9 = vpop.xlane.xlu0 %2395  ;;  %10691 = vrcp.f32 %v2399_v11  ;;  %v3145_v27 = vmul.f32 %v10680_v19, %v12625_v33  ;;  %v10682_v45 = vpop.eup %10681  ;;  %9889 = vmatprep.subr.bf16.mxu0 %v10380_v7  ;;  %v10384_v19 = vld [vmem:[%s15552_s10 + $0x28] sm:$0xff]   ;;  %v10385_v11 = vld [vmem:[%s15552_s10 + $0x30] sm:$0xff]  }
0x114e   : > { %10693 = vrcp.f32 %v2396_v9  ;;  %v3146_v62 = vmul.f32 %v10682_v45, %v15789_v29  ;;  %v10386_v9 = vld [vmem:[%s15552_s10 + $0x38] sm:$0xff]  }
0x114f   : > { %3167 = vrot.lane.b32.xlu0 %v3145_v27, %s15609_s17 }
0x1150   : > { %v10684_v16 = vpop.eup %10683  ;;  %3165 = vrot.lane.b32.xlu1 %v3144_v54, %s15609_s17  ;;  %v2405_v55 = vpop.xlane.xlu1 %2404  ;;  %9890 = vmatpush3.bf16.msra.mxu0 %v10380_v7 }
0x1151   : > { %v2402_v58 = vpop.xlane.xlu0 %2401  ;;  %10695 = vrcp.f32 %v2405_v55  ;;  %v3469_v10 = vmul.f32 %v10684_v16, %v15788_v15  ;;  %v10686_v8 = vpop.eup %10685  ;;  %9891 = vmatprep.subr.bf16.mxu0 %v10381_v50 }
0x1152   : > { %10697 = vrcp.f32 %v2402_v58  ;;  %v3470_v1 = vmul.f32 %v10686_v8, %v15791_v13 }
0x1153   : > { %3489 = vrot.lane.b32.xlu0 %v3469_v10, %s15607_s24 }
0x1154   : > { %v10688_v33 = vpop.eup %10687  ;;  %3169 = vrot.lane.b32.xlu1 %v3146_v62, %s15609_s17  ;;  %v2411_v53 = vpop.xlane.xlu1 %2410  ;;  %9892 = vmatpush3.bf16.msra.mxu0 %v10381_v50  ;;  %s15830_s17 = smov 56  }
0x1155   : > { %v2408_v52 = vpop.xlane.xlu0 %2407  ;;  %10699 = vrcp.f32 %v2411_v53  ;;  %v3471_v34 = vmul.f32 %v10688_v33, %v15790_v3  ;;  %v10690_v24 = vpop.eup %10689  ;;  %9893 = vmatprep.subr.bf16.mxu0 %v10382_v4 }
0x1156   : > { %10701 = vrcp.f32 %v2408_v52  ;;  %v3472_v17 = vmul.f32 %v10690_v24, %v15794_v43 }
0x1157   : > { %v10692_v26 = vpop.eup %10691  ;;  %3493 = vrot.lane.b32.xlu0 %v3471_v34, %s15607_s24 }
0x1158   : > { %v10694_v44 = vpop.eup %10693  ;;  %3491 = vrot.lane.b32.xlu1 %v3470_v1, %s15607_s24  ;;  %v2417_v18 = vpop.xlane.xlu1 %2416  ;;  %v2520_v25 = vmul.f32 %v10692_v26, %v15792_v59  ;;  %9894 = vmatpush3.bf16.msra.mxu0 %v10382_v4 }
0x1159   : > { %v2414_v6 = vpop.xlane.xlu0 %2413  ;;  %10703 = vrcp.f32 %v2417_v18  ;;  %v2519_v31 = vmul.f32 %v10694_v44, %v15793_v20  ;;  %9895 = vmatprep.subr.bf16.mxu0 %v10383_v23 }
0x115a   : > { %10705 = vrcp.f32 %v2414_v6  ;;  %2528 = vst.msk [vmem:[#allocation2 + $0x48] sm:$0xff] %vm980_vm1, %v2520_v25 }
0x115b   : > { %v10696_v22 = vpop.eup %10695  ;;  %2527 = vst.msk [vmem:[#allocation2 + $0x40] sm:$0xff] %vm980_vm1, %v2519_v31 }
0x115c   : > { %v10698_v28 = vpop.eup %10697  ;;  %3495 = vrot.lane.b32.xlu1 %v3472_v17, %s15607_s24  ;;  %v2522_v39 = vmul.f32 %v10696_v22, %v15795_v37  ;;  %9896 = vmatpush3.bf16.msra.mxu0 %v10383_v23 }
0x115d   : > { %v2521_v56 = vmul.f32 %v10698_v28, %v15796_v42  ;;  %9897 = vmatprep.subr.bf16.mxu0 %v10384_v19 }
0x115e   : > { %2530 = vst.msk [vmem:[#allocation2 + $0x58] sm:$0xff] %vm980_vm1, %v2522_v39 }
0x115f   : > { %v10700_v38 = vpop.eup %10699  ;;  %2529 = vst.msk [vmem:[#allocation2 + $0x50] sm:$0xff] %vm980_vm1, %v2521_v56 }
0x1160   : > { %v10702_v46 = vpop.eup %10701  ;;  %v2524_v51 = vmul.f32 %v10700_v38, %v15797_v40  ;;  %9898 = vmatpush3.bf16.msra.mxu0 %v10384_v19  ;;  %v13121_v38 = vld [vmem:[%s15551_s9] ss:$0 sm:$0xff] }
0x1161   : > { %v2523_v14 = vmul.f32 %v10702_v46, %v15798_v32  ;;  %9899 = vmatprep.subr.bf16.mxu0 %v10385_v11 }
0x1162   : > { %2532 = vst.msk [vmem:[#allocation2 + $0x68] sm:$0xff] %vm980_vm1, %v2524_v51 }
0x1163   : > { %v10704_v60 = vpop.eup %10703  ;;  %2531 = vst.msk [vmem:[#allocation2 + $0x60] sm:$0xff] %vm980_vm1, %v2523_v14 }
0x1164   : > { %v10706_v30 = vpop.eup %10705  ;;  %v2526_v35 = vmul.f32 %v10704_v60, %v15799_v63  ;;  %9900 = vmatpush3.bf16.msra.mxu0 %v10385_v11 }
0x1165   : > { %v2525_v21 = vmul.f32 %v10706_v30, %v15800_v36  ;;  %9901 = vmatprep.subr.bf16.mxu0 %v10386_v9 }
0x1166   : > { %2534 = vst.msk [vmem:[#allocation2 + $0x78] sm:$0xff] %vm980_vm1, %v2526_v35 }
0x1167   : > { %2533 = vst.msk [vmem:[#allocation2 + $0x70] sm:$0xff] %vm980_vm1, %v2525_v21 }
0x1168   : > { %9902 = vmatpush3.bf16.msra.mxu0 %v10386_v9 }
0x119e   : > { %v2832_v27 = vpop.permute.xlu1 %2831 }
0x119f   : > { %2854 = vst.msk [vmem:[#allocation2 + $0x48] sm:$0xff] %vm1578_vm3, %v2832_v27  ;;  %v2830_v49 = vpop.permute.xlu0 %2829 }
0x11a0   : > { %2853 = vst.msk [vmem:[#allocation2 + $0x40] sm:$0xff] %vm1578_vm3, %v2830_v49 }
0x11a2   : > { %v2834_v54 = vpop.permute.xlu1 %2833 }
0x11a3   : > { %2855 = vst.msk [vmem:[#allocation2 + $0x50] sm:$0xff] %vm1578_vm3, %v2834_v54 }
0x11a5   : > { %v3156_v45 = vpop.permute.xlu0 %3155 }
0x11a6   : > { %v2836_v16 = vpop.permute.xlu1 %2835  ;;  %3179 = vst.msk [vmem:[#allocation2 + $0x40] sm:$0xff] %vm1905_vm4, %v3156_v45 }
0x11a7   : > { %2856 = vst.msk [vmem:[#allocation2 + $0x58] sm:$0xff] %vm1578_vm3, %v2836_v16 }
0x11a9   : > { %v3160_v55 = vpop.permute.xlu0 %3159 }
0x11aa   : > { %v3158_v58 = vpop.permute.xlu1 %3157  ;;  %3181 = vst.msk [vmem:[#allocation2 + $0x50] sm:$0xff] %vm1905_vm4, %v3160_v55 }
0x11ab   : > { %3180 = vst.msk [vmem:[#allocation2 + $0x48] sm:$0xff] %vm1905_vm4, %v3158_v58 }
0x11ad   : > { %v3482_v15 = vpop.permute.xlu0 %3481 }
0x11ae   : > { %v3162_v10 = vpop.permute.xlu1 %3161  ;;  %3505 = vst.msk [vmem:[#allocation2 + $0x40] sm:$0xff] %vm2232_vm5, %v3482_v15 }
0x11af   : > { %3182 = vst.msk [vmem:[#allocation2 + $0x58] sm:$0xff] %vm1905_vm4, %v3162_v10 }
0x11b1   : > { %v3486_v29 = vpop.permute.xlu0 %3485 }
0x11b2   : > { %v3484_v62 = vpop.permute.xlu1 %3483  ;;  %3507 = vst.msk [vmem:[#allocation2 + $0x50] sm:$0xff] %vm2232_vm5, %v3486_v29 }
0x11b3   : > { %3506 = vst.msk [vmem:[#allocation2 + $0x48] sm:$0xff] %vm2232_vm5, %v3484_v62 }
0x11b5   : > { %v2838_v8 = vpop.permute.xlu0 %2837  ;;  %v3521_v3 = vld [vmem:[#allocation2 + $0x40] sm:$0xff] }
0x11b6   : > { %v3488_v33 = vpop.permute.xlu1 %3487  ;;  %2857 = vst.msk [vmem:[#allocation2 + $0x60] sm:$0xff] %vm1578_vm3, %v2838_v8 }
0x11b7   : > { %3508 = vst.msk [vmem:[#allocation2 + $0x58] sm:$0xff] %vm2232_vm5, %v3488_v33 }
0x11b9   : > { %v2842_v53 = vpop.permute.xlu0 %2841  ;;  %v3523_v26 = vld [vmem:[#allocation2 + $0x50] sm:$0xff] }
0x11ba   : > { %v2840_v52 = vpop.permute.xlu1 %2839  ;;  %2859 = vst.msk [vmem:[#allocation2 + $0x70] sm:$0xff] %vm1578_vm3, %v2842_v53  ;;  %v3522_v34 = vld [vmem:[#allocation2 + $0x48] sm:$0xff] }
0x11bb   : > { %2858 = vst.msk [vmem:[#allocation2 + $0x68] sm:$0xff] %vm1578_vm3, %v2840_v52  ;;  %v3537_v24 = vpack.c.bf16 %v3522_v34, %v3521_v3 }
0x11bd   : > { %9859 = vmatprep.mubr.msk.bf16.mxu0 %vm552_vm0, %v3537_v24  ;;  %v3164_v13 = vpop.permute.xlu0 %3163 }
0x11be   : > { %v2844_v1 = vpop.permute.xlu1 %2843  ;;  %3183 = vst.msk [vmem:[#allocation2 + $0x60] sm:$0xff] %vm1905_vm4, %v3164_v13  ;;  %v3524_v44 = vld [vmem:[#allocation2 + $0x58] sm:$0xff] }
0x11bf   : > { %2860 = vst.msk [vmem:[#allocation2 + $0x78] sm:$0xff] %vm1578_vm3, %v2844_v1  ;;  %v3538_v18 = vpack.c.bf16 %v3524_v44, %v3523_v26 }
0x11c1   : > { %9860 = vmatmul.mubr.msk.bf16.gmra.mrb[88].mxu0 %vm552_vm0, %v3538_v18  ;;  %v3168_v6 = vpop.permute.xlu0 %3167 }
0x11c2   : > { %v3166_v59 = vpop.permute.xlu1 %3165  ;;  %3185 = vst.msk [vmem:[#allocation2 + $0x70] sm:$0xff] %vm1905_vm4, %v3168_v6 }
0x11c3   : > { %3184 = vst.msk [vmem:[#allocation2 + $0x68] sm:$0xff] %vm1905_vm4, %v3166_v59 }
0x11c5   : > { %v3490_v25 = vpop.permute.xlu0 %3489 }
0x11c6   : > { %v3170_v20 = vpop.permute.xlu1 %3169  ;;  %3509 = vst.msk [vmem:[#allocation2 + $0x60] sm:$0xff] %vm2232_vm5, %v3490_v25 }
0x11c7   : > { %3186 = vst.msk [vmem:[#allocation2 + $0x78] sm:$0xff] %vm1905_vm4, %v3170_v20 }
0x11c9   : > { %v3494_v31 = vpop.permute.xlu0 %3493 }
0x11ca   : > { %v3492_v43 = vpop.permute.xlu1 %3491  ;;  %3511 = vst.msk [vmem:[#allocation2 + $0x70] sm:$0xff] %vm2232_vm5, %v3494_v31 }
0x11cb   : > { %3510 = vst.msk [vmem:[#allocation2 + $0x68] sm:$0xff] %vm2232_vm5, %v3492_v43 }
0x11cd   : > { %v3525_v22 = vld [vmem:[#allocation2 + $0x60] sm:$0xff] }
0x11ce   : > { %v3496_v17 = vpop.permute.xlu1 %3495 }
0x11cf   : > { %3512 = vst.msk [vmem:[#allocation2 + $0x78] sm:$0xff] %vm2232_vm5, %v3496_v17 }
0x11d1   : > { %v3527_v39 = vld [vmem:[#allocation2 + $0x70] sm:$0xff] }
0x11d2   : > { %v3526_v28 = vld [vmem:[#allocation2 + $0x68] sm:$0xff] }
0x11d3   : > { %v3539_v37 = vpack.c.bf16 %v3526_v28, %v3525_v22 }
0x11d5   : > { %9863 = vmatprep.mubr.msk.bf16.mxu0 %vm552_vm0, %v3539_v37 }
0x11d6   : > { %v3528_v42 = vld [vmem:[#allocation2 + $0x78] sm:$0xff] }
0x11d7   : > { %v3540_v56 = vpack.c.bf16 %v3528_v42, %v3527_v39 }
0x11d9   : > { %9864 = vmatmul.mubr.msk.bf16.gmra.mrb[92].mxu0 %vm552_vm0, %v3540_v56 }
0x11fb   : > { %v9873_v46 = vpop.f32.mrb[64].mxu1 }
0x11fc   : > { %v13124_v40 = vadd.f32 %v9873_v46, %v13121_v38  ;;  %v4066_v51 = vpop.f32.mrb[65].mxu1 }
0x11fd   : > { %v13127_v32 = vadd.f32 %v13121_v38, %v4066_v51  ;;  %v9874_v14 = vpop.f32.mrb[66].mxu1 }
0x11fe   : > { %v4147_v60 = vmul.f32 0.044715, %v13124_v40  ;;  %v13131_v30 = vadd.f32 %v9874_v14, %v13121_v38  ;;  %v4069_v63 = vpop.f32.mrb[67].mxu1 }
0x11ff   : > { %v4145_v35 = vmul.f32 0.044715, %v13127_v32  ;;  %v13135_v36 = vadd.f32 %v13121_v38, %v4069_v63 }
0x1200   : > { %v4163_v21 = vmul.f32 %v4147_v60, %v13124_v40  ;;  %v4148_v57 = vmul.f32 0.044715, %v13131_v30 }
0x1201   : > { %v4161_v7 = vmul.f32 %v4145_v35, %v13127_v32  ;;  %v4146_v50 = vmul.f32 0.044715, %v13135_v36 }
0x1202   : > { %v4179_v4 = vmul.f32 %v4163_v21, %v13124_v40  ;;  %v4164_v23 = vmul.f32 %v4148_v57, %v13131_v30  ;;  %v4131_v57 = vmul.f32 0.5, %v13124_v40 }
0x1203   : > { %v4177_v19 = vmul.f32 %v4161_v7, %v13127_v32  ;;  %v4162_v11 = vmul.f32 %v4146_v50, %v13135_v36  ;;  %v4132_v7 = vmul.f32 0.5, %v13131_v30 }
0x1204   : > { %v4195_v9 = vadd.f32 %v4179_v4, %v13124_v40  ;;  %v4180_v27 = vmul.f32 %v4164_v23, %v13131_v30  ;;  %v9877_v49 = vpop.f32.mrb[68].mxu1  ;;  %v4129_v4 = vmul.f32 0.5, %v13127_v32  ;;  %v4130_v23 = vmul.f32 0.5, %v13135_v36 }
0x1205   : > { %v4178_v54 = vmul.f32 %v4162_v11, %v13135_v36  ;;  %v13149_v45 = vadd.f32 %v9877_v49, %v13121_v38  ;;  %v4082_v16 = vpop.f32.mrb[69].mxu1  ;;  %v4193_v55 = vadd.f32 %v4177_v19, %v13127_v32 }
0x1206   : > { %v4211_v58 = vmul.f32 0.7978846, %v4195_v9  ;;  %v4196_v15 = vadd.f32 %v4180_v27, %v13131_v30  ;;  %v13154_v10 = vadd.f32 %v13121_v38, %v4082_v16  ;;  %v9878_v29 = vpop.f32.mrb[70].mxu1 }
0x1207   : > { %v4151_v62 = vmul.f32 0.044715, %v13149_v45  ;;  %v4094_v8 = vadd.f32 %v9878_v29, %v13121_v38  ;;  %v4085_v33 = vpop.f32.mrb[71].mxu1  ;;  %v4194_v53 = vadd.f32 %v4178_v54, %v13135_v36  ;;  %v4209_v52 = vmul.f32 0.7978846, %v4193_v55 }
0x1208   : > { %10707 = vtanh.f32 %v4211_v58  ;;  %v4212_v3 = vmul.f32 0.7978846, %v4196_v15  ;;  %v4149_v34 = vmul.f32 0.044715, %v13154_v10  ;;  %v4086_v24 = vadd.f32 %v13121_v38, %v4085_v33 }
0x1209   : > { %v4167_v13 = vmul.f32 %v4151_v62, %v13149_v45  ;;  %v4152_v1 = vmul.f32 0.044715, %v4094_v8  ;;  %v4210_v26 = vmul.f32 0.7978846, %v4194_v53  ;;  %10709 = vtanh.f32 %v4209_v52 }
0x120a   : > { %10711 = vtanh.f32 %v4212_v3  ;;  %v4165_v44 = vmul.f32 %v4149_v34, %v13154_v10  ;;  %v4150_v18 = vmul.f32 0.044715, %v4086_v24  ;;  %v4135_v32 = vmul.f32 0.5, %v13149_v45 }
0x120b   : > { %v4183_v6 = vmul.f32 %v4167_v13, %v13149_v45  ;;  %v4168_v59 = vmul.f32 %v4152_v1, %v4094_v8  ;;  %10713 = vtanh.f32 %v4210_v26  ;;  %v4136_v62 = vmul.f32 0.5, %v4094_v8 }
0x120c   : > { %v4181_v25 = vmul.f32 %v4165_v44, %v13154_v10  ;;  %v4166_v20 = vmul.f32 %v4150_v18, %v4086_v24  ;;  %v4133_v33 = vmul.f32 0.5, %v13154_v10  ;;  %v4134_v53 = vmul.f32 0.5, %v4086_v24 }
0x120d   : > { %v4184_v31 = vmul.f32 %v4168_v59, %v4094_v8  ;;  %v4199_v43 = vadd.f32 %v4183_v6, %v13149_v45  ;;  %v13174_v6 = vld [vmem:[%s11376_s27 + $0x10] sm:$0x3f] }
0x120e   : > { %v4182_v17 = vmul.f32 %v4166_v20, %v4086_v24  ;;  %v4197_v22 = vadd.f32 %v4181_v25, %v13154_v10  ;;  %v15801_v45 = vld [vmem:[#allocation29_spill] sm:$0xff]  ;;  %v11165_v10 = vld [vmem:[%s15549_s7] ss:$0 sm:$0xff] }
0x120f   : > { %v4200_v28 = vadd.f32 %v4184_v31, %v4094_v8  ;;  %v4215_v37 = vmul.f32 0.7978846, %v4199_v43  ;;  %v3688_v8 = vrot.slane %v13174_v6, %v15801_v45 }
0x1210   : > { %v4198_v39 = vadd.f32 %v4182_v17, %v4086_v24  ;;  %v4213_v42 = vmul.f32 0.7978846, %v4197_v22 }
0x1211   : > { %v4216_v56 = vmul.f32 0.7978846, %v4200_v28  ;;  %10715 = vtanh.f32 %v4215_v37  ;;  %v11166_v37 = vld [vmem:[%s11308_s19 + $0x40] sm:$0xff] }
0x1212   : > { %v10708_v46 = vpop.eup %10707  ;;  %v4214_v51 = vmul.f32 0.7978846, %v4198_v39  ;;  %10717 = vtanh.f32 %v4213_v42 }
0x1213   : > { %v10710_v14 = vpop.eup %10709  ;;  %v4243_v60 = vadd.f32 1.0, %v10708_v46  ;;  %10719 = vtanh.f32 %v4216_v56  ;;  %v11167_v56 = vld [vmem:[%s11308_s19 + $0x50] sm:$0xff] }
0x1214   : > { %v10712_v63 = vpop.eup %10711  ;;  %v4241_v35 = vadd.f32 1.0, %v10710_v14  ;;  %10721 = vtanh.f32 %v4214_v51  ;;  %v11168_v14 = vld [vmem:[%s11308_s19 + $0x48] sm:$0xff] }
0x1215   : > { %v10714_v21 = vpop.eup %10713  ;;  %v4244_v50 = vadd.f32 1.0, %v10712_v63  ;;  %v4259_v11 = vmul.f32 %v4243_v60, %v4131_v57 }
0x1216   : > { %v4242_v19 = vadd.f32 1.0, %v10714_v21  ;;  %v4257_v27 = vmul.f32 %v4241_v35, %v4129_v4  ;;  %v11169_v21 = vld [vmem:[%s11308_s19 + $0x58] sm:$0xff] }
0x1217   : > { %v4260_v9 = vmul.f32 %v4244_v50, %v4132_v7 }
0x1218   : > { %v4258_v49 = vmul.f32 %v4242_v19, %v4130_v23 }
0x1219   : > { %v4290_v54 = vpack.c.bf16 %v4260_v9, %v4259_v11 }
0x121a   : > { %v4289_v16 = vpack.c.bf16 %v4258_v49, %v4257_v27 }
0x121b   : > { %v10716_v55 = vpop.eup %10715 }
0x121c   : > { %v10718_v58 = vpop.eup %10717  ;;  %9903 = vmatprep.mubr.bf16.mxu0 %v4289_v16  ;;  %v4247_v15 = vadd.f32 1.0, %v10716_v55 }
0x121d   : > { %v10720_v29 = vpop.eup %10719  ;;  %9904 = vmatmul.mubr.bf16.vlgmr.msra.gmra.mrb[96].mxu0 %v4290_v54  ;;  %v4245_v40 = vadd.f32 1.0, %v10718_v58  ;;  %v11170_v58 = vld [vmem:[%s11308_s19 + $0x60] sm:$0xff] }
0x121e   : > { %v10722_v30 = vpop.eup %10721  ;;  %v4248_v36 = vadd.f32 1.0, %v10720_v29  ;;  %v4263_v3 = vmul.f32 %v4247_v15, %v4135_v32 }
0x121f   : > { %v4246_v52 = vadd.f32 1.0, %v10722_v30  ;;  %v4261_v13 = vmul.f32 %v4245_v40, %v4133_v33  ;;  %v11171_v30 = vld [vmem:[%s11308_s19 + $0x70] sm:$0xff] }
0x1220   : > { %v4264_v34 = vmul.f32 %v4248_v36, %v4136_v62  ;;  %v11172_v62 = vld [vmem:[%s11308_s19 + $0x68] sm:$0xff] }
0x1221   : > { %v4262_v1 = vmul.f32 %v4246_v52, %v4134_v53  ;;  %v11173_v53 = vld [vmem:[%s11308_s19 + $0x78] sm:$0xff]  ;;  %s15829_s19 = smov 64  }
0x1222   : > { %v4292_v26 = vpack.c.bf16 %v4264_v34, %v4263_v3 }
0x1223   : > { %v4291_v44 = vpack.c.bf16 %v4262_v1, %v4261_v13  ;;  %v13222_v1 = vsub.s32 5, %v15768_v2 }
0x1225   : > { %9907 = vmatprep.mubr.bf16.mxu0 %v4291_v44  ;;  %15802 = vst [vmem:[#allocation22_spill] sm:$0xff] %v13222_v1 }
0x1226   : > { %9908 = vmatmul.mubr.bf16.gmra.mrb[100].mxu0 %v4292_v26  ;;  %v13227_v26 = vld [vmem:[%s15553_s11] ss:$0 sm:$0xff] }
0x1294   : > { %v9861_v18 = vpop.f32.mrb[88].mxu0 }
0x1295   : > { %v3659_v24 = vadd.f32 %v11165_v10, %v9861_v18  ;;  %v3650_v59 = vpop.f32.mrb[89].mxu0  ;;  %v11174_v18 = vld [vmem:[%s11376_s27] sm:$0x3f] }
0x1296   : > { %v3651_v25 = vadd.f32 %v11165_v10, %v3650_v59  ;;  %v9862_v20 = vpop.f32.mrb[90].mxu0 }
0x1297   : > { %v3653_v31 = vpop.f32.mrb[91].mxu0  ;;  %v3699_v43 = vmul.f32 %v3688_v8, %v3659_v24  ;;  %v3662_v22 = vadd.f32 %v11165_v10, %v9862_v20 }
0x1298   : > { %v3697_v17 = vmul.f32 %v3688_v8, %v3651_v25  ;;  %v3654_v28 = vadd.f32 %v11165_v10, %v3653_v31 }
0x1299   : > { %v13185_v46 = vadd.f32 %v11167_v56, %v3699_v43  ;;  %v3700_v51 = vmul.f32 %v3688_v8, %v3662_v22  ;;  %v15805_v56 = vld [vmem:[#allocation28_spill] sm:$0xff] }
0x129a   : > { %v13182_v39 = vadd.f32 %v11166_v37, %v3697_v17  ;;  %v3698_v42 = vmul.f32 %v3688_v8, %v3654_v28 }
0x129b   : > { %v13195_v57 = vadd.f32 %v11169_v21, %v3700_v51  ;;  %v3751_v7 = vsel %vm552_vm0, %v13185_v46, 0.0 }
0x129c   : > { %v13188_v60 = vadd.f32 %v11168_v14, %v3698_v42  ;;  %v3745_v63 = vsel %vm552_vm0, %v13182_v39, 0.0 }
0x129d   : > { %3746 = vadd.xlane.f32.xlu0 %v3745_v63  ;;  %v3754_v50 = vsel %vm552_vm0, %v13195_v57, 0.0 }
0x129e   : > { %v3748_v35 = vsel %vm552_vm0, %v13188_v60, 0.0 }
0x129f   : > { %3749 = vadd.xlane.f32.xlu1 %v3748_v35 }
0x12a1   : > { %3752 = vadd.xlane.f32.xlu0 %v3751_v7 }
0x12a5   : > { %3755 = vadd.xlane.f32.xlu0 %v3754_v50 }
0x12ac   : > { %v9865_v4 = vpop.f32.mrb[92].mxu0 }
0x12ad   : > { %v3675_v23 = vadd.f32 %v11165_v10, %v9865_v4  ;;  %v3666_v19 = vpop.f32.mrb[93].mxu0 }
0x12ae   : > { %v3667_v11 = vadd.f32 %v11165_v10, %v3666_v19  ;;  %v9866_v9 = vpop.f32.mrb[94].mxu0 }
0x12af   : > { %v3678_v27 = vadd.f32 %v11165_v10, %v9866_v9  ;;  %v3669_v49 = vpop.f32.mrb[95].mxu0  ;;  %v3703_v54 = vmul.f32 %v3688_v8, %v3675_v23 }
0x12b0   : > { %v3701_v16 = vmul.f32 %v3688_v8, %v3667_v11  ;;  %v3670_v55 = vadd.f32 %v11165_v10, %v3669_v49 }
0x12b1   : > { %v3704_v29 = vmul.f32 %v3688_v8, %v3678_v27  ;;  %v13205_v32 = vadd.f32 %v11171_v30, %v3703_v54  ;;  %v15812_v30 = vld [vmem:[#allocation36_spill] sm:$0xff] }
0x12b2   : > { %v13202_v15 = vadd.f32 %v11170_v58, %v3701_v16  ;;  %v3702_v40 = vmul.f32 %v3688_v8, %v3670_v55  ;;  %v4452_v8 = vrot.slane %v11174_v18, %v13222_v1  ;;  %v15810_v58 = vld [vmem:[#allocation37_spill] sm:$0xff] }
0x12b3   : > { %v13213_v52 = vadd.f32 %v11173_v53, %v3704_v29  ;;  %v3763_v34 = vsel %vm552_vm0, %v13205_v32, 0.0 }
0x12b4   : > { %v13208_v36 = vadd.f32 %v11172_v62, %v3702_v40  ;;  %v3757_v33 = vsel %vm552_vm0, %v13202_v15, 0.0 }
0x12b5   : > { %3758 = vadd.xlane.f32.xlu0 %v3757_v33  ;;  %v3766_v13 = vsel %vm552_vm0, %v13213_v52, 0.0 }
0x12b6   : > { %v3760_v3 = vsel %vm552_vm0, %v13208_v36, 0.0 }
0x12b7   : > { %3761 = vadd.xlane.f32.xlu1 %v3760_v3 }
0x12b9   : > { %3764 = vadd.xlane.f32.xlu0 %v3763_v34 }
0x12bb   : > { %3767 = vadd.xlane.f32.xlu1 %v3766_v13 }
0x12f0   : > { %v9905_v44 = vpop.f32.mrb[96].mxu0 }
0x12f1   : > { %v4395_v10 = vadd.f32 %v9905_v44, %v13227_v26  ;;  %v4386_v24 = vpop.f32.mrb[97].mxu0 }
0x12f2   : > { %v4387_v59 = vadd.f32 %v13227_v26, %v4386_v24  ;;  %v9906_v25 = vpop.f32.mrb[98].mxu0 }
0x12f3   : > { %v4398_v20 = vadd.f32 %v9906_v25, %v13227_v26  ;;  %v4389_v31 = vpop.f32.mrb[99].mxu0  ;;  %v4459_v2 = vmul.f32 %v4452_v8, %v4395_v10 }
0x12f4   : > { %v4457_v43 = vmul.f32 %v4452_v8, %v4387_v59  ;;  %v4390_v17 = vadd.f32 %v13227_v26, %v4389_v31 }
0x12f5   : > { %v4460_v28 = vmul.f32 %v4452_v8, %v4398_v20  ;;  %v13239_v42 = vadd.f32 %v4459_v2, %v12806_v41 }
0x12f6   : > { %v13236_v22 = vadd.f32 %v4457_v43, %v12803_v12  ;;  %v4458_v37 = vmul.f32 %v4452_v8, %v4390_v17 }
0x12f7   : > { %15804 = vst [vmem:[#allocation30_spill] sm:$0xff] %v13239_v42  ;;  %v13247_v35 = vadd.f32 %v4460_v28, %v12816_v0  ;;  %v4495_v19 = vsel %vm552_vm0, %v13239_v42, 0.0 }
0x12f8   : > { %15803 = vst [vmem:[#allocation31_spill] sm:$0xff] %v13236_v22  ;;  %v13242_v51 = vadd.f32 %v4458_v37, %v15805_v56  ;;  %v4489_v14 = vsel %vm552_vm0, %v13236_v22, 0.0 }
0x12f9   : > { %v9909_v63 = vpop.f32.mrb[100].mxu0  ;;  %4490 = vadd.xlane.f32.xlu0 %v4489_v14  ;;  %15807 = vst [vmem:[#allocation39_spill] sm:$0xff] %v13247_v35  ;;  %v4498_v27 = vsel %vm552_vm0, %v13247_v35, 0.0 }
0x12fa   : > { %15806 = vst [vmem:[#allocation13_spill] sm:$0xff] %v13242_v51  ;;  %v4411_v21 = vadd.f32 %v9909_v63, %v13227_v26  ;;  %v4402_v12 = vpop.f32.mrb[101].mxu0  ;;  %v4492_v7 = vsel %vm552_vm0, %v13242_v51, 0.0 }
0x12fb   : > { %v4403_v41 = vadd.f32 %v13227_v26, %v4402_v12  ;;  %v9910_v50 = vpop.f32.mrb[102].mxu0  ;;  %4493 = vadd.xlane.f32.xlu1 %v4492_v7 }
0x12fc   : > { %v4414_v4 = vadd.f32 %v9910_v50, %v13227_v26  ;;  %v4405_v23 = vpop.f32.mrb[103].mxu0  ;;  %v4463_v11 = vmul.f32 %v4452_v8, %v4411_v21 }
0x12fd   : > { %v4461_v9 = vmul.f32 %v4452_v8, %v4403_v41  ;;  %v4406_v0 = vadd.f32 %v13227_v26, %v4405_v23  ;;  %4496 = vadd.xlane.f32.xlu0 %v4495_v19 }
0x12fe   : > { %v4464_v54 = vmul.f32 %v4452_v8, %v4414_v4  ;;  %v13263_v55 = vadd.f32 %v4463_v11, %v12834_v5 }
0x12ff   : > { %v13260_v49 = vadd.f32 %v4461_v9, %v12821_v48  ;;  %v4462_v16 = vmul.f32 %v4452_v8, %v4406_v0  ;;  %4499 = vadd.xlane.f32.xlu1 %v4498_v27 }
0x1300   : > { %15809 = vst [vmem:[#allocation38_spill] sm:$0xff] %v13263_v55  ;;  %v13271_v62 = vadd.f32 %v4464_v54, %v15812_v30  ;;  %v4507_v33 = vsel %vm552_vm0, %v13263_v55, 0.0 }
0x1301   : > { %15808 = vst [vmem:[#allocation12_spill] sm:$0xff] %v13260_v49  ;;  %v13266_v29 = vadd.f32 %v4462_v16, %v15810_v58  ;;  %v4501_v40 = vsel %vm552_vm0, %v13260_v49, 0.0 }
0x1302   : > { %4502 = vadd.xlane.f32.xlu0 %v4501_v40  ;;  %15813 = vst [vmem:[#allocation15_spill] sm:$0xff] %v13271_v62  ;;  %v4510_v5 = vsel %vm552_vm0, %v13271_v62, 0.0 }
0x1303   : > { %15811 = vst [vmem:[#allocation27_spill] sm:$0xff] %v13266_v29  ;;  %v4504_v48 = vsel %vm552_vm0, %v13266_v29, 0.0 }
0x1304   : > { %4505 = vadd.xlane.f32.xlu1 %v4504_v48 }
0x1306   : > { %4508 = vadd.xlane.f32.xlu0 %v4507_v33 }
0x1308   : > { %4511 = vadd.xlane.f32.xlu1 %v4510_v5 }
0x132a   : > { %v3747_v53 = vpop.xlane.xlu0 %3746 }
0x132b   : > { %v3777_v3 = vmul.f32 0.03125, %v3747_v53 }
0x132c   : > { %v3750_v34 = vpop.xlane.xlu1 %3749 }
0x132d   : > { %v13280_v13 = vsub.f32 %v13182_v39, %v3777_v3  ;;  %v3778_v44 = vmul.f32 0.03125, %v3750_v34 }
0x132e   : > { %v3753_v18 = vpop.xlane.xlu0 %3752 }
0x132f   : > { %v13283_v8 = vsub.f32 %v13188_v60, %v3778_v44  ;;  %v3779_v10 = vmul.f32 0.03125, %v3753_v18  ;;  %v3809_v24 = vmul.f32 %v13280_v13, %v13280_v13 }
0x1331   : > { %v13288_v59 = vsub.f32 %v13185_v46, %v3779_v10  ;;  %v3841_v25 = vsel %vm552_vm0, %v3809_v24, 0.0  ;;  %v3810_v20 = vmul.f32 %v13283_v8, %v13283_v8 }
0x1332   : > { %3842 = vadd.xlane.f32.xlu0 %v3841_v25  ;;  %v3756_v31 = vpop.xlane.xlu0 %3755 }
0x1333   : > { %v3780_v2 = vmul.f32 0.03125, %v3756_v31  ;;  %v3844_v43 = vsel %vm552_vm0, %v3810_v20, 0.0  ;;  %v3811_v17 = vmul.f32 %v13288_v59, %v13288_v59 }
0x1334   : > { %3845 = vadd.xlane.f32.xlu1 %v3844_v43 }
0x1335   : > { %v13297_v28 = vsub.f32 %v13195_v57, %v3780_v2  ;;  %v3847_v37 = vsel %vm552_vm0, %v3811_v17, 0.0 }
0x1336   : > { %3848 = vadd.xlane.f32.xlu0 %v3847_v37 }
0x1337   : > { %v3812_v56 = vmul.f32 %v13297_v28, %v13297_v28 }
0x1339   : > { %v3850_v14 = vsel %vm552_vm0, %v3812_v56, 0.0 }
0x133a   : > { %3851 = vadd.xlane.f32.xlu1 %v3850_v14 }
0x1342   : > { %v3759_v63 = vpop.xlane.xlu0 %3758 }
0x1343   : > { %v3781_v21 = vmul.f32 0.03125, %v3759_v63 }
0x1344   : > { %v3762_v12 = vpop.xlane.xlu1 %3761 }
0x1345   : > { %v13304_v7 = vsub.f32 %v13202_v15, %v3781_v21  ;;  %v3782_v41 = vmul.f32 0.03125, %v3762_v12 }
0x1346   : > { %v3765_v50 = vpop.xlane.xlu0 %3764 }
0x1347   : > { %v13307_v4 = vsub.f32 %v13208_v36, %v3782_v41  ;;  %v3783_v23 = vmul.f32 0.03125, %v3765_v50  ;;  %v3813_v19 = vmul.f32 %v13304_v7, %v13304_v7 }
0x1348   : > { %v3768_v11 = vpop.xlane.xlu1 %3767 }
0x1349   : > { %v13312_v9 = vsub.f32 %v13205_v32, %v3783_v23  ;;  %v3784_v0 = vmul.f32 0.03125, %v3768_v11  ;;  %v3853_v27 = vsel %vm552_vm0, %v3813_v19, 0.0  ;;  %v3814_v54 = vmul.f32 %v13307_v4, %v13307_v4 }
0x134a   : > { %3854 = vadd.xlane.f32.xlu0 %v3853_v27 }
0x134b   : > { %v13318_v16 = vsub.f32 %v13213_v52, %v3784_v0  ;;  %v3856_v58 = vsel %vm552_vm0, %v3814_v54, 0.0  ;;  %v3815_v40 = vmul.f32 %v13312_v9, %v13312_v9 }
0x134c   : > { %3857 = vadd.xlane.f32.xlu1 %v3856_v58 }
0x134d   : > { %v3859_v30 = vsel %vm552_vm0, %v3815_v40, 0.0  ;;  %v3816_v48 = vmul.f32 %v13318_v16, %v13318_v16 }
0x134e   : > { %3860 = vadd.xlane.f32.xlu0 %v3859_v30 }
0x134f   : > { %v3862_v33 = vsel %vm552_vm0, %v3816_v48, 0.0 }
0x1350   : > { %3863 = vadd.xlane.f32.xlu1 %v3862_v33 }
0x1386   : > { %v4491_v5 = vpop.xlane.xlu0 %4490 }
0x1387   : > { %v4537_v53 = vmul.f32 0.03125, %v4491_v5 }
0x1388   : > { %v4494_v3 = vpop.xlane.xlu1 %4493 }
0x1389   : > { %v13328_v34 = vsub.f32 %v13236_v22, %v4537_v53  ;;  %v4538_v44 = vmul.f32 0.03125, %v4494_v3 }
0x138a   : > { %v4497_v18 = vpop.xlane.xlu0 %4496 }
0x138b   : > { %v13331_v10 = vsub.f32 %v13242_v51, %v4538_v44  ;;  %v4539_v24 = vmul.f32 0.03125, %v4497_v18  ;;  %v4569_v25 = vmul.f32 %v13328_v34, %v13328_v34 }
0x138c   : > { %v4500_v20 = vpop.xlane.xlu1 %4499 }
0x138d   : > { %v13336_v31 = vsub.f32 %v13239_v42, %v4539_v24  ;;  %v4540_v2 = vmul.f32 0.03125, %v4500_v20  ;;  %v4585_v43 = vsel %vm552_vm0, %v4569_v25, 0.0  ;;  %v4570_v17 = vmul.f32 %v13331_v10, %v13331_v10  ;;  %v10387_v20 = vld [vmem:[%s15546_s4 + $0x10] sm:$0xff]  }
0x138e   : > { %4586 = vadd.xlane.f32.xlu0 %v4585_v43  ;;  %9919 = vmatprep.subr.bf16.mxu1 %v10387_v20 }
0x138f   : > { %v13342_v37 = vsub.f32 %v13247_v35, %v4540_v2  ;;  %v4503_v56 = vpop.xlane.xlu0 %4502  ;;  %v4588_v14 = vsel %vm552_vm0, %v4570_v17, 0.0  ;;  %v4571_v63 = vmul.f32 %v13336_v31, %v13336_v31  ;;  %v10388_v2 = vld [vmem:[%s15546_s4 + $0x18] sm:$0xff]   ;;  %9920 = vmatpush3.bf16.msra.mxu1 %v10387_v20 }
0x1390   : > { %v4541_v21 = vmul.f32 0.03125, %v4503_v56  ;;  %4589 = vadd.xlane.f32.xlu1 %v4588_v14  ;;  %9921 = vmatprep.subr.bf16.mxu1 %v10388_v2 }
0x1391   : > { %v4506_v12 = vpop.xlane.xlu1 %4505  ;;  %v4591_v41 = vsel %vm552_vm0, %v4571_v63, 0.0  ;;  %v4572_v50 = vmul.f32 %v13342_v37, %v13342_v37 }
0x1392   : > { %v13351_v23 = vsub.f32 %v13260_v49, %v4541_v21  ;;  %v4542_v19 = vmul.f32 0.03125, %v4506_v12  ;;  %4592 = vadd.xlane.f32.xlu0 %v4591_v41 }
0x1393   : > { %v4509_v11 = vpop.xlane.xlu0 %4508  ;;  %v4594_v0 = vsel %vm552_vm0, %v4572_v50, 0.0  ;;  %9922 = vmatpush3.bf16.msra.mxu1 %v10388_v2 }
0x1394   : > { %v13355_v27 = vsub.f32 %v13266_v29, %v4542_v19  ;;  %v4543_v54 = vmul.f32 0.03125, %v4509_v11  ;;  %4595 = vadd.xlane.f32.xlu1 %v4594_v0  ;;  %v4573_v58 = vmul.f32 %v13351_v23, %v13351_v23 }
0x1395   : > { %v4512_v40 = vpop.xlane.xlu1 %4511 }
0x1396   : > { %v13360_v30 = vsub.f32 %v13263_v55, %v4543_v54  ;;  %v4544_v48 = vmul.f32 0.03125, %v4512_v40  ;;  %v4597_v33 = vsel %vm552_vm0, %v4573_v58, 0.0  ;;  %v4574_v5 = vmul.f32 %v13355_v27, %v13355_v27  ;;  %v15814_v54 = vld [vmem:[#allocation7_spill] sm:$0xff] }
0x1397   : > { %4598 = vadd.xlane.f32.xlu0 %v4597_v33  ;;  %v3936_v58 = vrot.slane %v15814_v54, %v12961_v47 }
0x1398   : > { %v13366_v53 = vsub.f32 %v13271_v62, %v4544_v48  ;;  %v4600_v3 = vsel %vm552_vm0, %v4574_v5, 0.0  ;;  %v4575_v44 = vmul.f32 %v13360_v30, %v13360_v30 }
0x1399   : > { %4601 = vadd.xlane.f32.xlu1 %v4600_v3 }
0x139a   : > { %v4603_v18 = vsel %vm552_vm0, %v4575_v44, 0.0  ;;  %v4576_v24 = vmul.f32 %v13366_v53, %v13366_v53  ;;  %v3960_v44 = vrot.slane %v13174_v6, %v12968_v61 }
0x139b   : > { %4604 = vadd.xlane.f32.xlu0 %v4603_v18 }
0x139c   : > { %v4606_v25 = vsel %vm552_vm0, %v4576_v24, 0.0 }
0x139d   : > { %4607 = vadd.xlane.f32.xlu1 %v4606_v25 }
0x13bf   : > { %v3843_v43 = vpop.xlane.xlu0 %3842 }
0x13c0   : > { %v3873_v17 = vmul.f32 0.03125, %v3843_v43 }
0x13c1   : > { %v3846_v56 = vpop.xlane.xlu1 %3845 }
0x13c2   : > { %v3889_v14 = vadd.f32 1e-06, %v3873_v17  ;;  %v3874_v63 = vmul.f32 0.03125, %v3846_v56 }
0x13c3   : > { %v3849_v21 = vpop.xlane.xlu0 %3848 }
0x13c4   : > { %10723 = vrsqrt.f32 %v3889_v14  ;;  %v3890_v12 = vadd.f32 1e-06, %v3874_v63  ;;  %v3875_v41 = vmul.f32 0.03125, %v3849_v21 }
0x13c6   : > { %10725 = vrsqrt.f32 %v3890_v12  ;;  %v3891_v50 = vadd.f32 1e-06, %v3875_v41 }
0x13c7   : > { %v3852_v19 = vpop.xlane.xlu1 %3851 }
0x13c8   : > { %10727 = vrsqrt.f32 %v3891_v50  ;;  %v3876_v11 = vmul.f32 0.03125, %v3852_v19 }
0x13ca   : > { %v3892_v0 = vadd.f32 1e-06, %v3876_v11 }
0x13cc   : > { %10729 = vrsqrt.f32 %v3892_v0 }
0x13ce   : > { %v10724_v40 = vpop.eup %10723 }
0x13cf   : > { %v3921_v48 = vmul.f32 %v10724_v40, %v13280_v13 }
0x13d0   : > { %v10726_v33 = vpop.eup %10725 }
0x13d1   : > { %v3922_v5 = vmul.f32 %v10726_v33, %v13283_v8  ;;  %v3945_v3 = vmul.f32 %v3936_v58, %v3921_v48 }
0x13d2   : > { %v10728_v18 = vpop.eup %10727 }
0x13d3   : > { %v3946_v24 = vmul.f32 %v3936_v58, %v3922_v5  ;;  %v3923_v25 = vmul.f32 %v10728_v18, %v13288_v59  ;;  %v3969_v20 = vadd.f32 %v3960_v44, %v3945_v3 }
0x13d5   : > { %v3970_v2 = vadd.f32 %v3960_v44, %v3946_v24  ;;  %v3947_v63 = vmul.f32 %v3936_v58, %v3923_v25 }
0x13d6   : > { %v10730_v43 = vpop.eup %10729 }
0x13d7   : > { %v3855_v17 = vpop.xlane.xlu0 %3854  ;;  %v3985_v56 = vpack.c.bf16 %v3970_v2, %v3969_v20  ;;  %v3924_v14 = vmul.f32 %v10730_v43, %v13297_v28  ;;  %v3971_v19 = vadd.f32 %v3960_v44, %v3947_v63 }
0x13d8   : > { %v3877_v13 = vmul.f32 0.03125, %v3855_v17 }
0x13d9   : > { %v3858_v21 = vpop.xlane.xlu1 %3857  ;;  %9879 = vmatprep.mubr.msk.bf16.mxu1 %vm552_vm0, %v3985_v56  ;;  %v3948_v8 = vmul.f32 %v3936_v58, %v3924_v14 }
0x13da   : > { %v3893_v12 = vadd.f32 1e-06, %v3877_v13  ;;  %v3878_v41 = vmul.f32 0.03125, %v3858_v21 }
0x13db   : > { %v3861_v50 = vpop.xlane.xlu0 %3860  ;;  %v3972_v11 = vadd.f32 %v3960_v44, %v3948_v8 }
0x13dc   : > { %10731 = vrsqrt.f32 %v3893_v12  ;;  %v3894_v59 = vadd.f32 1e-06, %v3878_v41  ;;  %v3879_v0 = vmul.f32 0.03125, %v3861_v50 }
0x13dd   : > { %v3864_v54 = vpop.xlane.xlu1 %3863  ;;  %v3986_v40 = vpack.c.bf16 %v3972_v11, %v3971_v19 }
0x13de   : > { %10733 = vrsqrt.f32 %v3894_v59  ;;  %v3895_v48 = vadd.f32 1e-06, %v3879_v0  ;;  %v3880_v33 = vmul.f32 0.03125, %v3864_v54 }
0x13df   : > { %9880 = vmatmul.mubr.msk.bf16.gmra.mrb[72].mxu1 %vm552_vm0, %v3986_v40  ;;  %v549_v40 = vld [vmem:[%s11376_s27 + $0x8] sm:$0x3f] }
0x13e0   : > { %10735 = vrsqrt.f32 %v3895_v48  ;;  %v3896_v28 = vadd.f32 1e-06, %v3880_v33 }
0x13e2   : > { %10737 = vrsqrt.f32 %v3896_v28  ;;  %v13398_v28 = vadd.f32 1.0, %v549_v40 }
0x13e4   : > { %15815 = vst [vmem:[#allocation14_spill] sm:$0xff] %v13398_v28 }
0x13e6   : > { %v10732_v5 = vpop.eup %10731 }
0x13e7   : > { %v3925_v3 = vmul.f32 %v10732_v5, %v13304_v7 }
0x13e8   : > { %v10734_v18 = vpop.eup %10733 }
0x13e9   : > { %v3926_v24 = vmul.f32 %v10734_v18, %v13307_v4  ;;  %v3949_v25 = vmul.f32 %v3936_v58, %v3925_v3 }
0x13ea   : > { %v10736_v20 = vpop.eup %10735 }
0x13eb   : > { %v3950_v2 = vmul.f32 %v3936_v58, %v3926_v24  ;;  %v3927_v43 = vmul.f32 %v10736_v20, %v13312_v9  ;;  %v3973_v56 = vadd.f32 %v3960_v44, %v3949_v25  ;;  %v15816_v20 = vld [vmem:[#allocation5_spill] sm:$0xff] }
0x13ec   : > { %v10738_v17 = vpop.eup %10737 }
0x13ed   : > { %v3974_v14 = vadd.f32 %v3960_v44, %v3950_v2  ;;  %v3928_v63 = vmul.f32 %v10738_v17, %v13318_v16  ;;  %v3951_v13 = vmul.f32 %v3936_v58, %v3927_v43  ;;  %v4702_v2 = vrot.slane %v13398_v28, %v15816_v20 }
0x13ef   : > { %v3987_v21 = vpack.c.bf16 %v3974_v14, %v3973_v56  ;;  %v3952_v8 = vmul.f32 %v3936_v58, %v3928_v63  ;;  %v3975_v7 = vadd.f32 %v3960_v44, %v3951_v13 }
0x13f1   : > { %9883 = vmatprep.mubr.msk.bf16.mxu1 %vm552_vm0, %v3987_v21  ;;  %v3976_v12 = vadd.f32 %v3960_v44, %v3952_v8 }
0x13f3   : > { %v3988_v41 = vpack.c.bf16 %v3976_v12, %v3975_v7  ;;  %v15817_v7 = vld [vmem:[#allocation6_spill] sm:$0xff] }
0x13f4   : > { %v4726_v12 = vrot.slane %v549_v40, %v15817_v7 }
0x13f5   : > { %9884 = vmatmul.mubr.msk.bf16.gmra.mrb[76].mxu1 %vm552_vm0, %v3988_v41 }
0x141b   : > { %v4587_v4 = vpop.xlane.xlu0 %4586 }
0x141c   : > { %v4633_v50 = vmul.f32 0.03125, %v4587_v4 }
0x141d   : > { %v4590_v19 = vpop.xlane.xlu1 %4589 }
0x141e   : > { %v4649_v9 = vadd.f32 1e-06, %v4633_v50  ;;  %v4634_v11 = vmul.f32 0.03125, %v4590_v19 }
0x141f   : > { %v4593_v59 = vpop.xlane.xlu0 %4592 }
0x1420   : > { %10739 = vrsqrt.f32 %v4649_v9  ;;  %v4650_v0 = vadd.f32 1e-06, %v4634_v11  ;;  %v4635_v16 = vmul.f32 0.03125, %v4593_v59 }
0x1421   : > { %v4596_v54 = vpop.xlane.xlu1 %4595 }
0x1422   : > { %10741 = vrsqrt.f32 %v4650_v0  ;;  %v4651_v58 = vadd.f32 1e-06, %v4635_v16  ;;  %v4636_v48 = vmul.f32 0.03125, %v4596_v54 }
0x1424   : > { %10743 = vrsqrt.f32 %v4651_v58  ;;  %v4652_v33 = vadd.f32 1e-06, %v4636_v48  ;;  %v4599_v44 = vpop.xlane.xlu0 %4598 }
0x1425   : > { %v4637_v5 = vmul.f32 0.03125, %v4599_v44 }
0x1426   : > { %10745 = vrsqrt.f32 %v4652_v33  ;;  %v4602_v3 = vpop.xlane.xlu1 %4601 }
0x1427   : > { %v4653_v18 = vadd.f32 1e-06, %v4637_v5  ;;  %v4638_v24 = vmul.f32 0.03125, %v4602_v3 }
0x1428   : > { %v4605_v25 = vpop.xlane.xlu0 %4604 }
0x1429   : > { %10747 = vrsqrt.f32 %v4653_v18  ;;  %v4654_v43 = vadd.f32 1e-06, %v4638_v24  ;;  %v4639_v17 = vmul.f32 0.03125, %v4605_v25 }
0x142a   : > { %v10740_v56 = vpop.eup %10739  ;;  %v4608_v14 = vpop.xlane.xlu1 %4607 }
0x142b   : > { %10749 = vrsqrt.f32 %v4654_v43  ;;  %v4655_v63 = vadd.f32 1e-06, %v4639_v17  ;;  %v4640_v13 = vmul.f32 0.03125, %v4608_v14  ;;  %v4681_v21 = vmul.f32 %v10740_v56, %v13328_v34 }
0x142c   : > { %v10742_v8 = vpop.eup %10741 }
0x142d   : > { %10751 = vrsqrt.f32 %v4655_v63  ;;  %v4656_v41 = vadd.f32 1e-06, %v4640_v13  ;;  %v4682_v4 = vmul.f32 %v10742_v8, %v13331_v10  ;;  %v4707_v50 = vmul.f32 %v4702_v2, %v4681_v21 }
0x142e   : > { %v10744_v19 = vpop.eup %10743 }
0x142f   : > { %v4683_v9 = vmul.f32 %v10744_v19, %v13336_v31  ;;  %10753 = vrsqrt.f32 %v4656_v41  ;;  %v4708_v11 = vmul.f32 %v4702_v2, %v4682_v4  ;;  %v4731_v54 = vadd.f32 %v4726_v12, %v4707_v50 }
0x1430   : > { %v10746_v59 = vpop.eup %10745 }
0x1431   : > { %v4709_v0 = vmul.f32 %v4702_v2, %v4683_v9  ;;  %v4684_v16 = vmul.f32 %v10746_v59, %v13342_v37  ;;  %v4732_v58 = vadd.f32 %v4726_v12, %v4708_v11 }
0x1433   : > { %v10748_v34 = vpop.eup %10747  ;;  %v4710_v48 = vmul.f32 %v4702_v2, %v4684_v16  ;;  %v4752_v33 = vpack.c.bf16 %v4732_v58, %v4731_v54  ;;  %v4733_v5 = vadd.f32 %v4726_v12, %v4709_v0 }
0x1434   : > { %v4685_v40 = vmul.f32 %v10748_v34, %v13351_v23 }
0x1435   : > { %v10750_v44 = vpop.eup %10749  ;;  %v4734_v10 = vadd.f32 %v4726_v12, %v4710_v48  ;;  %9923 = vmatprep.mubr.msk.bf16.mxu1 %vm552_vm0, %v4752_v33 }
0x1436   : > { %v4686_v31 = vmul.f32 %v10750_v44, %v13355_v27  ;;  %v4711_v3 = vmul.f32 %v4702_v2, %v4685_v40 }
0x1437   : > { %v10752_v18 = vpop.eup %10751  ;;  %v4753_v24 = vpack.c.bf16 %v4734_v10, %v4733_v5 }
0x1438   : > { %v4712_v25 = vmul.f32 %v4702_v2, %v4686_v31  ;;  %v4687_v37 = vmul.f32 %v10752_v18, %v13360_v30  ;;  %v4735_v17 = vadd.f32 %v4726_v12, %v4711_v3 }
0x1439   : > { %v10754_v43 = vpop.eup %10753  ;;  %9924 = vmatmul.mubr.msk.bf16.vlgmr.msra.gmra.mrb[80].mxu1 %vm552_vm0, %v4753_v24 }
0x143a   : > { %v4736_v56 = vadd.f32 %v4726_v12, %v4712_v25  ;;  %v4688_v23 = vmul.f32 %v10754_v43, %v13366_v53  ;;  %v4713_v14 = vmul.f32 %v4702_v2, %v4687_v37 }
0x143c   : > { %v4754_v63 = vpack.c.bf16 %v4736_v56, %v4735_v17  ;;  %v4714_v13 = vmul.f32 %v4702_v2, %v4688_v23  ;;  %v4737_v21 = vadd.f32 %v4726_v12, %v4713_v14 }
0x143e   : > { %9927 = vmatprep.mubr.msk.bf16.mxu1 %vm552_vm0, %v4754_v63  ;;  %v4738_v27 = vadd.f32 %v4726_v12, %v4714_v13 }
0x1440   : > { %v4755_v8 = vpack.c.bf16 %v4738_v27, %v4737_v21 }
0x1442   : > { %9928 = vmatmul.mubr.msk.bf16.gmra.mrb[84].mxu1 %vm552_vm0, %v4755_v8 }
0x14b2   : > { %v9881_v41 = vpop.f32.mrb[72].mxu1 }
0x14b3   : > { %v4107_v30 = vadd.f32 %v9881_v41, %v13121_v38  ;;  %v4098_v4 = vpop.f32.mrb[73].mxu1 }
0x14b4   : > { %v4099_v50 = vadd.f32 %v13121_v38, %v4098_v4  ;;  %v9882_v19 = vpop.f32.mrb[74].mxu1 }
0x14b5   : > { %v4155_v9 = vmul.f32 0.044715, %v4107_v30  ;;  %v4110_v53 = vadd.f32 %v9882_v19, %v13121_v38  ;;  %v4101_v11 = vpop.f32.mrb[75].mxu1  ;;  %v4139_v21 = vmul.f32 0.5, %v4107_v30 }
0x14b6   : > { %v4153_v59 = vmul.f32 0.044715, %v4099_v50  ;;  %v4102_v2 = vadd.f32 %v13121_v38, %v4101_v11 }
0x14b7   : > { %v4171_v0 = vmul.f32 %v4155_v9, %v4107_v30  ;;  %v4156_v16 = vmul.f32 0.044715, %v4110_v53  ;;  %v4137_v9 = vmul.f32 0.5, %v4099_v50 }
0x14b8   : > { %v4169_v12 = vmul.f32 %v4153_v59, %v4099_v50  ;;  %v4154_v54 = vmul.f32 0.044715, %v4102_v2 }
0x14b9   : > { %v4187_v58 = vmul.f32 %v4171_v0, %v4107_v30  ;;  %v4172_v34 = vmul.f32 %v4156_v16, %v4110_v53 }
0x14ba   : > { %v4185_v48 = vmul.f32 %v4169_v12, %v4099_v50  ;;  %v4170_v33 = vmul.f32 %v4154_v54, %v4102_v2  ;;  %v4140_v12 = vmul.f32 0.5, %v4110_v53 }
0x14bb   : > { %v4188_v40 = vmul.f32 %v4172_v34, %v4110_v53  ;;  %v4203_v44 = vadd.f32 %v4187_v58, %v4107_v30 }
0x14bc   : > { %v4186_v5 = vmul.f32 %v4170_v33, %v4102_v2  ;;  %v4201_v10 = vadd.f32 %v4185_v48, %v4099_v50  ;;  %v4138_v48 = vmul.f32 0.5, %v4102_v2 }
0x14bd   : > { %v4204_v31 = vadd.f32 %v4188_v40, %v4110_v53  ;;  %v4219_v3 = vmul.f32 0.7978846, %v4203_v44 }
0x14be   : > { %v4202_v18 = vadd.f32 %v4186_v5, %v4102_v2  ;;  %v4217_v24 = vmul.f32 0.7978846, %v4201_v10 }
0x14bf   : > { %v4220_v25 = vmul.f32 0.7978846, %v4204_v31  ;;  %10755 = vtanh.f32 %v4219_v3 }
0x14c0   : > { %v4218_v37 = vmul.f32 0.7978846, %v4202_v18  ;;  %10757 = vtanh.f32 %v4217_v24 }
0x14c1   : > { %10759 = vtanh.f32 %v4220_v25 }
0x14c2   : > { %10761 = vtanh.f32 %v4218_v37 }
0x14c8   : > { %v9885_v43 = vpop.f32.mrb[76].mxu1 }
0x14c9   : > { %v10756_v17 = vpop.eup %10755  ;;  %v4123_v56 = vadd.f32 %v9885_v43, %v13121_v38  ;;  %v4114_v23 = vpop.f32.mrb[77].mxu1 }
0x14ca   : > { %v10758_v14 = vpop.eup %10757  ;;  %v4115_v63 = vadd.f32 %v13121_v38, %v4114_v23  ;;  %v9886_v13 = vpop.f32.mrb[78].mxu1  ;;  %v4251_v27 = vadd.f32 1.0, %v10756_v17 }
0x14cb   : > { %v10760_v8 = vpop.eup %10759  ;;  %v4159_v41 = vmul.f32 0.044715, %v4123_v56  ;;  %v4126_v4 = vadd.f32 %v9886_v13, %v13121_v38  ;;  %v4117_v19 = vpop.f32.mrb[79].mxu1  ;;  %v4249_v11 = vadd.f32 1.0, %v10758_v14 }
0x14cc   : > { %v10762_v59 = vpop.eup %10761  ;;  %v4157_v0 = vmul.f32 0.044715, %v4115_v63  ;;  %v4118_v16 = vadd.f32 %v13121_v38, %v4117_v19  ;;  %v4252_v54 = vadd.f32 1.0, %v10760_v8  ;;  %v4267_v44 = vmul.f32 %v4251_v27, %v4139_v21 }
0x14cd   : > { %v4175_v58 = vmul.f32 %v4159_v41, %v4123_v56  ;;  %v4160_v34 = vmul.f32 0.044715, %v4126_v4  ;;  %v4250_v33 = vadd.f32 1.0, %v10762_v59  ;;  %v4265_v3 = vmul.f32 %v4249_v11, %v4137_v9 }
0x14ce   : > { %v4173_v40 = vmul.f32 %v4157_v0, %v4115_v63  ;;  %v4158_v30 = vmul.f32 0.044715, %v4118_v16  ;;  %v4268_v5 = vmul.f32 %v4252_v54, %v4140_v12  ;;  %v4143_v0 = vmul.f32 0.5, %v4123_v56 }
0x14cf   : > { %v4191_v10 = vmul.f32 %v4175_v58, %v4123_v56  ;;  %v4176_v31 = vmul.f32 %v4160_v34, %v4126_v4  ;;  %v4266_v18 = vmul.f32 %v4250_v33, %v4138_v48  ;;  %v4144_v12 = vmul.f32 0.5, %v4126_v4 }
0x14d0   : > { %v4189_v50 = vmul.f32 %v4173_v40, %v4115_v63  ;;  %v4174_v24 = vmul.f32 %v4158_v30, %v4118_v16  ;;  %v4294_v25 = vpack.c.bf16 %v4268_v5, %v4267_v44  ;;  %v4141_v58 = vmul.f32 0.5, %v4115_v63 }
0x14d1   : > { %v4192_v37 = vmul.f32 %v4176_v31, %v4126_v4  ;;  %v4293_v43 = vpack.c.bf16 %v4266_v18, %v4265_v3  ;;  %v4207_v38 = vadd.f32 %v4191_v10, %v4123_v56  ;;  %v4142_v34 = vmul.f32 0.5, %v4118_v16  ;;  %v13426_v3 = vld [vmem:[%s15547_s5 + $0x1] ss:$0 sm:$0xff] }
0x14d2   : > { %v4190_v53 = vmul.f32 %v4174_v24, %v4118_v16  ;;  %v4205_v17 = vadd.f32 %v4189_v50, %v4115_v63 }
0x14d3   : > { %9911 = vmatprep.mubr.bf16.mxu0 %v4293_v43  ;;  %v4208_v23 = vadd.f32 %v4192_v37, %v4126_v4  ;;  %v4223_v2 = vmul.f32 0.7978846, %v4207_v38 }
0x14d4   : > { %9912 = vmatmul.mubr.bf16.gmra.mrb[104].mxu0 %v4294_v25  ;;  %v4206_v14 = vadd.f32 %v4190_v53, %v4118_v16  ;;  %v4221_v13 = vmul.f32 0.7978846, %v4205_v17 }
0x14d5   : > { %v4224_v21 = vmul.f32 0.7978846, %v4208_v23  ;;  %10763 = vtanh.f32 %v4223_v2 }
0x14d6   : > { %v4222_v27 = vmul.f32 0.7978846, %v4206_v14  ;;  %10765 = vtanh.f32 %v4221_v13 }
0x14d7   : > { %10767 = vtanh.f32 %v4224_v21 }
0x14d8   : > { %10769 = vtanh.f32 %v4222_v27 }
0x14df   : > { %v10764_v8 = vpop.eup %10763 }
0x14e0   : > { %v10766_v41 = vpop.eup %10765  ;;  %v4255_v19 = vadd.f32 1.0, %v10764_v8 }
0x14e1   : > { %v10768_v9 = vpop.eup %10767  ;;  %v4253_v11 = vadd.f32 1.0, %v10766_v41 }
0x14e2   : > { %v10770_v59 = vpop.eup %10769  ;;  %v4256_v54 = vadd.f32 1.0, %v10768_v9  ;;  %v4271_v33 = vmul.f32 %v4255_v19, %v4143_v0 }
0x14e3   : > { %v4254_v48 = vadd.f32 1.0, %v10770_v59  ;;  %v4269_v30 = vmul.f32 %v4253_v11, %v4141_v58 }
0x14e4   : > { %v4272_v40 = vmul.f32 %v4256_v54, %v4144_v12 }
0x14e5   : > { %v4270_v44 = vmul.f32 %v4254_v48, %v4142_v34  ;;  %v4456_v34 = vrot.slane %v13174_v6, %v13222_v1 }
0x14e6   : > { %v4296_v5 = vpack.c.bf16 %v4272_v40, %v4271_v33 }
0x14e7   : > { %v4295_v10 = vpack.c.bf16 %v4270_v44, %v4269_v30 }
0x14e9   : > { %9915 = vmatprep.mubr.bf16.mxu0 %v4295_v10 }
0x14ea   : > { %9916 = vmatmul.mubr.bf16.gmra.mrb[108].mxu0 %v4296_v5 }
0x150c   : > { %v9925_v31 = vpop.f32.mrb[80].mxu1 }
0x150d   : > { %v4838_v56 = vpop.f32.mrb[81].mxu1  ;;  %v4847_v63 = vadd.f32 %v9925_v31, %v13426_v3 }
0x150e   : > { %v9926_v4 = vpop.f32.mrb[82].mxu1  ;;  %v4839_v50 = vadd.f32 %v13426_v3, %v4838_v56 }
0x150f   : > { %v4850_v16 = vadd.f32 %v9926_v4, %v13426_v3  ;;  %v4841_v18 = vpop.f32.mrb[83].mxu1 }
0x1510   : > { %v4842_v24 = vadd.f32 %v13426_v3, %v4841_v18 }
0x1511   : > { %v13432_v25 = vpack.c.bf16 %v4850_v16, %v4847_v63 }
0x1512   : > { %v13434_v37 = vpack.c.bf16 %v4842_v24, %v4839_v50 }
0x1513   : > { %4911 = vrot.lane.b32.xlu1 %v13432_v25, %s15818_s28 }
0x1514   : > { %4909 = vrot.lane.b32.xlu0 %v13434_v37, %s15818_s28  ;;  %9947 = vmatprep.mubr.msk.bf16.mxu0 %vm980_vm1, %v13434_v37 }
0x1515   : > { %v9929_v43 = vpop.f32.mrb[84].mxu1 }
0x1516   : > { %v4854_v38 = vpop.f32.mrb[85].mxu1  ;;  %v4863_v17 = vadd.f32 %v9929_v43, %v13426_v3 }
0x1517   : > { %v9930_v53 = vpop.f32.mrb[86].mxu1  ;;  %v4855_v14 = vadd.f32 %v13426_v3, %v4854_v38 }
0x1518   : > { %v4866_v23 = vadd.f32 %v9930_v53, %v13426_v3  ;;  %v4857_v2 = vpop.f32.mrb[87].mxu1  ;;  %5203 = vrot.lane.b32.xlu0 %v13434_v37, %s15819_s30 }
0x1519   : > { %v4858_v13 = vadd.f32 %v13426_v3, %v4857_v2 }
0x151a   : > { %v13448_v21 = vpack.c.bf16 %v4866_v23, %v4863_v17 }
0x151b   : > { %v13450_v27 = vpack.c.bf16 %v4858_v13, %v4855_v14 }
0x151d   : > { %5207 = vrot.lane.b32.xlu0 %v13450_v27, %s15819_s30  ;;  %4913 = vrot.lane.b32.xlu1 %v13450_v27, %s15818_s28 }
0x1521   : > { %5195 = vrot.lane.b32.xlu0 %v13434_v37, %s15820_s23  ;;  %4915 = vrot.lane.b32.xlu1 %v13448_v21, %s15818_s28 }
0x1525   : > { %5199 = vrot.lane.b32.xlu0 %v13450_v27, %s15820_s23  ;;  %5205 = vrot.lane.b32.xlu1 %v13432_v25, %s15819_s30 }
0x1529   : > { %5209 = vrot.lane.b32.xlu1 %v13448_v21, %s15819_s30 }
0x152d   : > { %5197 = vrot.lane.b32.xlu1 %v13432_v25, %s15820_s23 }
0x1531   : > { %5201 = vrot.lane.b32.xlu1 %v13448_v21, %s15820_s23 }
0x1585   : > { %v4912_v19 = vpop.permute.xlu1 %4911 }
0x1586   : > { %v4910_v8 = vpop.permute.xlu0 %4909  ;;  %v4933_v9 = vsel %vm980_vm1, %v4912_v19, 0 }
0x1587   : > { %10319 = vmatprep.subr.msk.bf16.mxu0 %vm980_vm1, %v4910_v8  ;;  %v4930_v41 = vsel %vm980_vm1, %v4910_v8, 0 }
0x1588   : > { %9940 = vmatpush3.bf16.xpose.msra.mxu0 %v4930_v41 }
0x1589   : > { %10320 = vmatprep.subr.msk.bf16.mxu0 %vm980_vm1, %v4912_v19 }
0x158a   : > { %v5204_v54 = vpop.permute.xlu0 %5203 }
0x158b   : > { %v5224_v48 = vsel %vm980_vm1, %v5204_v54, 0 }
0x158f   : > { %v4914_v11 = vpop.permute.xlu1 %4913  ;;  %v5208_v10 = vpop.permute.xlu0 %5207 }
0x1590   : > { %9942 = vmatpush3.bf16.xpose.msra.mxu0 %v4933_v9  ;;  %v4936_v59 = vsel %vm980_vm1, %v4914_v11, 0  ;;  %v5230_v2 = vsel %vm980_vm1, %v5208_v10, 0 }
0x1591   : > { %10321 = vmatprep.subr.msk.bf16.mxu0 %vm980_vm1, %v4914_v11 }
0x1593   : > { %v4916_v0 = vpop.permute.xlu1 %4915  ;;  %v5196_v17 = vpop.permute.xlu0 %5195 }
0x1594   : > { %v4939_v12 = vsel %vm980_vm1, %v4916_v0, 0 }
0x1597   : > { %v5206_v33 = vpop.permute.xlu1 %5205 }
0x1598   : > { %9944 = vmatpush3.bf16.xpose.msra.mxu0 %v4936_v59  ;;  %v5227_v50 = vsel %vm980_vm1, %v5206_v33, 0 }
0x1599   : > { %10322 = vmatprep.subr.msk.bf16.mxu0 %vm980_vm1, %v4916_v0 }
0x159b   : > { %v5210_v14 = vpop.permute.xlu1 %5209 }
0x159c   : > { %v5233_v9 = vsel %vm980_vm1, %v5210_v14, 0 }
0x15a0   : > { %9946 = vmatpush3.bf16.xpose.msra.mxu0 %v4939_v12 }
0x15a1   : > { %10323 = vmatprep.subr.msk.bf16.mxu0 %vm980_vm1, %v5204_v54 }
0x15a7   : > { %v9913_v58 = vpop.f32.mrb[104].mxu0  ;;  %9948 = vmatmul.mubr.msk.bf16.vlgmr.msra.gmra.mrb[112].mxu0 %vm980_vm1, %v13432_v25 }
0x15a8   : > { %v4427_v40 = vadd.f32 %v9913_v58, %v13227_v26  ;;  %v4418_v30 = vpop.f32.mrb[105].mxu0  ;;  %9951 = vmatprep.mubr.msk.bf16.mxu0 %vm980_vm1, %v13450_v27  ;;  %9972 = vmatpush3.bf16.xpose.msra.mxu0 %v5224_v48 }
0x15a9   : > { %v4419_v44 = vadd.f32 %v13227_v26, %v4418_v30  ;;  %v9914_v5 = vpop.f32.mrb[106].mxu0  ;;  %10324 = vmatprep.subr.msk.bf16.mxu0 %vm980_vm1, %v5206_v33 }
0x15aa   : > { %v4421_v6 = vpop.f32.mrb[107].mxu0  ;;  %v4467_v31 = vmul.f32 %v4456_v34, %v4427_v40  ;;  %v4430_v4 = vadd.f32 %v9914_v5, %v13227_v26  ;;  %v5198_v5 = vpop.permute.xlu1 %5197 }
0x15ab   : > { %v4465_v56 = vmul.f32 %v4456_v34, %v4419_v44  ;;  %v4422_v63 = vadd.f32 %v13227_v26, %v4421_v6 }
0x15ac   : > { %v13496_v24 = vadd.f32 %v4467_v31, %v13185_v46  ;;  %v4468_v43 = vmul.f32 %v4456_v34, %v4430_v4 }
0x15ad   : > { %v13492_v16 = vadd.f32 %v4465_v56, %v13182_v39  ;;  %v4466_v18 = vmul.f32 %v4456_v34, %v4422_v63 }
0x15ae   : > { %15822 = vst [vmem:[#allocation16_spill] sm:$0xff] %v13496_v24  ;;  %v13510_v46 = vadd.f32 %v4468_v43, %v13195_v57 }
0x15af   : > { %15821 = vst [vmem:[#allocation19_spill] sm:$0xff] %v13492_v16  ;;  %v13499_v38 = vadd.f32 %v4466_v18, %v13188_v60  ;;  %v4513_v53 = vsel %vm552_vm0, %v13492_v16, 0.0  ;;  %9952 = vmatmul.mubr.msk.bf16.gmra.mrb[116].mxu0 %vm980_vm1, %v13448_v21  ;;  %v4519_v60 = vsel %vm552_vm0, %v13496_v24, 0.0 }
0x15b0   : > { %4514 = vadd.xlane.f32.xlu0 %v4513_v53  ;;  %9974 = vmatpush3.bf16.xpose.msra.mxu0 %v5227_v50  ;;  %15824 = vst [vmem:[#allocation18_spill] sm:$0xff] %v13510_v46  ;;  %v4522_v23 = vsel %vm552_vm0, %v13510_v46, 0.0 }
0x15b1   : > { %15823 = vst [vmem:[#allocation17_spill] sm:$0xff] %v13499_v38  ;;  %v4516_v39 = vsel %vm552_vm0, %v13499_v38, 0.0  ;;  %9979 = vmatprep.mubr.msk.bf16.mxu0 %vm980_vm1, %v5196_v17  ;;  %10325 = vmatprep.subr.msk.bf16.mxu0 %vm980_vm1, %v5208_v10  ;;  %v5200_v10 = vpop.permute.xlu0 %5199 }
0x15b2   : > { %4517 = vadd.xlane.f32.xlu1 %v4516_v39 }
0x15b4   : > { %4520 = vadd.xlane.f32.xlu0 %v4519_v60 }
0x15b8   : > { %4523 = vadd.xlane.f32.xlu0 %v4522_v23  ;;  %9976 = vmatpush3.bf16.xpose.msra.mxu0 %v5230_v2 }
0x15b9   : > { %10326 = vmatprep.subr.msk.bf16.mxu0 %vm980_vm1, %v5210_v14 }
0x15bd   : > { %v9917_v13 = vpop.f32.mrb[108].mxu0 }
0x15be   : > { %v4443_v8 = vadd.f32 %v9917_v13, %v13227_v26  ;;  %v4434_v41 = vpop.f32.mrb[109].mxu0 }
0x15bf   : > { %v4435_v57 = vadd.f32 %v13227_v26, %v4434_v41  ;;  %v9918_v19 = vpop.f32.mrb[110].mxu0 }
0x15c0   : > { %v4446_v11 = vadd.f32 %v9918_v19, %v13227_v26  ;;  %v4437_v59 = vpop.f32.mrb[111].mxu0  ;;  %9978 = vmatpush3.bf16.xpose.msra.mxu0 %v5233_v9  ;;  %v4471_v0 = vmul.f32 %v4456_v34, %v4443_v8 }
0x15c1   : > { %v4469_v12 = vmul.f32 %v4456_v34, %v4435_v57  ;;  %v4438_v54 = vadd.f32 %v13227_v26, %v4437_v59  ;;  %v5202_v26 = vpop.permute.xlu1 %5201 }
0x15c2   : > { %v4472_v48 = vmul.f32 %v4456_v34, %v4446_v11  ;;  %v13527_v40 = vadd.f32 %v4471_v0, %v13205_v32 }
0x15c3   : > { %v13524_v58 = vadd.f32 %v4469_v12, %v13202_v15  ;;  %v4470_v33 = vmul.f32 %v4456_v34, %v4438_v54 }
0x15c4   : > { %15826 = vst [vmem:[#allocation24_spill] sm:$0xff] %v13527_v40  ;;  %v13535_v6 = vadd.f32 %v4472_v48, %v13213_v52  ;;  %v4531_v32 = vsel %vm552_vm0, %v13527_v40, 0.0 }
0x15c5   : > { %15825 = vst [vmem:[#allocation26_spill] sm:$0xff] %v13524_v58  ;;  %v13530_v30 = vadd.f32 %v4470_v33, %v13208_v36  ;;  %v4525_v44 = vsel %vm552_vm0, %v13524_v58, 0.0 }
0x15c6   : > { %4526 = vadd.xlane.f32.xlu0 %v4525_v44  ;;  %15828 = vst [vmem:[#allocation32_spill] sm:$0xff] %v13535_v6  ;;  %v4534_v36 = vsel %vm552_vm0, %v13535_v6, 0.0 }
0x15c7   : > { %15827 = vst [vmem:[#allocation33_spill] sm:$0xff] %v13530_v30  ;;  %v4528_v15 = vsel %vm552_vm0, %v13530_v30, 0.0  ;;  %9980 = vmatmul.mubr.msk.bf16.vlgmr.msra.gmra.mrb[120].mxu0 %vm980_vm1, %v5198_v5 }
0x15c8   : > { %4529 = vadd.xlane.f32.xlu1 %v4528_v15  ;;  %9983 = vmatprep.mubr.msk.bf16.mxu0 %vm980_vm1, %v5200_v10 }
0x15ca   : > { %4532 = vadd.xlane.f32.xlu0 %v4531_v32 }
0x15cc   : > { %4535 = vadd.xlane.f32.xlu1 %v4534_v36 }
0x15cf   : > { %9984 = vmatmul.mubr.msk.bf16.gmra.mrb[124].mxu0 %vm980_vm1, %v5202_v26 }
0x163d   : > { %v4515_v52 = vpop.xlane.xlu0 %4514 }
0x163e   : > { %v4545_v34 = vmul.f32 0.03125, %v4515_v52 }
0x163f   : > { %v4518_v31 = vpop.xlane.xlu1 %4517 }
0x1640   : > { %v13547_v56 = vsub.f32 %v13492_v16, %v4545_v34  ;;  %v4546_v4 = vmul.f32 0.03125, %v4518_v31 }
0x1641   : > { %v4521_v63 = vpop.xlane.xlu0 %4520 }
0x1642   : > { %v13550_v18 = vsub.f32 %v13499_v38, %v4546_v4  ;;  %v4547_v50 = vmul.f32 0.03125, %v4521_v63  ;;  %v4577_v43 = vmul.f32 %v13547_v56, %v13547_v56 }
0x1644   : > { %v13555_v53 = vsub.f32 %v13496_v24, %v4547_v50  ;;  %v4609_v17 = vsel %vm552_vm0, %v4577_v43, 0.0  ;;  %v4578_v39 = vmul.f32 %v13550_v18, %v13550_v18 }
0x1645   : > { %4610 = vadd.xlane.f32.xlu0 %v4609_v17  ;;  %v4524_v60 = vpop.xlane.xlu0 %4523 }
0x1646   : > { %v4548_v23 = vmul.f32 0.03125, %v4524_v60  ;;  %v4612_v2 = vsel %vm552_vm0, %v4578_v39, 0.0  ;;  %v4579_v14 = vmul.f32 %v13555_v53, %v13555_v53 }
0x1647   : > { %4613 = vadd.xlane.f32.xlu1 %v4612_v2 }
0x1648   : > { %v13564_v13 = vsub.f32 %v13510_v46, %v4548_v23  ;;  %v4615_v8 = vsel %vm552_vm0, %v4579_v14, 0.0  ;;  %v13613_v14 = vld [vmem:[%s15543_s1 + $0x10] sm:$0xff] }
0x1649   : > { %4616 = vadd.xlane.f32.xlu0 %v4615_v8 }
0x164a   : > { %v4580_v41 = vmul.f32 %v13564_v13, %v13564_v13 }
0x164c   : > { %v4618_v57 = vsel %vm552_vm0, %v4580_v41, 0.0 }
0x164d   : > { %4619 = vadd.xlane.f32.xlu1 %v4618_v57  ;;  %v13621_v57 = vld [vmem:[%s15543_s1] sm:$0xff] }
0x1653   : > { %v4527_v19 = vpop.xlane.xlu0 %4526 }
0x1654   : > { %v4549_v9 = vmul.f32 0.03125, %v4527_v19 }
0x1655   : > { %v4530_v11 = vpop.xlane.xlu1 %4529 }
0x1656   : > { %v13571_v59 = vsub.f32 %v13524_v58, %v4549_v9  ;;  %v4550_v0 = vmul.f32 0.03125, %v4530_v11 }
0x1657   : > { %v4533_v12 = vpop.xlane.xlu0 %4532 }
0x1658   : > { %v13574_v54 = vsub.f32 %v13530_v30, %v4550_v0  ;;  %v4551_v48 = vmul.f32 0.03125, %v4533_v12  ;;  %v4581_v33 = vmul.f32 %v13571_v59, %v13571_v59  ;;  %v551_v30 = vld [vmem:[%s11376_s27 + $0x18] sm:$0x3f] }
0x1659   : > { %v4536_v44 = vpop.xlane.xlu1 %4535 }
0x165a   : > { %v13579_v5 = vsub.f32 %v13527_v40, %v4551_v48  ;;  %v4552_v10 = vmul.f32 0.03125, %v4536_v44  ;;  %v4621_v15 = vsel %vm552_vm0, %v4581_v33, 0.0  ;;  %v4582_v32 = vmul.f32 %v13574_v54, %v13574_v54  ;;  %v13631_v48 = vld [vmem:[%s15543_s1 + $0x30] sm:$0xff] }
0x165b   : > { %4622 = vadd.xlane.f32.xlu0 %v4621_v15 }
0x165c   : > { %v13585_v36 = vsub.f32 %v13535_v6, %v4552_v10  ;;  %v4624_v26 = vsel %vm552_vm0, %v4582_v32, 0.0  ;;  %v4583_v52 = vmul.f32 %v13579_v5, %v13579_v5  ;;  %v13641_v10 = vld [vmem:[%s15543_s1 + $0x18] sm:$0xff] }
0x165d   : > { %4625 = vadd.xlane.f32.xlu1 %v4624_v26  ;;  %v13649_v26 = vld [vmem:[%s15543_s1 + $0x20] sm:$0xff] }
0x165e   : > { %v4627_v34 = vsel %vm552_vm0, %v4583_v52, 0.0  ;;  %v4584_v31 = vmul.f32 %v13585_v36, %v13585_v36 }
0x165f   : > { %4628 = vadd.xlane.f32.xlu0 %v4627_v34 }
0x1660   : > { %v4630_v4 = vsel %vm552_vm0, %v4584_v31, 0.0 }
0x1661   : > { %4631 = vadd.xlane.f32.xlu1 %v4630_v4 }
0x1672   : > { %5084 = vrot.lane.b32.xlu1 %v13432_v25, %s15829_s19 }
0x1675   : > { %5082 = vrot.lane.b32.xlu0 %v13434_v37, %s15829_s19 }
0x1676   : > { %5088 = vrot.lane.b32.xlu1 %v13448_v21, %s15829_s19 }
0x1679   : > { %5086 = vrot.lane.b32.xlu0 %v13450_v27, %s15829_s19 }
0x167a   : > { %5376 = vrot.lane.b32.xlu1 %v13434_v37, %s15830_s17  ;;  %v9949_v63 = vpop.f32.mrb[112].mxu0 }
0x167b   : > { %v4975_v50 = vpop.f32.mrb[113].mxu0  ;;  %v13616_v8 = vadd.f32 %v13613_v14, %v9949_v63  ;;  %v13659_v63 = vld [vmem:[%s15543_s1 + $0x8] sm:$0xff] }
0x167c   : > { %v9950_v43 = vpop.f32.mrb[114].mxu0  ;;  %v13624_v19 = vadd.f32 %v13621_v57, %v4975_v50 }
0x167d   : > { %5380 = vrot.lane.b32.xlu0 %v13450_v27, %s15830_s17  ;;  %v4978_v17 = vpop.f32.mrb[115].mxu0  ;;  %v5012_v9 = vsel %vm1070_vm2, %v13616_v8, -inf  ;;  %v13644_v15 = vadd.f32 %v13641_v10, %v9950_v43 }
0x167e   : > { %5378 = vrot.lane.b32.xlu1 %v13432_v25, %s15830_s17  ;;  %v5006_v44 = vsel %vm1070_vm2, %v13624_v19, -inf  ;;  %v13662_v50 = vadd.f32 %v13659_v63, %v4978_v17 }
0x167f   : > { %v5015_v43 = vsel %vm1070_vm2, %v13644_v15, -inf }
0x1682   : > { %5382 = vrot.lane.b32.xlu1 %v13448_v21, %s15830_s17  ;;  %v9953_v39 = vpop.f32.mrb[116].mxu0 }
0x1683   : > { %v4991_v60 = vpop.f32.mrb[117].mxu0  ;;  %v13634_v33 = vadd.f32 %v13631_v48, %v9953_v39 }
0x1684   : > { %v9954_v23 = vpop.f32.mrb[118].mxu0  ;;  %v13652_v52 = vadd.f32 %v13649_v26, %v4991_v60 }
0x1685   : > { %v4994_v2 = vpop.f32.mrb[119].mxu0  ;;  %v5024_v34 = vsel %vm1070_vm2, %v13634_v33, -inf }
0x169a   : > { %v9981_v41 = vpop.f32.mrb[120].mxu0 }
0x169b   : > { %v5269_v11 = vpop.f32.mrb[121].mxu0  ;;  %v13669_v60 = vadd.f32 %v13613_v14, %v9981_v41 }
0x169c   : > { %5013 = vmax.xlane.f32.xlu0 %v5012_v9  ;;  %v9982_v0 = vpop.f32.mrb[122].mxu0  ;;  %v5018_v9 = vsel %vm1070_vm2, %v13652_v52, -inf }
0x169d   : > { %v5272_v12 = vpop.f32.mrb[123].mxu0  ;;  %v5306_v41 = vsel %vm1070_vm2, %v13669_v60, -inf }
0x16a0   : > { %5007 = vmax.xlane.f32.xlu0 %v5006_v44  ;;  %v13676_v44 = vld [vmem:[%s15543_s1 + $0x38] sm:$0xff] }
0x16a1   : > { %v13679_v17 = vadd.f32 %v13676_v44, %v9954_v23 }
0x16a2   : > { %v9985_v32 = vpop.f32.mrb[124].mxu0 }
0x16a3   : > { %v5285_v31 = vpop.f32.mrb[125].mxu0  ;;  %v5027_v23 = vsel %vm1070_vm2, %v13679_v17, -inf }
0x16a4   : > { %5025 = vmax.xlane.f32.xlu0 %v5024_v34  ;;  %v9986_v4 = vpop.f32.mrb[126].mxu0  ;;  %v5009_v34 = vsel %vm1070_vm2, %v13662_v50, -inf }
0x16a5   : > { %v13666_v39 = vpop.f32.mrb[127].mxu0 }
0x16a6   : > { %5016 = vmax.xlane.f32.xlu1 %v5015_v43  ;;  %v13684_v43 = vadd.f32 %v13659_v63, %v5272_v12 }
0x16a8   : > { %5019 = vmax.xlane.f32.xlu0 %v5018_v9  ;;  %v13691_v9 = vld [vmem:[%s15543_s1 + $0x28] sm:$0xff]  ;;  %v5303_v12 = vsel %vm1070_vm2, %v13684_v43, -inf }
0x16a9   : > { %v13694_v1 = vadd.f32 %v13691_v9, %v4994_v2  ;;  %v13709_v2 = vadd.f32 %v13649_v26, %v5285_v31 }
0x16aa   : > { %5010 = vmax.xlane.f32.xlu1 %v5009_v34  ;;  %v13699_v34 = vadd.f32 %v13631_v48, %v9985_v32  ;;  %v13714_v32 = vadd.f32 %v13641_v10, %v9982_v0 }
0x16ab   : > { %v5021_v61 = vsel %vm1070_vm2, %v13694_v1, -inf }
0x16ac   : > { %5307 = vmax.xlane.f32.xlu0 %v5306_v41  ;;  %v13704_v41 = vadd.f32 %v13621_v57, %v5269_v11  ;;  %v13719_v11 = vadd.f32 %v13676_v44, %v9986_v4  ;;  %v5309_v31 = vsel %vm1070_vm2, %v13714_v32, -inf }
0x16ae   : > { %5028 = vmax.xlane.f32.xlu1 %v5027_v23  ;;  %v5318_v23 = vsel %vm1070_vm2, %v13699_v34, -inf }
0x16b0   : > { %5304 = vmax.xlane.f32.xlu0 %v5303_v12  ;;  %v5300_v12 = vsel %vm1070_vm2, %v13704_v41, -inf }
0x16b2   : > { %5022 = vmax.xlane.f32.xlu1 %v5021_v61  ;;  %v5312_v61 = vsel %vm1070_vm2, %v13709_v2, -inf }
0x16b4   : > { %5319 = vmax.xlane.f32.xlu0 %v5318_v23  ;;  %v5321_v23 = vsel %vm1070_vm2, %v13719_v11, -inf }
0x16b6   : > { %5301 = vmax.xlane.f32.xlu1 %v5300_v12 }
0x16b8   : > { %5313 = vmax.xlane.f32.xlu0 %v5312_v61 }
0x16ba   : > { %5310 = vmax.xlane.f32.xlu1 %v5309_v31 }
0x16bc   : > { %5322 = vmax.xlane.f32.xlu0 %v5321_v23 }
0x16cb   : > { %5531 = vrot.lane.b32.xlu1 %v13432_v25, %s15831_s20 }
0x16cf   : > { %5533 = vrot.lane.b32.xlu1 %v13450_v27, %s15831_s20 }
0x16d2   : > { %5529 = vrot.lane.b32.xlu0 %v13434_v37, %s15831_s20  ;;  %v4611_v0 = vpop.xlane.xlu0 %4610 }
0x16d3   : > { %v4641_v4 = vmul.f32 0.03125, %v4611_v0  ;;  %v13738_v0 = vadd.f32 1.0, %v551_v30 }
0x16d4   : > { %v4614_v12 = vpop.xlane.xlu1 %4613 }
0x16d5   : > { %v4657_v61 = vadd.f32 1e-06, %v4641_v4  ;;  %v4642_v28 = vmul.f32 0.03125, %v4614_v12  ;;  %15833 = vst [vmem:[#allocation41_spill] sm:$0xff] %v13738_v0 }
0x16d6   : > { %5521 = vrot.lane.b32.xlu0 %v13434_v37, %s15832_s21  ;;  %v4617_v31 = vpop.xlane.xlu0 %4616 }
0x16d7   : > { %10771 = vrsqrt.f32 %v4657_v61  ;;  %v4658_v23 = vadd.f32 1e-06, %v4642_v28  ;;  %v4643_v47 = vmul.f32 0.03125, %v4617_v31  ;;  %v13744_v28 = vrot.slane %v13738_v0, %v15816_v20 }
0x16d9   : > { %10773 = vrsqrt.f32 %v4658_v23  ;;  %v4659_v6 = vadd.f32 1e-06, %v4643_v47 }
0x16da   : > { %v4620_v40 = vpop.xlane.xlu1 %4619  ;;  %5525 = vrot.lane.b32.xlu0 %v13450_v27, %s15832_s21 }
0x16db   : > { %10775 = vrsqrt.f32 %v4659_v6  ;;  %v4644_v58 = vmul.f32 0.03125, %v4620_v40  ;;  %v13750_v40 = vrot.slane %v551_v30, %v15817_v7 }
0x16dd   : > { %v4660_v4 = vadd.f32 1e-06, %v4644_v58 }
0x16de   : > { %5702 = vrot.lane.b32.xlu0 %v13434_v37, %s15834_s22 }
0x16df   : > { %10777 = vrsqrt.f32 %v4660_v4 }
0x16e1   : > { %v10772_v12 = vpop.eup %10771 }
0x16e2   : > { %v4689_v47 = vmul.f32 %v10772_v12, %v13547_v56 }
0x16e3   : > { %v10774_v61 = vpop.eup %10773 }
0x16e4   : > { %v4690_v31 = vmul.f32 %v10774_v61, %v13550_v18  ;;  %v4715_v6 = vmul.f32 %v13744_v28, %v4689_v47 }
0x16e5   : > { %v10776_v58 = vpop.eup %10775 }
0x16e6   : > { %v4716_v23 = vmul.f32 %v13744_v28, %v4690_v31  ;;  %v4691_v4 = vmul.f32 %v10776_v58, %v13555_v53  ;;  %v4739_v20 = vadd.f32 %v13750_v40, %v4715_v6 }
0x16e8   : > { %v4623_v46 = vpop.xlane.xlu0 %4622  ;;  %v4740_v0 = vadd.f32 %v13750_v40, %v4716_v23  ;;  %v4717_v47 = vmul.f32 %v13744_v28, %v4691_v4  ;;  %v13762_v23 = vadd.f32 %v13691_v9, %v13666_v39 }
0x16e9   : > { %v10778_v38 = vpop.eup %10777  ;;  %v4645_v56 = vmul.f32 0.03125, %v4623_v46 }
0x16ea   : > { %v4626_v12 = vpop.xlane.xlu1 %4625  ;;  %v4756_v24 = vpack.c.bf16 %v4740_v0, %v4739_v20  ;;  %v4692_v18 = vmul.f32 %v10778_v38, %v13564_v13  ;;  %v4741_v20 = vadd.f32 %v13750_v40, %v4717_v47  ;;  %v5315_v39 = vsel %vm1070_vm2, %v13762_v23, -inf }
0x16eb   : > { %v4661_v30 = vadd.f32 1e-06, %v4645_v56  ;;  %v4646_v61 = vmul.f32 0.03125, %v4626_v12 }
0x16ec   : > { %9931 = vmatprep.mubr.msk.bf16.mxu1 %vm552_vm0, %v4756_v24  ;;  %v4629_v31 = vpop.xlane.xlu0 %4628  ;;  %v4718_v53 = vmul.f32 %v13744_v28, %v4692_v18 }
0x16ed   : > { %10779 = vrsqrt.f32 %v4661_v30  ;;  %v4662_v58 = vadd.f32 1e-06, %v4646_v61  ;;  %v4647_v6 = vmul.f32 0.03125, %v4629_v31 }
0x16ee   : > { %v4632_v46 = vpop.xlane.xlu1 %4631  ;;  %v4742_v38 = vadd.f32 %v13750_v40, %v4718_v53 }
0x16ef   : > { %10781 = vrsqrt.f32 %v4662_v58  ;;  %v4663_v13 = vadd.f32 1e-06, %v4647_v6  ;;  %v4648_v0 = vmul.f32 0.03125, %v4632_v46 }
0x16f0   : > { %v5083_v4 = vpop.permute.xlu0 %5082  ;;  %v4757_v24 = vpack.c.bf16 %v4742_v38, %v4741_v20 }
0x16f1   : > { %10783 = vrsqrt.f32 %v4663_v13  ;;  %v4664_v56 = vadd.f32 1e-06, %v4648_v0  ;;  %9955 = vmatprep.subr.bf16.mxu1 %v5083_v4 }
0x16f2   : > { %v5085_v12 = vpop.permute.xlu1 %5084  ;;  %9932 = vmatmul.mubr.msk.bf16.gmra.mrb[88].mxu1 %vm552_vm0, %v4757_v24 }
0x16f3   : > { %10785 = vrsqrt.f32 %v4664_v56  ;;  %9956 = vmatpush3.bf16.msra.mxu1 %v5083_v4  ;;  %5316 = vmax.xlane.f32.xlu1 %v5315_v39 }
0x16f4   : > { %9957 = vmatprep.subr.bf16.mxu1 %v5085_v12  ;;  %v5087_v47 = vpop.permute.xlu0 %5086 }
0x16f6   : > { %v5089_v31 = vpop.permute.xlu1 %5088 }
0x16f7   : > { %v10780_v18 = vpop.eup %10779  ;;  %9958 = vmatpush3.bf16.msra.mxu1 %v5085_v12 }
0x16f8   : > { %9959 = vmatprep.subr.bf16.mxu1 %v5087_v47  ;;  %v4693_v30 = vmul.f32 %v10780_v18, %v13571_v59 }
0x16f9   : > { %v10782_v61 = vpop.eup %10781 }
0x16fa   : > { %v4694_v53 = vmul.f32 %v10782_v61, %v13574_v54  ;;  %v4719_v58 = vmul.f32 %v13744_v28, %v4693_v30  ;;  %v13778_v24 = vpop.permute.xlu1 %5376 }
0x16fb   : > { %v10784_v6 = vpop.eup %10783  ;;  %9960 = vmatpush3.bf16.msra.mxu1 %v5087_v47 }
0x16fc   : > { %9961 = vmatprep.subr.bf16.mxu1 %v5089_v31  ;;  %v4720_v46 = vmul.f32 %v13744_v28, %v4694_v53  ;;  %v4695_v20 = vmul.f32 %v10784_v6, %v13579_v5  ;;  %v4743_v13 = vadd.f32 %v13750_v40, %v4719_v58 }
0x16fd   : > { %v10786_v38 = vpop.eup %10785 }
0x16fe   : > { %v4744_v0 = vadd.f32 %v13750_v40, %v4720_v46  ;;  %v4696_v59 = vmul.f32 %v10786_v38, %v13585_v36  ;;  %v4721_v4 = vmul.f32 %v13744_v28, %v4695_v20 }
0x16ff   : > { %9962 = vmatpush3.bf16.msra.mxu1 %v5089_v31 }
0x1700   : > { %9987 = vmatprep.subr.bf16.mxu1 %v13778_v24  ;;  %v4758_v54 = vpack.c.bf16 %v4744_v0, %v4743_v13  ;;  %v4722_v56 = vmul.f32 %v13744_v28, %v4696_v59  ;;  %v4745_v5 = vadd.f32 %v13750_v40, %v4721_v4  ;;  %v13798_v28 = vpop.permute.xlu0 %5380 }
0x1702   : > { %9935 = vmatprep.mubr.msk.bf16.mxu1 %vm552_vm0, %v4758_v54  ;;  %v4746_v12 = vadd.f32 %v13750_v40, %v4722_v56  ;;  %v13800_v40 = vpop.permute.xlu1 %5378 }
0x1704   : > { %5535 = vrot.lane.b32.xlu1 %v13448_v21, %s15831_s20  ;;  %v4759_v36 = vpack.c.bf16 %v4746_v12, %v4745_v5 }
0x1706   : > { %9936 = vmatmul.mubr.msk.bf16.gmra.mrb[92].mxu1 %vm552_vm0, %v4759_v36  ;;  %v13802_v47 = vpop.permute.xlu1 %5382 }
0x1708   : > { %5523 = vrot.lane.b32.xlu1 %v13432_v25, %s15832_s21 }
0x170c   : > { %5527 = vrot.lane.b32.xlu1 %v13448_v21, %s15832_s21 }
0x1710   : > { %5704 = vrot.lane.b32.xlu1 %v13432_v25, %s15834_s22 }
0x1714   : > { %5706 = vrot.lane.b32.xlu1 %v13450_v27, %s15834_s22 }
0x1718   : > { %5708 = vrot.lane.b32.xlu1 %v13448_v21, %s15834_s22 }
0x1729   : > { %v5014_v39 = vpop.xlane.xlu0 %5013 }
0x172a   : > { %v5032_v58 = vsub.f32 %v13616_v8, %v5014_v39 }
0x172c   : > { %v5042_v0 = vmul.f32 1.442695, %v5032_v58 }
0x172d   : > { %v5008_v18 = vpop.xlane.xlu0 %5007 }
0x172e   : > { %v5030_v61 = vsub.f32 %v13624_v19, %v5008_v18 }
0x1730   : > { %v5038_v46 = vmul.f32 1.442695, %v5030_v61 }
0x1731   : > { %v5026_v30 = vpop.xlane.xlu0 %5025 }
0x1732   : > { %10787 = vpow2.f32 %v5038_v46  ;;  %v5036_v8 = vsub.f32 %v13634_v33, %v5026_v30 }
0x1733   : > { %v5017_v31 = vpop.xlane.xlu1 %5016 }
0x1734   : > { %v5033_v53 = vsub.f32 %v13644_v15, %v5017_v31  ;;  %v5050_v18 = vmul.f32 1.442695, %v5036_v8 }
0x1735   : > { %v5020_v6 = vpop.xlane.xlu0 %5019 }
0x1736   : > { %v5044_v20 = vmul.f32 1.442695, %v5033_v53  ;;  %v5034_v4 = vsub.f32 %v13652_v52, %v5020_v6 }
0x1737   : > { %v5011_v38 = vpop.xlane.xlu1 %5010 }
0x1738   : > { %v5031_v13 = vsub.f32 %v13662_v50, %v5011_v38  ;;  %10789 = vpow2.f32 %v5044_v20  ;;  %v5046_v5 = vmul.f32 1.442695, %v5034_v4 }
0x1739   : > { %v5308_v59 = vpop.xlane.xlu0 %5307 }
0x173a   : > { %v5040_v54 = vmul.f32 1.442695, %v5031_v13  ;;  %v5326_v31 = vsub.f32 %v13669_v60, %v5308_v59 }
0x173b   : > { %v5029_v56 = vpop.xlane.xlu1 %5028 }
0x173c   : > { %10791 = vpow2.f32 %v5040_v54  ;;  %v5037_v19 = vsub.f32 %v13679_v17, %v5029_v56  ;;  %v13816_v58 = vpop.eup %10787  ;;  %v5336_v20 = vmul.f32 1.442695, %v5326_v31 }
0x173d   : > { %10793 = vpow2.f32 %v5042_v0  ;;  %v5305_v15 = vpop.xlane.xlu0 %5304  ;;  %15835 = vst [vmem:[#allocation40_spill] sm:$0xff] %v13816_v58 }
0x173e   : > { %v5052_v12 = vmul.f32 1.442695, %v5037_v19  ;;  %v5325_v36 = vsub.f32 %v13684_v43, %v5305_v15  ;;  %10795 = vpow2.f32 %v5046_v5 }
0x173f   : > { %v5023_v50 = vpop.xlane.xlu1 %5022 }
0x1740   : > { %v5035_v39 = vsub.f32 %v13694_v1, %v5023_v50  ;;  %10797 = vpow2.f32 %v5052_v12  ;;  %v5334_v17 = vmul.f32 1.442695, %v5325_v36 }
0x1741   : > { %v13813_v61 = vpop.xlane.xlu0 %5319 }
0x1742   : > { %v5048_v52 = vmul.f32 1.442695, %v5035_v39  ;;  %v13819_v30 = vpop.eup %10789 }
0x1743   : > { %v5302_v53 = vpop.xlane.xlu1 %5301  ;;  %15836 = vst [vmem:[#allocation35_spill] sm:$0xff] %v13819_v30 }
0x1744   : > { %10799 = vpow2.f32 %v5048_v52  ;;  %v5324_v33 = vsub.f32 %v13704_v41, %v5302_v53 }
0x1745   : > { %10801 = vpow2.f32 %v5050_v18  ;;  %v5314_v43 = vpop.xlane.xlu0 %5313 }
0x1746   : > { %v13821_v1 = vpop.eup %10791  ;;  %v5332_v6 = vmul.f32 1.442695, %v5324_v33  ;;  %10803 = vpow2.f32 %v5334_v17  ;;  %v5328_v33 = vsub.f32 %v13709_v2, %v5314_v43 }
0x1747   : > { %15837 = vst [vmem:[#allocation34_spill] sm:$0xff] %v13821_v1  ;;  %v13823_v46 = vpop.eup %10793  ;;  %v5311_v60 = vpop.xlane.xlu1 %5310  ;;  %v5078_v38 = vpack.c.bf16 %v13821_v1, %v13816_v58 }
0x1748   : > { %15838 = vst [vmem:[#allocation43_spill] sm:$0xff] %v13823_v46  ;;  %v5079_v13 = vpack.c.bf16 %v13819_v30, %v13823_v46  ;;  %10805 = vpow2.f32 %v5332_v6  ;;  %v5327_v41 = vsub.f32 %v13714_v32, %v5311_v60  ;;  %v13833_v4 = vpop.eup %10795  ;;  %v5340_v60 = vmul.f32 1.442695, %v5328_v33 }
0x1749   : > { %9963 = vmatprep.mubr.msk.bf16.mxu1 %vm1070_vm2, %v5078_v38  ;;  %v5323_v0 = vpop.xlane.xlu0 %5322  ;;  %10807 = vpow2.f32 %v5336_v20  ;;  %15839 = vst [vmem:[#allocation42_spill] sm:$0xff] %v13833_v4  ;;  %v5330_v20 = vsub.f32 %v13699_v34, %v13813_v61 }
0x174a   : > { %v5338_v59 = vmul.f32 1.442695, %v5327_v41  ;;  %9964 = vmatmul.mubr.msk.bf16.vlgmr.msra.gmra.mrb[96].mxu1 %vm1070_vm2, %v5079_v13  ;;  %v13836_v54 = vpop.eup %10797  ;;  %v5331_v6 = vsub.f32 %v13719_v11, %v5323_v0 }
0x174b   : > { %9988 = vmatpush3.bf16.msra.mxu1 %v13778_v24  ;;  %15840 = vst [vmem:[#allocation3_spill] sm:$0xff] %v13836_v54  ;;  %v5532_v31 = vpop.permute.xlu1 %5531 }
0x174c   : > { %10809 = vpow2.f32 %v5338_v59  ;;  %9989 = vmatprep.subr.bf16.mxu1 %v13800_v40  ;;  %v5553_v17 = vsel %vm980_vm1, %v5532_v31, 0  ;;  %v5346_v38 = vmul.f32 1.442695, %v5331_v6  ;;  %v5344_v59 = vmul.f32 1.442695, %v5330_v20 }
0x174d   : > { %v5530_v56 = vpop.permute.xlu0 %5529  ;;  %10811 = vpow2.f32 %v5340_v60 }
0x174e   : > { %v13838_v19 = vpop.eup %10799  ;;  %v5550_v52 = vsel %vm980_vm1, %v5530_v56, 0  ;;  %10813 = vpow2.f32 %v5346_v38 }
0x174f   : > { %15841 = vst [vmem:[#allocation61_spill] sm:$0xff] %v13838_v19  ;;  %v13840_v32 = vpop.eup %10801  ;;  %9990 = vmatpush3.bf16.msra.mxu1 %v13800_v40  ;;  %v5080_v8 = vpack.c.bf16 %v13838_v19, %v13833_v4  ;;  %v5534_v53 = vpop.permute.xlu1 %5533 }
0x1750   : > { %15842 = vst [vmem:[#allocation60_spill] sm:$0xff] %v13840_v32  ;;  %9991 = vmatprep.subr.bf16.mxu1 %v13798_v28  ;;  %v5081_v24 = vpack.c.bf16 %v13836_v54, %v13840_v32  ;;  %v13848_v15 = vpop.eup %10803 }
0x1751   : > { %9967 = vmatprep.mubr.msk.bf16.mxu1 %vm1070_vm2, %v5080_v8  ;;  %v5522_v5 = vpop.permute.xlu0 %5521 }
0x1752   : > { %v13851_v12 = vpop.eup %10805  ;;  %9968 = vmatmul.mubr.msk.bf16.gmra.mrb[100].mxu1 %vm1070_vm2, %v5081_v24 }
0x1753   : > { %9992 = vmatpush3.bf16.msra.mxu1 %v13798_v28  ;;  %v5372_v40 = vpack.c.bf16 %v13848_v15, %v13851_v12  ;;  %v13858_v36 = vpop.eup %10807 }
0x1754   : > { %9993 = vmatprep.subr.bf16.mxu1 %v13802_v47 }
0x1755   : > { %9995 = vmatprep.mubr.msk.bf16.mxu1 %vm1070_vm2, %v5372_v40  ;;  %v5526_v50 = vpop.permute.xlu0 %5525 }
0x1756   : > { %v13861_v39 = vpop.eup %10809 }
0x1757   : > { %v5373_v18 = vpack.c.bf16 %v13861_v39, %v13858_v36  ;;  %9994 = vmatpush3.bf16.msra.mxu1 %v13802_v47  ;;  %v5556_v47 = vsel %vm980_vm1, %v5534_v53, 0  ;;  %v13880_v34 = vpop.eup %10811 }
0x1758   : > { %10327 = vmatprep.subr.msk.bf16.mxu1 %vm980_vm1, %v5530_v56  ;;  %v13882_v61 = vpop.eup %10813 }
0x1759   : > { %v5703_v28 = vpop.permute.xlu0 %5702 }
0x175a   : > { %9996 = vmatmul.mubr.msk.bf16.vlgmr.msra.gmra.mrb[104].mxu1 %vm1070_vm2, %v5373_v18  ;;  %10019 = vmatprep.subr.bf16.mxu0 %v5703_v28 }
0x175b   : > { %10020 = vmatpush3.bf16.msra.mxu0 %v5703_v28 }
0x1760   : > { %10004 = vmatpush3.bf16.xpose.msra.mxu1 %v5550_v52 }
0x1761   : > { %10328 = vmatprep.subr.msk.bf16.mxu1 %vm980_vm1, %v5532_v31 }
0x1768   : > { %10006 = vmatpush3.bf16.xpose.msra.mxu1 %v5553_v17 }
0x1769   : > { %10329 = vmatprep.subr.msk.bf16.mxu1 %vm980_vm1, %v5534_v53 }
0x1770   : > { %10008 = vmatpush3.bf16.xpose.msra.mxu1 %v5556_v47 }
0x1780   : > { %v5317_v13 = vpop.xlane.xlu1 %5316 }
0x1781   : > { %v5329_v41 = vsub.f32 %v13762_v23, %v5317_v13 }
0x1783   : > { %v5342_v56 = vmul.f32 1.442695, %v5329_v41 }
0x1784   : > { %v5536_v8 = vpop.permute.xlu1 %5535 }
0x1785   : > { %10815 = vpow2.f32 %v5342_v56  ;;  %10330 = vmatprep.subr.msk.bf16.mxu1 %vm980_vm1, %v5536_v8  ;;  %v5559_v2 = vsel %vm980_vm1, %v5536_v8, 0 }
0x1786   : > { %10817 = vpow2.f32 %v5344_v59  ;;  %10010 = vmatpush3.bf16.xpose.msra.mxu1 %v5559_v2 }
0x1788   : > { %v5524_v11 = vpop.permute.xlu1 %5523 }
0x178c   : > { %v5528_v43 = vpop.permute.xlu1 %5527 }
0x178f   : > { %v13884_v0 = vpop.eup %10815 }
0x1790   : > { %v13886_v23 = vpop.eup %10817  ;;  %v5705_v24 = vpop.permute.xlu1 %5704  ;;  %v5374_v40 = vpack.c.bf16 %v13884_v0, %v13880_v34 }
0x1791   : > { %10021 = vmatprep.subr.bf16.mxu0 %v5705_v24  ;;  %v5375_v18 = vpack.c.bf16 %v13882_v61, %v13886_v23 }
0x1792   : > { %9999 = vmatprep.mubr.msk.bf16.mxu1 %vm1070_vm2, %v5374_v40  ;;  %10022 = vmatpush3.bf16.msra.mxu0 %v5705_v24 }
0x1793   : > { %10000 = vmatmul.mubr.msk.bf16.gmra.mrb[108].mxu1 %vm1070_vm2, %v5375_v18 }
0x1794   : > { %v5707_v28 = vpop.permute.xlu1 %5706  ;;  %10011 = vmatprep.mubr.msk.bf16.mxu1 %vm980_vm1, %v5522_v5 }
0x1795   : > { %10023 = vmatprep.subr.bf16.mxu0 %v5707_v28 }
0x1796   : > { %10024 = vmatpush3.bf16.msra.mxu0 %v5707_v28 }
0x1798   : > { %v5709_v52 = vpop.permute.xlu1 %5708 }
0x1799   : > { %10025 = vmatprep.subr.bf16.mxu0 %v5709_v52 }
0x179a   : > { %10026 = vmatpush3.bf16.msra.mxu0 %v5709_v52 }
0x179b   : > { %10012 = vmatmul.mubr.msk.bf16.vlgmr.msra.gmra.mrb[112].mxu1 %vm980_vm1, %v5524_v11 }
0x179c   : > { %10015 = vmatprep.mubr.msk.bf16.mxu1 %vm980_vm1, %v5526_v50 }
0x17a3   : > { %10016 = vmatmul.mubr.msk.bf16.gmra.mrb[116].mxu1 %vm980_vm1, %v5528_v43 }
0x17c5   : > { %v9933_v31 = vpop.f32.mrb[88].mxu1 }
0x17c6   : > { %v4870_v17 = vpop.f32.mrb[89].mxu1  ;;  %v4879_v47 = vadd.f32 %v9933_v31, %v13426_v3 }
0x17c7   : > { %v9934_v53 = vpop.f32.mrb[90].mxu1  ;;  %v4871_v5 = vadd.f32 %v13426_v3, %v4870_v17 }
0x17c8   : > { %v4882_v33 = vadd.f32 %v9934_v53, %v13426_v3  ;;  %v4873_v6 = vpop.f32.mrb[91].mxu1 }
0x17c9   : > { %v4874_v20 = vadd.f32 %v13426_v3, %v4873_v6 }
0x17ca   : > { %v13902_v60 = vpack.c.bf16 %v4882_v33, %v4879_v47 }
0x17cb   : > { %v13904_v38 = vpack.c.bf16 %v4874_v20, %v4871_v5 }
0x17d9   : > { %v9937_v13 = vpop.f32.mrb[92].mxu1 }
0x17da   : > { %v4886_v50 = vpop.f32.mrb[93].mxu1  ;;  %v4895_v59 = vadd.f32 %v9937_v13, %v13426_v3 }
0x17db   : > { %v9938_v41 = vpop.f32.mrb[94].mxu1  ;;  %v4887_v2 = vadd.f32 %v13426_v3, %v4886_v50 }
0x17dc   : > { %v4898_v56 = vadd.f32 %v9938_v41, %v13426_v3  ;;  %v4889_v8 = vpop.f32.mrb[95].mxu1 }
0x17dd   : > { %v4890_v11 = vadd.f32 %v13426_v3, %v4889_v8 }
0x17de   : > { %v13910_v43 = vpack.c.bf16 %v4898_v56, %v4895_v59 }
0x17df   : > { %v13912_v24 = vpack.c.bf16 %v4890_v11, %v4887_v2 }
0x181d   : > { %v13914_v40 = vpop.f32.mrb[96].mxu1 }
0x181e   : > { %15843 = vst [vmem:[#allocation44_spill] sm:$0xff] %v13914_v40  ;;  %v13916_v18 = vpop.f32.mrb[97].mxu1 }
0x181f   : > { %15844 = vst [vmem:[#allocation45_spill] sm:$0xff] %v13916_v18  ;;  %v13918_v28 = vpop.f32.mrb[98].mxu1 }
0x1820   : > { %15845 = vst [vmem:[#allocation47_spill] sm:$0xff] %v13918_v28  ;;  %v13920_v52 = vpop.f32.mrb[99].mxu1 }
0x1821   : > { %15846 = vst [vmem:[#allocation46_spill] sm:$0xff] %v13920_v52 }
0x1825   : > { %v13922_v31 = vpop.f32.mrb[100].mxu1 }
0x1826   : > { %15847 = vst [vmem:[#allocation50_spill] sm:$0xff] %v13922_v31  ;;  %v13924_v17 = vpop.f32.mrb[101].mxu1 }
0x1827   : > { %15848 = vst [vmem:[#allocation48_spill] sm:$0xff] %v13924_v17  ;;  %v13926_v53 = vpop.f32.mrb[102].mxu1 }
0x1828   : > { %15849 = vst [vmem:[#allocation49_spill] sm:$0xff] %v13926_v53  ;;  %v13928_v47 = vpop.f32.mrb[103].mxu1 }
0x1829   : > { %15850 = vst [vmem:[#allocation51_spill] sm:$0xff] %v13928_v47 }
0x182d   : > { %v13930_v3 = vpop.f32.mrb[104].mxu1 }
0x182e   : > { %15851 = vst [vmem:[#allocation4_spill] sm:$0xff] %v13930_v3  ;;  %v13932_v33 = vpop.f32.mrb[105].mxu1 }
0x182f   : > { %15852 = vst [vmem:[#allocation62_spill] sm:$0xff] %v13932_v33  ;;  %v13934_v6 = vpop.f32.mrb[106].mxu1 }
0x1830   : > { %15853 = vst [vmem:[#allocation11_spill] sm:$0xff] %v13934_v6  ;;  %v13936_v5 = vpop.f32.mrb[107].mxu1 }
0x1831   : > { %15854 = vst [vmem:[#allocation8_spill] sm:$0xff] %v13936_v5 }
0x1866   : > { %v13938_v20 = vpop.f32.mrb[108].mxu1 }
0x1867   : > { %15855 = vst [vmem:[#allocation10_spill] sm:$0xff] %v13938_v20  ;;  %v13940_v13 = vpop.f32.mrb[109].mxu1 }
0x1868   : > { %15856 = vst [vmem:[#allocation9_spill] sm:$0xff] %v13940_v13  ;;  %v13942_v50 = vpop.f32.mrb[110].mxu1 }
0x1869   : > { %15857 = vst [vmem:[#allocation21_spill] sm:$0xff] %v13942_v50  ;;  %v13944_v41 = vpop.f32.mrb[111].mxu1 }
0x186a   : > { %15858 = vst [vmem:[#allocation55_spill] sm:$0xff] %v13944_v41 }
0x186e   : > { %v10013_v59 = vpop.f32.mrb[112].mxu1 }
0x186f   : > { %v5604_v56 = vadd.f32 %v13613_v14, %v10013_v59  ;;  %v5595_v8 = vpop.f32.mrb[113].mxu1 }
0x1870   : > { %v10014_v2 = vpop.f32.mrb[114].mxu1  ;;  %v5596_v11 = vadd.f32 %v13621_v57, %v5595_v8 }
0x1871   : > { %v5598_v7 = vpop.f32.mrb[115].mxu1  ;;  %v5632_v16 = vsel %vm1070_vm2, %v5604_v56, -inf  ;;  %v5607_v55 = vadd.f32 %v13641_v10, %v10014_v2 }
0x1872   : > { %v5599_v62 = vadd.f32 %v13659_v63, %v5598_v7  ;;  %5633 = vmax.xlane.f32.xlu0 %v5632_v16  ;;  %v5626_v49 = vsel %vm1070_vm2, %v5596_v11, -inf }
0x1873   : > { %v5635_v22 = vsel %vm1070_vm2, %v5607_v55, -inf }
0x1874   : > { %v5629_v29 = vsel %vm1070_vm2, %v5599_v62, -inf }
0x1875   : > { %5630 = vmax.xlane.f32.xlu1 %v5629_v29 }
0x1876   : > { %5627 = vmax.xlane.f32.xlu0 %v5626_v49  ;;  %v10017_v35 = vpop.f32.mrb[116].mxu1 }
0x1877   : > { %v5611_v59 = vpop.f32.mrb[117].mxu1  ;;  %v13954_v42 = vadd.f32 %v13631_v48, %v10017_v35 }
0x1878   : > { %v10018_v51 = vpop.f32.mrb[118].mxu1  ;;  %v13958_v7 = vadd.f32 %v13649_v26, %v5611_v59 }
0x1879   : > { %v5614_v8 = vpop.f32.mrb[119].mxu1  ;;  %v5644_v16 = vsel %vm1070_vm2, %v13954_v42, -inf  ;;  %v13963_v29 = vadd.f32 %v13676_v44, %v10018_v51 }
0x187a   : > { %5636 = vmax.xlane.f32.xlu0 %v5635_v22  ;;  %v5638_v49 = vsel %vm1070_vm2, %v13958_v7, -inf  ;;  %v5615_v22 = vadd.f32 %v13691_v9, %v5614_v8 }
0x187b   : > { %v5647_v35 = vsel %vm1070_vm2, %v13963_v29, -inf }
0x187c   : > { %v5641_v51 = vsel %vm1070_vm2, %v5615_v22, -inf }
0x187e   : > { %5645 = vmax.xlane.f32.xlu0 %v5644_v16 }
0x1882   : > { %5639 = vmax.xlane.f32.xlu0 %v5638_v49 }
0x1886   : > { %5857 = vrot.lane.b32.xlu1 %v13432_v25, %s15723_s25  ;;  %5648 = vmax.xlane.f32.xlu0 %v5647_v35 }
0x188a   : > { %5859 = vrot.lane.b32.xlu1 %v13450_v27, %s15723_s25 }
0x189c   : > { %5855 = vrot.lane.b32.xlu0 %v13434_v37, %s15723_s25 }
0x18a0   : > { %5847 = vrot.lane.b32.xlu0 %v13434_v37, %s15724_s26 }
0x18a4   : > { %5851 = vrot.lane.b32.xlu0 %v13450_v27, %s15724_s26 }
0x18a8   : > { %6028 = vrot.lane.b32.xlu0 %v13434_v37, %s15725_s16 }
0x18ae   : > { %5642 = vmax.xlane.f32.xlu1 %v5641_v51 }
0x18bf   : > { %5861 = vrot.lane.b32.xlu1 %v13448_v21, %s15723_s25 }
0x18c3   : > { %5849 = vrot.lane.b32.xlu1 %v13432_v25, %s15724_s26 }
0x18c7   : > { %5853 = vrot.lane.b32.xlu1 %v13448_v21, %s15724_s26 }
0x18cb   : > { %6030 = vrot.lane.b32.xlu1 %v13432_v25, %s15725_s16 }
0x18cf   : > { %6032 = vrot.lane.b32.xlu1 %v13450_v27, %s15725_s16 }
0x18d3   : > { %6034 = vrot.lane.b32.xlu1 %v13448_v21, %s15725_s16 }
0x18ff   : > { %v5634_v37 = vpop.xlane.xlu0 %5633 }
0x1900   : > { %v5652_v59 = vsub.f32 %v5604_v56, %v5634_v37 }
0x1902   : > { %v5631_v2 = vpop.xlane.xlu1 %5630  ;;  %v5662_v45 = vmul.f32 1.442695, %v5652_v59 }
0x1903   : > { %v5651_v8 = vsub.f32 %v5599_v62, %v5631_v2  ;;  %v5628_v16 = vpop.xlane.xlu0 %5627 }
0x1904   : > { %v5650_v49 = vsub.f32 %v5596_v11, %v5628_v16 }
0x1905   : > { %v5660_v35 = vmul.f32 1.442695, %v5651_v8 }
0x1906   : > { %v5658_v51 = vmul.f32 1.442695, %v5650_v49 }
0x1907   : > { %10819 = vpow2.f32 %v5660_v35  ;;  %v5637_v31 = vpop.xlane.xlu0 %5636 }
0x1908   : > { %10821 = vpow2.f32 %v5658_v51  ;;  %v5653_v17 = vsub.f32 %v5607_v55, %v5637_v31 }
0x1909   : > { %10823 = vpow2.f32 %v5662_v45 }
0x190a   : > { %v5664_v25 = vmul.f32 1.442695, %v5653_v17  ;;  %v5858_v17 = vpop.permute.xlu1 %5857 }
0x190b   : > { %v5646_v53 = vpop.xlane.xlu0 %5645  ;;  %v5879_v8 = vsel %vm980_vm1, %v5858_v17, 0 }
0x190c   : > { %10825 = vpow2.f32 %v5664_v25 }
0x190e   : > { %v5860_v16 = vpop.permute.xlu1 %5859 }
0x190f   : > { %v5640_v27 = vpop.xlane.xlu0 %5639  ;;  %v5882_v35 = vsel %vm980_vm1, %v5860_v16, 0 }
0x1910   : > { %v5654_v51 = vsub.f32 %v13958_v7, %v5640_v27 }
0x1911   : > { %v13995_v40 = vpop.eup %10819 }
0x1912   : > { %v13997_v21 = vpop.eup %10821 }
0x1913   : > { %v5649_v56 = vpop.xlane.xlu0 %5648  ;;  %v5698_v62 = vpack.c.bf16 %v13995_v40, %v13997_v21  ;;  %v14001_v11 = vpop.eup %10823 }
0x1914   : > { %v5657_v25 = vsub.f32 %v13963_v29, %v5649_v56 }
0x1915   : > { %10027 = vmatprep.mubr.msk.bf16.mxu0 %vm1070_vm2, %v5698_v62  ;;  %v5656_v62 = vsub.f32 %v13954_v42, %v5646_v53 }
0x1916   : > { %v14004_v37 = vpop.eup %10825 }
0x1917   : > { %v5699_v45 = vpack.c.bf16 %v14004_v37, %v14001_v11  ;;  %v5856_v55 = vpop.permute.xlu0 %5855  ;;  %v5670_v47 = vmul.f32 1.442695, %v5656_v62 }
0x1918   : > { %10331 = vmatprep.subr.msk.bf16.mxu0 %vm980_vm1, %v5856_v55  ;;  %v5876_v31 = vsel %vm980_vm1, %v5856_v55, 0  ;;  %v5672_v55 = vmul.f32 1.442695, %v5657_v25 }
0x1919   : > { %10028 = vmatmul.mubr.msk.bf16.vlgmr.msra.gmra.mrb[128].mxu0 %vm1070_vm2, %v5699_v45  ;;  %v5666_v45 = vmul.f32 1.442695, %v5654_v51 }
0x191a   : > { %10036 = vmatpush3.bf16.xpose.msra.mxu0 %v5876_v31 }
0x191b   : > { %10332 = vmatprep.subr.msk.bf16.mxu0 %vm980_vm1, %v5858_v17  ;;  %v5848_v2 = vpop.permute.xlu0 %5847  ;;  %10827 = vpow2.f32 %v5666_v45 }
0x191c   : > { %10829 = vpow2.f32 %v5672_v55 }
0x191f   : > { %v5852_v59 = vpop.permute.xlu0 %5851 }
0x1922   : > { %10038 = vmatpush3.bf16.xpose.msra.mxu0 %v5879_v8 }
0x1923   : > { %10333 = vmatprep.subr.msk.bf16.mxu0 %vm980_vm1, %v5860_v16  ;;  %v6029_v49 = vpop.permute.xlu0 %6028 }
0x1924   : > { %10051 = vmatprep.subr.bf16.mxu1 %v6029_v49 }
0x1925   : > { %10052 = vmatpush3.bf16.msra.mxu1 %v6029_v49  ;;  %v14020_v27 = vpop.eup %10827 }
0x1926   : > { %v14022_v42 = vpop.eup %10829 }
0x192a   : > { %10040 = vmatpush3.bf16.xpose.msra.mxu0 %v5882_v35 }
0x193b   : > { %v5643_v31 = vpop.xlane.xlu1 %5642 }
0x193c   : > { %v5655_v17 = vsub.f32 %v5615_v22, %v5643_v31 }
0x193e   : > { %v5668_v8 = vmul.f32 1.442695, %v5655_v17 }
0x193f   : > { %v5862_v18 = vpop.permute.xlu1 %5861 }
0x1940   : > { %10831 = vpow2.f32 %v5668_v8  ;;  %10334 = vmatprep.subr.msk.bf16.mxu0 %vm980_vm1, %v5862_v18  ;;  %v5885_v16 = vsel %vm980_vm1, %v5862_v18, 0 }
0x1941   : > { %10833 = vpow2.f32 %v5670_v47  ;;  %10042 = vmatpush3.bf16.xpose.msra.mxu0 %v5885_v16 }
0x1943   : > { %v5850_v7 = vpop.permute.xlu1 %5849 }
0x1947   : > { %v5854_v29 = vpop.permute.xlu1 %5853 }
0x194a   : > { %v14024_v53 = vpop.eup %10831 }
0x194b   : > { %v14026_v22 = vpop.eup %10833  ;;  %v6031_v56 = vpop.permute.xlu1 %6030  ;;  %v5700_v49 = vpack.c.bf16 %v14024_v53, %v14020_v27 }
0x194c   : > { %10053 = vmatprep.subr.bf16.mxu1 %v6031_v56  ;;  %v5701_v18 = vpack.c.bf16 %v14022_v42, %v14026_v22 }
0x194d   : > { %10031 = vmatprep.mubr.msk.bf16.mxu0 %vm1070_vm2, %v5700_v49  ;;  %10054 = vmatpush3.bf16.msra.mxu1 %v6031_v56 }
0x194e   : > { %10032 = vmatmul.mubr.msk.bf16.gmra.mrb[132].mxu0 %vm1070_vm2, %v5701_v18 }
0x194f   : > { %v6033_v47 = vpop.permute.xlu1 %6032  ;;  %10043 = vmatprep.mubr.msk.bf16.mxu0 %vm980_vm1, %v5848_v2 }
0x1950   : > { %10055 = vmatprep.subr.bf16.mxu1 %v6033_v47 }
0x1951   : > { %10056 = vmatpush3.bf16.msra.mxu1 %v6033_v47 }
0x1953   : > { %v6035_v35 = vpop.permute.xlu1 %6034 }
0x1954   : > { %10057 = vmatprep.subr.bf16.mxu1 %v6035_v35 }
0x1955   : > { %10058 = vmatpush3.bf16.msra.mxu1 %v6035_v35 }
0x1956   : > { %10044 = vmatmul.mubr.msk.bf16.vlgmr.msra.gmra.mrb[136].mxu0 %vm980_vm1, %v5850_v7 }
0x1957   : > { %10047 = vmatprep.mubr.msk.bf16.mxu0 %vm980_vm1, %v5852_v59 }
0x195e   : > { %10048 = vmatmul.mubr.msk.bf16.gmra.mrb[140].mxu0 %vm980_vm1, %v5854_v29 }
0x19ec   : > { %v14038_v51 = vpop.f32.mrb[128].mxu0 }
0x19ed   : > { %15859 = vst [vmem:[#allocation53_spill] sm:$0xff] %v14038_v51  ;;  %v14040_v25 = vpop.f32.mrb[129].mxu0 }
0x19ee   : > { %15860 = vst [vmem:[#allocation20_spill] sm:$0xff] %v14040_v25  ;;  %v14042_v62 = vpop.f32.mrb[130].mxu0 }
0x19ef   : > { %15861 = vst [vmem:[#allocation54_spill] sm:$0xff] %v14042_v62  ;;  %v14044_v45 = vpop.f32.mrb[131].mxu0 }
0x19f0   : > { %15862 = vst [vmem:[#allocation52_spill] sm:$0xff] %v14044_v45 }
0x1a21   : > { %v14046_v2 = vpop.f32.mrb[132].mxu0 }
0x1a22   : > { %15863 = vst [vmem:[#allocation59_spill] sm:$0xff] %v14046_v2  ;;  %v14048_v55 = vpop.f32.mrb[133].mxu0 }
0x1a23   : > { %15864 = vst [vmem:[#allocation57_spill] sm:$0xff] %v14048_v55  ;;  %v14050_v31 = vpop.f32.mrb[134].mxu0 }
0x1a24   : > { %15865 = vst [vmem:[#allocation58_spill] sm:$0xff] %v14050_v31  ;;  %v14052_v17 = vpop.f32.mrb[135].mxu0 }
0x1a25   : > { %15866 = vst [vmem:[#allocation56_spill] sm:$0xff] %v14052_v17 }
0x1a29   : > { %v10045_v8 = vpop.f32.mrb[136].mxu0 }
0x1a2a   : > { %v5930_v59 = vadd.f32 %v13613_v14, %v10045_v8  ;;  %v5921_v16 = vpop.f32.mrb[137].mxu0 }
0x1a2b   : > { %v10046_v7 = vpop.f32.mrb[138].mxu0  ;;  %v5922_v29 = vadd.f32 %v13621_v57, %v5921_v16 }
0x1a2c   : > { %v5924_v56 = vpop.f32.mrb[139].mxu0  ;;  %v5958_v49 = vsel %vm1070_vm2, %v5930_v59, -inf  ;;  %v5933_v35 = vadd.f32 %v13641_v10, %v10046_v7 }
0x1a2d   : > { %v5925_v18 = vadd.f32 %v13659_v63, %v5924_v56  ;;  %5959 = vmax.xlane.f32.xlu0 %v5958_v49  ;;  %v5952_v2 = vsel %vm1070_vm2, %v5922_v29, -inf }
0x1a2e   : > { %v5961_v16 = vsel %vm1070_vm2, %v5933_v35, -inf }
0x1a2f   : > { %v5955_v47 = vsel %vm1070_vm2, %v5925_v18, -inf }
0x1a30   : > { %5956 = vmax.xlane.f32.xlu1 %v5955_v47 }
0x1a31   : > { %5953 = vmax.xlane.f32.xlu0 %v5952_v2  ;;  %v10049_v31 = vpop.f32.mrb[140].mxu0 }
0x1a32   : > { %v5937_v14 = vpop.f32.mrb[141].mxu0  ;;  %v14062_v28 = vadd.f32 %v13631_v48, %v10049_v31 }
0x1a33   : > { %v10050_v8 = vpop.f32.mrb[142].mxu0  ;;  %v14066_v63 = vadd.f32 %v13649_v26, %v5937_v14 }
0x1a34   : > { %v5940_v57 = vpop.f32.mrb[143].mxu0  ;;  %v5970_v10 = vsel %vm1070_vm2, %v14062_v28, -inf  ;;  %v5949_v7 = vadd.f32 %v13676_v44, %v10050_v8 }
0x1a35   : > { %5962 = vmax.xlane.f32.xlu0 %v5961_v16  ;;  %v5964_v2 = vsel %vm1070_vm2, %v14066_v63, -inf  ;;  %v5941_v26 = vadd.f32 %v13691_v9, %v5940_v57 }
0x1a36   : > { %v5973_v48 = vsel %vm1070_vm2, %v5949_v7, -inf }
0x1a37   : > { %v5967_v44 = vsel %vm1070_vm2, %v5941_v26, -inf }
0x1a39   : > { %5971 = vmax.xlane.f32.xlu0 %v5970_v10 }
0x1a3d   : > { %5965 = vmax.xlane.f32.xlu0 %v5964_v2 }
0x1a41   : > { %6183 = vrot.lane.b32.xlu1 %v13902_v60, %s15818_s28  ;;  %5974 = vmax.xlane.f32.xlu0 %v5973_v48 }
0x1a45   : > { %6185 = vrot.lane.b32.xlu1 %v13912_v24, %s15818_s28 }
0x1a57   : > { %6181 = vrot.lane.b32.xlu0 %v13904_v38, %s15818_s28 }
0x1a5b   : > { %6354 = vrot.lane.b32.xlu0 %v13904_v38, %s15829_s19 }
0x1a69   : > { %5968 = vmax.xlane.f32.xlu1 %v5967_v44 }
0x1a7a   : > { %6187 = vrot.lane.b32.xlu1 %v13910_v43, %s15818_s28 }
0x1a7e   : > { %6356 = vrot.lane.b32.xlu1 %v13902_v60, %s15829_s19 }
0x1a82   : > { %6358 = vrot.lane.b32.xlu1 %v13912_v24, %s15829_s19 }
0x1a86   : > { %6360 = vrot.lane.b32.xlu1 %v13910_v43, %s15829_s19  ;;  %s16004_s19 = sshll.u32 %s16006_s15, 6 }
0x1aba   : > { %v5960_v31 = vpop.xlane.xlu0 %5959 }
0x1abb   : > { %v5978_v49 = vsub.f32 %v5930_v59, %v5960_v31 }
0x1abd   : > { %v5957_v56 = vpop.xlane.xlu1 %5956  ;;  %v5988_v16 = vmul.f32 1.442695, %v5978_v49 }
0x1abe   : > { %v5977_v47 = vsub.f32 %v5925_v18, %v5957_v56  ;;  %v5954_v9 = vpop.xlane.xlu0 %5953 }
0x1abf   : > { %v5976_v14 = vsub.f32 %v5922_v29, %v5954_v9 }
0x1ac0   : > { %v5986_v8 = vmul.f32 1.442695, %v5977_v47 }
0x1ac1   : > { %v5984_v57 = vmul.f32 1.442695, %v5976_v14  ;;  %v6184_v47 = vpop.permute.xlu1 %6183 }
0x1ac2   : > { %10835 = vpow2.f32 %v5986_v8  ;;  %v5963_v10 = vpop.xlane.xlu0 %5962  ;;  %v6205_v14 = vsel %vm980_vm1, %v6184_v47, 0 }
0x1ac3   : > { %10837 = vpow2.f32 %v5984_v57  ;;  %v5979_v2 = vsub.f32 %v5933_v35, %v5963_v10 }
0x1ac4   : > { %10839 = vpow2.f32 %v5988_v16 }
0x1ac5   : > { %v5990_v48 = vmul.f32 1.442695, %v5979_v2  ;;  %v6186_v8 = vpop.permute.xlu1 %6185 }
0x1ac6   : > { %v5972_v44 = vpop.xlane.xlu0 %5971  ;;  %v6208_v57 = vsel %vm980_vm1, %v6186_v8, 0 }
0x1ac7   : > { %10841 = vpow2.f32 %v5990_v48  ;;  %v5982_v2 = vsub.f32 %v14062_v28, %v5972_v44 }
0x1aca   : > { %v5966_v52 = vpop.xlane.xlu0 %5965 }
0x1acb   : > { %v5980_v16 = vsub.f32 %v14066_v63, %v5966_v52 }
0x1acc   : > { %v14092_v55 = vpop.eup %10835 }
0x1acd   : > { %v14094_v17 = vpop.eup %10837  ;;  %v5992_v48 = vmul.f32 1.442695, %v5980_v16 }
0x1ace   : > { %v5975_v59 = vpop.xlane.xlu0 %5974  ;;  %v6024_v29 = vpack.c.bf16 %v14092_v55, %v14094_v17  ;;  %v14098_v18 = vpop.eup %10839 }
0x1acf   : > { %v5983_v10 = vsub.f32 %v5949_v7, %v5975_v59  ;;  %10843 = vpow2.f32 %v5992_v48 }
0x1ad0   : > { %10059 = vmatprep.mubr.msk.bf16.mxu1 %vm1070_vm2, %v6024_v29 }
0x1ad1   : > { %v14101_v31 = vpop.eup %10841  ;;  %v5998_v29 = vmul.f32 1.442695, %v5983_v10 }
0x1ad2   : > { %v6025_v35 = vpack.c.bf16 %v14101_v31, %v14098_v18  ;;  %v6182_v56 = vpop.permute.xlu0 %6181 }
0x1ad3   : > { %10335 = vmatprep.subr.msk.bf16.mxu1 %vm980_vm1, %v6182_v56  ;;  %v6202_v49 = vsel %vm980_vm1, %v6182_v56, 0  ;;  %10845 = vpow2.f32 %v5998_v29 }
0x1ad4   : > { %10060 = vmatmul.mubr.msk.bf16.vlgmr.msra.gmra.mrb[120].mxu1 %vm1070_vm2, %v6025_v35 }
0x1ad5   : > { %10068 = vmatpush3.bf16.xpose.msra.mxu1 %v6202_v49  ;;  %v5996_v49 = vmul.f32 1.442695, %v5982_v2 }
0x1ad6   : > { %10336 = vmatprep.subr.msk.bf16.mxu1 %vm980_vm1, %v6184_v47  ;;  %v6355_v9 = vpop.permute.xlu0 %6354 }
0x1ad7   : > { %10083 = vmatprep.subr.bf16.mxu0 %v6355_v9 }
0x1ad8   : > { %10084 = vmatpush3.bf16.msra.mxu0 %v6355_v9 }
0x1ad9   : > { %v14116_v63 = vpop.eup %10843 }
0x1add   : > { %10070 = vmatpush3.bf16.xpose.msra.mxu1 %v6205_v14  ;;  %v14118_v7 = vpop.eup %10845 }
0x1ade   : > { %10337 = vmatprep.subr.msk.bf16.mxu1 %vm980_vm1, %v6186_v8 }
0x1ae5   : > { %10072 = vmatpush3.bf16.xpose.msra.mxu1 %v6208_v57 }
0x1af6   : > { %v5969_v35 = vpop.xlane.xlu1 %5968 }
0x1af7   : > { %v5981_v56 = vsub.f32 %v5941_v26, %v5969_v35 }
0x1af9   : > { %v5994_v9 = vmul.f32 1.442695, %v5981_v56 }
0x1afa   : > { %v6188_v47 = vpop.permute.xlu1 %6187 }
0x1afb   : > { %10847 = vpow2.f32 %v5994_v9  ;;  %10338 = vmatprep.subr.msk.bf16.mxu1 %vm980_vm1, %v6188_v47  ;;  %v6211_v14 = vsel %vm980_vm1, %v6188_v47, 0  ;;  %v14157_v47 = vld [vmem:[%s15543_s1 + $0x10] sm:$0xff] }
0x1afc   : > { %10849 = vpow2.f32 %v5996_v49  ;;  %10074 = vmatpush3.bf16.xpose.msra.mxu1 %v6211_v14 }
0x1afe   : > { %v6357_v52 = vpop.permute.xlu1 %6356 }
0x1aff   : > { %10085 = vmatprep.subr.bf16.mxu0 %v6357_v52 }
0x1b00   : > { %10086 = vmatpush3.bf16.msra.mxu0 %v6357_v52 }
0x1b02   : > { %v6359_v28 = vpop.permute.xlu1 %6358 }
0x1b03   : > { %10087 = vmatprep.subr.bf16.mxu0 %v6359_v28 }
0x1b04   : > { %10088 = vmatpush3.bf16.msra.mxu0 %v6359_v28 }
0x1b05   : > { %v14120_v26 = vpop.eup %10847 }
0x1b06   : > { %v14122_v44 = vpop.eup %10849  ;;  %v6361_v59 = vpop.permute.xlu1 %6360  ;;  %v6026_v8 = vpack.c.bf16 %v14120_v26, %v14116_v63 }
0x1b07   : > { %10089 = vmatprep.subr.bf16.mxu0 %v6361_v59  ;;  %v6027_v57 = vpack.c.bf16 %v14118_v7, %v14122_v44 }
0x1b08   : > { %10063 = vmatprep.mubr.msk.bf16.mxu1 %vm1070_vm2, %v6026_v8  ;;  %10090 = vmatpush3.bf16.msra.mxu0 %v6361_v59  ;;  %v14163_v59 = vld [vmem:[%s15543_s1] sm:$0xff] }
0x1b09   : > { %10064 = vmatmul.mubr.msk.bf16.gmra.mrb[124].mxu1 %vm1070_vm2, %v6027_v57 }
0x1b0a   : > { %10075 = vmatprep.mubr.msk.bf16.mxu1 %vm980_vm1, %v13904_v38 }
0x1b11   : > { %10076 = vmatmul.mubr.msk.bf16.vlgmr.msra.gmra.mrb[128].mxu1 %vm980_vm1, %v13902_v60 }
0x1b12   : > { %10079 = vmatprep.mubr.msk.bf16.mxu1 %vm980_vm1, %v13912_v24 }
0x1b19   : > { %10080 = vmatmul.mubr.msk.bf16.gmra.mrb[132].mxu1 %vm980_vm1, %v13910_v43 }
0x1ba7   : > { %v14138_v16 = vpop.f32.mrb[120].mxu1 }
0x1ba8   : > { %15867 = vst [vmem:[#allocation28_spill] sm:$0xff] %v14138_v16  ;;  %v14140_v10 = vpop.f32.mrb[121].mxu1 }
0x1ba9   : > { %15868 = vst [vmem:[#allocation37_spill] sm:$0xff] %v14140_v10  ;;  %v14142_v2 = vpop.f32.mrb[122].mxu1 }
0x1baa   : > { %15869 = vst [vmem:[#allocation36_spill] sm:$0xff] %v14142_v2  ;;  %v14144_v48 = vpop.f32.mrb[123].mxu1 }
0x1bab   : > { %15870 = vst [vmem:[#allocation7_spill] sm:$0xff] %v14144_v48 }
0x1bdc   : > { %v14146_v29 = vpop.f32.mrb[124].mxu1 }
0x1bdd   : > { %15871 = vst [vmem:[#allocation63_spill] sm:$0xff] %v14146_v29  ;;  %v14148_v35 = vpop.f32.mrb[125].mxu1 }
0x1bde   : > { %15872 = vst [vmem:[#allocation64_spill] sm:$0xff] %v14148_v35  ;;  %v14150_v56 = vpop.f32.mrb[126].mxu1  ;;  %v14177_v35 = vld [vmem:[%s15543_s1 + $0x18] sm:$0xff] }
0x1bdf   : > { %15873 = vst [vmem:[#allocation65_spill] sm:$0xff] %v14150_v56  ;;  %v14152_v49 = vpop.f32.mrb[127].mxu1 }
0x1be0   : > { %15874 = vst [vmem:[#allocation66_spill] sm:$0xff] %v14152_v49  ;;  %v14170_v49 = vld [vmem:[%s15543_s1 + $0x8] sm:$0xff] }
0x1be4   : > { %v10077_v9 = vpop.f32.mrb[128].mxu1 }
0x1be5   : > { %v6256_v14 = vadd.f32 %v14157_v47, %v10077_v9  ;;  %v6247_v52 = vpop.f32.mrb[129].mxu1 }
0x1be6   : > { %v10078_v28 = vpop.f32.mrb[130].mxu1  ;;  %v6248_v8 = vadd.f32 %v14163_v59, %v6247_v52 }
0x1be7   : > { %v6250_v57 = vpop.f32.mrb[131].mxu1  ;;  %v6284_v56 = vsel %vm1070_vm2, %v6256_v14, -inf  ;;  %v6259_v52 = vadd.f32 %v14177_v35, %v10078_v28  ;;  %v14193_v28 = vld [vmem:[%s15543_s1 + $0x20] sm:$0xff] }
0x1be8   : > { %v6251_v29 = vadd.f32 %v14170_v49, %v6250_v57  ;;  %6285 = vmax.xlane.f32.xlu0 %v6284_v56  ;;  %v6278_v20 = vsel %vm1070_vm2, %v6248_v8, -inf  ;;  %v14184_v56 = vld [vmem:[%s15543_s1 + $0x30] sm:$0xff] }
0x1be9   : > { %v6287_v2 = vsel %vm1070_vm2, %v6259_v52, -inf }
0x1bea   : > { %v6281_v9 = vsel %vm1070_vm2, %v6251_v29, -inf }
0x1beb   : > { %6282 = vmax.xlane.f32.xlu1 %v6281_v9 }
0x1bec   : > { %v10081_v50 = vpop.f32.mrb[132].mxu1  ;;  %6279 = vmax.xlane.f32.xlu0 %v6278_v20 }
0x1bed   : > { %v6263_v13 = vpop.f32.mrb[133].mxu1  ;;  %v14187_v57 = vadd.f32 %v14184_v56, %v10081_v50  ;;  %v14203_v50 = vld [vmem:[%s15543_s1 + $0x38] sm:$0xff] }
0x1bee   : > { %v10082_v41 = vpop.f32.mrb[134].mxu1  ;;  %v14196_v20 = vadd.f32 %v14193_v28, %v6263_v13 }
0x1bef   : > { %v6266_v16 = vpop.f32.mrb[135].mxu1  ;;  %v6296_v9 = vsel %vm1070_vm2, %v14187_v57, -inf  ;;  %v14206_v10 = vadd.f32 %v14203_v50, %v10082_v41  ;;  %v14227_v41 = vld [vmem:[%s15543_s1 + $0x28] sm:$0xff] }
0x1bf0   : > { %6288 = vmax.xlane.f32.xlu0 %v6287_v2  ;;  %v6290_v2 = vsel %vm1070_vm2, %v14196_v20, -inf }
0x1bf1   : > { %v6299_v13 = vsel %vm1070_vm2, %v14206_v10, -inf }
0x1bf4   : > { %6297 = vmax.xlane.f32.xlu0 %v6296_v9  ;;  %v6267_v9 = vadd.f32 %v14227_v41, %v6266_v16 }
0x1bf8   : > { %6291 = vmax.xlane.f32.xlu0 %v6290_v2  ;;  %v6293_v2 = vsel %vm1070_vm2, %v6267_v9, -inf }
0x1bfc   : > { %6477 = vrot.lane.b32.xlu1 %v13902_v60, %s15819_s30  ;;  %6300 = vmax.xlane.f32.xlu0 %v6299_v13 }
0x1c00   : > { %6479 = vrot.lane.b32.xlu1 %v13912_v24, %s15819_s30 }
0x1c12   : > { %6475 = vrot.lane.b32.xlu0 %v13904_v38, %s15819_s30 }
0x1c16   : > { %6467 = vrot.lane.b32.xlu0 %v13904_v38, %s15820_s23 }
0x1c1a   : > { %6471 = vrot.lane.b32.xlu0 %v13912_v24, %s15820_s23 }
0x1c1e   : > { %6648 = vrot.lane.b32.xlu0 %v13904_v38, %s15830_s17 }
0x1c24   : > { %6294 = vmax.xlane.f32.xlu1 %v6293_v2 }
0x1c35   : > { %6481 = vrot.lane.b32.xlu1 %v13910_v43, %s15819_s30  ;;  %s15933_s30 = smov 16  }
0x1c39   : > { %6469 = vrot.lane.b32.xlu1 %v13902_v60, %s15820_s23 }
0x1c3d   : > { %6473 = vrot.lane.b32.xlu1 %v13910_v43, %s15820_s23 }
0x1c41   : > { %6650 = vrot.lane.b32.xlu1 %v13902_v60, %s15830_s17 }
0x1c45   : > { %6652 = vrot.lane.b32.xlu1 %v13912_v24, %s15830_s17 }
0x1c49   : > { %6654 = vrot.lane.b32.xlu1 %v13910_v43, %s15830_s17 }
0x1c75   : > { %v6286_v16 = vpop.xlane.xlu0 %6285 }
0x1c76   : > { %v6304_v2 = vsub.f32 %v6256_v14, %v6286_v16 }
0x1c78   : > { %v6283_v13 = vpop.xlane.xlu1 %6282  ;;  %v6314_v6 = vmul.f32 1.442695, %v6304_v2 }
0x1c79   : > { %v6303_v48 = vsub.f32 %v6251_v29, %v6283_v13  ;;  %v6280_v51 = vpop.xlane.xlu0 %6279 }
0x1c7a   : > { %v6302_v62 = vsub.f32 %v6248_v8, %v6280_v51 }
0x1c7b   : > { %v6312_v25 = vmul.f32 1.442695, %v6303_v48 }
0x1c7c   : > { %v6310_v45 = vmul.f32 1.442695, %v6302_v62 }
0x1c7d   : > { %10851 = vpow2.f32 %v6312_v25  ;;  %v6289_v3 = vpop.xlane.xlu0 %6288 }
0x1c7e   : > { %10853 = vpow2.f32 %v6310_v45  ;;  %v6305_v33 = vsub.f32 %v6259_v52, %v6289_v3 }
0x1c7f   : > { %10855 = vpow2.f32 %v6314_v6 }
0x1c80   : > { %v6316_v5 = vmul.f32 1.442695, %v6305_v33 }
0x1c81   : > { %v6298_v32 = vpop.xlane.xlu0 %6297 }
0x1c82   : > { %10857 = vpow2.f32 %v6316_v5  ;;  %v6478_v5 = vpop.permute.xlu1 %6477 }
0x1c83   : > { %v6499_v29 = vsel %vm980_vm1, %v6478_v5, 0 }
0x1c85   : > { %v6292_v4 = vpop.xlane.xlu0 %6291 }
0x1c86   : > { %v6480_v8 = vpop.permute.xlu1 %6479  ;;  %v6306_v13 = vsub.f32 %v14196_v20, %v6292_v4 }
0x1c87   : > { %v14243_v54 = vpop.eup %10851  ;;  %v6502_v16 = vsel %vm980_vm1, %v6480_v8, 0 }
0x1c88   : > { %15875 = vst [vmem:[#allocation67_spill] sm:$0xff] %v14243_v54  ;;  %v14245_v46 = vpop.eup %10853 }
0x1c89   : > { %15876 = vst [vmem:[#allocation68_spill] sm:$0xff] %v14245_v46  ;;  %v6301_v14 = vpop.xlane.xlu0 %6300  ;;  %v6350_v51 = vpack.c.bf16 %v14243_v54, %v14245_v46  ;;  %v14249_v48 = vpop.eup %10855 }
0x1c8a   : > { %15877 = vst [vmem:[#allocation69_spill] sm:$0xff] %v14249_v48  ;;  %v6309_v2 = vsub.f32 %v14206_v10, %v6301_v14 }
0x1c8b   : > { %10091 = vmatprep.mubr.msk.bf16.mxu0 %vm1070_vm2, %v6350_v51  ;;  %v6308_v51 = vsub.f32 %v14187_v57, %v6298_v32 }
0x1c8c   : > { %v14252_v25 = vpop.eup %10857 }
0x1c8d   : > { %15878 = vst [vmem:[#allocation70_spill] sm:$0xff] %v14252_v25  ;;  %v6351_v3 = vpack.c.bf16 %v14252_v25, %v14249_v48  ;;  %v6476_v33 = vpop.permute.xlu0 %6475  ;;  %v6322_v48 = vmul.f32 1.442695, %v6308_v51 }
0x1c8e   : > { %10339 = vmatprep.subr.msk.bf16.mxu0 %vm980_vm1, %v6476_v33  ;;  %v6496_v6 = vsel %vm980_vm1, %v6476_v33, 0  ;;  %v6324_v33 = vmul.f32 1.442695, %v6309_v2 }
0x1c8f   : > { %10092 = vmatmul.mubr.msk.bf16.vlgmr.msra.gmra.mrb[144].mxu0 %vm1070_vm2, %v6351_v3  ;;  %v6318_v3 = vmul.f32 1.442695, %v6306_v13 }
0x1c90   : > { %10100 = vmatpush3.bf16.xpose.msra.mxu0 %v6496_v6 }
0x1c91   : > { %10340 = vmatprep.subr.msk.bf16.mxu0 %vm980_vm1, %v6478_v5  ;;  %v6468_v62 = vpop.permute.xlu0 %6467  ;;  %10859 = vpow2.f32 %v6318_v3 }
0x1c92   : > { %10861 = vpow2.f32 %v6324_v33 }
0x1c95   : > { %v6472_v45 = vpop.permute.xlu0 %6471 }
0x1c98   : > { %10102 = vmatpush3.bf16.xpose.msra.mxu0 %v6499_v29 }
0x1c99   : > { %10341 = vmatprep.subr.msk.bf16.mxu0 %vm980_vm1, %v6480_v8  ;;  %v6649_v52 = vpop.permute.xlu0 %6648 }
0x1c9a   : > { %10115 = vmatprep.subr.bf16.mxu1 %v6649_v52 }
0x1c9b   : > { %10116 = vmatpush3.bf16.msra.mxu1 %v6649_v52  ;;  %v14268_v20 = vpop.eup %10859 }
0x1c9c   : > { %15879 = vst [vmem:[#allocation71_spill] sm:$0xff] %v14268_v20  ;;  %v14270_v32 = vpop.eup %10861 }
0x1c9d   : > { %15880 = vst [vmem:[#allocation72_spill] sm:$0xff] %v14270_v32 }
0x1ca0   : > { %10104 = vmatpush3.bf16.xpose.msra.mxu0 %v6502_v16 }
0x1cb1   : > { %v6295_v6 = vpop.xlane.xlu1 %6294 }
0x1cb2   : > { %v6307_v5 = vsub.f32 %v6267_v9, %v6295_v6 }
0x1cb4   : > { %v6320_v29 = vmul.f32 1.442695, %v6307_v5 }
0x1cb5   : > { %v6482_v46 = vpop.permute.xlu1 %6481 }
0x1cb6   : > { %10863 = vpow2.f32 %v6320_v29  ;;  %10342 = vmatprep.subr.msk.bf16.mxu0 %vm980_vm1, %v6482_v46  ;;  %v6505_v8 = vsel %vm980_vm1, %v6482_v46, 0 }
0x1cb7   : > { %10865 = vpow2.f32 %v6322_v48  ;;  %10106 = vmatpush3.bf16.xpose.msra.mxu0 %v6505_v8 }
0x1cb9   : > { %v6470_v4 = vpop.permute.xlu1 %6469 }
0x1cbd   : > { %v6474_v10 = vpop.permute.xlu1 %6473 }
0x1cc0   : > { %v14272_v57 = vpop.eup %10863 }
0x1cc1   : > { %15881 = vst [vmem:[#allocation73_spill] sm:$0xff] %v14272_v57  ;;  %v14274_v9 = vpop.eup %10865  ;;  %v6651_v14 = vpop.permute.xlu1 %6650  ;;  %v6352_v52 = vpack.c.bf16 %v14272_v57, %v14268_v20 }
0x1cc2   : > { %15882 = vst [vmem:[#allocation74_spill] sm:$0xff] %v14274_v9  ;;  %10117 = vmatprep.subr.bf16.mxu1 %v6651_v14  ;;  %v6353_v46 = vpack.c.bf16 %v14270_v32, %v14274_v9 }
0x1cc3   : > { %10095 = vmatprep.mubr.msk.bf16.mxu0 %vm1070_vm2, %v6352_v52  ;;  %10118 = vmatpush3.bf16.msra.mxu1 %v6651_v14 }
0x1cc4   : > { %10096 = vmatmul.mubr.msk.bf16.gmra.mrb[148].mxu0 %vm1070_vm2, %v6353_v46 }
0x1cc5   : > { %v6653_v48 = vpop.permute.xlu1 %6652  ;;  %10107 = vmatprep.mubr.msk.bf16.mxu0 %vm980_vm1, %v6468_v62 }
0x1cc6   : > { %10119 = vmatprep.subr.bf16.mxu1 %v6653_v48 }
0x1cc7   : > { %10120 = vmatpush3.bf16.msra.mxu1 %v6653_v48 }
0x1cc9   : > { %v6655_v16 = vpop.permute.xlu1 %6654 }
0x1cca   : > { %10121 = vmatprep.subr.bf16.mxu1 %v6655_v16 }
0x1ccb   : > { %10122 = vmatpush3.bf16.msra.mxu1 %v6655_v16 }
0x1ccc   : > { %10108 = vmatmul.mubr.msk.bf16.vlgmr.msra.gmra.mrb[152].mxu0 %vm980_vm1, %v6470_v4 }
0x1ccd   : > { %10111 = vmatprep.mubr.msk.bf16.mxu0 %vm980_vm1, %v6472_v45 }
0x1cd4   : > { %10112 = vmatmul.mubr.msk.bf16.gmra.mrb[156].mxu0 %vm980_vm1, %v6474_v10 }
0x1d62   : > { %v14286_v13 = vpop.f32.mrb[144].mxu0 }
0x1d63   : > { %15883 = vst [vmem:[#allocation75_spill] sm:$0xff] %v14286_v13  ;;  %v14288_v2 = vpop.f32.mrb[145].mxu0 }
0x1d64   : > { %15884 = vst [vmem:[#allocation76_spill] sm:$0xff] %v14288_v2  ;;  %v14290_v51 = vpop.f32.mrb[146].mxu0 }
0x1d65   : > { %15885 = vst [vmem:[#allocation77_spill] sm:$0xff] %v14290_v51  ;;  %v14292_v3 = vpop.f32.mrb[147].mxu0 }
0x1d66   : > { %15886 = vst [vmem:[#allocation78_spill] sm:$0xff] %v14292_v3 }
0x1d97   : > { %v14294_v62 = vpop.f32.mrb[148].mxu0 }
0x1d98   : > { %15887 = vst [vmem:[#allocation79_spill] sm:$0xff] %v14294_v62  ;;  %v14296_v33 = vpop.f32.mrb[149].mxu0 }
0x1d99   : > { %15888 = vst [vmem:[#allocation80_spill] sm:$0xff] %v14296_v33  ;;  %v14298_v6 = vpop.f32.mrb[150].mxu0 }
0x1d9a   : > { %15889 = vst [vmem:[#allocation81_spill] sm:$0xff] %v14298_v6  ;;  %v14300_v5 = vpop.f32.mrb[151].mxu0 }
0x1d9b   : > { %15890 = vst [vmem:[#allocation82_spill] sm:$0xff] %v14300_v5 }
0x1d9f   : > { %v10109_v29 = vpop.f32.mrb[152].mxu0 }
0x1da0   : > { %v6550_v45 = vadd.f32 %v14157_v47, %v10109_v29  ;;  %v6541_v8 = vpop.f32.mrb[153].mxu0 }
0x1da1   : > { %v10110_v4 = vpop.f32.mrb[154].mxu0  ;;  %v6542_v10 = vadd.f32 %v14163_v59, %v6541_v8 }
0x1da2   : > { %v6544_v14 = vpop.f32.mrb[155].mxu0  ;;  %v6578_v52 = vsel %vm1070_vm2, %v6550_v45, -inf  ;;  %v6553_v16 = vadd.f32 %v14177_v35, %v10110_v4 }
0x1da3   : > { %v6545_v46 = vadd.f32 %v14170_v49, %v6544_v14  ;;  %6579 = vmax.xlane.f32.xlu0 %v6578_v52  ;;  %v6572_v62 = vsel %vm1070_vm2, %v6542_v10, -inf }
0x1da4   : > { %v6581_v5 = vsel %vm1070_vm2, %v6553_v16, -inf }
0x1da5   : > { %v6575_v48 = vsel %vm1070_vm2, %v6545_v46, -inf }
0x1da6   : > { %6576 = vmax.xlane.f32.xlu1 %v6575_v48 }
0x1da7   : > { %6573 = vmax.xlane.f32.xlu0 %v6572_v62  ;;  %v10113_v33 = vpop.f32.mrb[156].mxu0 }
0x1da8   : > { %v6557_v29 = vpop.f32.mrb[157].mxu0  ;;  %v14310_v13 = vadd.f32 %v14184_v56, %v10113_v33 }
0x1da9   : > { %v10114_v6 = vpop.f32.mrb[158].mxu0  ;;  %v14314_v14 = vadd.f32 %v14193_v28, %v6557_v29 }
0x1daa   : > { %v6560_v8 = vpop.f32.mrb[159].mxu0  ;;  %v6590_v4 = vsel %vm1070_vm2, %v14310_v13, -inf  ;;  %v14319_v52 = vadd.f32 %v14203_v50, %v10114_v6 }
0x1dab   : > { %6582 = vmax.xlane.f32.xlu0 %v6581_v5  ;;  %v6584_v62 = vsel %vm1070_vm2, %v14314_v14, -inf  ;;  %v6561_v6 = vadd.f32 %v14227_v41, %v6560_v8 }
0x1dac   : > { %v6593_v33 = vsel %vm1070_vm2, %v14319_v52, -inf }
0x1dad   : > { %v6587_v5 = vsel %vm1070_vm2, %v6561_v6, -inf }
0x1daf   : > { %6591 = vmax.xlane.f32.xlu0 %v6590_v4 }
0x1db3   : > { %6585 = vmax.xlane.f32.xlu0 %v6584_v62 }
0x1db7   : > { %6803 = vrot.lane.b32.xlu1 %v13902_v60, %s15831_s20  ;;  %6594 = vmax.xlane.f32.xlu0 %v6593_v33 }
0x1dbb   : > { %6805 = vrot.lane.b32.xlu1 %v13912_v24, %s15831_s20 }
0x1dcd   : > { %6801 = vrot.lane.b32.xlu0 %v13904_v38, %s15831_s20 }
0x1dd1   : > { %6793 = vrot.lane.b32.xlu0 %v13904_v38, %s15832_s21 }
0x1dd5   : > { %6797 = vrot.lane.b32.xlu0 %v13912_v24, %s15832_s21 }
0x1dd9   : > { %6974 = vrot.lane.b32.xlu0 %v13904_v38, %s15834_s22 }
0x1ddf   : > { %6588 = vmax.xlane.f32.xlu1 %v6587_v5 }
0x1df0   : > { %6807 = vrot.lane.b32.xlu1 %v13910_v43, %s15831_s20  ;;  %s15938_s20 = smov 24  }
0x1df4   : > { %6795 = vrot.lane.b32.xlu1 %v13902_v60, %s15832_s21 }
0x1df8   : > { %6799 = vrot.lane.b32.xlu1 %v13910_v43, %s15832_s21 }
0x1dfc   : > { %6976 = vrot.lane.b32.xlu1 %v13902_v60, %s15834_s22 }
0x1e00   : > { %6978 = vrot.lane.b32.xlu1 %v13912_v24, %s15834_s22 }
0x1e04   : > { %6980 = vrot.lane.b32.xlu1 %v13910_v43, %s15834_s22 }
0x1e30   : > { %v6580_v48 = vpop.xlane.xlu0 %6579 }
0x1e31   : > { %v6598_v8 = vsub.f32 %v6550_v45, %v6580_v48 }
0x1e33   : > { %v6577_v29 = vpop.xlane.xlu1 %6576  ;;  %v6608_v51 = vmul.f32 1.442695, %v6598_v8 }
0x1e34   : > { %v6597_v4 = vsub.f32 %v6545_v46, %v6577_v29  ;;  %v6574_v62 = vpop.xlane.xlu0 %6573 }
0x1e35   : > { %v6596_v33 = vsub.f32 %v6542_v10, %v6574_v62 }
0x1e36   : > { %v6606_v5 = vmul.f32 1.442695, %v6597_v4 }
0x1e37   : > { %v6604_v2 = vmul.f32 1.442695, %v6596_v33 }
0x1e38   : > { %10867 = vpow2.f32 %v6606_v5  ;;  %v6583_v3 = vpop.xlane.xlu0 %6582 }
0x1e39   : > { %10869 = vpow2.f32 %v6604_v2  ;;  %v6599_v9 = vsub.f32 %v6553_v16, %v6583_v3 }
0x1e3a   : > { %10871 = vpow2.f32 %v6608_v51  ;;  %v6804_v51 = vpop.permute.xlu1 %6803 }
0x1e3b   : > { %v6610_v20 = vmul.f32 1.442695, %v6599_v9  ;;  %v6825_v29 = vsel %vm980_vm1, %v6804_v51, 0 }
0x1e3c   : > { %v6592_v32 = vpop.xlane.xlu0 %6591 }
0x1e3d   : > { %10873 = vpow2.f32 %v6610_v20 }
0x1e3e   : > { %v6806_v8 = vpop.permute.xlu1 %6805 }
0x1e3f   : > { %v6828_v62 = vsel %vm980_vm1, %v6806_v8, 0 }
0x1e40   : > { %v6586_v57 = vpop.xlane.xlu0 %6585 }
0x1e41   : > { %v6600_v33 = vsub.f32 %v14314_v14, %v6586_v57 }
0x1e42   : > { %v14351_v25 = vpop.eup %10867 }
0x1e43   : > { %v14353_v54 = vpop.eup %10869 }
0x1e44   : > { %v6595_v45 = vpop.xlane.xlu0 %6594  ;;  %v6644_v10 = vpack.c.bf16 %v14351_v25, %v14353_v54  ;;  %v14357_v46 = vpop.eup %10871 }
0x1e45   : > { %v6603_v5 = vsub.f32 %v14319_v52, %v6595_v45 }
0x1e46   : > { %10123 = vmatprep.mubr.msk.bf16.mxu1 %vm1070_vm2, %v6644_v10  ;;  %v6602_v10 = vsub.f32 %v14310_v13, %v6592_v32 }
0x1e47   : > { %v14360_v48 = vpop.eup %10873 }
0x1e48   : > { %v6645_v9 = vpack.c.bf16 %v14360_v48, %v14357_v46  ;;  %v6802_v2 = vpop.permute.xlu0 %6801  ;;  %v6616_v19 = vmul.f32 1.442695, %v6602_v10 }
0x1e49   : > { %10343 = vmatprep.subr.msk.bf16.mxu1 %vm980_vm1, %v6802_v2  ;;  %v6822_v20 = vsel %vm980_vm1, %v6802_v2, 0  ;;  %v6618_v2 = vmul.f32 1.442695, %v6603_v5 }
0x1e4a   : > { %10124 = vmatmul.mubr.msk.bf16.vlgmr.msra.gmra.mrb[136].mxu1 %vm1070_vm2, %v6645_v9  ;;  %v6612_v9 = vmul.f32 1.442695, %v6600_v33 }
0x1e4b   : > { %10132 = vmatpush3.bf16.xpose.msra.mxu1 %v6822_v20 }
0x1e4c   : > { %10344 = vmatprep.subr.msk.bf16.mxu1 %vm980_vm1, %v6804_v51  ;;  %v6794_v3 = vpop.permute.xlu0 %6793  ;;  %10875 = vpow2.f32 %v6612_v9 }
0x1e4d   : > { %10877 = vpow2.f32 %v6618_v2 }
0x1e50   : > { %v6798_v16 = vpop.permute.xlu0 %6797 }
0x1e53   : > { %10134 = vmatpush3.bf16.xpose.msra.mxu1 %v6825_v29 }
0x1e54   : > { %10345 = vmatprep.subr.msk.bf16.mxu1 %vm980_vm1, %v6806_v8  ;;  %v6975_v4 = vpop.permute.xlu0 %6974 }
0x1e55   : > { %10147 = vmatprep.subr.bf16.mxu0 %v6975_v4 }
0x1e56   : > { %10148 = vmatpush3.bf16.msra.mxu0 %v6975_v4  ;;  %v14376_v52 = vpop.eup %10875 }
0x1e57   : > { %15891 = vst [vmem:[#allocation83_spill] sm:$0xff] %v14376_v52  ;;  %v14378_v32 = vpop.eup %10877 }
0x1e58   : > { %15892 = vst [vmem:[#allocation84_spill] sm:$0xff] %v14378_v32 }
0x1e5b   : > { %10136 = vmatpush3.bf16.xpose.msra.mxu1 %v6828_v62 }
0x1e6c   : > { %v6589_v20 = vpop.xlane.xlu1 %6588 }
0x1e6d   : > { %v6601_v51 = vsub.f32 %v6561_v6, %v6589_v20 }
0x1e6f   : > { %v6614_v29 = vmul.f32 1.442695, %v6601_v51 }
0x1e70   : > { %v6808_v58 = vpop.permute.xlu1 %6807 }
0x1e71   : > { %10879 = vpow2.f32 %v6614_v29  ;;  %10346 = vmatprep.subr.msk.bf16.mxu1 %vm980_vm1, %v6808_v58  ;;  %v6831_v8 = vsel %vm980_vm1, %v6808_v58, 0 }
0x1e72   : > { %10881 = vpow2.f32 %v6616_v19  ;;  %10138 = vmatpush3.bf16.xpose.msra.mxu1 %v6831_v8 }
0x1e74   : > { %v6796_v57 = vpop.permute.xlu1 %6795 }
0x1e78   : > { %v6800_v14 = vpop.permute.xlu1 %6799 }
0x1e7b   : > { %v14380_v13 = vpop.eup %10879 }
0x1e7c   : > { %15893 = vst [vmem:[#allocation85_spill] sm:$0xff] %v14380_v13  ;;  %v14382_v6 = vpop.eup %10881  ;;  %v6977_v45 = vpop.permute.xlu1 %6976  ;;  %v6646_v4 = vpack.c.bf16 %v14380_v13, %v14376_v52 }
0x1e7d   : > { %15894 = vst [vmem:[#allocation86_spill] sm:$0xff] %v14382_v6  ;;  %10149 = vmatprep.subr.bf16.mxu0 %v6977_v45  ;;  %v6647_v58 = vpack.c.bf16 %v14378_v32, %v14382_v6 }
0x1e7e   : > { %10127 = vmatprep.mubr.msk.bf16.mxu1 %vm1070_vm2, %v6646_v4  ;;  %10150 = vmatpush3.bf16.msra.mxu0 %v6977_v45 }
0x1e7f   : > { %10128 = vmatmul.mubr.msk.bf16.gmra.mrb[140].mxu1 %vm1070_vm2, %v6647_v58 }
0x1e80   : > { %v6979_v19 = vpop.permute.xlu1 %6978  ;;  %10139 = vmatprep.mubr.msk.bf16.mxu1 %vm980_vm1, %v6794_v3 }
0x1e81   : > { %10151 = vmatprep.subr.bf16.mxu0 %v6979_v19 }
0x1e82   : > { %10152 = vmatpush3.bf16.msra.mxu0 %v6979_v19 }
0x1e84   : > { %v6981_v62 = vpop.permute.xlu1 %6980 }
0x1e85   : > { %10153 = vmatprep.subr.bf16.mxu0 %v6981_v62 }
0x1e86   : > { %10154 = vmatpush3.bf16.msra.mxu0 %v6981_v62 }
0x1e87   : > { %10140 = vmatmul.mubr.msk.bf16.vlgmr.msra.gmra.mrb[144].mxu1 %vm980_vm1, %v6796_v57 }
0x1e88   : > { %10143 = vmatprep.mubr.msk.bf16.mxu1 %vm980_vm1, %v6798_v16 }
0x1e8f   : > { %10144 = vmatmul.mubr.msk.bf16.gmra.mrb[148].mxu1 %vm980_vm1, %v6800_v14 }
0x1f1d   : > { %v14394_v33 = vpop.f32.mrb[136].mxu1 }
0x1f1e   : > { %15895 = vst [vmem:[#allocation87_spill] sm:$0xff] %v14394_v33  ;;  %v14396_v5 = vpop.f32.mrb[137].mxu1 }
0x1f1f   : > { %15896 = vst [vmem:[#allocation88_spill] sm:$0xff] %v14396_v5  ;;  %v14398_v10 = vpop.f32.mrb[138].mxu1 }
0x1f20   : > { %15897 = vst [vmem:[#allocation89_spill] sm:$0xff] %v14398_v10  ;;  %v14400_v9 = vpop.f32.mrb[139].mxu1 }
0x1f21   : > { %15898 = vst [vmem:[#allocation90_spill] sm:$0xff] %v14400_v9 }
0x1f52   : > { %v14402_v3 = vpop.f32.mrb[140].mxu1 }
0x1f53   : > { %15899 = vst [vmem:[#allocation91_spill] sm:$0xff] %v14402_v3  ;;  %v14404_v2 = vpop.f32.mrb[141].mxu1 }
0x1f54   : > { %15900 = vst [vmem:[#allocation92_spill] sm:$0xff] %v14404_v2  ;;  %v14406_v20 = vpop.f32.mrb[142].mxu1 }
0x1f55   : > { %15901 = vst [vmem:[#allocation93_spill] sm:$0xff] %v14406_v20  ;;  %v14408_v51 = vpop.f32.mrb[143].mxu1 }
0x1f56   : > { %15902 = vst [vmem:[#allocation94_spill] sm:$0xff] %v14408_v51 }
0x1f5a   : > { %v10141_v29 = vpop.f32.mrb[144].mxu1 }
0x1f5b   : > { %v6876_v16 = vadd.f32 %v14157_v47, %v10141_v29  ;;  %v6867_v8 = vpop.f32.mrb[145].mxu1 }
0x1f5c   : > { %v10142_v57 = vpop.f32.mrb[146].mxu1  ;;  %v6868_v14 = vadd.f32 %v14163_v59, %v6867_v8 }
0x1f5d   : > { %v6870_v45 = vpop.f32.mrb[147].mxu1  ;;  %v6904_v4 = vsel %vm1070_vm2, %v6876_v16, -inf  ;;  %v6879_v62 = vadd.f32 %v14177_v35, %v10142_v57 }
0x1f5e   : > { %v6871_v58 = vadd.f32 %v14170_v49, %v6870_v45  ;;  %6905 = vmax.xlane.f32.xlu0 %v6904_v4  ;;  %v6898_v20 = vsel %vm1070_vm2, %v6868_v14, -inf }
0x1f5f   : > { %v6907_v3 = vsel %vm1070_vm2, %v6879_v62, -inf }
0x1f60   : > { %v6901_v19 = vsel %vm1070_vm2, %v6871_v58, -inf }
0x1f61   : > { %6902 = vmax.xlane.f32.xlu1 %v6901_v19 }
0x1f62   : > { %6899 = vmax.xlane.f32.xlu0 %v6898_v20  ;;  %v10145_v51 = vpop.f32.mrb[148].mxu1 }
0x1f63   : > { %v6883_v29 = vpop.f32.mrb[149].mxu1  ;;  %v14418_v9 = vadd.f32 %v14184_v56, %v10145_v51 }
0x1f64   : > { %v10146_v10 = vpop.f32.mrb[150].mxu1  ;;  %v6884_v45 = vadd.f32 %v14193_v28, %v6883_v29 }
0x1f65   : > { %v6886_v8 = vpop.f32.mrb[151].mxu1  ;;  %v6916_v4 = vsel %vm1070_vm2, %v14418_v9, -inf  ;;  %v6895_v57 = vadd.f32 %v14203_v50, %v10146_v10 }
0x1f66   : > { %6908 = vmax.xlane.f32.xlu0 %v6907_v3  ;;  %v6910_v20 = vsel %vm1070_vm2, %v6884_v45, -inf  ;;  %v6887_v10 = vadd.f32 %v14227_v41, %v6886_v8 }
0x1f67   : > { %v6919_v19 = vsel %vm1070_vm2, %v6895_v57, -inf }
0x1f68   : > { %v6913_v3 = vsel %vm1070_vm2, %v6887_v10, -inf }
0x1f6a   : > { %6917 = vmax.xlane.f32.xlu0 %v6916_v4 }
0x1f6e   : > { %6911 = vmax.xlane.f32.xlu0 %v6910_v20 }
0x1f72   : > { %7129 = vrot.lane.b32.xlu1 %v13902_v60, %s15723_s25  ;;  %6920 = vmax.xlane.f32.xlu0 %v6919_v19 }
0x1f76   : > { %7131 = vrot.lane.b32.xlu1 %v13912_v24, %s15723_s25 }
0x1f88   : > { %7127 = vrot.lane.b32.xlu0 %v13904_v38, %s15723_s25 }
0x1f8c   : > { %7119 = vrot.lane.b32.xlu0 %v13904_v38, %s15724_s26 }
0x1f90   : > { %7123 = vrot.lane.b32.xlu0 %v13912_v24, %s15724_s26 }
0x1f9a   : > { %6914 = vmax.xlane.f32.xlu1 %v6913_v3 }
0x1fab   : > { %7133 = vrot.lane.b32.xlu1 %v13910_v43, %s15723_s25  ;;  %s15927_s25 = smov 8  }
0x1faf   : > { %7121 = vrot.lane.b32.xlu1 %v13902_v60, %s15724_s26 }
0x1fb3   : > { %7125 = vrot.lane.b32.xlu1 %v13910_v43, %s15724_s26 }
0x1feb   : > { %v6906_v51 = vpop.xlane.xlu0 %6905 }
0x1fec   : > { %v6924_v4 = vsub.f32 %v6876_v16, %v6906_v51 }
0x1fee   : > { %v6903_v29 = vpop.xlane.xlu1 %6902  ;;  %v6934_v5 = vmul.f32 1.442695, %v6924_v4 }
0x1fef   : > { %v6923_v20 = vsub.f32 %v6871_v58, %v6903_v29  ;;  %v6900_v19 = vpop.xlane.xlu0 %6899 }
0x1ff0   : > { %v6922_v2 = vsub.f32 %v6868_v14, %v6900_v19 }
0x1ff1   : > { %v6932_v33 = vmul.f32 1.442695, %v6923_v20 }
0x1ff2   : > { %v6930_v8 = vmul.f32 1.442695, %v6922_v2  ;;  %v7130_v2 = vpop.permute.xlu1 %7129 }
0x1ff3   : > { %10883 = vpow2.f32 %v6932_v33  ;;  %v6909_v3 = vpop.xlane.xlu0 %6908 }
0x1ff4   : > { %10885 = vpow2.f32 %v6930_v8  ;;  %v6925_v30 = vsub.f32 %v6879_v62, %v6909_v3  ;;  %v7151_v62 = vsel %vm980_vm1, %v7130_v2, 0 }
0x1ff5   : > { %10887 = vpow2.f32 %v6934_v5 }
0x1ff6   : > { %v6936_v1 = vmul.f32 1.442695, %v6925_v30  ;;  %v7132_v51 = vpop.permute.xlu1 %7131 }
0x1ff7   : > { %v6918_v6 = vpop.xlane.xlu0 %6917  ;;  %v7154_v29 = vsel %vm980_vm1, %v7132_v51, 0 }
0x1ff8   : > { %10889 = vpow2.f32 %v6936_v1  ;;  %v6928_v19 = vsub.f32 %v14418_v9, %v6918_v6 }
0x1ffb   : > { %v6912_v52 = vpop.xlane.xlu0 %6911 }
0x1ffc   : > { %v6926_v4 = vsub.f32 %v6884_v45, %v6912_v52 }
0x1ffd   : > { %v14445_v32 = vpop.eup %10883 }
0x1ffe   : > { %v14447_v13 = vpop.eup %10885  ;;  %v6938_v8 = vmul.f32 1.442695, %v6926_v4 }
0x1fff   : > { %v6921_v16 = vpop.xlane.xlu0 %6920  ;;  %v6970_v14 = vpack.c.bf16 %v14445_v32, %v14447_v13  ;;  %v14451_v58 = vpop.eup %10887 }
0x2000   : > { %v6929_v20 = vsub.f32 %v6895_v57, %v6921_v16  ;;  %10891 = vpow2.f32 %v6938_v8 }
0x2001   : > { %10155 = vmatprep.mubr.msk.bf16.mxu0 %vm1070_vm2, %v6970_v14 }
0x2002   : > { %v14454_v33 = vpop.eup %10889  ;;  %v6944_v3 = vmul.f32 1.442695, %v6929_v20 }
0x2003   : > { %v6971_v30 = vpack.c.bf16 %v14454_v33, %v14451_v58  ;;  %v7128_v5 = vpop.permute.xlu0 %7127 }
0x2004   : > { %10347 = vmatprep.subr.msk.bf16.mxu0 %vm980_vm1, %v7128_v5  ;;  %v7148_v1 = vsel %vm980_vm1, %v7128_v5, 0  ;;  %v6942_v5 = vmul.f32 1.442695, %v6928_v19  ;;  %10893 = vpow2.f32 %v6944_v3 }
0x2005   : > { %10156 = vmatmul.mubr.msk.bf16.vlgmr.msra.gmra.mrb[160].mxu0 %vm1070_vm2, %v6971_v30 }
0x2006   : > { %10164 = vmatpush3.bf16.xpose.msra.mxu0 %v7148_v1 }
0x2007   : > { %10348 = vmatprep.subr.msk.bf16.mxu0 %vm980_vm1, %v7130_v2  ;;  %v7120_v16 = vpop.permute.xlu0 %7119 }
0x200a   : > { %v14468_v52 = vpop.eup %10891 }
0x200e   : > { %10166 = vmatpush3.bf16.xpose.msra.mxu0 %v7151_v62  ;;  %v14470_v45 = vpop.eup %10893 }
0x200f   : > { %10349 = vmatprep.subr.msk.bf16.mxu0 %vm980_vm1, %v7132_v51 }
0x2016   : > { %10168 = vmatpush3.bf16.xpose.msra.mxu0 %v7154_v29  ;;  %v7124_v29 = vpop.permute.xlu0 %7123 }
0x2027   : > { %v6915_v14 = vpop.xlane.xlu1 %6914 }
0x2028   : > { %v6927_v30 = vsub.f32 %v6887_v10, %v6915_v14 }
0x202a   : > { %v6940_v1 = vmul.f32 1.442695, %v6927_v30 }
0x202b   : > { %v7134_v2 = vpop.permute.xlu1 %7133 }
0x202c   : > { %10895 = vpow2.f32 %v6940_v1  ;;  %10350 = vmatprep.subr.msk.bf16.mxu0 %vm980_vm1, %v7134_v2  ;;  %v7157_v62 = vsel %vm980_vm1, %v7134_v2, 0 }
0x202d   : > { %10897 = vpow2.f32 %v6942_v5  ;;  %10170 = vmatpush3.bf16.xpose.msra.mxu0 %v7157_v62 }
0x202f   : > { %v7122_v51 = vpop.permute.xlu1 %7121 }
0x2033   : > { %v7126_v4 = vpop.permute.xlu1 %7125 }
0x2036   : > { %v14472_v6 = vpop.eup %10895 }
0x2037   : > { %v14474_v9 = vpop.eup %10897  ;;  %v6972_v57 = vpack.c.bf16 %v14472_v6, %v14468_v52 }
0x2038   : > { %v6973_v10 = vpack.c.bf16 %v14470_v45, %v14474_v9 }
0x2039   : > { %10159 = vmatprep.mubr.msk.bf16.mxu0 %vm1070_vm2, %v6972_v57 }
0x203a   : > { %10160 = vmatmul.mubr.msk.bf16.gmra.mrb[164].mxu0 %vm1070_vm2, %v6973_v10 }
0x203b   : > { %10171 = vmatprep.mubr.msk.bf16.mxu0 %vm980_vm1, %v7120_v16 }
0x2042   : > { %10172 = vmatmul.mubr.msk.bf16.vlgmr.msra.gmra.mrb[168].mxu0 %vm980_vm1, %v7122_v51 }
0x2043   : > { %10175 = vmatprep.mubr.msk.bf16.mxu0 %vm980_vm1, %v7124_v29 }
0x204a   : > { %10176 = vmatmul.mubr.msk.bf16.gmra.mrb[172].mxu0 %vm980_vm1, %v7126_v4 }
0x20d8   : > { %v14486_v20 = vpop.f32.mrb[160].mxu0 }
0x20d9   : > { %v14488_v19 = vpop.f32.mrb[161].mxu0 }
0x20da   : > { %v14490_v8 = vpop.f32.mrb[162].mxu0 }
0x20db   : > { %v14492_v3 = vpop.f32.mrb[163].mxu0 }
0x210d   : > { %v14494_v14 = vpop.f32.mrb[164].mxu0 }
0x210e   : > { %15903 = vst [vmem:[#allocation95_spill] sm:$0xff] %v14494_v14  ;;  %v14496_v30 = vpop.f32.mrb[165].mxu0 }
0x210f   : > { %v14498_v5 = vpop.f32.mrb[166].mxu0 }
0x2110   : > { %15904 = vst [vmem:[#allocation96_spill] sm:$0xff] %v14498_v5  ;;  %v14500_v1 = vpop.f32.mrb[167].mxu0 }
0x2111   : > { %15905 = vst [vmem:[#allocation97_spill] sm:$0xff] %v14500_v1 }
0x2115   : > { %v10173_v2 = vpop.f32.mrb[168].mxu0 }
0x2116   : > { %v14503_v62 = vadd.f32 %v14157_v47, %v10173_v2  ;;  %v7193_v57 = vpop.f32.mrb[169].mxu0 }
0x2117   : > { %v10174_v10 = vpop.f32.mrb[170].mxu0  ;;  %v14506_v16 = vadd.f32 %v14163_v59, %v7193_v57 }
0x2118   : > { %v7196_v51 = vpop.f32.mrb[171].mxu0  ;;  %v7230_v29 = vsel %vm1070_vm2, %v14503_v62, -inf  ;;  %v14516_v14 = vadd.f32 %v14177_v35, %v10174_v10  ;;  %v6012_v10 = vsel %vm1070_vm2, %v14116_v63, 0.0  ;;  %v6949_v63 = vsel %vm1070_vm2, %v14445_v32, 0.0 }
0x2119   : > { %v14511_v4 = vadd.f32 %v14170_v49, %v7196_v51  ;;  %7231 = vmax.xlane.f32.xlu0 %v7230_v29  ;;  %v7224_v47 = vsel %vm1070_vm2, %v14506_v16, -inf  ;;  %v6952_v32 = vsel %vm1070_vm2, %v14451_v58, 0.0  ;;  %v6967_v58 = vsel %vm1070_vm2, %v14470_v45, 0.0 }
0x211a   : > { %v7233_v51 = vsel %vm1070_vm2, %v14516_v14, -inf  ;;  %v6964_v45 = vsel %vm1070_vm2, %v14474_v9, 0.0  ;;  %v15914_v9 = vld [vmem:[#allocation43_spill] sm:$0xff] }
0x211b   : > { %v7227_v5 = vsel %vm1070_vm2, %v14511_v4, -inf }
0x211c   : > { %7228 = vmax.xlane.f32.xlu1 %v7227_v5 }
0x211d   : > { %7225 = vmax.xlane.f32.xlu0 %v7224_v47  ;;  %v10177_v59 = vpop.f32.mrb[172].mxu0  ;;  %v15906_v47 = vld [vmem:[#allocation85_spill] sm:$0xff] }
0x211e   : > { %v7209_v2 = vpop.f32.mrb[173].mxu0  ;;  %v14521_v1 = vadd.f32 %v14184_v56, %v10177_v59  ;;  %v5351_v56 = vsel %vm1070_vm2, %v13848_v15, 0.0  ;;  %v6003_v15 = vsel %vm1070_vm2, %v14092_v55, 0.0  ;;  %v6000_v55 = vsel %vm1070_vm2, %v14094_v17, 0.0  ;;  %v15907_v59 = vld [vmem:[#allocation84_spill] sm:$0xff] }
0x211f   : > { %v10178_v57 = vpop.f32.mrb[174].mxu0  ;;  %v14526_v29 = vadd.f32 %v14193_v28, %v7209_v2  ;;  %v5677_v28 = vsel %vm1070_vm2, %v13995_v40, 0.0  ;;  %v5674_v40 = vsel %vm1070_vm2, %v13997_v21, 0.0  ;;  %v5689_v21 = vsel %vm1070_vm2, %v14024_v53, 0.0  ;;  %v15908_v2 = vld [vmem:[#allocation83_spill] sm:$0xff] }
0x2120   : > { %v7212_v49 = vpop.f32.mrb[175].mxu0  ;;  %v7242_v35 = vsel %vm1070_vm2, %v14521_v1, -inf }
0x2121   : > { %7234 = vmax.xlane.f32.xlu0 %v7233_v51  ;;  %v7236_v5 = vsel %vm1070_vm2, %v14526_v29, -inf  ;;  %v14578_v17 = vadd.f32 %v14227_v41, %v7212_v49  ;;  %v5692_v41 = vsel %vm1070_vm2, %v14026_v22, 0.0  ;;  %v6629_v22 = vsel %vm1070_vm2, %v14360_v48, 0.0 }
0x2122   : > { %v6946_v48 = vsel %vm1070_vm2, %v14447_v13, 0.0  ;;  %v6961_v13 = vsel %vm1070_vm2, %v14472_v6, 0.0 }
0x2125   : > { %7243 = vmax.xlane.f32.xlu0 %v7242_v35 }
0x2129   : > { %7237 = vmax.xlane.f32.xlu0 %v7236_v5  ;;  %v6958_v5 = vsel %vm1070_vm2, %v14468_v52, 0.0  ;;  %v15911_v52 = vld [vmem:[#allocation35_spill] sm:$0xff] }
0x212d   : > { %7302 = vrot.lane.b32.xlu1 %v13902_v60, %s15725_s16  ;;  %v5348_v60 = vsel %vm1070_vm2, %v13851_v12, 0.0  ;;  %v6009_v12 = vsel %vm1070_vm2, %v14101_v31, 0.0  ;;  %v14571_v31 = vadd.f32 %v14203_v50, %v10178_v57  ;;  %v7239_v50 = vsel %vm1070_vm2, %v14578_v17, -inf  ;;  %v15909_v57 = vld [vmem:[#allocation86_spill] sm:$0xff] }
0x212e   : > { %v6638_v49 = vsel %vm1070_vm2, %v15909_v57, 0.0 }
0x212f   : > { %v7245_v53 = vsel %vm1070_vm2, %v14571_v31, -inf }
0x2131   : > { %7304 = vrot.lane.b32.xlu1 %v13912_v24, %s15725_s16  ;;  %v5683_v24 = vsel %vm1070_vm2, %v14004_v37, 0.0  ;;  %v5680_v37 = vsel %vm1070_vm2, %v14001_v11, 0.0  ;;  %v5695_v11 = vsel %vm1070_vm2, %v14022_v42, 0.0  ;;  %v5686_v42 = vsel %vm1070_vm2, %v14020_v27, 0.0 }
0x2132   : > { %v6623_v27 = vsel %vm1070_vm2, %v14351_v25, 0.0  ;;  %v6626_v25 = vsel %vm1070_vm2, %v14357_v46, 0.0  ;;  %v6641_v46 = vsel %vm1070_vm2, %v15907_v59, 0.0  ;;  %v15922_v59 = vld [vmem:[#allocation69_spill] sm:$0xff] }
0x2135   : > { %7306 = vrot.lane.b32.xlu1 %v13910_v43, %s15725_s16  ;;  %v5354_v43 = vsel %vm1070_vm2, %v13858_v36, 0.0  ;;  %v5363_v36 = vsel %vm1070_vm2, %v13884_v0, 0.0  ;;  %v6006_v0 = vsel %vm1070_vm2, %v14098_v18, 0.0  ;;  %v5366_v18 = vsel %vm1070_vm2, %v13886_v23, 0.0 }
0x2136   : > { %v6021_v23 = vsel %vm1070_vm2, %v14118_v7, 0.0  ;;  %v6620_v7 = vsel %vm1070_vm2, %v14353_v54, 0.0  ;;  %v6635_v54 = vsel %vm1070_vm2, %v15906_v47, 0.0 }
0x213f   : > { %7300 = vrot.lane.b32.xlu0 %v13904_v38, %s15725_s16  ;;  %v5357_v38 = vsel %vm1070_vm2, %v13861_v39, 0.0  ;;  %v5369_v39 = vsel %vm1070_vm2, %v13882_v61, 0.0  ;;  %v5360_v61 = vsel %vm1070_vm2, %v13880_v34, 0.0  ;;  %v6015_v34 = vsel %vm1070_vm2, %v14120_v26, 0.0 }
0x2140   : > { %v6018_v26 = vsel %vm1070_vm2, %v14122_v44, 0.0  ;;  %v6955_v44 = vsel %vm1070_vm2, %v14454_v33, 0.0  ;;  %v6632_v33 = vsel %vm1070_vm2, %v15908_v2, 0.0 }
0x2159   : > { %5352 = vadd.xlane.f32.xlu1 %v5351_v56 }
0x215d   : > { %5678 = vadd.xlane.f32.xlu1 %v5677_v28 }
0x215e   : > { %5349 = vadd.xlane.f32.xlu0 %v5348_v60 }
0x2161   : > { %5684 = vadd.xlane.f32.xlu1 %v5683_v24  ;;  %v15910_v24 = vld [vmem:[#allocation34_spill] sm:$0xff] }
0x2162   : > { %5355 = vadd.xlane.f32.xlu0 %v5354_v43  ;;  %v5057_v43 = vsel %vm1070_vm2, %v15910_v24, 0.0 }
0x2165   : > { %6004 = vadd.xlane.f32.xlu1 %v6003_v15 }
0x2166   : > { %5358 = vadd.xlane.f32.xlu0 %v5357_v38 }
0x2169   : > { %6010 = vadd.xlane.f32.xlu1 %v6009_v12  ;;  %v15912_v12 = vld [vmem:[#allocation40_spill] sm:$0xff] }
0x216a   : > { %5675 = vadd.xlane.f32.xlu0 %v5674_v40 }
0x216d   : > { %5364 = vadd.xlane.f32.xlu1 %v5363_v36 }
0x216e   : > { %5681 = vadd.xlane.f32.xlu0 %v5680_v37  ;;  %v15913_v37 = vld [vmem:[#allocation61_spill] sm:$0xff] }
0x2171   : > { %5370 = vadd.xlane.f32.xlu1 %v5369_v39  ;;  %v5069_v39 = vsel %vm1070_vm2, %v15913_v37, 0.0 }
0x2172   : > { %6001 = vadd.xlane.f32.xlu0 %v6000_v55  ;;  %v5060_v55 = vsel %vm1070_vm2, %v15914_v9, 0.0 }
0x2175   : > { %5690 = vadd.xlane.f32.xlu1 %v5689_v21 }
0x2176   : > { %6007 = vadd.xlane.f32.xlu0 %v6006_v0 }
0x2179   : > { %5696 = vadd.xlane.f32.xlu1 %v5695_v11 }
0x217a   : > { %5361 = vadd.xlane.f32.xlu0 %v5360_v61 }
0x217d   : > { %7246 = vmax.xlane.f32.xlu1 %v7245_v53 }
0x217e   : > { %5367 = vadd.xlane.f32.xlu0 %v5366_v18  ;;  %v15915_v18 = vld [vmem:[#allocation3_spill] sm:$0xff] }
0x2181   : > { %7240 = vmax.xlane.f32.xlu1 %v7239_v50  ;;  %v5075_v50 = vsel %vm1070_vm2, %v15915_v18, 0.0 }
0x2182   : > { %5687 = vadd.xlane.f32.xlu0 %v5686_v42  ;;  %v15916_v42 = vld [vmem:[#allocation42_spill] sm:$0xff] }
0x2185   : > { %6016 = vadd.xlane.f32.xlu1 %v6015_v34  ;;  %v5066_v34 = vsel %vm1070_vm2, %v15916_v42, 0.0  ;;  %v15930_v42 = vld [vmem:[#allocation11_spill] sm:$0xff] }
0x2186   : > { %5693 = vadd.xlane.f32.xlu0 %v5692_v41 }
0x2189   : > { %6022 = vadd.xlane.f32.xlu1 %v6021_v23 }
0x218a   : > { %6013 = vadd.xlane.f32.xlu0 %v6012_v10  ;;  %v15917_v10 = vld [vmem:[#allocation67_spill] sm:$0xff] }
0x218d   : > { %6624 = vadd.xlane.f32.xlu1 %v6623_v27  ;;  %v6329_v27 = vsel %vm1070_vm2, %v15917_v10, 0.0 }
0x218e   : > { %6019 = vadd.xlane.f32.xlu0 %v6018_v26  ;;  %v15918_v26 = vld [vmem:[#allocation60_spill] sm:$0xff] }
0x2191   : > { %6630 = vadd.xlane.f32.xlu1 %v6629_v22  ;;  %v5072_v22 = vsel %vm1070_vm2, %v15918_v26, 0.0 }
0x2192   : > { %6621 = vadd.xlane.f32.xlu0 %v6620_v7 }
0x2195   : > { %6950 = vadd.xlane.f32.xlu1 %v6949_v63  ;;  %v15919_v63 = vld [vmem:[#allocation70_spill] sm:$0xff] }
0x2196   : > { %6627 = vadd.xlane.f32.xlu0 %v6626_v25  ;;  %v6335_v25 = vsel %vm1070_vm2, %v15919_v63, 0.0 }
0x2199   : > { %6956 = vadd.xlane.f32.xlu1 %v6955_v44  ;;  %v15920_v44 = vld [vmem:[#allocation68_spill] sm:$0xff] }
0x219a   : > { %6947 = vadd.xlane.f32.xlu0 %v6946_v48  ;;  %v6326_v48 = vsel %vm1070_vm2, %v15920_v44, 0.0 }
0x219d   : > { %6636 = vadd.xlane.f32.xlu1 %v6635_v54  ;;  %v15921_v54 = vld [vmem:[#allocation73_spill] sm:$0xff] }
0x219e   : > { %6953 = vadd.xlane.f32.xlu0 %v6952_v32  ;;  %v6341_v32 = vsel %vm1070_vm2, %v15921_v54, 0.0  ;;  %v15934_v54 = vld [vmem:[#allocation54_spill] sm:$0xff] }
0x21a1   : > { %6642 = vadd.xlane.f32.xlu1 %v6641_v46  ;;  %v6332_v46 = vsel %vm1070_vm2, %v15922_v59, 0.0  ;;  %v15935_v59 = vld [vmem:[#allocation53_spill] sm:$0xff] }
0x21a2   : > { %6633 = vadd.xlane.f32.xlu0 %v6632_v33 }
0x21a5   : > { %6962 = vadd.xlane.f32.xlu1 %v6961_v13  ;;  %v15923_v13 = vld [vmem:[#allocation72_spill] sm:$0xff] }
0x21a6   : > { %6639 = vadd.xlane.f32.xlu0 %v6638_v49  ;;  %v7232_v51 = vpop.xlane.xlu0 %7231  ;;  %v6347_v57 = vsel %vm1070_vm2, %v15923_v13, 0.0 }
0x21a7   : > { %v7250_v21 = vsub.f32 %v14503_v62, %v7232_v51  ;;  %v15924_v51 = vld [vmem:[#allocation71_spill] sm:$0xff] }
0x21a9   : > { %v7229_v35 = vpop.xlane.xlu1 %7228  ;;  %6968 = vadd.xlane.f32.xlu1 %v6967_v58  ;;  %v7260_v41 = vmul.f32 1.442695, %v7250_v21  ;;  %v6338_v58 = vsel %vm1070_vm2, %v15924_v51, 0.0  ;;  %v15929_v21 = vld [vmem:[#allocation4_spill] sm:$0xff] }
0x21aa   : > { %v7249_v56 = vsub.f32 %v14511_v4, %v7229_v35  ;;  %6959 = vadd.xlane.f32.xlu0 %v6958_v5  ;;  %v7226_v28 = vpop.xlane.xlu0 %7225  ;;  %v5063_v4 = vsel %vm1070_vm2, %v15911_v52, 0.0  ;;  %v15925_v35 = vld [vmem:[#allocation74_spill] sm:$0xff] }
0x21ab   : > { %v7248_v6 = vsub.f32 %v14506_v16, %v7226_v28  ;;  %v5054_v16 = vsel %vm1070_vm2, %v15912_v12, 0.0  ;;  %v6344_v5 = vsel %vm1070_vm2, %v15925_v35, 0.0 }
0x21ac   : > { %v7258_v60 = vmul.f32 1.442695, %v7249_v56 }
0x21ad   : > { %v7256_v15 = vmul.f32 1.442695, %v7248_v6  ;;  %5058 = vadd.xlane.f32.xlu1 %v5057_v43  ;;  %v7303_v61 = vpop.permute.xlu1 %7302 }
0x21ae   : > { %10899 = vpow2.f32 %v7258_v60  ;;  %6965 = vadd.xlane.f32.xlu0 %v6964_v45  ;;  %v7235_v38 = vpop.xlane.xlu0 %7234  ;;  %v15926_v45 = vld [vmem:[#allocation8_spill] sm:$0xff] }
0x21af   : > { %10901 = vpow2.f32 %v7256_v15  ;;  %v7251_v36 = vsub.f32 %v14516_v14, %v7235_v38 }
0x21b1   : > { %5064 = vadd.xlane.f32.xlu1 %v5063_v4  ;;  %v7262_v53 = vmul.f32 1.442695, %v7251_v36  ;;  %v7305_v7 = vpop.permute.xlu1 %7304  ;;  %v15928_v36 = vld [vmem:[#allocation62_spill] sm:$0xff] }
0x21b2   : > { %5055 = vadd.xlane.f32.xlu0 %v5054_v16  ;;  %v14638_v40 = vpop.xlane.xlu0 %7243 }
0x21b3   : > { %10903 = vpow2.f32 %v7262_v53 }
0x21b4   : > { %10905 = vpow2.f32 %v7260_v41 }
0x21b5   : > { %5070 = vadd.xlane.f32.xlu1 %v5069_v39  ;;  %v7307_v47 = vpop.permute.xlu1 %7306 }
0x21b6   : > { %5061 = vadd.xlane.f32.xlu0 %v5060_v55  ;;  %v14646_v0 = vpop.xlane.xlu0 %7237 }
0x21b8   : > { %v14648_v11 = vpop.eup %10899 }
0x21b9   : > { %v14652_v14 = vpop.eup %10901  ;;  %5076 = vadd.xlane.f32.xlu1 %v5075_v50 }
0x21ba   : > { %5067 = vadd.xlane.f32.xlu0 %v5066_v34  ;;  %v7301_v23 = vpop.permute.xlu0 %7300  ;;  %v7296_v62 = vpack.c.bf16 %v14648_v11, %v14652_v14 }
0x21bb   : > { %10179 = vmatprep.subr.bf16.mxu1 %v7301_v23 }
0x21bc   : > { %10180 = vmatpush3.bf16.msra.mxu1 %v7301_v23  ;;  %10187 = vmatprep.mubr.msk.bf16.mxu1 %vm1070_vm2, %v7296_v62 }
0x21bd   : > { %6330 = vadd.xlane.f32.xlu1 %v6329_v27  ;;  %10181 = vmatprep.subr.bf16.mxu1 %v7303_v61  ;;  %v14671_v2 = vpop.eup %10903  ;;  %v15931_v27 = vld [vmem:[#allocation52_spill] sm:$0xff] }
0x21be   : > { %5073 = vadd.xlane.f32.xlu0 %v5072_v22  ;;  %v14673_v33 = vpop.eup %10905  ;;  %v15932_v22 = vld [vmem:[#allocation20_spill] sm:$0xff] }
0x21bf   : > { %v7297_v49 = vpack.c.bf16 %v14671_v2, %v14673_v33 }
0x21c0   : > { %10182 = vmatpush3.bf16.msra.mxu1 %v7303_v61 }
0x21c1   : > { %6336 = vadd.xlane.f32.xlu1 %v6335_v25  ;;  %10183 = vmatprep.subr.bf16.mxu1 %v7305_v7  ;;  %v10389_v25 = vld [vmem:[%s15548_s6 + $0x10] sm:$0xff]  }
0x21c2   : > { %6327 = vadd.xlane.f32.xlu0 %v6326_v48 }
0x21c4   : > { %10184 = vmatpush3.bf16.msra.mxu1 %v7305_v7 }
0x21c5   : > { %6342 = vadd.xlane.f32.xlu1 %v6341_v32  ;;  %10185 = vmatprep.subr.bf16.mxu1 %v7307_v47 }
0x21c6   : > { %6333 = vadd.xlane.f32.xlu0 %v6332_v46 }
0x21c8   : > { %10186 = vmatpush3.bf16.msra.mxu1 %v7307_v47 }
0x21c9   : > { %6348 = vadd.xlane.f32.xlu1 %v6347_v57  ;;  %10195 = vmatprep.subr.bf16.mxu1 %v10389_v25  ;;  %v10390_v57 = vld [vmem:[%s15548_s6 + $0x18] sm:$0xff]  }
0x21ca   : > { %6339 = vadd.xlane.f32.xlu0 %v6338_v58 }
0x21cb   : > { %10188 = vmatmul.mubr.msk.bf16.vlgmr.msra.gmra.mrb[152].mxu1 %vm1070_vm2, %v7297_v49  ;;  %v7252_v49 = vsub.f32 %v14526_v29, %v14646_v0  ;;  %v7254_v29 = vsub.f32 %v14521_v1, %v14638_v40 }
0x21cc   : > { %10196 = vmatpush3.bf16.msra.mxu1 %v10389_v25 }
0x21cd   : > { %10197 = vmatprep.subr.bf16.mxu1 %v10390_v57  ;;  %v7264_v0 = vmul.f32 1.442695, %v7252_v49 }
0x21ce   : > { %6345 = vadd.xlane.f32.xlu0 %v6344_v5 }
0x21d0   : > { %10198 = vmatpush3.bf16.msra.mxu1 %v10390_v57 }
0x21e6   : > { %v5353_v56 = vpop.xlane.xlu1 %5352 }
0x21e7   : > { %10907 = vrcp.f32 %v5353_v56  ;;  %v15936_v56 = vld [vmem:[#allocation7_spill] sm:$0xff] }
0x21ea   : > { %v5679_v28 = vpop.xlane.xlu1 %5678 }
0x21eb   : > { %v5350_v6 = vpop.xlane.xlu0 %5349 }
0x21ec   : > { %10909 = vrcp.f32 %v5350_v6  ;;  %v15937_v6 = vld [vmem:[#allocation37_spill] sm:$0xff] }
0x21ee   : > { %v5685_v60 = vpop.xlane.xlu1 %5684 }
0x21ef   : > { %v5356_v24 = vpop.xlane.xlu0 %5355 }
0x21f0   : > { %10911 = vrcp.f32 %v5356_v24 }
0x21f1   : > { %v10908_v43 = vpop.eup %10907 }
0x21f2   : > { %v6005_v15 = vpop.xlane.xlu1 %6004  ;;  %v5474_v38 = vmul.f32 %v10908_v43, %v15926_v45 }
0x21f3   : > { %v5359_v52 = vpop.xlane.xlu0 %5358 }
0x21f4   : > { %10913 = vrcp.f32 %v5359_v52  ;;  %5491 = vrot.lane.b32.xlu1 %v5474_v38, %s15927_s25  ;;  %v15939_v52 = vld [vmem:[#allocation36_spill] sm:$0xff] }
0x21f5   : > { %10915 = vrcp.f32 %v5679_v28 }
0x21f6   : > { %v10910_v4 = vpop.eup %10909  ;;  %v6011_v12 = vpop.xlane.xlu1 %6010 }
0x21f7   : > { %v5676_v16 = vpop.xlane.xlu0 %5675  ;;  %v5473_v37 = vmul.f32 %v10910_v4, %v15928_v36 }
0x21f8   : > { %10917 = vrcp.f32 %v5676_v16 }
0x21f9   : > { %5489 = vrot.lane.b32.xlu0 %v5473_v37, %s15927_s25  ;;  %10919 = vrcp.f32 %v5685_v60  ;;  %v7268_v37 = vmul.f32 1.442695, %v7254_v29 }
0x21fa   : > { %v10912_v39 = vpop.eup %10911  ;;  %v5365_v9 = vpop.xlane.xlu1 %5364 }
0x21fb   : > { %v5682_v55 = vpop.xlane.xlu0 %5681  ;;  %v5475_v61 = vmul.f32 %v10912_v39, %v15929_v21  ;;  %v15942_v21 = vld [vmem:[#allocation9_spill] sm:$0xff] }
0x21fc   : > { %10921 = vrcp.f32 %v5682_v55 }
0x21fd   : > { %5493 = vrot.lane.b32.xlu1 %v5475_v61, %s15927_s25  ;;  %10923 = vrcp.f32 %v6005_v15 }
0x21fe   : > { %v10914_v53 = vpop.eup %10913  ;;  %v5371_v18 = vpop.xlane.xlu1 %5370 }
0x21ff   : > { %v6002_v50 = vpop.xlane.xlu0 %6001  ;;  %v5476_v34 = vmul.f32 %v10914_v53, %v15930_v42  ;;  %v10916_v41 = vpop.eup %10915 }
0x2200   : > { %10925 = vrcp.f32 %v6002_v50  ;;  %v5800_v26 = vmul.f32 %v10916_v41, %v15931_v27 }
0x2201   : > { %5495 = vrot.lane.b32.xlu1 %v5476_v34, %s15927_s25  ;;  %10927 = vrcp.f32 %v6011_v12  ;;  %v15940_v12 = vld [vmem:[#allocation28_spill] sm:$0xff]  ;;  %v15943_v34 = vld [vmem:[#allocation21_spill] sm:$0xff] }
0x2202   : > { %v10918_v23 = vpop.eup %10917  ;;  %v5691_v62 = vpop.xlane.xlu1 %5690 }
0x2203   : > { %v6008_v10 = vpop.xlane.xlu0 %6007  ;;  %v5799_v7 = vmul.f32 %v10918_v23, %v15932_v22  ;;  %v10920_v63 = vpop.eup %10919  ;;  %v15944_v23 = vld [vmem:[#allocation10_spill] sm:$0xff] }
0x2204   : > { %10929 = vrcp.f32 %v6008_v10  ;;  %v5802_v32 = vmul.f32 %v10920_v63, %v15934_v54  ;;  %v15945_v63 = vld [vmem:[#allocation56_spill] sm:$0xff] }
0x2205   : > { %5817 = vrot.lane.b32.xlu1 %v5800_v26, %s15933_s30  ;;  %5815 = vrot.lane.b32.xlu0 %v5799_v7, %s15933_s30  ;;  %10931 = vrcp.f32 %v5365_v9  ;;  %v15941_v9 = vld [vmem:[#allocation55_spill] sm:$0xff] }
0x2206   : > { %v10922_v44 = vpop.eup %10921  ;;  %v14699_v48 = vpop.xlane.xlu1 %5696 }
0x2207   : > { %v5362_v47 = vpop.xlane.xlu0 %5361  ;;  %v5801_v46 = vmul.f32 %v10922_v44, %v15935_v59  ;;  %v10924_v13 = vpop.eup %10923  ;;  %v15946_v44 = vld [vmem:[#allocation57_spill] sm:$0xff] }
0x2208   : > { %10933 = vrcp.f32 %v5362_v47  ;;  %v6126_v28 = vmul.f32 %v10924_v13, %v15936_v56 }
0x2209   : > { %5821 = vrot.lane.b32.xlu1 %v5802_v32, %s15933_s30  ;;  %5819 = vrot.lane.b32.xlu0 %v5801_v46, %s15933_s30  ;;  %10935 = vrcp.f32 %v5371_v18 }
0x220a   : > { %v10926_v51 = vpop.eup %10925  ;;  %v7247_v58 = vpop.xlane.xlu1 %7246 }
0x220b   : > { %v7255_v35 = vsub.f32 %v14571_v31, %v7247_v58  ;;  %v5368_v5 = vpop.xlane.xlu0 %5367  ;;  %v6125_v60 = vmul.f32 %v10926_v51, %v15937_v6  ;;  %v10928_v24 = vpop.eup %10927 }
0x220c   : > { %10937 = vrcp.f32 %v5368_v5  ;;  %v6128_v4 = vmul.f32 %v10928_v24, %v15939_v52 }
0x220d   : > { %6143 = vrot.lane.b32.xlu1 %v6126_v28, %s15938_s20  ;;  %6141 = vrot.lane.b32.xlu0 %v6125_v60, %s15938_s20  ;;  %10939 = vrcp.f32 %v5691_v62  ;;  %v7270_v15 = vmul.f32 1.442695, %v7255_v35 }
0x220e   : > { %v10930_v43 = vpop.eup %10929  ;;  %v7241_v31 = vpop.xlane.xlu1 %7240 }
0x220f   : > { %v7253_v45 = vsub.f32 %v14578_v17, %v7241_v31  ;;  %v5688_v38 = vpop.xlane.xlu0 %5687  ;;  %v6127_v16 = vmul.f32 %v10930_v43, %v15940_v12  ;;  %v10932_v36 = vpop.eup %10931  ;;  %v7281_v12 = vsel %vm1070_vm2, %v14671_v2, 0.0 }
0x2210   : > { %10941 = vrcp.f32 %v5688_v38  ;;  %v5478_v55 = vmul.f32 %v10932_v36, %v15941_v9 }
0x2211   : > { %10943 = vpow2.f32 %v7264_v0  ;;  %v7266_v1 = vmul.f32 1.442695, %v7253_v45  ;;  %6147 = vrot.lane.b32.xlu1 %v6128_v4, %s15938_s20  ;;  %6145 = vrot.lane.b32.xlu0 %v6127_v16, %s15938_s20  ;;  %v7278_v45 = vsel %vm1070_vm2, %v14673_v33, 0.0  ;;  %v7272_v4 = vsel %vm1070_vm2, %v14652_v14, 0.0 }
0x2212   : > { %v10934_v40 = vpop.eup %10933  ;;  %10945 = vpow2.f32 %v7270_v15  ;;  %v14722_v39 = vpop.xlane.xlu1 %6016  ;;  %v7275_v33 = vsel %vm1070_vm2, %v14648_v11, 0.0 }
0x2213   : > { %10947 = vpow2.f32 %v7266_v1  ;;  %v14724_v17 = vpop.xlane.xlu0 %5693  ;;  %v5477_v61 = vmul.f32 %v10934_v40, %v15942_v21  ;;  %v10936_v53 = vpop.eup %10935  ;;  %v15947_v40 = vld [vmem:[#allocation46_spill] sm:$0xff] }
0x2214   : > { %10949 = vpow2.f32 %v7268_v37  ;;  %v5480_v41 = vmul.f32 %v10936_v53, %v15943_v34 }
0x2215   : > { %5499 = vrot.lane.b32.xlu1 %v5478_v55, %s15927_s25  ;;  %5497 = vrot.lane.b32.xlu0 %v5477_v61, %s15927_s25 }
0x2216   : > { %v10938_v18 = vpop.eup %10937  ;;  %v14730_v50 = vpop.xlane.xlu1 %6022 }
0x2217   : > { %v14732_v42 = vpop.xlane.xlu0 %6013  ;;  %v5479_v62 = vmul.f32 %v10938_v18, %v15944_v23  ;;  %v10940_v10 = vpop.eup %10939  ;;  %v15948_v18 = vld [vmem:[#allocation47_spill] sm:$0xff] }
0x2218   : > { %v5804_v25 = vmul.f32 %v10940_v10, %v15945_v63 }
0x2219   : > { %5503 = vrot.lane.b32.xlu1 %v5480_v41, %s15927_s25  ;;  %5501 = vrot.lane.b32.xlu0 %v5479_v62, %s15927_s25  ;;  %v15949_v41 = vld [vmem:[#allocation45_spill] sm:$0xff] }
0x221a   : > { %v10942_v27 = vpop.eup %10941  ;;  %v14738_v26 = vpop.xlane.xlu1 %6624 }
0x221b   : > { %v10944_v22 = vpop.eup %10943  ;;  %v14740_v7 = vpop.xlane.xlu0 %6019  ;;  %v5803_v47 = vmul.f32 %v10942_v27, %v15946_v44  ;;  %v15950_v27 = vld [vmem:[#allocation51_spill] sm:$0xff] }
0x221c   : > { %v14744_v54 = vpop.eup %10945  ;;  %v7284_v55 = vsel %vm1070_vm2, %v10944_v22, 0.0 }
0x221d   : > { %v14746_v32 = vpop.eup %10947  ;;  %5825 = vrot.lane.b32.xlu1 %v5804_v25, %s15933_s30  ;;  %5823 = vrot.lane.b32.xlu0 %v5803_v47, %s15933_s30  ;;  %v15951_v25 = vld [vmem:[#allocation44_spill] sm:$0xff] }
0x221e   : > { %v10950_v59 = vpop.eup %10949  ;;  %v14750_v46 = vpop.xlane.xlu1 %6630  ;;  %v7298_v13 = vpack.c.bf16 %v14746_v32, %v10944_v22 }
0x221f   : > { %v14753_v57 = vpop.xlane.xlu0 %6621  ;;  %v7299_v49 = vpack.c.bf16 %v14744_v54, %v10950_v59  ;;  %v7290_v37 = vsel %vm1070_vm2, %v10950_v59, 0.0 }
0x2220   : > { %10191 = vmatprep.mubr.msk.bf16.mxu1 %vm1070_vm2, %v7298_v13 }
0x2221   : > { %10192 = vmatmul.mubr.msk.bf16.gmra.mrb[156].mxu1 %vm1070_vm2, %v7299_v49 }
0x2222   : > { %v14758_v51 = vpop.xlane.xlu1 %6950 }
0x2223   : > { %v14760_v58 = vpop.xlane.xlu0 %6627 }
0x2226   : > { %v14762_v35 = vpop.xlane.xlu1 %6956 }
0x2227   : > { %v14764_v5 = vpop.xlane.xlu0 %6947 }
0x222a   : > { %v14766_v56 = vpop.xlane.xlu1 %6636 }
0x222b   : > { %v14768_v28 = vpop.xlane.xlu0 %6953 }
0x222e   : > { %v14770_v6 = vpop.xlane.xlu1 %6642 }
0x222f   : > { %v14772_v60 = vpop.xlane.xlu0 %6633 }
0x2232   : > { %v14774_v24 = vpop.xlane.xlu1 %6962 }
0x2233   : > { %v14776_v29 = vpop.xlane.xlu0 %6639 }
0x2236   : > { %v14778_v0 = vpop.xlane.xlu1 %6968 }
0x2237   : > { %v14780_v43 = vpop.xlane.xlu0 %6959 }
0x223a   : > { %v5059_v15 = vpop.xlane.xlu1 %5058 }
0x223b   : > { %10951 = vrcp.f32 %v5059_v15  ;;  %v14782_v31 = vpop.xlane.xlu0 %6965  ;;  %v15952_v15 = vld [vmem:[#allocation49_spill] sm:$0xff] }
0x223c   : > { %7279 = vadd.xlane.f32.xlu0 %v7278_v45 }
0x223e   : > { %v5065_v38 = vpop.xlane.xlu1 %5064 }
0x223f   : > { %10953 = vrcp.f32 %v5065_v38  ;;  %v5056_v52 = vpop.xlane.xlu0 %5055  ;;  %v15953_v38 = vld [vmem:[#allocation48_spill] sm:$0xff] }
0x2240   : > { %10955 = vrcp.f32 %v5056_v52  ;;  %7273 = vadd.xlane.f32.xlu0 %v7272_v4  ;;  %v15954_v4 = vld [vmem:[#allocation58_spill] sm:$0xff] }
0x2241   : > { %7282 = vadd.xlane.f32.xlu1 %v7281_v12 }
0x2242   : > { %v5071_v16 = vpop.xlane.xlu1 %5070 }
0x2243   : > { %10957 = vrcp.f32 %v5071_v16  ;;  %v5062_v36 = vpop.xlane.xlu0 %5061 }
0x2244   : > { %10959 = vrcp.f32 %v5062_v36  ;;  %7291 = vadd.xlane.f32.xlu0 %v7290_v37 }
0x2245   : > { %v10952_v1 = vpop.eup %10951  ;;  %7276 = vadd.xlane.f32.xlu1 %v7275_v33  ;;  %10961 = vrcp.f32 %v14699_v48 }
0x2246   : > { %v5077_v14 = vpop.xlane.xlu1 %5076  ;;  %v5180_v9 = vmul.f32 %v10952_v1, %v15947_v40 }
0x2247   : > { %10963 = vrcp.f32 %v5077_v14  ;;  %v5068_v2 = vpop.xlane.xlu0 %5067  ;;  %v15956_v14 = vld [vmem:[#allocation50_spill] sm:$0xff] }
0x2248   : > { %10965 = vrcp.f32 %v5068_v2  ;;  %7285 = vadd.xlane.f32.xlu0 %v7284_v55  ;;  %5188 = vst.msk [vmem:[#allocation2 + $0x8] sm:$0xff] %vm980_vm1, %v5180_v9 }
0x2249   : > { %v10954_v21 = vpop.eup %10953 }
0x224a   : > { %v10956_v61 = vpop.eup %10955  ;;  %v6331_v53 = vpop.xlane.xlu1 %6330  ;;  %v5182_v11 = vmul.f32 %v10954_v21, %v15948_v18  ;;  %v15957_v21 = vld [vmem:[#allocation77_spill] sm:$0xff] }
0x224b   : > { %10967 = vrcp.f32 %v6331_v53  ;;  %v5074_v34 = vpop.xlane.xlu0 %5073  ;;  %v5179_v48 = vmul.f32 %v10956_v61, %v15949_v41  ;;  %v15958_v53 = vld [vmem:[#allocation76_spill] sm:$0xff] }
0x224c   : > { %10969 = vrcp.f32 %v5074_v34  ;;  %5190 = vst.msk [vmem:[#allocation2 + $0x18] sm:$0xff] %vm980_vm1, %v5182_v11  ;;  %v15959_v34 = vld [vmem:[#allocation59_spill] sm:$0xff] }
0x224d   : > { %v10958_v23 = vpop.eup %10957  ;;  %5187 = vst.msk [vmem:[#allocation2] sm:$0xff] %vm980_vm1, %v5179_v48  ;;  %10971 = vrcp.f32 %v14724_v17 }
0x224e   : > { %v10960_v62 = vpop.eup %10959  ;;  %v6337_v10 = vpop.xlane.xlu1 %6336  ;;  %v5184_v22 = vmul.f32 %v10958_v23, %v15950_v27 }
0x224f   : > { %10973 = vrcp.f32 %v6337_v10  ;;  %v6328_v63 = vpop.xlane.xlu0 %6327  ;;  %v5181_v44 = vmul.f32 %v10960_v62, %v15951_v25  ;;  %v10962_v47 = vpop.eup %10961  ;;  %v15960_v62 = vld [vmem:[#allocation82_spill] sm:$0xff] }
0x2250   : > { %10975 = vrcp.f32 %v6328_v63  ;;  %5192 = vst.msk [vmem:[#allocation2 + $0x28] sm:$0xff] %vm980_vm1, %v5184_v22  ;;  %v5806_v12 = vmul.f32 %v10962_v47, %v15954_v4  ;;  %v15962_v63 = vld [vmem:[#allocation64_spill] sm:$0xff]  ;;  %v15966_v4 = vld [vmem:[#allocation79_spill] sm:$0xff] }
0x2251   : > { %v10964_v59 = vpop.eup %10963  ;;  %5189 = vst.msk [vmem:[#allocation2 + $0x10] sm:$0xff] %vm980_vm1, %v5181_v44  ;;  %10977 = vrcp.f32 %v14732_v42  ;;  %v15955_v42 = vld [vmem:[#allocation78_spill] sm:$0xff] }
0x2252   : > { %v10966_v13 = vpop.eup %10965  ;;  %v6343_v49 = vpop.xlane.xlu1 %6342  ;;  %v5186_v17 = vmul.f32 %v10964_v59, %v15952_v15  ;;  %v15963_v59 = vld [vmem:[#allocation81_spill] sm:$0xff] }
0x2253   : > { %10979 = vrcp.f32 %v6343_v49  ;;  %v6334_v45 = vpop.xlane.xlu0 %6333  ;;  %v5183_v52 = vmul.f32 %v10966_v13, %v15953_v38  ;;  %v15964_v49 = vld [vmem:[#allocation80_spill] sm:$0xff] }
0x2254   : > { %10981 = vrcp.f32 %v6334_v45  ;;  %5194 = vst.msk [vmem:[#allocation2 + $0x38] sm:$0xff] %vm980_vm1, %v5186_v17 }
0x2255   : > { %v10968_v16 = vpop.eup %10967  ;;  %5191 = vst.msk [vmem:[#allocation2 + $0x20] sm:$0xff] %vm980_vm1, %v5183_v52  ;;  %10983 = vrcp.f32 %v14740_v7 }
0x2256   : > { %v10970_v36 = vpop.eup %10969  ;;  %v6349_v37 = vpop.xlane.xlu1 %6348  ;;  %5829 = vrot.lane.b32.xlu1 %v5806_v12, %s15933_s30  ;;  %v6452_v33 = vmul.f32 %v10968_v16, %v15955_v42  ;;  %v15968_v42 = vld [vmem:[#allocation87_spill] sm:$0xff] }
0x2257   : > { %10985 = vrcp.f32 %v6349_v37  ;;  %v6340_v1 = vpop.xlane.xlu0 %6339  ;;  %v5185_v40 = vmul.f32 %v10970_v36, %v15956_v14  ;;  %v10972_v9 = vpop.eup %10971 }
0x2258   : > { %10987 = vrcp.f32 %v6340_v1  ;;  %6460 = vst.msk [vmem:[#allocation2 + $0x48] sm:$0xff] %vm980_vm1, %v6452_v33  ;;  %v5805_v41 = vmul.f32 %v10972_v9, %v15959_v34  ;;  %v7287_v34 = vsel %vm1070_vm2, %v14746_v32, 0.0 }
0x2259   : > { %v10974_v2 = vpop.eup %10973  ;;  %5193 = vst.msk [vmem:[#allocation2 + $0x30] sm:$0xff] %vm980_vm1, %v5185_v40  ;;  %10989 = vrcp.f32 %v14753_v57  ;;  %v15961_v57 = vld [vmem:[#allocation75_spill] sm:$0xff] }
0x225a   : > { %v10976_v55 = vpop.eup %10975  ;;  %v6454_v61 = vmul.f32 %v10974_v2, %v15957_v21 }
0x225b   : > { %v6346_v7 = vpop.xlane.xlu0 %6345  ;;  %v6451_v18 = vmul.f32 %v10976_v55, %v15958_v53  ;;  %v10978_v11 = vpop.eup %10977  ;;  %v15970_v53 = vld [vmem:[#allocation91_spill] sm:$0xff] }
0x225c   : > { %10991 = vrcp.f32 %v6346_v7  ;;  %6462 = vst.msk [vmem:[#allocation2 + $0x58] sm:$0xff] %vm980_vm1, %v6454_v61  ;;  %v6129_v25 = vmul.f32 %v10978_v11, %v15962_v63 }
0x225d   : > { %v10980_v48 = vpop.eup %10979  ;;  %6459 = vst.msk [vmem:[#allocation2 + $0x40] sm:$0xff] %vm980_vm1, %v6451_v18  ;;  %10993 = vrcp.f32 %v14760_v58  ;;  %v15965_v58 = vld [vmem:[#allocation63_spill] sm:$0xff] }
0x225e   : > { %v10982_v23 = vpop.eup %10981  ;;  %5827 = vrot.lane.b32.xlu0 %v5805_v41, %s15933_s30  ;;  %v6456_v10 = vmul.f32 %v10980_v48, %v15960_v62  ;;  %10995 = vrcp.f32 %v14764_v5  ;;  %v15967_v5 = vld [vmem:[#allocation88_spill] sm:$0xff] }
0x225f   : > { %v6453_v27 = vmul.f32 %v10982_v23, %v15961_v57  ;;  %v10984_v22 = vpop.eup %10983  ;;  %10997 = vrcp.f32 %v14768_v28 }
0x2260   : > { %6464 = vst.msk [vmem:[#allocation2 + $0x68] sm:$0xff] %vm980_vm1, %v6456_v10  ;;  %v6131_v17 = vmul.f32 %v10984_v22, %v15965_v58  ;;  %10999 = vrcp.f32 %v14772_v60 }
0x2261   : > { %v10986_v44 = vpop.eup %10985  ;;  %6461 = vst.msk [vmem:[#allocation2 + $0x50] sm:$0xff] %vm980_vm1, %v6453_v27  ;;  %11001 = vrcp.f32 %v14776_v29 }
0x2262   : > { %v10988_v47 = vpop.eup %10987  ;;  %6149 = vrot.lane.b32.xlu0 %v6129_v25, %s15938_s20  ;;  %v6458_v13 = vmul.f32 %v10986_v44, %v15963_v59  ;;  %11003 = vrcp.f32 %v14780_v43  ;;  %v7293_v43 = vsel %vm1070_vm2, %v14744_v54, 0.0 }
0x2263   : > { %v6455_v15 = vmul.f32 %v10988_v47, %v15964_v49  ;;  %v10990_v45 = vpop.eup %10989  ;;  %11005 = vrcp.f32 %v14722_v39 }
0x2264   : > { %6466 = vst.msk [vmem:[#allocation2 + $0x78] sm:$0xff] %vm980_vm1, %v6458_v13  ;;  %v6745_v16 = vmul.f32 %v10990_v45, %v15967_v5  ;;  %11007 = vrcp.f32 %v14730_v50 }
0x2265   : > { %6463 = vst.msk [vmem:[#allocation2 + $0x60] sm:$0xff] %vm980_vm1, %v6455_v15  ;;  %11009 = vrcp.f32 %v14738_v26  ;;  %v15971_v26 = vld [vmem:[#allocation66_spill] sm:$0xff] }
0x2266   : > { %v10992_v38 = vpop.eup %10991  ;;  %v5492_v52 = vpop.permute.xlu1 %5491  ;;  %6153 = vrot.lane.b32.xlu0 %v6131_v17, %s15938_s20  ;;  %11011 = vrcp.f32 %v14750_v46  ;;  %v15972_v46 = vld [vmem:[#allocation65_spill] sm:$0xff]  ;;  %v15973_v17 = vld [vmem:[#allocation90_spill] sm:$0xff] }
0x2267   : > { %5514 = vst.msk [vmem:[#allocation2 + $0x8] sm:$0xff] %vm1578_vm3, %v5492_v52  ;;  %v6457_v12 = vmul.f32 %v10992_v38, %v15966_v4  ;;  %v10994_v36 = vpop.eup %10993  ;;  %11013 = vrcp.f32 %v14758_v51  ;;  %v15974_v52 = vld [vmem:[#allocation89_spill] sm:$0xff] }
0x2268   : > { %v6747_v33 = vmul.f32 %v10994_v36, %v15968_v42  ;;  %v10996_v1 = vpop.eup %10995  ;;  %11015 = vrcp.f32 %v14762_v35 }
0x2269   : > { %6465 = vst.msk [vmem:[#allocation2 + $0x70] sm:$0xff] %vm980_vm1, %v6457_v12  ;;  %v7071_v14 = vmul.f32 %v10996_v1, %v14488_v19  ;;  %v10998_v40 = vpop.eup %10997  ;;  %v15969_v19 = vld [vmem:[#allocation92_spill] sm:$0xff]  ;;  %11017 = vrcp.f32 %v14766_v56 }
0x226a   : > { %6761 = vrot.lane.b32.xlu0 %v6745_v16, %s15927_s25  ;;  %v7073_v9 = vmul.f32 %v10998_v40, %v14486_v20  ;;  %v11000_v2 = vpop.eup %10999  ;;  %11019 = vrcp.f32 %v14770_v6  ;;  %v15977_v40 = vld [vmem:[#allocation97_spill] sm:$0xff] }
0x226b   : > { %v5490_v37 = vpop.permute.xlu0 %5489  ;;  %v6749_v21 = vmul.f32 %v11000_v2, %v15969_v19  ;;  %v11002_v61 = vpop.eup %11001  ;;  %11021 = vrcp.f32 %v14774_v24 }
0x226c   : > { %5513 = vst.msk [vmem:[#allocation2] sm:$0xff] %vm1578_vm3, %v5490_v37  ;;  %v6751_v18 = vmul.f32 %v11002_v61, %v15970_v53  ;;  %v11004_v11 = vpop.eup %11003 }
0x226d   : > { %v7075_v48 = vmul.f32 %v11004_v11, %v14496_v30  ;;  %v11006_v27 = vpop.eup %11005 }
0x226e   : > { %6765 = vrot.lane.b32.xlu0 %v6747_v33, %s15927_s25  ;;  %v6130_v47 = vmul.f32 %v11006_v27, %v15971_v26  ;;  %v11008_v59 = vpop.eup %11007  ;;  %v15975_v33 = vld [vmem:[#allocation94_spill] sm:$0xff] }
0x226f   : > { %v5494_v28 = vpop.permute.xlu1 %5493  ;;  %v6132_v15 = vmul.f32 %v11008_v59, %v15972_v46  ;;  %v11010_v58 = vpop.eup %11009 }
0x2270   : > { %5515 = vst.msk [vmem:[#allocation2 + $0x10] sm:$0xff] %vm1578_vm3, %v5494_v28  ;;  %v6746_v45 = vmul.f32 %v11010_v58, %v15973_v17  ;;  %v11012_v38 = vpop.eup %11011 }
0x2271   : > { %v6748_v51 = vmul.f32 %v11012_v38, %v15974_v52  ;;  %v11014_v4 = vpop.eup %11013 }
0x2272   : > { %7087 = vrot.lane.b32.xlu0 %v7071_v14, %s15933_s30  ;;  %v7072_v12 = vmul.f32 %v11014_v4, %v14492_v3  ;;  %v11016_v5 = vpop.eup %11015  ;;  %v15976_v3 = vld [vmem:[#allocation93_spill] sm:$0xff] }
0x2273   : > { %v5496_v60 = vpop.permute.xlu1 %5495  ;;  %v7074_v56 = vmul.f32 %v11016_v5, %v14490_v8  ;;  %v11018_v42 = vpop.eup %11017 }
0x2274   : > { %5516 = vst.msk [vmem:[#allocation2 + $0x18] sm:$0xff] %vm1578_vm3, %v5496_v60  ;;  %v6750_v1 = vmul.f32 %v11018_v42, %v15975_v33  ;;  %v11020_v28 = vpop.eup %11019 }
0x2275   : > { %v6752_v6 = vmul.f32 %v11020_v28, %v15976_v3  ;;  %v11022_v14 = vpop.eup %11021 }
0x2276   : > { %7091 = vrot.lane.b32.xlu0 %v7073_v9, %s15933_s30  ;;  %v7076_v60 = vmul.f32 %v11022_v14, %v15977_v40 }
0x2277   : > { %v5818_v55 = vpop.permute.xlu1 %5817  ;;  %v5816_v29 = vpop.permute.xlu0 %5815 }
0x2278   : > { %5840 = vst.msk [vmem:[#allocation2 + $0x8] sm:$0xff] %vm1905_vm4, %v5818_v55  ;;  %5839 = vst.msk [vmem:[#allocation2] sm:$0xff] %vm1905_vm4, %v5816_v29 }
0x227a   : > { %7294 = vadd.xlane.f32.xlu1 %v7293_v43  ;;  %6769 = vrot.lane.b32.xlu0 %v6749_v21, %s15927_s25 }
0x227b   : > { %v5822_v7 = vpop.permute.xlu1 %5821  ;;  %v5820_v20 = vpop.permute.xlu0 %5819 }
0x227c   : > { %5842 = vst.msk [vmem:[#allocation2 + $0x18] sm:$0xff] %vm1905_vm4, %v5822_v7  ;;  %5841 = vst.msk [vmem:[#allocation2 + $0x10] sm:$0xff] %vm1905_vm4, %v5820_v20 }
0x227e   : > { %7288 = vadd.xlane.f32.xlu1 %v7287_v34  ;;  %6773 = vrot.lane.b32.xlu0 %v6751_v18, %s15927_s25  ;;  %v15978_v34 = vld [vmem:[#allocation95_spill] sm:$0xff] }
0x227f   : > { %v6144_v41 = vpop.permute.xlu1 %6143  ;;  %v6142_v54 = vpop.permute.xlu0 %6141 }
0x2280   : > { %6166 = vst.msk [vmem:[#allocation2 + $0x8] sm:$0xff] %vm2232_vm5, %v6144_v41  ;;  %6165 = vst.msk [vmem:[#allocation2] sm:$0xff] %vm2232_vm5, %v6142_v54 }
0x2282   : > { %7095 = vrot.lane.b32.xlu0 %v7075_v48, %s15933_s30 }
0x2283   : > { %v6148_v23 = vpop.permute.xlu1 %6147  ;;  %v6146_v62 = vpop.permute.xlu0 %6145 }
0x2284   : > { %6168 = vst.msk [vmem:[#allocation2 + $0x18] sm:$0xff] %vm2232_vm5, %v6148_v23  ;;  %6167 = vst.msk [vmem:[#allocation2 + $0x10] sm:$0xff] %vm2232_vm5, %v6146_v62  ;;  %v15979_v62 = vld [vmem:[#allocation96_spill] sm:$0xff] }
0x2287   : > { %v5500_v32 = vpop.permute.xlu1 %5499  ;;  %v5498_v10 = vpop.permute.xlu0 %5497  ;;  %v7445_v57 = vld [vmem:[#allocation2] sm:$0xff]  ;;  %v7446_v39 = vld [vmem:[#allocation2 + $0x8] sm:$0xff] }
0x2288   : > { %5518 = vst.msk [vmem:[#allocation2 + $0x28] sm:$0xff] %vm1578_vm3, %v5500_v32  ;;  %5517 = vst.msk [vmem:[#allocation2 + $0x20] sm:$0xff] %vm1578_vm3, %v5498_v10  ;;  %v7466_v30 = vpack.c.bf16 %v7446_v39, %v7445_v57 }
0x228a   : > { %10199 = vmatprep.mubr.msk.bf16.mxu1 %vm552_vm0, %v7466_v30 }
0x228b   : > { %v5504_v22 = vpop.permute.xlu1 %5503  ;;  %v5502_v50 = vpop.permute.xlu0 %5501  ;;  %v7447_v63 = vld [vmem:[#allocation2 + $0x10] sm:$0xff]  ;;  %v7448_v25 = vld [vmem:[#allocation2 + $0x18] sm:$0xff] }
0x228c   : > { %5520 = vst.msk [vmem:[#allocation2 + $0x38] sm:$0xff] %vm1578_vm3, %v5504_v22  ;;  %5519 = vst.msk [vmem:[#allocation2 + $0x30] sm:$0xff] %vm1578_vm3, %v5502_v50  ;;  %v7467_v44 = vpack.c.bf16 %v7448_v25, %v7447_v63 }
0x228e   : > { %10200 = vmatmul.mubr.msk.bf16.vlgmr.msra.gmra.mrb[160].mxu1 %vm552_vm0, %v7467_v44 }
0x228f   : > { %6151 = vrot.lane.b32.xlu1 %v6130_v47, %s15938_s20  ;;  %v5826_v13 = vpop.permute.xlu1 %5825  ;;  %v5824_v49 = vpop.permute.xlu0 %5823 }
0x2290   : > { %5844 = vst.msk [vmem:[#allocation2 + $0x28] sm:$0xff] %vm1905_vm4, %v5826_v13  ;;  %5843 = vst.msk [vmem:[#allocation2 + $0x20] sm:$0xff] %vm1905_vm4, %v5824_v49 }
0x2293   : > { %6155 = vrot.lane.b32.xlu1 %v6132_v15, %s15938_s20 }
0x2297   : > { %6763 = vrot.lane.b32.xlu1 %v6746_v45, %s15927_s25 }
0x229b   : > { %6767 = vrot.lane.b32.xlu1 %v6748_v51, %s15927_s25 }
0x229e   : > { %v10189_v16 = vpop.f32.mrb[152].mxu1 }
0x229f   : > { %v7358_v36 = vpop.f32.mrb[153].mxu1  ;;  %7089 = vrot.lane.b32.xlu1 %v7072_v12, %s15933_s30 }
0x22a0   : > { %v10190_v35 = vpop.f32.mrb[154].mxu1 }
0x22a1   : > { %v7361_v37 = vpop.f32.mrb[155].mxu1 }
0x22a3   : > { %7093 = vrot.lane.b32.xlu1 %v7074_v56, %s15933_s30 }
0x22a7   : > { %6771 = vrot.lane.b32.xlu1 %v6750_v1, %s15927_s25 }
0x22ab   : > { %6775 = vrot.lane.b32.xlu1 %v6752_v6, %s15927_s25  ;;  %s15521_s25 = scalar_lea.vmem %s15556_s14, %s16004_s19 }
0x22af   : > { %7097 = vrot.lane.b32.xlu1 %v7076_v60, %s15933_s30 }
0x22c9   : > { %v7280_v24 = vpop.xlane.xlu0 %7279 }
0x22ca   : > { %11023 = vrcp.f32 %v7280_v24 }
0x22cd   : > { %v7274_v8 = vpop.xlane.xlu0 %7273 }
0x22ce   : > { %11025 = vrcp.f32 %v7274_v8  ;;  %v7283_v9 = vpop.xlane.xlu1 %7282 }
0x22cf   : > { %11027 = vrcp.f32 %v7283_v9 }
0x22d0   : > { %11029 = vrcp.f32 %v14782_v31 }
0x22d1   : > { %v7292_v2 = vpop.xlane.xlu0 %7291 }
0x22d2   : > { %v7277_v55 = vpop.xlane.xlu1 %7276 }
0x22d3   : > { %11031 = vrcp.f32 %v7277_v55 }
0x22d4   : > { %v11024_v29 = vpop.eup %11023  ;;  %11033 = vrcp.f32 %v14778_v0 }
0x22d5   : > { %v7286_v19 = vpop.xlane.xlu0 %7285  ;;  %v7399_v21 = vmul.f32 %v11024_v29, %v10189_v16 }
0x22d6   : > { %v5830_v61 = vpop.permute.xlu1 %5829  ;;  %11035 = vrcp.f32 %v7286_v19 }
0x22d7   : > { %5846 = vst.msk [vmem:[#allocation2 + $0x38] sm:$0xff] %vm1905_vm4, %v5830_v61  ;;  %7417 = vrot.lane.b32.xlu0 %v7399_v21, %s15938_s20  ;;  %11037 = vrcp.f32 %v7292_v2  ;;  %v14957_v61 = vld [vmem:[%s15549_s7 + $0x1] ss:$0 sm:$0xff] }
0x22d8   : > { %v11026_v43 = vpop.eup %11025 }
0x22d9   : > { %v11028_v7 = vpop.eup %11027  ;;  %v5828_v20 = vpop.permute.xlu0 %5827  ;;  %v7397_v53 = vmul.f32 %v11026_v43, %v7358_v36 }
0x22da   : > { %v11030_v18 = vpop.eup %11029  ;;  %5845 = vst.msk [vmem:[#allocation2 + $0x30] sm:$0xff] %vm1905_vm4, %v5828_v20  ;;  %v7400_v31 = vmul.f32 %v11028_v7, %v10190_v35  ;;  %v14960_v7 = vld [vmem:[%s11376_s27 + $0x8] sm:$0x3f]  ;;  %v15980_v20 = vld [vmem:[#allocation29_spill] sm:$0xff] }
0x22db   : > { %7413 = vrot.lane.b32.xlu0 %v7397_v53, %s15938_s20  ;;  %v7077_v41 = vmul.f32 %v11030_v18, %v15978_v34  ;;  %v7618_v53 = vrot.slane %v14960_v7, %v15980_v20 }
0x22dc   : > { %7419 = vrot.lane.b32.xlu1 %v7400_v31, %s15938_s20 }
0x22dd   : > { %v11032_v0 = vpop.eup %11031  ;;  %v6150_v11 = vpop.permute.xlu0 %6149 }
0x22de   : > { %6169 = vst.msk [vmem:[#allocation2 + $0x20] sm:$0xff] %vm2232_vm5, %v6150_v11  ;;  %v7398_v54 = vmul.f32 %v11032_v0, %v7361_v37  ;;  %v11034_v48 = vpop.eup %11033 }
0x22df   : > { %7099 = vrot.lane.b32.xlu0 %v7077_v41, %s15933_s30  ;;  %v7078_v32 = vmul.f32 %v11034_v48, %v15979_v62  ;;  %v15981_v62 = vld [vmem:[#allocation31_spill] sm:$0xff] }
0x22e0   : > { %7415 = vrot.lane.b32.xlu1 %v7398_v54, %s15938_s20  ;;  %v11036_v22 = vpop.eup %11035 }
0x22e1   : > { %v6154_v23 = vpop.permute.xlu0 %6153  ;;  %v11038_v47 = vpop.eup %11037 }
0x22e2   : > { %6171 = vst.msk [vmem:[#allocation2 + $0x30] sm:$0xff] %vm2232_vm5, %v6154_v23 }
0x22e4   : > { %7101 = vrot.lane.b32.xlu1 %v7078_v32, %s15933_s30 }
0x22e5   : > { %v6762_v10 = vpop.permute.xlu0 %6761  ;;  %v7449_v51 = vld [vmem:[#allocation2 + $0x20] sm:$0xff] }
0x22e6   : > { %6785 = vst.msk [vmem:[#allocation2 + $0x40] sm:$0xff] %vm1578_vm3, %v6762_v10 }
0x22e9   : > { %v6766_v57 = vpop.permute.xlu0 %6765  ;;  %v7451_v35 = vld [vmem:[#allocation2 + $0x30] sm:$0xff] }
0x22ea   : > { %6787 = vst.msk [vmem:[#allocation2 + $0x50] sm:$0xff] %vm1578_vm3, %v6766_v57  ;;  %v15982_v57 = vld [vmem:[#allocation30_spill] sm:$0xff] }
0x22ed   : > { %v7088_v39 = vpop.permute.xlu0 %7087 }
0x22ee   : > { %7111 = vst.msk [vmem:[#allocation2 + $0x40] sm:$0xff] %vm1905_vm4, %v7088_v39 }
0x22f1   : > { %v7092_v30 = vpop.permute.xlu0 %7091 }
0x22f2   : > { %7113 = vst.msk [vmem:[#allocation2 + $0x50] sm:$0xff] %vm1905_vm4, %v7092_v30 }
0x22f4   : > { %v10193_v27 = vpop.f32.mrb[156].mxu1 }
0x22f5   : > { %v7374_v50 = vpop.f32.mrb[157].mxu1  ;;  %v6770_v63 = vpop.permute.xlu0 %6769  ;;  %v7403_v13 = vmul.f32 %v11038_v47, %v10193_v27  ;;  %v15983_v27 = vld [vmem:[#allocation13_spill] sm:$0xff] }
0x22f6   : > { %v7401_v25 = vmul.f32 %v11036_v22, %v7374_v50  ;;  %6789 = vst.msk [vmem:[#allocation2 + $0x60] sm:$0xff] %vm1578_vm3, %v6770_v63  ;;  %v10194_v44 = vpop.f32.mrb[158].mxu1 }
0x22f7   : > { %v7377_v26 = vpop.f32.mrb[159].mxu1 }
0x22f8   : > { %7421 = vrot.lane.b32.xlu0 %v7401_v25, %s15938_s20 }
0x22f9   : > { %v6774_v59 = vpop.permute.xlu0 %6773 }
0x22fa   : > { %6791 = vst.msk [vmem:[#allocation2 + $0x70] sm:$0xff] %vm1578_vm3, %v6774_v59 }
0x22fc   : > { %7425 = vrot.lane.b32.xlu0 %v7403_v13, %s15938_s20 }
0x22fd   : > { %v7096_v49 = vpop.permute.xlu0 %7095 }
0x22fe   : > { %7115 = vst.msk [vmem:[#allocation2 + $0x60] sm:$0xff] %vm1905_vm4, %v7096_v49 }
0x2307   : > { %v7295_v46 = vpop.xlane.xlu1 %7294 }
0x230b   : > { %v7289_v15 = vpop.xlane.xlu1 %7288 }
0x230c   : > { %11039 = vrcp.f32 %v7289_v15 }
0x230d   : > { %11041 = vrcp.f32 %v7295_v46 }
0x230f   : > { %v6152_v58 = vpop.permute.xlu1 %6151 }
0x2310   : > { %6170 = vst.msk [vmem:[#allocation2 + $0x28] sm:$0xff] %vm2232_vm5, %v6152_v58 }
0x2313   : > { %v6156_v17 = vpop.permute.xlu1 %6155 }
0x2314   : > { %6172 = vst.msk [vmem:[#allocation2 + $0x38] sm:$0xff] %vm2232_vm5, %v6156_v17 }
0x2316   : > { %v11040_v45 = vpop.eup %11039 }
0x2317   : > { %v6764_v38 = vpop.permute.xlu1 %6763  ;;  %v7402_v52 = vmul.f32 %v11040_v45, %v7377_v26  ;;  %v7450_v4 = vld [vmem:[#allocation2 + $0x28] sm:$0xff]  ;;  %v11042_v12 = vpop.eup %11041 }
0x2318   : > { %6786 = vst.msk [vmem:[#allocation2 + $0x48] sm:$0xff] %vm1578_vm3, %v6764_v38  ;;  %v7468_v5 = vpack.c.bf16 %v7450_v4, %v7449_v51  ;;  %v7404_v36 = vmul.f32 %v11042_v12, %v10194_v44  ;;  %v15984_v44 = vld [vmem:[#allocation39_spill] sm:$0xff] }
0x2319   : > { %7423 = vrot.lane.b32.xlu1 %v7402_v52, %s15938_s20 }
0x231a   : > { %10203 = vmatprep.mubr.msk.bf16.mxu1 %vm552_vm0, %v7468_v5 }
0x231b   : > { %v6768_v16 = vpop.permute.xlu1 %6767  ;;  %v7452_v37 = vld [vmem:[#allocation2 + $0x38] sm:$0xff] }
0x231c   : > { %6788 = vst.msk [vmem:[#allocation2 + $0x58] sm:$0xff] %vm1578_vm3, %v6768_v16  ;;  %v7469_v56 = vpack.c.bf16 %v7452_v37, %v7451_v35 }
0x231d   : > { %7427 = vrot.lane.b32.xlu1 %v7404_v36, %s15938_s20  ;;  %s8949_s20 = sshll.u32 %s16006_s15, 1 }
0x231e   : > { %10204 = vmatmul.mubr.msk.bf16.gmra.mrb[164].mxu1 %vm552_vm0, %v7469_v56  ;;  %s15480_s24 = scalar_lea.vmem %s15545_s3, %s8949_s20 }
0x231f   : > { %v7090_v42 = vpop.permute.xlu1 %7089 }
0x2320   : > { %7112 = vst.msk [vmem:[#allocation2 + $0x48] sm:$0xff] %vm1905_vm4, %v7090_v42 }
0x2323   : > { %v7094_v33 = vpop.permute.xlu1 %7093 }
0x2324   : > { %7114 = vst.msk [vmem:[#allocation2 + $0x58] sm:$0xff] %vm1905_vm4, %v7094_v33  ;;  %v15985_v33 = vld [vmem:[#allocation12_spill] sm:$0xff] }
0x2327   : > { %v6772_v1 = vpop.permute.xlu1 %6771 }
0x2328   : > { %6790 = vst.msk [vmem:[#allocation2 + $0x68] sm:$0xff] %vm1578_vm3, %v6772_v1 }
0x232b   : > { %v6776_v28 = vpop.permute.xlu1 %6775 }
0x232c   : > { %6792 = vst.msk [vmem:[#allocation2 + $0x78] sm:$0xff] %vm1578_vm3, %v6776_v28 }
0x232f   : > { %v7098_v3 = vpop.permute.xlu1 %7097 }
0x2330   : > { %7116 = vst.msk [vmem:[#allocation2 + $0x68] sm:$0xff] %vm1905_vm4, %v7098_v3 }
0x2349   : > { %v7418_v6 = vpop.permute.xlu0 %7417 }
0x234a   : > { %7439 = vst.msk [vmem:[#allocation2 + $0x50] sm:$0xff] %vm2232_vm5, %v7418_v6  ;;  %v15986_v6 = vld [vmem:[#allocation38_spill] sm:$0xff] }
0x234d   : > { %v7414_v14 = vpop.permute.xlu0 %7413 }
0x234e   : > { %7437 = vst.msk [vmem:[#allocation2 + $0x40] sm:$0xff] %vm2232_vm5, %v7414_v14  ;;  %v7420_v40 = vpop.permute.xlu1 %7419 }
0x234f   : > { %7440 = vst.msk [vmem:[#allocation2 + $0x58] sm:$0xff] %vm2232_vm5, %v7420_v40  ;;  %v15987_v40 = vld [vmem:[#allocation27_spill] sm:$0xff] }
0x2351   : > { %v7100_v60 = vpop.permute.xlu0 %7099  ;;  %v7455_v19 = vld [vmem:[#allocation2 + $0x50] sm:$0xff] }
0x2352   : > { %7117 = vst.msk [vmem:[#allocation2 + $0x70] sm:$0xff] %vm1905_vm4, %v7100_v60  ;;  %v7416_v24 = vpop.permute.xlu1 %7415 }
0x2353   : > { %7438 = vst.msk [vmem:[#allocation2 + $0x48] sm:$0xff] %vm2232_vm5, %v7416_v24 }
0x2355   : > { %v7453_v2 = vld [vmem:[#allocation2 + $0x40] sm:$0xff] }
0x2356   : > { %v7102_v8 = vpop.permute.xlu1 %7101  ;;  %v7456_v9 = vld [vmem:[#allocation2 + $0x58] sm:$0xff] }
0x2357   : > { %7118 = vst.msk [vmem:[#allocation2 + $0x78] sm:$0xff] %vm1905_vm4, %v7102_v8  ;;  %v7471_v21 = vpack.c.bf16 %v7456_v9, %v7455_v19  ;;  %v15988_v8 = vld [vmem:[#allocation15_spill] sm:$0xff] }
0x235a   : > { %v7454_v55 = vld [vmem:[#allocation2 + $0x48] sm:$0xff] }
0x235b   : > { %v7470_v29 = vpack.c.bf16 %v7454_v55, %v7453_v2 }
0x235d   : > { %10207 = vmatprep.mubr.msk.bf16.mxu1 %vm552_vm0, %v7470_v29 }
0x235e   : > { %10208 = vmatmul.mubr.msk.bf16.gmra.mrb[168].mxu1 %vm552_vm0, %v7471_v21  ;;  %v15019_v21 = vld [vmem:[%s11376_s27 + $0x18] sm:$0x3f] }
0x2361   : > { %v10201_v43 = vpop.f32.mrb[160].mxu1 }
0x2362   : > { %v7561_v18 = vadd.f32 %v10201_v43, %v14957_v61  ;;  %v7552_v31 = vpop.f32.mrb[161].mxu1  ;;  %v7622_v43 = vrot.slane %v15019_v21, %v15980_v20 }
0x2363   : > { %v7553_v0 = vadd.f32 %v14957_v61, %v7552_v31  ;;  %v10202_v11 = vpop.f32.mrb[162].mxu1 }
0x2364   : > { %v7555_v34 = vpop.f32.mrb[163].mxu1  ;;  %v7625_v41 = vmul.f32 %v7618_v53, %v7561_v18  ;;  %v7564_v48 = vadd.f32 %v10202_v11, %v14957_v61 }
0x2365   : > { %v7623_v54 = vmul.f32 %v7618_v53, %v7553_v0  ;;  %v7556_v23 = vadd.f32 %v14957_v61, %v7555_v34 }
0x2366   : > { %v14972_v39 = vadd.f32 %v7625_v41, %v15982_v57  ;;  %v7626_v30 = vmul.f32 %v7618_v53, %v7564_v48 }
0x2367   : > { %v14969_v32 = vadd.f32 %v7623_v54, %v15981_v62  ;;  %v7624_v10 = vmul.f32 %v7618_v53, %v7556_v23  ;;  %v15989_v23 = vld [vmem:[#allocation19_spill] sm:$0xff] }
0x2368   : > { %v14983_v26 = vadd.f32 %v7626_v30, %v15984_v44  ;;  %v7661_v47 = vsel %vm552_vm0, %v14972_v39, 0.0  ;;  %v15990_v30 = vld [vmem:[#allocation16_spill] sm:$0xff] }
0x2369   : > { %v14975_v22 = vadd.f32 %v7624_v10, %v15983_v27  ;;  %v7655_v50 = vsel %vm552_vm0, %v14969_v32, 0.0  ;;  %v15991_v27 = vld [vmem:[#allocation17_spill] sm:$0xff] }
0x236a   : > { %7656 = vadd.xlane.f32.xlu0 %v7655_v50  ;;  %v7422_v63 = vpop.permute.xlu0 %7421  ;;  %v7664_v13 = vsel %vm552_vm0, %v14983_v26, 0.0 }
0x236b   : > { %7441 = vst.msk [vmem:[#allocation2 + $0x60] sm:$0xff] %vm2232_vm5, %v7422_v63  ;;  %v7658_v25 = vsel %vm552_vm0, %v14975_v22, 0.0 }
0x236c   : > { %7659 = vadd.xlane.f32.xlu1 %v7658_v25  ;;  %v15992_v25 = vld [vmem:[#allocation18_spill] sm:$0xff] }
0x236e   : > { %7662 = vadd.xlane.f32.xlu0 %v7661_v47  ;;  %v7426_v59 = vpop.permute.xlu0 %7425 }
0x236f   : > { %7443 = vst.msk [vmem:[#allocation2 + $0x70] sm:$0xff] %vm2232_vm5, %v7426_v59 }
0x2372   : > { %7665 = vadd.xlane.f32.xlu0 %v7664_v13  ;;  %v7457_v15 = vld [vmem:[#allocation2 + $0x60] sm:$0xff] }
0x2376   : > { %v7459_v45 = vld [vmem:[#allocation2 + $0x70] sm:$0xff] }
0x238b   : > { %v7424_v49 = vpop.permute.xlu1 %7423 }
0x238c   : > { %7442 = vst.msk [vmem:[#allocation2 + $0x68] sm:$0xff] %vm2232_vm5, %v7424_v49 }
0x238f   : > { %v7428_v46 = vpop.permute.xlu1 %7427 }
0x2390   : > { %7444 = vst.msk [vmem:[#allocation2 + $0x78] sm:$0xff] %vm2232_vm5, %v7428_v46 }
0x2393   : > { %v7458_v58 = vld [vmem:[#allocation2 + $0x68] sm:$0xff] }
0x2394   : > { %v7472_v17 = vpack.c.bf16 %v7458_v58, %v7457_v15 }
0x2396   : > { %10211 = vmatprep.mubr.msk.bf16.mxu1 %vm552_vm0, %v7472_v17 }
0x2397   : > { %v7460_v38 = vld [vmem:[#allocation2 + $0x78] sm:$0xff] }
0x2398   : > { %v7473_v52 = vpack.c.bf16 %v7460_v38, %v7459_v45 }
0x239a   : > { %10212 = vmatmul.mubr.msk.bf16.gmra.mrb[172].mxu1 %vm552_vm0, %v7473_v52 }
0x23f1   : > { %v10205_v51 = vpop.f32.mrb[164].mxu1 }
0x23f2   : > { %v7577_v4 = vadd.f32 %v10205_v51, %v14957_v61  ;;  %v7568_v12 = vpop.f32.mrb[165].mxu1 }
0x23f3   : > { %v7569_v5 = vadd.f32 %v14957_v61, %v7568_v12  ;;  %v10206_v16 = vpop.f32.mrb[166].mxu1 }
0x23f4   : > { %v7580_v36 = vadd.f32 %v10206_v16, %v14957_v61  ;;  %v7571_v35 = vpop.f32.mrb[167].mxu1  ;;  %v7629_v37 = vmul.f32 %v7618_v53, %v7577_v4 }
0x23f5   : > { %v7627_v56 = vmul.f32 %v7618_v53, %v7569_v5  ;;  %v7572_v42 = vadd.f32 %v14957_v61, %v7571_v35 }
0x23f6   : > { %v7630_v28 = vmul.f32 %v7618_v53, %v7580_v36  ;;  %v15002_v14 = vadd.f32 %v7629_v37, %v15986_v6 }
0x23f7   : > { %v14999_v1 = vadd.f32 %v7627_v56, %v15985_v33  ;;  %v7628_v3 = vmul.f32 %v7618_v53, %v7572_v42  ;;  %v7657_v49 = vpop.xlane.xlu0 %7656  ;;  %v15993_v56 = vld [vmem:[#allocation26_spill] sm:$0xff] }
0x23f8   : > { %v15010_v9 = vadd.f32 %v7630_v28, %v15988_v8  ;;  %v7673_v55 = vsel %vm552_vm0, %v15002_v14, 0.0  ;;  %v7703_v52 = vmul.f32 0.03125, %v7657_v49  ;;  %v15995_v8 = vld [vmem:[#allocation33_spill] sm:$0xff] }
0x23f9   : > { %v15005_v60 = vadd.f32 %v7628_v3, %v15987_v40  ;;  %v7667_v24 = vsel %vm552_vm0, %v14999_v1, 0.0  ;;  %v7660_v51 = vpop.xlane.xlu1 %7659  ;;  %v15994_v40 = vld [vmem:[#allocation24_spill] sm:$0xff] }
0x23fa   : > { %7668 = vadd.xlane.f32.xlu0 %v7667_v24  ;;  %v7676_v29 = vsel %vm552_vm0, %v15010_v9, 0.0  ;;  %v7704_v37 = vmul.f32 0.03125, %v7660_v51  ;;  %v15055_v28 = vsub.f32 %v14969_v32, %v7703_v52 }
0x23fb   : > { %v7670_v2 = vsel %vm552_vm0, %v15005_v60, 0.0  ;;  %v7663_v15 = vpop.xlane.xlu0 %7662 }
0x23fc   : > { %7671 = vadd.xlane.f32.xlu1 %v7670_v2  ;;  %v7705_v6 = vmul.f32 0.03125, %v7663_v15 }
0x23fe   : > { %7674 = vadd.xlane.f32.xlu0 %v7673_v55  ;;  %v15066_v55 = vsub.f32 %v14975_v22, %v7704_v37  ;;  %v10392_v37 = vld [vmem:[%s15550_s8 + $0x18] sm:$0xff]  }
0x23ff   : > { %v7666_v3 = vpop.xlane.xlu0 %7665 }
0x2400   : > { %7677 = vadd.xlane.f32.xlu1 %v7676_v29  ;;  %v7706_v29 = vmul.f32 0.03125, %v7666_v3 }
0x2431   : > { %v10209_v19 = vpop.f32.mrb[168].mxu1 }
0x2432   : > { %v7593_v53 = vadd.f32 %v10209_v19, %v14957_v61  ;;  %v7584_v18 = vpop.f32.mrb[169].mxu1  ;;  %v15996_v19 = vld [vmem:[#allocation32_spill] sm:$0xff] }
0x2433   : > { %v7585_v31 = vadd.f32 %v14957_v61, %v7584_v18  ;;  %v10210_v0 = vpop.f32.mrb[170].mxu1  ;;  %v15074_v18 = vsub.f32 %v14972_v39, %v7705_v6 }
0x2434   : > { %v7596_v11 = vadd.f32 %v10210_v0, %v14957_v61  ;;  %v7587_v34 = vpop.f32.mrb[171].mxu1  ;;  %v7633_v41 = vmul.f32 %v7622_v43, %v7593_v53  ;;  %v7735_v0 = vmul.f32 %v15055_v28, %v15055_v28 }
0x2435   : > { %v7631_v54 = vmul.f32 %v7622_v43, %v7585_v31  ;;  %v7588_v48 = vadd.f32 %v14957_v61, %v7587_v34 }
0x2436   : > { %v7634_v10 = vmul.f32 %v7622_v43, %v7596_v11  ;;  %v15031_v20 = vadd.f32 %v7633_v41, %v15990_v30  ;;  %v15081_v11 = vsub.f32 %v14983_v26, %v7706_v29  ;;  %v7736_v41 = vmul.f32 %v15066_v55, %v15066_v55 }
0x2437   : > { %v15028_v62 = vadd.f32 %v7631_v54, %v15989_v23  ;;  %v7632_v57 = vmul.f32 %v7622_v43, %v7588_v48  ;;  %v7751_v54 = vsel %vm552_vm0, %v7735_v0, 0.0  ;;  %v7737_v48 = vmul.f32 %v15074_v18, %v15074_v18 }
0x2438   : > { %v15039_v44 = vadd.f32 %v7634_v10, %v15992_v25  ;;  %v7685_v59 = vsel %vm552_vm0, %v15031_v20, 0.0  ;;  %v7754_v23 = vsel %vm552_vm0, %v7736_v41, 0.0  ;;  %v7738_v10 = vmul.f32 %v15081_v11, %v15081_v11 }
0x2439   : > { %v15034_v50 = vadd.f32 %v7632_v57, %v15991_v27  ;;  %v7679_v63 = vsel %vm552_vm0, %v15028_v62, 0.0  ;;  %v7757_v57 = vsel %vm552_vm0, %v7737_v48, 0.0 }
0x243a   : > { %7680 = vadd.xlane.f32.xlu0 %v7679_v63  ;;  %v7688_v13 = vsel %vm552_vm0, %v15039_v44, 0.0  ;;  %v7760_v30 = vsel %vm552_vm0, %v7738_v10, 0.0 }
0x243b   : > { %v7682_v47 = vsel %vm552_vm0, %v15034_v50, 0.0 }
0x243c   : > { %7683 = vadd.xlane.f32.xlu1 %v7682_v47 }
0x243e   : > { %7686 = vadd.xlane.f32.xlu0 %v7685_v59 }
0x2440   : > { %7689 = vadd.xlane.f32.xlu1 %v7688_v13 }
0x246d   : > { %v10213_v46 = vpop.f32.mrb[172].mxu1 }
0x246e   : > { %v7609_v58 = vadd.f32 %v10213_v46, %v14957_v61  ;;  %v7600_v17 = vpop.f32.mrb[173].mxu1 }
0x246f   : > { %v7601_v45 = vadd.f32 %v14957_v61, %v7600_v17  ;;  %v10214_v38 = vpop.f32.mrb[174].mxu1 }
0x2470   : > { %v7637_v4 = vmul.f32 %v7622_v43, %v7609_v58  ;;  %v7612_v12 = vadd.f32 %v10214_v38, %v14957_v61  ;;  %v7603_v5 = vpop.f32.mrb[175].mxu1 }
0x2471   : > { %v7635_v16 = vmul.f32 %v7622_v43, %v7601_v45  ;;  %v7604_v36 = vadd.f32 %v14957_v61, %v7603_v5 }
0x2472   : > { %v7638_v35 = vmul.f32 %v7622_v43, %v7612_v12  ;;  %v15058_v24 = vadd.f32 %v7637_v4, %v15994_v40 }
0x2473   : > { %v15052_v42 = vadd.f32 %v7635_v16, %v15993_v56  ;;  %v7636_v33 = vmul.f32 %v7622_v43, %v7604_v36 }
0x2474   : > { %v15069_v43 = vadd.f32 %v7638_v35, %v15996_v19  ;;  %v7697_v31 = vsel %vm552_vm0, %v15058_v24, 0.0  ;;  %v10391_v35 = vld [vmem:[%s15550_s8 + $0x10] sm:$0xff]  }
0x2475   : > { %v15061_v2 = vadd.f32 %v7636_v33, %v15995_v8  ;;  %v7691_v61 = vsel %vm552_vm0, %v15052_v42, 0.0  ;;  %10215 = vmatprep.subr.bf16.mxu0 %v10391_v35 }
0x2476   : > { %7692 = vadd.xlane.f32.xlu0 %v7691_v61  ;;  %v7700_v34 = vsel %vm552_vm0, %v15069_v43, 0.0  ;;  %10216 = vmatpush3.bf16.msra.mxu0 %v10391_v35 }
0x2477   : > { %v7694_v53 = vsel %vm552_vm0, %v15061_v2, 0.0  ;;  %10217 = vmatprep.subr.bf16.mxu0 %v10392_v37 }
0x2478   : > { %7695 = vadd.xlane.f32.xlu1 %v7694_v53 }
0x247a   : > { %7698 = vadd.xlane.f32.xlu0 %v7697_v31  ;;  %10218 = vmatpush3.bf16.msra.mxu0 %v10392_v37 }
0x247c   : > { %7701 = vadd.xlane.f32.xlu1 %v7700_v34 }
0x247e   : > { %7752 = vadd.xlane.f32.xlu0 %v7751_v54 }
0x2480   : > { %7755 = vadd.xlane.f32.xlu1 %v7754_v23 }
0x2482   : > { %7758 = vadd.xlane.f32.xlu0 %v7757_v57 }
0x2484   : > { %7761 = vadd.xlane.f32.xlu1 %v7760_v30 }
0x2487   : > { %v7669_v27 = vpop.xlane.xlu0 %7668 }
0x2488   : > { %v7707_v63 = vmul.f32 0.03125, %v7669_v27 }
0x2489   : > { %v7672_v25 = vpop.xlane.xlu1 %7671 }
0x248a   : > { %v15096_v47 = vsub.f32 %v14999_v1, %v7707_v63  ;;  %v7708_v59 = vmul.f32 0.03125, %v7672_v25 }
0x248b   : > { %v7675_v13 = vpop.xlane.xlu0 %7674 }
0x248c   : > { %v15099_v49 = vsub.f32 %v15005_v60, %v7708_v59  ;;  %v7709_v46 = vmul.f32 0.03125, %v7675_v13  ;;  %v7739_v15 = vmul.f32 %v15096_v47, %v15096_v47 }
0x248d   : > { %v7678_v58 = vpop.xlane.xlu1 %7677 }
0x248e   : > { %v15104_v17 = vsub.f32 %v15002_v14, %v7709_v46  ;;  %v7710_v45 = vmul.f32 0.03125, %v7678_v58  ;;  %v7763_v38 = vsel %vm552_vm0, %v7739_v15, 0.0  ;;  %v7740_v52 = vmul.f32 %v15099_v49, %v15099_v49 }
0x248f   : > { %7764 = vadd.xlane.f32.xlu0 %v7763_v38 }
0x2490   : > { %v15110_v51 = vsub.f32 %v15010_v9, %v7710_v45  ;;  %v7766_v4 = vsel %vm552_vm0, %v7740_v52, 0.0  ;;  %v7741_v12 = vmul.f32 %v15104_v17, %v15104_v17 }
0x2491   : > { %7767 = vadd.xlane.f32.xlu1 %v7766_v4 }
0x2492   : > { %v7769_v5 = vsel %vm552_vm0, %v7741_v12, 0.0  ;;  %v7742_v16 = vmul.f32 %v15110_v51, %v15110_v51 }
0x2493   : > { %7770 = vadd.xlane.f32.xlu0 %v7769_v5 }
0x2494   : > { %v7772_v36 = vsel %vm552_vm0, %v7742_v16, 0.0 }
0x2495   : > { %7773 = vadd.xlane.f32.xlu1 %v7772_v36 }
0x24c7   : > { %v7681_v56 = vpop.xlane.xlu0 %7680 }
0x24c8   : > { %v7711_v33 = vmul.f32 0.03125, %v7681_v56 }
0x24c9   : > { %v7684_v3 = vpop.xlane.xlu1 %7683 }
0x24ca   : > { %v15126_v6 = vsub.f32 %v15028_v62, %v7711_v33  ;;  %v7712_v40 = vmul.f32 0.03125, %v7684_v3 }
0x24cb   : > { %v7687_v8 = vpop.xlane.xlu0 %7686 }
0x24cc   : > { %v15129_v61 = vsub.f32 %v15034_v50, %v7712_v40  ;;  %v7713_v29 = vmul.f32 0.03125, %v7687_v8  ;;  %v7743_v19 = vmul.f32 %v15126_v6, %v15126_v6 }
0x24cd   : > { %v7690_v53 = vpop.xlane.xlu1 %7689 }
0x24ce   : > { %v15134_v31 = vsub.f32 %v15031_v20, %v7713_v29  ;;  %v7714_v0 = vmul.f32 0.03125, %v7690_v53  ;;  %v7775_v34 = vsel %vm552_vm0, %v7743_v19, 0.0  ;;  %v7744_v41 = vmul.f32 %v15129_v61, %v15129_v61 }
0x24cf   : > { %7776 = vadd.xlane.f32.xlu0 %v7775_v34 }
0x24d0   : > { %v15140_v54 = vsub.f32 %v15039_v44, %v7714_v0  ;;  %v7778_v48 = vsel %vm552_vm0, %v7744_v41, 0.0  ;;  %v7745_v23 = vmul.f32 %v15134_v31, %v15134_v31 }
0x24d1   : > { %7779 = vadd.xlane.f32.xlu1 %v7778_v48 }
0x24d2   : > { %v7781_v10 = vsel %vm552_vm0, %v7745_v23, 0.0  ;;  %v7746_v57 = vmul.f32 %v15140_v54, %v15140_v54 }
0x24d3   : > { %7782 = vadd.xlane.f32.xlu0 %v7781_v10 }
0x24d4   : > { %v7784_v30 = vsel %vm552_vm0, %v7746_v57, 0.0 }
0x24d5   : > { %7785 = vadd.xlane.f32.xlu1 %v7784_v30  ;;  %v15997_v30 = vld [vmem:[#allocation25_spill] sm:$0xff] }
0x2503   : > { %v7693_v27 = vpop.xlane.xlu0 %7692 }
0x2504   : > { %v7715_v63 = vmul.f32 0.03125, %v7693_v27  ;;  %v15998_v27 = vld [vmem:[#allocation14_spill] sm:$0xff] }
0x2505   : > { %v7696_v25 = vpop.xlane.xlu1 %7695 }
0x2506   : > { %v15150_v59 = vsub.f32 %v15052_v42, %v7715_v63  ;;  %v7716_v13 = vmul.f32 0.03125, %v7696_v25  ;;  %v7866_v63 = vrot.slane %v15998_v27, %v15997_v30 }
0x2507   : > { %v7699_v46 = vpop.xlane.xlu0 %7698 }
0x2508   : > { %v15153_v15 = vsub.f32 %v15061_v2, %v7716_v13  ;;  %v7717_v58 = vmul.f32 0.03125, %v7699_v46  ;;  %v7747_v45 = vmul.f32 %v15150_v59, %v15150_v59 }
0x2509   : > { %v7702_v38 = vpop.xlane.xlu1 %7701 }
0x250a   : > { %v15158_v52 = vsub.f32 %v15058_v24, %v7717_v58  ;;  %v7718_v4 = vmul.f32 0.03125, %v7702_v38  ;;  %v7787_v12 = vsel %vm552_vm0, %v7747_v45, 0.0  ;;  %v7748_v5 = vmul.f32 %v15153_v15, %v15153_v15 }
0x250b   : > { %7788 = vadd.xlane.f32.xlu0 %v7787_v12  ;;  %v7753_v16 = vpop.xlane.xlu0 %7752 }
0x250c   : > { %v15164_v36 = vsub.f32 %v15069_v43, %v7718_v4  ;;  %v7799_v35 = vmul.f32 0.03125, %v7753_v16  ;;  %v7790_v37 = vsel %vm552_vm0, %v7748_v5, 0.0  ;;  %v7749_v56 = vmul.f32 %v15158_v52, %v15158_v52  ;;  %v15999_v4 = vld [vmem:[#allocation23_spill] sm:$0xff] }
0x250d   : > { %v7756_v33 = vpop.xlane.xlu1 %7755  ;;  %7791 = vadd.xlane.f32.xlu1 %v7790_v37  ;;  %v7890_v12 = vrot.slane %v14960_v7, %v15999_v4 }
0x250e   : > { %v7815_v3 = vadd.f32 1e-06, %v7799_v35  ;;  %v7800_v40 = vmul.f32 0.03125, %v7756_v33  ;;  %v7793_v8 = vsel %vm552_vm0, %v7749_v56, 0.0  ;;  %v7750_v29 = vmul.f32 %v15164_v36, %v15164_v36 }
0x250f   : > { %7794 = vadd.xlane.f32.xlu0 %v7793_v8  ;;  %v7759_v19 = vpop.xlane.xlu0 %7758 }
0x2510   : > { %11043 = vrsqrt.f32 %v7815_v3  ;;  %v7816_v53 = vadd.f32 1e-06, %v7800_v40  ;;  %v7801_v0 = vmul.f32 0.03125, %v7759_v19  ;;  %v7796_v34 = vsel %vm552_vm0, %v7750_v29, 0.0 }
0x2511   : > { %7797 = vadd.xlane.f32.xlu1 %v7796_v34  ;;  %v7762_v41 = vpop.xlane.xlu1 %7761 }
0x2512   : > { %11045 = vrsqrt.f32 %v7816_v53  ;;  %v7817_v48 = vadd.f32 1e-06, %v7801_v0  ;;  %v7802_v23 = vmul.f32 0.03125, %v7762_v41 }
0x2514   : > { %11047 = vrsqrt.f32 %v7817_v48  ;;  %v7818_v10 = vadd.f32 1e-06, %v7802_v23 }
0x2516   : > { %11049 = vrsqrt.f32 %v7818_v10 }
0x251a   : > { %v11044_v57 = vpop.eup %11043 }
0x251b   : > { %v7847_v25 = vmul.f32 %v11044_v57, %v15055_v28 }
0x251c   : > { %v11046_v13 = vpop.eup %11045  ;;  %v7765_v46 = vpop.xlane.xlu0 %7764 }
0x251d   : > { %v7848_v58 = vmul.f32 %v11046_v13, %v15066_v55  ;;  %v7803_v45 = vmul.f32 0.03125, %v7765_v46  ;;  %v7871_v16 = vmul.f32 %v7866_v63, %v7847_v25 }
0x251e   : > { %v11048_v38 = vpop.eup %11047  ;;  %v7768_v5 = vpop.xlane.xlu1 %7767 }
0x251f   : > { %v7849_v35 = vmul.f32 %v11048_v38, %v15074_v18  ;;  %v7819_v37 = vadd.f32 1e-06, %v7803_v45  ;;  %v7804_v56 = vmul.f32 0.03125, %v7768_v5  ;;  %v7872_v33 = vmul.f32 %v7866_v63, %v7848_v58 }
0x2520   : > { %v11050_v3 = vpop.eup %11049  ;;  %v7771_v40 = vpop.xlane.xlu0 %7770  ;;  %v7895_v53 = vadd.f32 %v7890_v12, %v7871_v16 }
0x2521   : > { %v7873_v8 = vmul.f32 %v7866_v63, %v7849_v35  ;;  %v7850_v28 = vmul.f32 %v11050_v3, %v15081_v11  ;;  %11051 = vrsqrt.f32 %v7819_v37  ;;  %v7820_v29 = vadd.f32 1e-06, %v7804_v56 }
0x2522   : > { %v7805_v55 = vmul.f32 0.03125, %v7771_v40  ;;  %v7774_v19 = vpop.xlane.xlu1 %7773  ;;  %v7896_v0 = vadd.f32 %v7890_v12, %v7872_v33 }
0x2523   : > { %v7874_v34 = vmul.f32 %v7866_v63, %v7850_v28  ;;  %11053 = vrsqrt.f32 %v7820_v29  ;;  %v7806_v7 = vmul.f32 0.03125, %v7774_v19  ;;  %v7897_v18 = vadd.f32 %v7890_v12, %v7873_v8 }
0x2524   : > { %v7821_v41 = vadd.f32 1e-06, %v7805_v55  ;;  %v7916_v48 = vpack.c.bf16 %v7896_v0, %v7895_v53 }
0x2525   : > { %v7898_v23 = vadd.f32 %v7890_v12, %v7874_v34  ;;  %v7822_v10 = vadd.f32 1e-06, %v7806_v7 }
0x2526   : > { %11055 = vrsqrt.f32 %v7821_v41  ;;  %10219 = vmatprep.mubr.msk.bf16.mxu0 %vm552_vm0, %v7916_v48 }
0x2527   : > { %11057 = vrsqrt.f32 %v7822_v10  ;;  %v7917_v57 = vpack.c.bf16 %v7898_v23, %v7897_v18 }
0x2529   : > { %10220 = vmatmul.mubr.msk.bf16.vlgmr.msra.gmra.mrb[176].mxu0 %vm552_vm0, %v7917_v57 }
0x252b   : > { %v11052_v11 = vpop.eup %11051 }
0x252c   : > { %v7851_v27 = vmul.f32 %v11052_v11, %v15096_v47  ;;  %v15198_v11 = vrot.slane %v15019_v21, %v15999_v4 }
0x252d   : > { %v11054_v25 = vpop.eup %11053 }
0x252e   : > { %v7852_v13 = vmul.f32 %v11054_v25, %v15099_v49  ;;  %v7875_v46 = vmul.f32 %v7866_v63, %v7851_v27 }
0x2530   : > { %v11056_v58 = vpop.eup %11055  ;;  %v7876_v45 = vmul.f32 %v7866_v63, %v7852_v13  ;;  %v7899_v35 = vadd.f32 %v7890_v12, %v7875_v46 }
0x2531   : > { %v11058_v38 = vpop.eup %11057  ;;  %v7853_v5 = vmul.f32 %v11056_v58, %v15104_v17 }
0x2532   : > { %v7854_v16 = vmul.f32 %v11058_v38, %v15110_v51  ;;  %v7900_v37 = vadd.f32 %v7890_v12, %v7876_v45 }
0x2533   : > { %v7877_v56 = vmul.f32 %v7866_v63, %v7853_v5  ;;  %v10394_v5 = vld [vmem:[%s15552_s10 + $0x48] sm:$0xff]  }
0x2534   : > { %v7918_v33 = vpack.c.bf16 %v7900_v37, %v7899_v35  ;;  %v7878_v3 = vmul.f32 %v7866_v63, %v7854_v16  ;;  %v10395_v16 = vld [vmem:[%s15552_s10 + $0x50] sm:$0xff]   ;;  %v10396_v35 = vld [vmem:[%s15552_s10 + $0x58] sm:$0xff]   ;;  %v10397_v37 = vld [vmem:[%s15552_s10 + $0x60] sm:$0xff]  }
0x2535   : > { %v7901_v40 = vadd.f32 %v7890_v12, %v7877_v56  ;;  %v10398_v56 = vld [vmem:[%s15552_s10 + $0x68] sm:$0xff]  }
0x2536   : > { %10223 = vmatprep.mubr.msk.bf16.mxu0 %vm552_vm0, %v7918_v33  ;;  %v7902_v47 = vadd.f32 %v7890_v12, %v7878_v3  ;;  %v16000_v12 = vld [vmem:[#allocation41_spill] sm:$0xff] }
0x2537   : > { %v15191_v41 = vrot.slane %v16000_v12, %v15997_v30  ;;  %v10399_v33 = vld [vmem:[%s15552_s10 + $0x70] sm:$0xff]  }
0x2538   : > { %v7919_v8 = vpack.c.bf16 %v7902_v47, %v7901_v40  ;;  %v10400_v40 = vld [vmem:[%s15552_s10 + $0x78] sm:$0xff]  }
0x253a   : > { %10224 = vmatmul.mubr.msk.bf16.gmra.mrb[180].mxu0 %vm552_vm0, %v7919_v8 }
0x255c   : > { %v7777_v49 = vpop.xlane.xlu0 %7776 }
0x255d   : > { %v7807_v28 = vmul.f32 0.03125, %v7777_v49 }
0x255e   : > { %v7780_v29 = vpop.xlane.xlu1 %7779 }
0x255f   : > { %v7823_v55 = vadd.f32 1e-06, %v7807_v28  ;;  %v7808_v19 = vmul.f32 0.03125, %v7780_v29 }
0x2560   : > { %v7783_v17 = vpop.xlane.xlu0 %7782 }
0x2561   : > { %11059 = vrsqrt.f32 %v7823_v55  ;;  %v7824_v51 = vadd.f32 1e-06, %v7808_v19  ;;  %v7809_v53 = vmul.f32 0.03125, %v7783_v17 }
0x2562   : > { %v7786_v0 = vpop.xlane.xlu1 %7785 }
0x2563   : > { %11061 = vrsqrt.f32 %v7824_v51  ;;  %v7825_v34 = vadd.f32 1e-06, %v7809_v53  ;;  %v7810_v63 = vmul.f32 0.03125, %v7786_v0 }
0x2565   : > { %11063 = vrsqrt.f32 %v7825_v34  ;;  %v7826_v7 = vadd.f32 1e-06, %v7810_v63 }
0x2567   : > { %11065 = vrsqrt.f32 %v7826_v7 }
0x256b   : > { %v11060_v48 = vpop.eup %11059 }
0x256c   : > { %v7855_v18 = vmul.f32 %v11060_v48, %v15126_v6 }
0x256d   : > { %v11062_v23 = vpop.eup %11061 }
0x256e   : > { %v7856_v10 = vmul.f32 %v11062_v23, %v15129_v61  ;;  %v7879_v57 = vmul.f32 %v15191_v41, %v7855_v18 }
0x256f   : > { %v11064_v27 = vpop.eup %11063 }
0x2570   : > { %v7857_v25 = vmul.f32 %v11064_v27, %v15134_v31  ;;  %v7880_v13 = vmul.f32 %v15191_v41, %v7856_v10  ;;  %v7903_v58 = vadd.f32 %v15198_v11, %v7879_v57 }
0x2571   : > { %v11066_v46 = vpop.eup %11065 }
0x2572   : > { %v7858_v30 = vmul.f32 %v11066_v46, %v15140_v54  ;;  %v7904_v6 = vadd.f32 %v15198_v11, %v7880_v13  ;;  %v7881_v61 = vmul.f32 %v15191_v41, %v7857_v25  ;;  %v10393_v54 = vld [vmem:[%s15552_s10 + $0x40] sm:$0xff]  }
0x2573   : > { %10235 = vmatprep.subr.bf16.mxu1 %v10393_v54 }
0x2574   : > { %v7920_v45 = vpack.c.bf16 %v7904_v6, %v7903_v58  ;;  %v7882_v38 = vmul.f32 %v15191_v41, %v7858_v30  ;;  %v7905_v21 = vadd.f32 %v15198_v11, %v7881_v61  ;;  %10236 = vmatpush3.bf16.msra.mxu1 %v10393_v54 }
0x2575   : > { %10237 = vmatprep.subr.bf16.mxu1 %v10394_v5 }
0x2576   : > { %10227 = vmatprep.mubr.msk.bf16.mxu0 %vm552_vm0, %v7920_v45  ;;  %v7906_v31 = vadd.f32 %v15198_v11, %v7882_v38 }
0x2578   : > { %v7921_v4 = vpack.c.bf16 %v7906_v31, %v7905_v21  ;;  %10238 = vmatpush3.bf16.msra.mxu1 %v10394_v5 }
0x2579   : > { %10239 = vmatprep.subr.bf16.mxu1 %v10395_v16 }
0x257a   : > { %10228 = vmatmul.mubr.msk.bf16.gmra.mrb[184].mxu0 %vm552_vm0, %v7921_v4 }
0x257c   : > { %10240 = vmatpush3.bf16.msra.mxu1 %v10395_v16 }
0x257d   : > { %10241 = vmatprep.subr.bf16.mxu1 %v10396_v35 }
0x2580   : > { %10242 = vmatpush3.bf16.msra.mxu1 %v10396_v35 }
0x2581   : > { %10243 = vmatprep.subr.bf16.mxu1 %v10397_v37 }
0x2584   : > { %10244 = vmatpush3.bf16.msra.mxu1 %v10397_v37 }
0x2585   : > { %10245 = vmatprep.subr.bf16.mxu1 %v10398_v56 }
0x2588   : > { %10246 = vmatpush3.bf16.msra.mxu1 %v10398_v56 }
0x2589   : > { %10247 = vmatprep.subr.bf16.mxu1 %v10399_v33 }
0x258c   : > { %10248 = vmatpush3.bf16.msra.mxu1 %v10399_v33 }
0x258d   : > { %10249 = vmatprep.subr.bf16.mxu1 %v10400_v40 }
0x2590   : > { %10250 = vmatpush3.bf16.msra.mxu1 %v10400_v40 }
0x2598   : > { %v7789_v3 = vpop.xlane.xlu0 %7788 }
0x2599   : > { %v7811_v47 = vmul.f32 0.03125, %v7789_v3 }
0x259a   : > { %v7792_v8 = vpop.xlane.xlu1 %7791 }
0x259b   : > { %v7827_v49 = vadd.f32 1e-06, %v7811_v47  ;;  %v7812_v28 = vmul.f32 0.03125, %v7792_v8 }
0x259c   : > { %v7795_v29 = vpop.xlane.xlu0 %7794 }
0x259d   : > { %11067 = vrsqrt.f32 %v7827_v49  ;;  %v7828_v55 = vadd.f32 1e-06, %v7812_v28  ;;  %v7813_v19 = vmul.f32 0.03125, %v7795_v29 }
0x259e   : > { %v7798_v17 = vpop.xlane.xlu1 %7797 }
0x259f   : > { %11069 = vrsqrt.f32 %v7828_v55  ;;  %v7829_v51 = vadd.f32 1e-06, %v7813_v19  ;;  %v7814_v53 = vmul.f32 0.03125, %v7798_v17 }
0x25a1   : > { %11071 = vrsqrt.f32 %v7829_v51  ;;  %v7830_v0 = vadd.f32 1e-06, %v7814_v53 }
0x25a3   : > { %11073 = vrsqrt.f32 %v7830_v0 }
0x25a7   : > { %v11068_v34 = vpop.eup %11067 }
0x25a8   : > { %v7859_v63 = vmul.f32 %v11068_v34, %v15150_v59 }
0x25a9   : > { %v11070_v7 = vpop.eup %11069 }
0x25aa   : > { %v7860_v12 = vmul.f32 %v11070_v7, %v15153_v15  ;;  %v7883_v48 = vmul.f32 %v15191_v41, %v7859_v63 }
0x25ab   : > { %v11072_v18 = vpop.eup %11071 }
0x25ac   : > { %v7861_v23 = vmul.f32 %v11072_v18, %v15158_v52  ;;  %v7884_v10 = vmul.f32 %v15191_v41, %v7860_v12  ;;  %v7907_v25 = vadd.f32 %v15198_v11, %v7883_v48 }
0x25ad   : > { %v11074_v57 = vpop.eup %11073 }
0x25ae   : > { %v7862_v27 = vmul.f32 %v11074_v57, %v15164_v36  ;;  %v7908_v13 = vadd.f32 %v15198_v11, %v7884_v10  ;;  %v7885_v46 = vmul.f32 %v15191_v41, %v7861_v23  ;;  %v15252_v36 = vld [vmem:[%s15551_s9 + $0x1] ss:$0 sm:$0xff] }
0x25b0   : > { %v7922_v59 = vpack.c.bf16 %v7908_v13, %v7907_v25  ;;  %v7886_v30 = vmul.f32 %v15191_v41, %v7862_v27  ;;  %v7909_v15 = vadd.f32 %v15198_v11, %v7885_v46 }
0x25b2   : > { %10231 = vmatprep.mubr.msk.bf16.mxu0 %vm552_vm0, %v7922_v59  ;;  %v7910_v52 = vadd.f32 %v15198_v11, %v7886_v30 }
0x25b4   : > { %v7923_v58 = vpack.c.bf16 %v7910_v52, %v7909_v15 }
0x25b6   : > { %10232 = vmatmul.mubr.msk.bf16.gmra.mrb[188].mxu0 %vm552_vm0, %v7923_v58 }
0x25fc   : > { %v10221_v6 = vpop.f32.mrb[176].mxu0 }
0x25fd   : > { %v8011_v61 = vadd.f32 %v10221_v6, %v15252_v36  ;;  %v8002_v45 = vpop.f32.mrb[177].mxu0 }
0x25fe   : > { %v8003_v41 = vadd.f32 %v15252_v36, %v8002_v45  ;;  %v10222_v38 = vpop.f32.mrb[178].mxu0 }
0x25ff   : > { %v8083_v21 = vmul.f32 0.044715, %v8011_v61  ;;  %v8014_v31 = vadd.f32 %v10222_v38, %v15252_v36  ;;  %v8005_v4 = vpop.f32.mrb[179].mxu0  ;;  %v8067_v15 = vmul.f32 0.5, %v8011_v61 }
0x2600   : > { %v8081_v11 = vmul.f32 0.044715, %v8003_v41  ;;  %v8006_v54 = vadd.f32 %v15252_v36, %v8005_v4  ;;  %v8065_v4 = vmul.f32 0.5, %v8003_v41 }
0x2601   : > { %v8099_v5 = vmul.f32 %v8083_v21, %v8011_v61  ;;  %v8084_v16 = vmul.f32 0.044715, %v8014_v31 }
0x2602   : > { %v8097_v35 = vmul.f32 %v8081_v11, %v8003_v41  ;;  %v8082_v37 = vmul.f32 0.044715, %v8006_v54 }
0x2603   : > { %v8115_v56 = vmul.f32 %v8099_v5, %v8011_v61  ;;  %v8100_v33 = vmul.f32 %v8084_v16, %v8014_v31  ;;  %v8068_v16 = vmul.f32 0.5, %v8014_v31 }
0x2604   : > { %v8113_v3 = vmul.f32 %v8097_v35, %v8003_v41  ;;  %v8098_v40 = vmul.f32 %v8082_v37, %v8006_v54 }
0x2605   : > { %v8131_v47 = vadd.f32 %v8115_v56, %v8011_v61  ;;  %v8116_v8 = vmul.f32 %v8100_v33, %v8014_v31 }
0x2606   : > { %v8114_v49 = vmul.f32 %v8098_v40, %v8006_v54  ;;  %v8129_v28 = vadd.f32 %v8113_v3, %v8003_v41  ;;  %v8066_v3 = vmul.f32 0.5, %v8006_v54 }
0x2607   : > { %v8147_v29 = vmul.f32 0.7978846, %v8131_v47  ;;  %v8132_v55 = vadd.f32 %v8116_v8, %v8014_v31 }
0x2608   : > { %v8130_v19 = vadd.f32 %v8114_v49, %v8006_v54  ;;  %v8145_v17 = vmul.f32 0.7978846, %v8129_v28 }
0x2609   : > { %11075 = vtanh.f32 %v8147_v29  ;;  %v8148_v51 = vmul.f32 0.7978846, %v8132_v55 }
0x260a   : > { %v8146_v53 = vmul.f32 0.7978846, %v8130_v19  ;;  %11077 = vtanh.f32 %v8145_v17 }
0x260b   : > { %11079 = vtanh.f32 %v8148_v51 }
0x260c   : > { %11081 = vtanh.f32 %v8146_v53 }
0x260d   : > { %v10225_v0 = vpop.f32.mrb[180].mxu0 }
0x260e   : > { %v8027_v34 = vadd.f32 %v10225_v0, %v15252_v36  ;;  %v8018_v63 = vpop.f32.mrb[181].mxu0 }
0x260f   : > { %v8019_v7 = vadd.f32 %v15252_v36, %v8018_v63  ;;  %v10226_v12 = vpop.f32.mrb[182].mxu0 }
0x2610   : > { %v8087_v48 = vmul.f32 0.044715, %v8027_v34  ;;  %v8030_v18 = vadd.f32 %v10226_v12, %v15252_v36  ;;  %v8021_v23 = vpop.f32.mrb[183].mxu0 }
0x2611   : > { %v8085_v10 = vmul.f32 0.044715, %v8019_v7  ;;  %v8022_v57 = vadd.f32 %v15252_v36, %v8021_v23 }
0x2612   : > { %v8103_v27 = vmul.f32 %v8087_v48, %v8027_v34  ;;  %v8088_v25 = vmul.f32 0.044715, %v8030_v18 }
0x2613   : > { %v11076_v13 = vpop.eup %11075  ;;  %v8101_v46 = vmul.f32 %v8085_v10, %v8019_v7  ;;  %v8086_v59 = vmul.f32 0.044715, %v8022_v57  ;;  %v8071_v10 = vmul.f32 0.5, %v8027_v34 }
0x2614   : > { %v11078_v30 = vpop.eup %11077  ;;  %v8119_v52 = vmul.f32 %v8103_v27, %v8027_v34  ;;  %v8104_v58 = vmul.f32 %v8088_v25, %v8030_v18  ;;  %v8179_v6 = vadd.f32 1.0, %v11076_v13  ;;  %v8072_v27 = vmul.f32 0.5, %v8030_v18 }
0x2615   : > { %v11080_v45 = vpop.eup %11079  ;;  %v8117_v38 = vmul.f32 %v8101_v46, %v8019_v7  ;;  %v8102_v21 = vmul.f32 %v8086_v59, %v8022_v57  ;;  %v8177_v11 = vadd.f32 1.0, %v11078_v30  ;;  %v8069_v13 = vmul.f32 0.5, %v8019_v7 }
0x2616   : > { %v11082_v5 = vpop.eup %11081  ;;  %v8120_v35 = vmul.f32 %v8104_v58, %v8030_v18  ;;  %v8180_v37 = vadd.f32 1.0, %v11080_v45  ;;  %v8135_v56 = vadd.f32 %v8119_v52, %v8027_v34  ;;  %v8195_v8 = vmul.f32 %v8179_v6, %v8067_v15 }
0x2617   : > { %v8118_v33 = vmul.f32 %v8102_v21, %v8022_v57  ;;  %v8178_v40 = vadd.f32 1.0, %v11082_v5  ;;  %v8133_v47 = vadd.f32 %v8117_v38, %v8019_v7  ;;  %v8193_v29 = vmul.f32 %v8177_v11, %v8065_v4 }
0x2618   : > { %v8196_v49 = vmul.f32 %v8180_v37, %v8068_v16  ;;  %v8136_v61 = vadd.f32 %v8120_v35, %v8030_v18  ;;  %v8151_v28 = vmul.f32 0.7978846, %v8135_v56  ;;  %v8070_v46 = vmul.f32 0.5, %v8022_v57 }
0x2619   : > { %v8194_v55 = vmul.f32 %v8178_v40, %v8066_v3  ;;  %v8134_v19 = vadd.f32 %v8118_v33, %v8022_v57  ;;  %v8149_v17 = vmul.f32 0.7978846, %v8133_v47 }
0x261a   : > { %v8227_v51 = vpack.c.bf16 %v8196_v49, %v8195_v8  ;;  %v8152_v41 = vmul.f32 0.7978846, %v8136_v61  ;;  %11083 = vtanh.f32 %v8151_v28 }
0x261b   : > { %v8226_v53 = vpack.c.bf16 %v8194_v55, %v8193_v29  ;;  %v8150_v31 = vmul.f32 0.7978846, %v8134_v19  ;;  %11085 = vtanh.f32 %v8149_v17 }
0x261c   : > { %11087 = vtanh.f32 %v8152_v41 }
0x261d   : > { %10251 = vmatprep.mubr.bf16.mxu1 %v8226_v53  ;;  %11089 = vtanh.f32 %v8150_v31 }
0x261e   : > { %10252 = vmatmul.mubr.bf16.vlgmr.msra.gmra.mrb[176].mxu1 %v8227_v51 }
0x2624   : > { %v11084_v54 = vpop.eup %11083 }
0x2625   : > { %v11086_v0 = vpop.eup %11085  ;;  %v8183_v63 = vadd.f32 1.0, %v11084_v54 }
0x2626   : > { %v11088_v12 = vpop.eup %11087  ;;  %v8181_v48 = vadd.f32 1.0, %v11086_v0 }
0x2627   : > { %v11090_v23 = vpop.eup %11089  ;;  %v8184_v25 = vadd.f32 1.0, %v11088_v12  ;;  %v8199_v30 = vmul.f32 %v8183_v63, %v8071_v10 }
0x2628   : > { %v8182_v59 = vadd.f32 1.0, %v11090_v23  ;;  %v8197_v52 = vmul.f32 %v8181_v48, %v8069_v13 }
0x2629   : > { %v8200_v15 = vmul.f32 %v8184_v25, %v8072_v27 }
0x262a   : > { %v8198_v58 = vmul.f32 %v8182_v59, %v8070_v46 }
0x262b   : > { %v8229_v6 = vpack.c.bf16 %v8200_v15, %v8199_v30 }
0x262c   : > { %v8228_v45 = vpack.c.bf16 %v8198_v58, %v8197_v52 }
0x262e   : > { %10255 = vmatprep.mubr.bf16.mxu1 %v8228_v45 }
0x262f   : > { %10256 = vmatmul.mubr.bf16.gmra.mrb[180].mxu1 %v8229_v6 }
0x264d   : > { %v10229_v38 = vpop.f32.mrb[184].mxu0 }
0x264e   : > { %v8043_v21 = vadd.f32 %v10229_v38, %v15252_v36  ;;  %v8034_v4 = vpop.f32.mrb[185].mxu0 }
0x264f   : > { %v8035_v11 = vadd.f32 %v15252_v36, %v8034_v4  ;;  %v10230_v34 = vpop.f32.mrb[186].mxu0 }
0x2650   : > { %v8091_v18 = vmul.f32 0.044715, %v8043_v21  ;;  %v8046_v7 = vadd.f32 %v10230_v34, %v15252_v36  ;;  %v8037_v57 = vpop.f32.mrb[187].mxu0  ;;  %v8075_v23 = vmul.f32 0.5, %v8043_v21 }
0x2651   : > { %v8089_v5 = vmul.f32 0.044715, %v8035_v11  ;;  %v8038_v16 = vadd.f32 %v15252_v36, %v8037_v57  ;;  %v8073_v25 = vmul.f32 0.5, %v8035_v11 }
0x2652   : > { %v8107_v35 = vmul.f32 %v8091_v18, %v8043_v21  ;;  %v8092_v37 = vmul.f32 0.044715, %v8046_v7  ;;  %v8076_v10 = vmul.f32 0.5, %v8046_v7 }
0x2653   : > { %v8105_v56 = vmul.f32 %v8089_v5, %v8035_v11  ;;  %v8090_v33 = vmul.f32 0.044715, %v8038_v16  ;;  %v8074_v13 = vmul.f32 0.5, %v8038_v16 }
0x2654   : > { %v8123_v3 = vmul.f32 %v8107_v35, %v8043_v21  ;;  %v8108_v40 = vmul.f32 %v8092_v37, %v8046_v7 }
0x2655   : > { %v8121_v47 = vmul.f32 %v8105_v56, %v8035_v11  ;;  %v8106_v8 = vmul.f32 %v8090_v33, %v8038_v16 }
0x2656   : > { %v8124_v49 = vmul.f32 %v8108_v40, %v8046_v7  ;;  %v8139_v61 = vadd.f32 %v8123_v3, %v8043_v21 }
0x2657   : > { %v8122_v28 = vmul.f32 %v8106_v8, %v8038_v16  ;;  %v8137_v29 = vadd.f32 %v8121_v47, %v8035_v11 }
0x2658   : > { %v8140_v55 = vadd.f32 %v8124_v49, %v8046_v7  ;;  %v8155_v19 = vmul.f32 0.7978846, %v8139_v61 }
0x2659   : > { %v8138_v17 = vadd.f32 %v8122_v28, %v8038_v16  ;;  %v8153_v51 = vmul.f32 0.7978846, %v8137_v29 }
0x265a   : > { %v8156_v41 = vmul.f32 0.7978846, %v8140_v55  ;;  %11091 = vtanh.f32 %v8155_v19 }
0x265b   : > { %v8154_v53 = vmul.f32 0.7978846, %v8138_v17  ;;  %11093 = vtanh.f32 %v8153_v51 }
0x265c   : > { %11095 = vtanh.f32 %v8156_v41 }
0x265d   : > { %11097 = vtanh.f32 %v8154_v53 }
0x2664   : > { %v11092_v31 = vpop.eup %11091 }
0x2665   : > { %v11094_v54 = vpop.eup %11093  ;;  %v8187_v0 = vadd.f32 1.0, %v11092_v31 }
0x2666   : > { %v11096_v63 = vpop.eup %11095  ;;  %v8185_v12 = vadd.f32 1.0, %v11094_v54 }
0x2667   : > { %v11098_v48 = vpop.eup %11097  ;;  %v8188_v27 = vadd.f32 1.0, %v11096_v63  ;;  %v8203_v59 = vmul.f32 %v8187_v0, %v8075_v23 }
0x2668   : > { %v8186_v46 = vadd.f32 1.0, %v11098_v48  ;;  %v8201_v15 = vmul.f32 %v8185_v12, %v8073_v25 }
0x2669   : > { %v8204_v30 = vmul.f32 %v8188_v27, %v8076_v10 }
0x266a   : > { %v8202_v52 = vmul.f32 %v8186_v46, %v8074_v13 }
0x266b   : > { %v8231_v58 = vpack.c.bf16 %v8204_v30, %v8203_v59 }
0x266c   : > { %v8230_v6 = vpack.c.bf16 %v8202_v52, %v8201_v15 }
0x266e   : > { %10259 = vmatprep.mubr.bf16.mxu1 %v8230_v6 }
0x266f   : > { %10260 = vmatmul.mubr.bf16.gmra.mrb[184].mxu1 %v8231_v58  ;;  %v15273_v58 = vld [vmem:[%s15553_s11 + $0x1] ss:$0 sm:$0xff] }
0x2689   : > { %v10233_v45 = vpop.f32.mrb[188].mxu0 }
0x268a   : > { %v8059_v38 = vadd.f32 %v10233_v45, %v15252_v36  ;;  %v8050_v4 = vpop.f32.mrb[189].mxu0  ;;  %v11193_v45 = vld [vmem:[%s11376_s27 + $0x8] sm:$0x3f] }
0x268b   : > { %v8051_v34 = vadd.f32 %v15252_v36, %v8050_v4  ;;  %v10234_v21 = vpop.f32.mrb[190].mxu0 }
0x268c   : > { %v8095_v18 = vmul.f32 0.044715, %v8059_v38  ;;  %v8062_v11 = vadd.f32 %v10234_v21, %v15252_v36  ;;  %v8053_v7 = vpop.f32.mrb[191].mxu0  ;;  %v8079_v12 = vmul.f32 0.5, %v8059_v38 }
0x268d   : > { %v8093_v57 = vmul.f32 0.044715, %v8051_v34  ;;  %v8054_v5 = vadd.f32 %v15252_v36, %v8053_v7  ;;  %v8077_v10 = vmul.f32 0.5, %v8051_v34 }
0x268e   : > { %v8111_v16 = vmul.f32 %v8095_v18, %v8059_v38  ;;  %v8096_v35 = vmul.f32 0.044715, %v8062_v11  ;;  %v8080_v48 = vmul.f32 0.5, %v8062_v11 }
0x268f   : > { %v8109_v37 = vmul.f32 %v8093_v57, %v8051_v34  ;;  %v8094_v56 = vmul.f32 0.044715, %v8054_v5  ;;  %v8078_v27 = vmul.f32 0.5, %v8054_v5 }
0x2690   : > { %v8127_v33 = vmul.f32 %v8111_v16, %v8059_v38  ;;  %v8112_v3 = vmul.f32 %v8096_v35, %v8062_v11 }
0x2691   : > { %v8125_v40 = vmul.f32 %v8109_v37, %v8051_v34  ;;  %v8110_v47 = vmul.f32 %v8094_v56, %v8054_v5 }
0x2692   : > { %v8128_v8 = vmul.f32 %v8112_v3, %v8062_v11  ;;  %v8143_v49 = vadd.f32 %v8127_v33, %v8059_v38  ;;  %v16001_v38 = vld [vmem:[#allocation22_spill] sm:$0xff] }
0x2693   : > { %v8126_v61 = vmul.f32 %v8110_v47, %v8054_v5  ;;  %v8141_v28 = vadd.f32 %v8125_v40, %v8051_v34  ;;  %v8390_v4 = vrot.slane %v11193_v45, %v16001_v38 }
0x2694   : > { %v8144_v29 = vadd.f32 %v8128_v8, %v8062_v11  ;;  %v8159_v55 = vmul.f32 0.7978846, %v8143_v49 }
0x2695   : > { %v8142_v19 = vadd.f32 %v8126_v61, %v8054_v5  ;;  %v8157_v17 = vmul.f32 0.7978846, %v8141_v28 }
0x2696   : > { %v8160_v51 = vmul.f32 0.7978846, %v8144_v29  ;;  %11099 = vtanh.f32 %v8159_v55 }
0x2697   : > { %v8158_v41 = vmul.f32 0.7978846, %v8142_v19  ;;  %11101 = vtanh.f32 %v8157_v17 }
0x2698   : > { %11103 = vtanh.f32 %v8160_v51 }
0x2699   : > { %11105 = vtanh.f32 %v8158_v41 }
0x26a0   : > { %v11100_v36 = vpop.eup %11099 }
0x26a1   : > { %v11102_v53 = vpop.eup %11101  ;;  %v8191_v31 = vadd.f32 1.0, %v11100_v36 }
0x26a2   : > { %v11104_v54 = vpop.eup %11103  ;;  %v8189_v0 = vadd.f32 1.0, %v11102_v53 }
0x26a3   : > { %v11106_v63 = vpop.eup %11105  ;;  %v8192_v23 = vadd.f32 1.0, %v11104_v54  ;;  %v8207_v13 = vmul.f32 %v8191_v31, %v8079_v12 }
0x26a4   : > { %v8190_v25 = vadd.f32 1.0, %v11106_v63  ;;  %v8205_v59 = vmul.f32 %v8189_v0, %v8077_v10  ;;  %v11194_v10 = vld [vmem:[%s11376_s27 + $0x18] sm:$0x3f] }
0x26a5   : > { %v8208_v46 = vmul.f32 %v8192_v23, %v8080_v48 }
0x26a6   : > { %v8206_v30 = vmul.f32 %v8190_v25, %v8078_v27 }
0x26a7   : > { %v8233_v15 = vpack.c.bf16 %v8208_v46, %v8207_v13 }
0x26a8   : > { %v8232_v52 = vpack.c.bf16 %v8206_v30, %v8205_v59 }
0x26aa   : > { %10263 = vmatprep.mubr.bf16.mxu1 %v8232_v52 }
0x26ab   : > { %10264 = vmatmul.mubr.bf16.gmra.mrb[188].mxu1 %v8233_v15 }
0x26f1   : > { %v10253_v6 = vpop.f32.mrb[176].mxu1 }
0x26f2   : > { %v8333_v34 = vadd.f32 %v10253_v6, %v15273_v58  ;;  %v8324_v21 = vpop.f32.mrb[177].mxu1 }
0x26f3   : > { %v8325_v18 = vadd.f32 %v15273_v58, %v8324_v21  ;;  %v10254_v11 = vpop.f32.mrb[178].mxu1 }
0x26f4   : > { %v8336_v7 = vadd.f32 %v10254_v11, %v15273_v58  ;;  %v8327_v57 = vpop.f32.mrb[179].mxu1  ;;  %v8397_v5 = vmul.f32 %v8390_v4, %v8333_v34 }
0x26f5   : > { %v8395_v16 = vmul.f32 %v8390_v4, %v8325_v18  ;;  %v8328_v35 = vadd.f32 %v15273_v58, %v8327_v57 }
0x26f6   : > { %v8398_v37 = vmul.f32 %v8390_v4, %v8336_v7  ;;  %v15290_v47 = vadd.f32 %v8397_v5, %v14972_v39 }
0x26f7   : > { %v8396_v56 = vmul.f32 %v8390_v4, %v8328_v35  ;;  %v15282_v33 = vadd.f32 %v8395_v16, %v14969_v32 }
0x26f8   : > { %v15295_v49 = vadd.f32 %v8398_v37, %v14983_v26  ;;  %v8435_v32 = vsel %vm552_vm0, %v15290_v47, 0.0 }
0x26f9   : > { %v8429_v3 = vsel %vm552_vm0, %v15282_v33, 0.0  ;;  %v15287_v40 = vadd.f32 %v8396_v56, %v14975_v22 }
0x26fa   : > { %8430 = vadd.xlane.f32.xlu0 %v8429_v3  ;;  %v8438_v61 = vsel %vm552_vm0, %v15295_v49, 0.0 }
0x26fb   : > { %v8432_v8 = vsel %vm552_vm0, %v15287_v40, 0.0 }
0x26fc   : > { %8433 = vadd.xlane.f32.xlu1 %v8432_v8 }
0x26fe   : > { %8436 = vadd.xlane.f32.xlu0 %v8435_v32 }
0x2700   : > { %8439 = vadd.xlane.f32.xlu1 %v8438_v61 }
0x2702   : > { %v10257_v22 = vpop.f32.mrb[180].mxu1 }
0x2703   : > { %v8349_v39 = vadd.f32 %v10257_v22, %v15273_v58  ;;  %v8340_v28 = vpop.f32.mrb[181].mxu1 }
0x2704   : > { %v8341_v29 = vadd.f32 %v15273_v58, %v8340_v28  ;;  %v10258_v55 = vpop.f32.mrb[182].mxu1 }
0x2705   : > { %v8352_v19 = vadd.f32 %v10258_v55, %v15273_v58  ;;  %v8343_v26 = vpop.f32.mrb[183].mxu1  ;;  %v8401_v17 = vmul.f32 %v8390_v4, %v8349_v39 }
0x2706   : > { %v8399_v51 = vmul.f32 %v8390_v4, %v8341_v29  ;;  %v8344_v41 = vadd.f32 %v15273_v58, %v8343_v26 }
0x2707   : > { %v8402_v36 = vmul.f32 %v8390_v4, %v8352_v19  ;;  %v15314_v63 = vadd.f32 %v8401_v17, %v15002_v14  ;;  %v8394_v14 = vrot.slane %v11194_v10, %v16001_v38 }
0x2708   : > { %v8400_v53 = vmul.f32 %v8390_v4, %v8344_v41  ;;  %v15306_v31 = vadd.f32 %v8399_v51, %v14999_v1 }
0x2709   : > { %v15319_v48 = vadd.f32 %v8402_v36, %v15010_v9  ;;  %v8447_v1 = vsel %vm552_vm0, %v15314_v63, 0.0 }
0x270a   : > { %v8441_v54 = vsel %vm552_vm0, %v15306_v31, 0.0  ;;  %v15311_v0 = vadd.f32 %v8400_v53, %v15005_v60 }
0x270b   : > { %8442 = vadd.xlane.f32.xlu0 %v8441_v54  ;;  %v8450_v23 = vsel %vm552_vm0, %v15319_v48, 0.0 }
0x270c   : > { %v8444_v12 = vsel %vm552_vm0, %v15311_v0, 0.0 }
0x270d   : > { %8445 = vadd.xlane.f32.xlu1 %v8444_v12 }
0x270f   : > { %8448 = vadd.xlane.f32.xlu0 %v8447_v1 }
0x2711   : > { %8451 = vadd.xlane.f32.xlu1 %v8450_v23 }
0x2742   : > { %v10261_v60 = vpop.f32.mrb[184].mxu1 }
0x2743   : > { %v8365_v27 = vadd.f32 %v10261_v60, %v15273_v58  ;;  %v8356_v25 = vpop.f32.mrb[185].mxu1 }
0x2744   : > { %v8357_v13 = vadd.f32 %v15273_v58, %v8356_v25  ;;  %v10262_v9 = vpop.f32.mrb[186].mxu1 }
0x2745   : > { %v8368_v46 = vadd.f32 %v10262_v9, %v15273_v58  ;;  %v8359_v59 = vpop.f32.mrb[187].mxu1  ;;  %v8405_v30 = vmul.f32 %v8394_v14, %v8365_v27 }
0x2746   : > { %v8403_v15 = vmul.f32 %v8394_v14, %v8357_v13  ;;  %v8360_v52 = vadd.f32 %v15273_v58, %v8359_v59 }
0x2747   : > { %v8406_v6 = vmul.f32 %v8394_v14, %v8368_v46  ;;  %v15340_v21 = vadd.f32 %v8405_v30, %v15031_v20 }
0x2748   : > { %v8404_v45 = vmul.f32 %v8394_v14, %v8360_v52  ;;  %v15332_v4 = vadd.f32 %v8403_v15, %v15028_v62 }
0x2749   : > { %v15345_v11 = vadd.f32 %v8406_v6, %v15039_v44  ;;  %v8459_v62 = vsel %vm552_vm0, %v15340_v21, 0.0 }
0x274a   : > { %v8453_v38 = vsel %vm552_vm0, %v15332_v4, 0.0  ;;  %v15337_v34 = vadd.f32 %v8404_v45, %v15034_v50 }
0x274b   : > { %8454 = vadd.xlane.f32.xlu0 %v8453_v38  ;;  %v8462_v7 = vsel %vm552_vm0, %v15345_v11, 0.0 }
0x274c   : > { %v8456_v18 = vsel %vm552_vm0, %v15337_v34, 0.0 }
0x274d   : > { %8457 = vadd.xlane.f32.xlu1 %v8456_v18 }
0x274f   : > { %8460 = vadd.xlane.f32.xlu0 %v8459_v62 }
0x2751   : > { %8463 = vadd.xlane.f32.xlu1 %v8462_v7 }
0x277e   : > { %v10265_v50 = vpop.f32.mrb[188].mxu1 }
0x277f   : > { %v8381_v20 = vadd.f32 %v10265_v50, %v15273_v58  ;;  %v8372_v57 = vpop.f32.mrb[189].mxu1 }
0x2780   : > { %v8373_v5 = vadd.f32 %v15273_v58, %v8372_v57  ;;  %v10266_v16 = vpop.f32.mrb[190].mxu1 }
0x2781   : > { %v8409_v35 = vmul.f32 %v8394_v14, %v8381_v20  ;;  %v8384_v44 = vadd.f32 %v10266_v16, %v15273_v58  ;;  %v8375_v37 = vpop.f32.mrb[191].mxu1  ;;  %v10402_v20 = vld [vmem:[%s15554_s12 + $0x8] sm:$0xff]  }
0x2782   : > { %v8407_v56 = vmul.f32 %v8394_v14, %v8373_v5  ;;  %v8376_v3 = vadd.f32 %v15273_v58, %v8375_v37 }
0x2783   : > { %v8410_v8 = vmul.f32 %v8394_v14, %v8384_v44  ;;  %v15364_v28 = vadd.f32 %v8409_v35, %v15058_v24 }
0x2784   : > { %v8408_v32 = vmul.f32 %v8394_v14, %v8376_v3  ;;  %v15356_v61 = vadd.f32 %v8407_v56, %v15052_v42 }
0x2785   : > { %v15369_v19 = vadd.f32 %v8410_v8, %v15069_v43 }
0x2786   : > { %v8465_v22 = vsel %vm552_vm0, %v15356_v61, 0.0  ;;  %v15361_v39 = vadd.f32 %v8408_v32, %v15061_v2  ;;  %v8471_v2 = vsel %vm552_vm0, %v15364_v28, 0.0 }
0x2787   : > { %8466 = vadd.xlane.f32.xlu0 %v8465_v22  ;;  %v8431_v29 = vpop.xlane.xlu0 %8430  ;;  %v8474_v36 = vsel %vm552_vm0, %v15369_v19, 0.0 }
0x2788   : > { %v8477_v55 = vmul.f32 0.03125, %v8431_v29  ;;  %v8468_v58 = vsel %vm552_vm0, %v15361_v39, 0.0 }
0x2789   : > { %v8434_v42 = vpop.xlane.xlu1 %8433  ;;  %8469 = vadd.xlane.f32.xlu1 %v8468_v58 }
0x278a   : > { %v15372_v26 = vsub.f32 %v15282_v33, %v8477_v55  ;;  %v8478_v17 = vmul.f32 0.03125, %v8434_v42 }
0x278b   : > { %8472 = vadd.xlane.f32.xlu0 %v8471_v2  ;;  %v8437_v24 = vpop.xlane.xlu0 %8436 }
0x278c   : > { %v15377_v51 = vsub.f32 %v15287_v40, %v8478_v17  ;;  %v8479_v41 = vmul.f32 0.03125, %v8437_v24  ;;  %v8509_v43 = vmul.f32 %v15372_v26, %v15372_v26 }
0x278d   : > { %v8440_v53 = vpop.xlane.xlu1 %8439  ;;  %8475 = vadd.xlane.f32.xlu1 %v8474_v36 }
0x278e   : > { %v15384_v33 = vsub.f32 %v15290_v47, %v8479_v41  ;;  %v8480_v54 = vmul.f32 0.03125, %v8440_v53  ;;  %v8525_v12 = vsel %vm552_vm0, %v8509_v43, 0.0  ;;  %v8510_v1 = vmul.f32 %v15377_v51, %v15377_v51 }
0x278f   : > { %8526 = vadd.xlane.f32.xlu0 %v8525_v12 }
0x2790   : > { %v15390_v40 = vsub.f32 %v15295_v49, %v8480_v54  ;;  %v8528_v23 = vsel %vm552_vm0, %v8510_v1, 0.0  ;;  %v8511_v60 = vmul.f32 %v15384_v33, %v15384_v33 }
0x2791   : > { %8529 = vadd.xlane.f32.xlu1 %v8528_v23 }
0x2792   : > { %v8531_v10 = vsel %vm552_vm0, %v8511_v60, 0.0  ;;  %v8512_v47 = vmul.f32 %v15390_v40, %v15390_v40 }
0x2793   : > { %8532 = vadd.xlane.f32.xlu0 %v8531_v10 }
0x2794   : > { %v8534_v14 = vsel %vm552_vm0, %v8512_v47, 0.0 }
0x2795   : > { %8535 = vadd.xlane.f32.xlu1 %v8534_v14 }
0x2798   : > { %v8443_v27 = vpop.xlane.xlu0 %8442 }
0x2799   : > { %v8481_v25 = vmul.f32 0.03125, %v8443_v27 }
0x279a   : > { %v8446_v13 = vpop.xlane.xlu1 %8445 }
0x279b   : > { %v15400_v49 = vsub.f32 %v15306_v31, %v8481_v25  ;;  %v8482_v9 = vmul.f32 0.03125, %v8446_v13 }
0x279c   : > { %v8449_v46 = vpop.xlane.xlu0 %8448 }
0x279d   : > { %v15403_v59 = vsub.f32 %v15311_v0, %v8482_v9  ;;  %v8483_v30 = vmul.f32 0.03125, %v8449_v46  ;;  %v8513_v15 = vmul.f32 %v15400_v49, %v15400_v49 }
0x279e   : > { %v8452_v52 = vpop.xlane.xlu1 %8451 }
0x279f   : > { %v15408_v6 = vsub.f32 %v15314_v63, %v8483_v30  ;;  %v8484_v45 = vmul.f32 0.03125, %v8452_v52  ;;  %v8537_v38 = vsel %vm552_vm0, %v8513_v15, 0.0  ;;  %v8514_v31 = vmul.f32 %v15403_v59, %v15403_v59 }
0x27a0   : > { %8538 = vadd.xlane.f32.xlu0 %v8537_v38 }
0x27a1   : > { %v15414_v18 = vsub.f32 %v15319_v48, %v8484_v45  ;;  %v8540_v0 = vsel %vm552_vm0, %v8514_v31, 0.0  ;;  %v8515_v62 = vmul.f32 %v15408_v6, %v15408_v6  ;;  %v10401_v48 = vld [vmem:[%s15554_s12] sm:$0xff]  }
0x27a2   : > { %8541 = vadd.xlane.f32.xlu1 %v8540_v0  ;;  %10267 = vmatprep.subr.bf16.mxu0 %v10401_v48 }
0x27a3   : > { %v8543_v7 = vsel %vm552_vm0, %v8515_v62, 0.0  ;;  %v8516_v63 = vmul.f32 %v15414_v18, %v15414_v18  ;;  %10268 = vmatpush3.bf16.msra.mxu0 %v10401_v48 }
0x27a4   : > { %8544 = vadd.xlane.f32.xlu0 %v8543_v7  ;;  %10269 = vmatprep.subr.bf16.mxu0 %v10402_v20  ;;  %v8427_v7 = vld [vmem:[%s15480_s24] sm:$0x3] }
0x27a5   : > { %v8546_v50 = vsel %vm552_vm0, %v8516_v63, 0.0 }
0x27a6   : > { %8547 = vadd.xlane.f32.xlu1 %v8546_v50  ;;  %v8637_v50 = vadd.f32 1.0, %v8427_v7 }
0x27a7   : > { %10270 = vmatpush3.bf16.msra.mxu0 %v10402_v20  ;;  %v16002_v20 = vld [vmem:[#allocation5_spill] sm:$0xff] }
0x27d8   : > { %v8455_v57 = vpop.xlane.xlu0 %8454 }
0x27d9   : > { %v8485_v5 = vmul.f32 0.03125, %v8455_v57  ;;  %v8642_v57 = vrot.slane %v8637_v50, %v16002_v20 }
0x27da   : > { %v8458_v16 = vpop.xlane.xlu1 %8457 }
0x27db   : > { %v15430_v35 = vsub.f32 %v15332_v4, %v8485_v5  ;;  %v8486_v44 = vmul.f32 0.03125, %v8458_v16 }
0x27dc   : > { %v8461_v37 = vpop.xlane.xlu0 %8460 }
0x27dd   : > { %v15433_v56 = vsub.f32 %v15337_v34, %v8486_v44  ;;  %v8487_v3 = vmul.f32 0.03125, %v8461_v37  ;;  %v8517_v8 = vmul.f32 %v15430_v35, %v15430_v35 }
0x27de   : > { %v8464_v32 = vpop.xlane.xlu1 %8463 }
0x27df   : > { %v15438_v22 = vsub.f32 %v15340_v21, %v8487_v3  ;;  %v8488_v29 = vmul.f32 0.03125, %v8464_v32  ;;  %v8549_v55 = vsel %vm552_vm0, %v8517_v8, 0.0  ;;  %v8518_v4 = vmul.f32 %v15433_v56, %v15433_v56  ;;  %v16003_v32 = vld [vmem:[#allocation6_spill] sm:$0xff] }
0x27e0   : > { %8550 = vadd.xlane.f32.xlu0 %v8549_v55 }
0x27e1   : > { %v15444_v58 = vsub.f32 %v15345_v11, %v8488_v29  ;;  %v8552_v34 = vsel %vm552_vm0, %v8518_v4, 0.0  ;;  %v8519_v42 = vmul.f32 %v15438_v22, %v15438_v22  ;;  %v8666_v29 = vrot.slane %v8427_v7, %v16003_v32 }
0x27e2   : > { %8553 = vadd.xlane.f32.xlu1 %v8552_v34 }
0x27e3   : > { %v8555_v17 = vsel %vm552_vm0, %v8519_v42, 0.0  ;;  %v8520_v21 = vmul.f32 %v15444_v58, %v15444_v58 }
0x27e4   : > { %8556 = vadd.xlane.f32.xlu0 %v8555_v17 }
0x27e5   : > { %v8558_v2 = vsel %vm552_vm0, %v8520_v21, 0.0 }
0x27e6   : > { %8559 = vadd.xlane.f32.xlu1 %v8558_v2 }
0x2814   : > { %v8467_v24 = vpop.xlane.xlu0 %8466 }
0x2815   : > { %v8489_v41 = vmul.f32 0.03125, %v8467_v24 }
0x2816   : > { %v8470_v36 = vpop.xlane.xlu1 %8469 }
0x2817   : > { %v15454_v11 = vsub.f32 %v15356_v61, %v8489_v41  ;;  %v8490_v43 = vmul.f32 0.03125, %v8470_v36 }
0x2818   : > { %v8473_v53 = vpop.xlane.xlu0 %8472 }
0x2819   : > { %v15457_v54 = vsub.f32 %v15361_v39, %v8490_v43  ;;  %v8491_v12 = vmul.f32 0.03125, %v8473_v53  ;;  %v8521_v1 = vmul.f32 %v15454_v11, %v15454_v11 }
0x281a   : > { %v8476_v23 = vpop.xlane.xlu1 %8475 }
0x281b   : > { %v15462_v60 = vsub.f32 %v15364_v28, %v8491_v12  ;;  %v8492_v10 = vmul.f32 0.03125, %v8476_v23  ;;  %v8561_v47 = vsel %vm552_vm0, %v8521_v1, 0.0  ;;  %v8522_v61 = vmul.f32 %v15457_v54, %v15457_v54 }
0x281c   : > { %8562 = vadd.xlane.f32.xlu0 %v8561_v47  ;;  %v8527_v14 = vpop.xlane.xlu0 %8526 }
0x281d   : > { %v15468_v39 = vsub.f32 %v15369_v19, %v8492_v10  ;;  %v8573_v27 = vmul.f32 0.03125, %v8527_v14  ;;  %v8564_v25 = vsel %vm552_vm0, %v8522_v61, 0.0  ;;  %v8523_v13 = vmul.f32 %v15462_v60, %v15462_v60 }
0x281e   : > { %8565 = vadd.xlane.f32.xlu1 %v8564_v25  ;;  %v8530_v28 = vpop.xlane.xlu1 %8529 }
0x281f   : > { %v8589_v9 = vadd.f32 1e-06, %v8573_v27  ;;  %v8574_v46 = vmul.f32 0.03125, %v8530_v28  ;;  %v8567_v30 = vsel %vm552_vm0, %v8523_v13, 0.0  ;;  %v8524_v15 = vmul.f32 %v15468_v39, %v15468_v39 }
0x2820   : > { %8568 = vadd.xlane.f32.xlu0 %v8567_v30  ;;  %v8533_v52 = vpop.xlane.xlu0 %8532 }
0x2821   : > { %11107 = vrsqrt.f32 %v8589_v9  ;;  %v8590_v19 = vadd.f32 1e-06, %v8574_v46  ;;  %v8575_v45 = vmul.f32 0.03125, %v8533_v52  ;;  %v8570_v38 = vsel %vm552_vm0, %v8524_v15, 0.0 }
0x2822   : > { %8571 = vadd.xlane.f32.xlu1 %v8570_v38  ;;  %v8536_v31 = vpop.xlane.xlu1 %8535 }
0x2823   : > { %11109 = vrsqrt.f32 %v8590_v19  ;;  %v8591_v0 = vadd.f32 1e-06, %v8575_v45  ;;  %v8576_v62 = vmul.f32 0.03125, %v8536_v31 }
0x2825   : > { %11111 = vrsqrt.f32 %v8591_v0  ;;  %v8592_v63 = vadd.f32 1e-06, %v8576_v62 }
0x2827   : > { %11113 = vrsqrt.f32 %v8592_v63 }
0x282b   : > { %v11108_v48 = vpop.eup %11107 }
0x282c   : > { %v8621_v5 = vmul.f32 %v11108_v48, %v15372_v26 }
0x282d   : > { %v11110_v16 = vpop.eup %11109  ;;  %v8539_v44 = vpop.xlane.xlu0 %8538 }
0x282e   : > { %v8622_v37 = vmul.f32 %v11110_v16, %v15377_v51  ;;  %v8577_v3 = vmul.f32 0.03125, %v8539_v44  ;;  %v8647_v4 = vmul.f32 %v8642_v57, %v8621_v5 }
0x282f   : > { %v11112_v8 = vpop.eup %11111  ;;  %v8542_v55 = vpop.xlane.xlu1 %8541 }
0x2830   : > { %v8623_v34 = vmul.f32 %v11112_v8, %v15384_v33  ;;  %v8593_v42 = vadd.f32 1e-06, %v8577_v3  ;;  %v8578_v17 = vmul.f32 0.03125, %v8542_v55  ;;  %v8648_v21 = vmul.f32 %v8642_v57, %v8622_v37  ;;  %v8428_v8 = vld [vmem:[%s15480_s24 + $0x2] sm:$0x3] }
0x2831   : > { %v11114_v2 = vpop.eup %11113  ;;  %v8545_v24 = vpop.xlane.xlu0 %8544  ;;  %v8671_v53 = vadd.f32 %v8666_v29, %v8647_v4  ;;  %v8638_v55 = vadd.f32 1.0, %v8428_v8 }
0x2832   : > { %v8649_v41 = vmul.f32 %v8642_v57, %v8623_v34  ;;  %v8624_v26 = vmul.f32 %v11114_v2, %v15390_v40  ;;  %11115 = vrsqrt.f32 %v8593_v42  ;;  %v8594_v36 = vadd.f32 1e-06, %v8578_v17 }
0x2833   : > { %v8579_v43 = vmul.f32 0.03125, %v8545_v24  ;;  %v8548_v51 = vpop.xlane.xlu1 %8547  ;;  %v8672_v12 = vadd.f32 %v8666_v29, %v8648_v21  ;;  %v8646_v4 = vrot.slane %v8638_v55, %v16002_v20  ;;  %v8670_v24 = vrot.slane %v8428_v8, %v16003_v32 }
0x2834   : > { %v8650_v1 = vmul.f32 %v8642_v57, %v8624_v26  ;;  %11117 = vrsqrt.f32 %v8594_v36  ;;  %v8580_v23 = vmul.f32 0.03125, %v8548_v51  ;;  %v8673_v33 = vadd.f32 %v8666_v29, %v8649_v41 }
0x2835   : > { %v8595_v10 = vadd.f32 1e-06, %v8579_v43  ;;  %v8691_v47 = vpack.c.bf16 %v8672_v12, %v8671_v53 }
0x2836   : > { %v8674_v61 = vadd.f32 %v8666_v29, %v8650_v1  ;;  %v8596_v14 = vadd.f32 1e-06, %v8580_v23 }
0x2837   : > { %11119 = vrsqrt.f32 %v8595_v10  ;;  %10271 = vmatprep.mubr.msk.bf16.mxu0 %vm552_vm0, %v8691_v47 }
0x2838   : > { %11121 = vrsqrt.f32 %v8596_v14  ;;  %v8692_v27 = vpack.c.bf16 %v8674_v61, %v8673_v33 }
0x283a   : > { %10272 = vmatmul.mubr.msk.bf16.vlgmr.msra.gmra.mrb[192].mxu0 %vm552_vm0, %v8692_v27 }
0x283c   : > { %v11116_v40 = vpop.eup %11115 }
0x283d   : > { %v8625_v25 = vmul.f32 %v11116_v40, %v15400_v49 }
0x283e   : > { %v11118_v13 = vpop.eup %11117 }
0x283f   : > { %v8626_v28 = vmul.f32 %v11118_v13, %v15403_v59  ;;  %v8651_v9 = vmul.f32 %v8642_v57, %v8625_v25 }
0x2841   : > { %v11120_v46 = vpop.eup %11119  ;;  %v8652_v30 = vmul.f32 %v8642_v57, %v8626_v28  ;;  %v8675_v45 = vadd.f32 %v8666_v29, %v8651_v9 }
0x2842   : > { %v11122_v15 = vpop.eup %11121  ;;  %v8627_v52 = vmul.f32 %v11120_v46, %v15408_v6 }
0x2843   : > { %v8628_v19 = vmul.f32 %v11122_v15, %v15414_v18  ;;  %v8676_v38 = vadd.f32 %v8666_v29, %v8652_v30 }
0x2844   : > { %v8653_v31 = vmul.f32 %v8642_v57, %v8627_v52 }
0x2845   : > { %v8693_v0 = vpack.c.bf16 %v8676_v38, %v8675_v45  ;;  %v8654_v62 = vmul.f32 %v8642_v57, %v8628_v19 }
0x2846   : > { %v8677_v7 = vadd.f32 %v8666_v29, %v8653_v31 }
0x2847   : > { %10275 = vmatprep.mubr.msk.bf16.mxu0 %vm552_vm0, %v8693_v0  ;;  %v8678_v49 = vadd.f32 %v8666_v29, %v8654_v62 }
0x2849   : > { %v8694_v63 = vpack.c.bf16 %v8678_v49, %v8677_v7 }
0x284b   : > { %10276 = vmatmul.mubr.msk.bf16.gmra.mrb[196].mxu0 %vm552_vm0, %v8694_v63 }
0x286d   : > { %v8551_v59 = vpop.xlane.xlu0 %8550 }
0x286e   : > { %v8581_v50 = vmul.f32 0.03125, %v8551_v59 }
0x286f   : > { %v8554_v48 = vpop.xlane.xlu1 %8553 }
0x2870   : > { %v8597_v5 = vadd.f32 1e-06, %v8581_v50  ;;  %v8582_v6 = vmul.f32 0.03125, %v8554_v48 }
0x2871   : > { %v8557_v16 = vpop.xlane.xlu0 %8556 }
0x2872   : > { %11123 = vrsqrt.f32 %v8597_v5  ;;  %v8598_v18 = vadd.f32 1e-06, %v8582_v6  ;;  %v8583_v44 = vmul.f32 0.03125, %v8557_v16 }
0x2873   : > { %v8560_v37 = vpop.xlane.xlu1 %8559 }
0x2874   : > { %11125 = vrsqrt.f32 %v8598_v18  ;;  %v8599_v57 = vadd.f32 1e-06, %v8583_v44  ;;  %v8584_v3 = vmul.f32 0.03125, %v8560_v37 }
0x2876   : > { %11127 = vrsqrt.f32 %v8599_v57  ;;  %v8600_v29 = vadd.f32 1e-06, %v8584_v3 }
0x2878   : > { %11129 = vrsqrt.f32 %v8600_v29 }
0x287c   : > { %v11124_v34 = vpop.eup %11123 }
0x287d   : > { %v8629_v42 = vmul.f32 %v11124_v34, %v15430_v35 }
0x287e   : > { %v11126_v17 = vpop.eup %11125 }
0x287f   : > { %v8630_v21 = vmul.f32 %v11126_v17, %v15433_v56  ;;  %v8655_v2 = vmul.f32 %v8646_v4, %v8629_v42 }
0x2880   : > { %v11128_v41 = vpop.eup %11127 }
0x2881   : > { %v8631_v26 = vmul.f32 %v11128_v41, %v15438_v22  ;;  %v8656_v36 = vmul.f32 %v8646_v4, %v8630_v21  ;;  %v8679_v53 = vadd.f32 %v8670_v24, %v8655_v2 }
0x2882   : > { %v11130_v43 = vpop.eup %11129 }
0x2883   : > { %v8632_v51 = vmul.f32 %v11130_v43, %v15444_v58  ;;  %v8680_v12 = vadd.f32 %v8670_v24, %v8656_v36  ;;  %v8657_v1 = vmul.f32 %v8646_v4, %v8631_v26 }
0x2885   : > { %v8695_v20 = vpack.c.bf16 %v8680_v12, %v8679_v53  ;;  %v8658_v23 = vmul.f32 %v8646_v4, %v8632_v51  ;;  %v8681_v35 = vadd.f32 %v8670_v24, %v8657_v1 }
0x2887   : > { %10279 = vmatprep.mubr.msk.bf16.mxu0 %vm552_vm0, %v8695_v20  ;;  %v8682_v10 = vadd.f32 %v8670_v24, %v8658_v23 }
0x2889   : > { %v8696_v56 = vpack.c.bf16 %v8682_v10, %v8681_v35 }
0x288b   : > { %10280 = vmatmul.mubr.msk.bf16.gmra.mrb[200].mxu0 %vm552_vm0, %v8696_v56 }
0x28a9   : > { %v8563_v32 = vpop.xlane.xlu0 %8562 }
0x28aa   : > { %v8585_v47 = vmul.f32 0.03125, %v8563_v32 }
0x28ab   : > { %v8566_v33 = vpop.xlane.xlu1 %8565 }
0x28ac   : > { %v8601_v22 = vadd.f32 1e-06, %v8585_v47  ;;  %v8586_v61 = vmul.f32 0.03125, %v8566_v33 }
0x28ad   : > { %v8569_v14 = vpop.xlane.xlu0 %8568 }
0x28ae   : > { %11131 = vrsqrt.f32 %v8601_v22  ;;  %v8602_v58 = vadd.f32 1e-06, %v8586_v61  ;;  %v8587_v27 = vmul.f32 0.03125, %v8569_v14 }
0x28af   : > { %v8572_v40 = vpop.xlane.xlu1 %8571 }
0x28b0   : > { %11133 = vrsqrt.f32 %v8602_v58  ;;  %v8603_v25 = vadd.f32 1e-06, %v8587_v27  ;;  %v8588_v13 = vmul.f32 0.03125, %v8572_v40 }
0x28b2   : > { %11135 = vrsqrt.f32 %v8603_v25  ;;  %v8604_v28 = vadd.f32 1e-06, %v8588_v13 }
0x28b4   : > { %11137 = vrsqrt.f32 %v8604_v28 }
0x28b8   : > { %v11132_v9 = vpop.eup %11131 }
0x28b9   : > { %v8633_v46 = vmul.f32 %v11132_v9, %v15454_v11 }
0x28ba   : > { %v11134_v30 = vpop.eup %11133 }
0x28bb   : > { %v8634_v15 = vmul.f32 %v11134_v30, %v15457_v54  ;;  %v8659_v52 = vmul.f32 %v8646_v4, %v8633_v46  ;;  %v9197_v54 = vld [vmem:[%s15555_s13] ss:$0 sm:$0xff] }
0x28bc   : > { %v11136_v19 = vpop.eup %11135 }
0x28bd   : > { %v8635_v45 = vmul.f32 %v11136_v19, %v15462_v60  ;;  %v8660_v38 = vmul.f32 %v8646_v4, %v8634_v15  ;;  %v8683_v62 = vadd.f32 %v8670_v24, %v8659_v52 }
0x28be   : > { %v11138_v31 = vpop.eup %11137 }
0x28bf   : > { %v8636_v0 = vmul.f32 %v11138_v31, %v15468_v39  ;;  %v8684_v7 = vadd.f32 %v8670_v24, %v8660_v38  ;;  %v8661_v49 = vmul.f32 %v8646_v4, %v8635_v45 }
0x28c1   : > { %v8697_v63 = vpack.c.bf16 %v8684_v7, %v8683_v62  ;;  %v8662_v59 = vmul.f32 %v8646_v4, %v8636_v0  ;;  %v8685_v50 = vadd.f32 %v8670_v24, %v8661_v49 }
0x28c3   : > { %10283 = vmatprep.mubr.msk.bf16.mxu0 %vm552_vm0, %v8697_v63  ;;  %v8686_v11 = vadd.f32 %v8670_v24, %v8662_v59 }
0x28c5   : > { %v8698_v48 = vpack.c.bf16 %v8686_v11, %v8685_v50 }
0x28c7   : > { %10284 = vmatmul.mubr.msk.bf16.gmra.mrb[204].mxu0 %vm552_vm0, %v8698_v48 }
0x290d   : > { %v10273_v60 = vpop.f32.mrb[192].mxu0 }
0x290e   : > { %v8785_v39 = vadd.f32 %v10273_v60, %v9197_v54  ;;  %v8776_v5 = vpop.f32.mrb[193].mxu0 }
0x290f   : > { %v8777_v6 = vadd.f32 %v9197_v54, %v8776_v5  ;;  %v10274_v16 = vpop.f32.mrb[194].mxu0 }
0x2910   : > { %8841 = vst [vmem:[%s15521_s25 + $0x10] sm:$0xff] %v8785_v39  ;;  %v8788_v18 = vadd.f32 %v10274_v16, %v9197_v54  ;;  %v8779_v44 = vpop.f32.mrb[195].mxu0 }
0x2911   : > { %8839 = vst [vmem:[%s15521_s25] sm:$0xff] %v8777_v6  ;;  %v8780_v37 = vadd.f32 %v9197_v54, %v8779_v44 }
0x2912   : > { %8842 = vst [vmem:[%s15521_s25 + $0x18] sm:$0xff] %v8788_v18 }
0x2913   : > { %8840 = vst [vmem:[%s15521_s25 + $0x8] sm:$0xff] %v8780_v37 }
0x291e   : > { %v10277_v57 = vpop.f32.mrb[196].mxu0 }
0x291f   : > { %v8801_v3 = vadd.f32 %v10277_v57, %v9197_v54  ;;  %v8792_v8 = vpop.f32.mrb[197].mxu0 }
0x2920   : > { %v8793_v29 = vadd.f32 %v9197_v54, %v8792_v8  ;;  %v10278_v55 = vpop.f32.mrb[198].mxu0 }
0x2921   : > { %8845 = vst [vmem:[%s15521_s25 + $0x30] sm:$0xff] %v8801_v3  ;;  %v8804_v4 = vadd.f32 %v10278_v55, %v9197_v54  ;;  %v8795_v34 = vpop.f32.mrb[199].mxu0 }
0x2922   : > { %8843 = vst [vmem:[%s15521_s25 + $0x20] sm:$0xff] %v8793_v29  ;;  %v8796_v42 = vadd.f32 %v9197_v54, %v8795_v34 }
0x2923   : > { %8846 = vst [vmem:[%s15521_s25 + $0x38] sm:$0xff] %v8804_v4 }
0x2924   : > { %8844 = vst [vmem:[%s15521_s25 + $0x28] sm:$0xff] %v8796_v42 }
0x295e   : > { %v10281_v17 = vpop.f32.mrb[200].mxu0 }
0x295f   : > { %v8817_v21 = vadd.f32 %v10281_v17, %v9197_v54  ;;  %v8808_v2 = vpop.f32.mrb[201].mxu0 }
0x2960   : > { %v8809_v24 = vadd.f32 %v9197_v54, %v8808_v2  ;;  %v10282_v41 = vpop.f32.mrb[202].mxu0 }
0x2961   : > { %8849 = vst [vmem:[%s15521_s25 + $0x50] sm:$0xff] %v8817_v21  ;;  %v8820_v26 = vadd.f32 %v10282_v41, %v9197_v54  ;;  %v8811_v36 = vpop.f32.mrb[203].mxu0 }
0x2962   : > { %8847 = vst [vmem:[%s15521_s25 + $0x40] sm:$0xff] %v8809_v24  ;;  %v8812_v43 = vadd.f32 %v9197_v54, %v8811_v36 }
0x2963   : > { %8850 = vst [vmem:[%s15521_s25 + $0x58] sm:$0xff] %v8820_v26 }
0x2964   : > { %8848 = vst [vmem:[%s15521_s25 + $0x48] sm:$0xff] %v8812_v43 }
0x299a   : > { %v10285_v51 = vpop.f32.mrb[204].mxu0 }
0x299b   : > { %v8833_v53 = vadd.f32 %v10285_v51, %v9197_v54  ;;  %v8824_v12 = vpop.f32.mrb[205].mxu0 }
0x299c   : > { %v8825_v1 = vadd.f32 %v9197_v54, %v8824_v12  ;;  %v10286_v20 = vpop.f32.mrb[206].mxu0 }
0x299d   : > { %8853 = vst [vmem:[%s15521_s25 + $0x70] sm:$0xff] %v8833_v53  ;;  %v8836_v23 = vadd.f32 %v10286_v20, %v9197_v54  ;;  %v8827_v35 = vpop.f32.mrb[207].mxu0 }
0x299e   : > { %8851 = vst [vmem:[%s15521_s25 + $0x60] sm:$0xff] %v8825_v1  ;;  %v8828_v10 = vadd.f32 %v9197_v54, %v8827_v35 }
0x299f   : > { %8854 = vst [vmem:[%s15521_s25 + $0x78] sm:$0xff] %v8836_v23 }
0x29a0   : > { %8852 = vst [vmem:[%s15521_s25 + $0x68] sm:$0xff] %v8828_v10 }
0x29a1 PF: > { %s24_s29 = sadd.s32 1, %s11201_s29  }
0x29a2   : > { %p21_p4 = scmp.ge.s32.totalorder %s24_s29, 4  }
0x29a4   :  { %23 = sbr.rel (!%p21_p4) target bundleno = 3 (0x3), region = 120 }

</bundles_post_ra>
